<compile_context>
chip_gen: v5e
topology: v5e:2x2
jax: 0.10.0
libtpu: 0.0.40
codegen_flags: <defaults>
</compile_context>

<pallas_src>
import functools
import math

import jax
import jax.numpy as jnp
from jax.experimental import pallas as pl
from jax.experimental.pallas import tpu as pltpu

_MM_DTYPE = jnp.bfloat16            # MXU operand dtype (f32 accumulation)
_WHOLE_VMEM = pl.BlockSpec(memory_space=pltpu.MemorySpace.VMEM)


def _round_up(x, m):
    return ((x + m - 1) // m) * m


# ----------------------------- in-kernel helpers -----------------------------

def _mm(a, b):
    """MXU matmul: bf16 operands, f32 accumulation."""
    return jnp.dot(a.astype(_MM_DTYPE), b.astype(_MM_DTYPE),
                   preferred_element_type=jnp.float32)


def _layer_norm(x, gamma, beta, eps):
    mu = jnp.mean(x, axis=-1, keepdims=True)
    var = jnp.mean(jnp.square(x - mu), axis=-1, keepdims=True)
    return (x - mu) * jax.lax.rsqrt(var + eps) * gamma + beta


def _mha(x, score_bias, w_in, b_in, wo, bo, num_heads):
    """Batched nn.MultiheadAttention (batch_first, eval) over a molecule tile.

    x:          (BT, S, D) f32 activations
    score_bias: (BT, 1, S) additive key-padding bias (0 / -1e30) or None
    w_in:       (H, 3, D, hd) bf16 per-head q/k/v projection weights
    b_in:       (H, 3, 1, hd) f32 per-head q/k/v biases
    wo:         (D, D) bf16 output projection, bo: (1, D) f32
    """
    BT, S, D = x.shape
    hd = D // num_heads
    scale = 1.0 / math.sqrt(hd)

    x2 = x.reshape(BT * S, D).astype(_MM_DTYPE)       # cast once for all heads
    heads = []
    for h in range(num_heads):                        # static unroll, VMEM-resident
        q = (jnp.dot(x2, w_in[h, 0], preferred_element_type=jnp.float32)
             + b_in[h, 0]).reshape(BT, S, hd)
        k = (jnp.dot(x2, w_in[h, 1], preferred_element_type=jnp.float32)
             + b_in[h, 1]).reshape(BT, S, hd)
        v = (jnp.dot(x2, w_in[h, 2], preferred_element_type=jnp.float32)
             + b_in[h, 2]).reshape(BT, S, hd)
        # Batched scores over the molecule tile: (BT, S, S)
        s = jnp.einsum('bqd,bkd->bqk', q.astype(_MM_DTYPE), k.astype(_MM_DTYPE),
                       preferred_element_type=jnp.float32) * scale
        if score_bias is not None:
            s = s + score_bias                        # key_padding_mask semantics
        s = s - jnp.max(s, axis=-1, keepdims=True)
        p = jnp.exp(s)
        p = p * pl.reciprocal(jnp.sum(p, axis=-1, keepdims=True), approx=True)
        o = jnp.einsum('bqk,bkd->bqd', p.astype(_MM_DTYPE), v.astype(_MM_DTYPE),
                       preferred_element_type=jnp.float32)
        heads.append(o.astype(_MM_DTYPE))             # keep narrow heads in bf16
    # One lane-concat + ONE (BT*S, D) x (D, D) output projection.
    ctx = jnp.concatenate(heads, axis=-1).reshape(BT * S, D)
    out = jnp.dot(ctx, wo.astype(_MM_DTYPE), preferred_element_type=jnp.float32) + bo
    return out.reshape(BT, S, D)


# --------------------------------- the kernel --------------------------------

def _encoder_kernel(
    # per-tile data (BT molecules per grid step)
    atoms_ref,     # (BT, N, 9)
    mask_ref,      # (BT, N)   1.0 = real atom
    side_ref,      # (BT, 37)  [fg(12) | scaffold(10) | mol(15)]
    # packed, VMEM-resident parameters
    pos_ref,       # (N, d)
    aw1_ref,       # (9, d/2)                       atom MLP layer 1
    w_hd_ref,      # (2, d/2, d)  [atom_w2, sc_w2]
    w_dd_ref,      # (3, d, d)    [a_wo, fg_agg_w, f_wo]
    w37_ref,       # (2, 37, d)   [fg (rows 0:12), mol (rows 22:37)]  zero-padded
    sc1_ref,       # (37, d/2)    scaffold layer 1 (rows 12:22)       zero-padded
    a_w_in_ref,    # (8, 3, d, d/8)   atomic attention per-head q/k/v weights
    a_b_in_ref,    # (8, 3, 1, d/8)
    f_w_in_ref,    # (4, 3, d, d/4)   fusion attention per-head q/k/v weights
    f_b_in_ref,    # (4, 3, 1, d/4)
    ff_w1_ref,     # (4, d, E)    final-fusion layer 1 split by level token
    ff_w2_ref,     # (E, E)
    bh_ref,        # (2, d/2)  [atom_b1, sc_b1]
    bd_ref,        # (9, d)    [atom_b2, a_bo, a_ln_g, a_ln_b, fg_b, fg_agg_b, sc_b2, mol_b, f_bo]
    be_ref,        # (4, E)    [ff_b1, ff_b2, ln_g, ln_b]
    # output
    out_ref,       # (BT, E)
    *, atomic_heads, fusion_heads, eps,
):
    BT, N, A = atoms_ref.shape
    d = pos_ref.shape[1]

    # ---- Atomic level: atom MLP + positional emb + self-attn + LN + masked mean
    atoms = atoms_ref[...].reshape(BT * N, A)
    h = jnp.maximum(_mm(atoms, aw1_ref[...]) + bh_ref[0:1, :], 0.0)      # (BT*N, d/2)
    ae = _mm(h, w_hd_ref[0]) + bd_ref[0:1, :]                            # (BT*N, d)
    ae = ae.reshape(BT, N, d) + pos_ref[...]

    valid = mask_ref[...]                                                # (BT, N)
    # Additive key-padding bias, computed once per tile (hoisted out of heads).
    score_bias = ((valid - 1.0) * 1e30)[:, None, :]                      # (BT, 1, N)

    attn = _mha(ae, score_bias, a_w_in_ref[...], a_b_in_ref[...],
                w_dd_ref[0], bd_ref[1:2, :], atomic_heads)               # (BT, N, d)
    y = _layer_norm(attn, bd_ref[2:3, :], bd_ref[3:4, :], eps)
    num = jnp.sum(y * valid[:, :, None], axis=1)                         # (BT, d)
    cnt = jnp.sum(valid, axis=1, keepdims=True)                          # (BT, 1)
    atomic_repr = num / (cnt + 1e-8)

    # ---- FG / scaffold / molecular levels (single fused "side" input,
    #      weights zero-row-padded so no lane slicing is needed)
    side = side_ref[...]                                                 # (BT, 37)
    fg_feat = _mm(side, w37_ref[0]) + bd_ref[4:5, :]
    fg_repr = _mm(fg_feat, w_dd_ref[1]) + bd_ref[5:6, :]
    sc_h = jnp.maximum(_mm(side, sc1_ref[...]) + bh_ref[1:2, :], 0.0)
    sc_repr = _mm(sc_h, w_hd_ref[1]) + bd_ref[6:7, :]
    mol_repr = jnp.maximum(_mm(side, w37_ref[1]) + bd_ref[7:8, :], 0.0)

    # ---- Cross-level fusion: 4 level tokens, 4 heads, no mask
    levels = jnp.stack([atomic_repr, fg_repr, sc_repr, mol_repr], axis=1)  # (BT, 4, d)
    fused = _mha(levels, None, f_w_in_ref[...], f_b_in_ref[...],
                 w_dd_ref[2], bd_ref[8:9, :], fusion_heads)                # (BT, 4, d)

    # final_fusion on the flattened (BT, 4d) vector, written as a sum of
    # per-level-token matmuls (no sublane->lane reshape needed).
    acc = _mm(fused[:, 0, :], ff_w1_ref[0])
    for l in range(1, 4):
        acc = acc + _mm(fused[:, l, :], ff_w1_ref[l])
    hf = jnp.maximum(acc + be_ref[0:1, :], 0.0)                          # (BT, E)
    yf = _mm(hf, ff_w2_ref[...]) + be_ref[1:2, :]
    out_ref[...] = _layer_norm(yf, be_ref[2:3, :], be_ref[3:4, :], eps).astype(out_ref.dtype)


# --------------------------------- parameters --------------------------------

def init_params(key, d, E, max_atoms, n_fg=12, n_scaffold=10, n_mol=15,
                atomic_heads=8, fusion_heads=4):
    assert E == 4 * d
    assert d % atomic_heads == 0 and d % fusion_heads == 0 and d % n_fg == 0
    keys = iter(jax.random.split(key, 64))

    def w(shape, scale=0.1):
        return jax.random.normal(next(keys), shape, jnp.float32) * scale

    def attn(num_heads):
        hd = d // num_heads
        wq, wk, wv, wo = w((d, d)), w((d, d)), w((d, d)), w((d, d))
        bq, bk, bv, bo = w((d,)), w((d,)), w((d,)), w((d,))
        w_in = jnp.stack([jnp.stack([m[:, h * hd:(h + 1) * hd] for m in (wq, wk, wv)])
                          for h in range(num_heads)])                  # (H, 3, d, hd)
        b_in = jnp.stack([jnp.stack([b[h * hd:(h + 1) * hd][None, :] for b in (bq, bk, bv)])
                          for h in range(num_heads)])                  # (H, 3, 1, hd)
        return w_in, b_in, wo, bo

    # AtomicLevelEncoder: Linear(9, d/2) -> ReLU -> [Dropout] -> Linear(d/2, d)
    atom_w1, atom_b1 = w((9, d // 2)), w((d // 2,))
    atom_w2, atom_b2 = w((d // 2, d)), w((d,))
    pos = w((max_atoms, d))
    a_w_in, a_b_in, a_wo, a_bo = attn(atomic_heads)
    a_ln_g, a_ln_b = jnp.ones((d,), jnp.float32), jnp.zeros((d,), jnp.float32)

    # FunctionalGroupEncoder: 12 x Linear(1, d/12) concatenated == block-diag matmul
    sub = d // n_fg
    fg_w, fg_b = w((n_fg, sub)), w((n_fg, sub))
    fg_wblk = jnp.zeros((n_fg, d), jnp.float32)
    for g in range(n_fg):
        fg_wblk = fg_wblk.at[g, g * sub:(g + 1) * sub].set(fg_w[g])
    fg_bcat = fg_b.reshape(d)
    fg_agg_w, fg_agg_b = w((d, d)), w((d,))

    # ScaffoldEncoder: Linear(10, d/2) -> ReLU -> Linear(d/2, d)
    sc_w1, sc_b1 = w((n_scaffold, d // 2)), w((d // 2,))
    sc_w2, sc_b2 = w((d // 2, d)), w((d,))

    # molecular_encoder: Linear(15, d) -> ReLU
    mol_w, mol_b = w((n_mol, d)), w((d,))

    # fusion attention (4 heads over 4 level tokens)
    f_w_in, f_b_in, f_wo, f_bo = attn(fusion_heads)

    # final_fusion: Linear(E, E) -> ReLU -> Linear(E, E); LayerNorm(E)
    ff_w1, ff_b1 = w((E, E)), w((E,))
    ff_w2, ff_b2 = w((E, E)), w((E,))
    ln_g, ln_b = jnp.ones((E,), jnp.float32), jnp.zeros((E,), jnp.float32)

    # ---- pack the 31 logical tensors into 15 kernel arguments ----------------
    n_side = n_fg + n_scaffold + n_mol
    fg37 = jnp.zeros((n_side, d), jnp.float32).at[0:n_fg].set(fg_wblk)
    sc37 = jnp.zeros((n_side, d // 2), jnp.float32).at[n_fg:n_fg + n_scaffold].set(sc_w1)
    mol37 = jnp.zeros((n_side, d), jnp.float32).at[n_fg + n_scaffold:].set(mol_w)

    mm = _MM_DTYPE
    return {
        "pos": pos,
        "atom_w1": atom_w1.astype(mm),
        "w_hd": jnp.stack([atom_w2, sc_w2]).astype(mm),
        "w_dd": jnp.stack([a_wo, fg_agg_w, f_wo]).astype(mm),
        "w37": jnp.stack([fg37, mol37]).astype(mm),
        "sc1_37": sc37.astype(mm),
        "a_w_in": a_w_in.astype(mm), "a_b_in": a_b_in,
        "f_w_in": f_w_in.astype(mm), "f_b_in": f_b_in,
        "ff_w1": ff_w1.reshape(4, d, E).astype(mm),
        "ff_w2": ff_w2.astype(mm),
        "bias_h": jnp.stack([atom_b1, sc_b1]),
        "bias_d": jnp.stack([atom_b2, a_bo, a_ln_g, a_ln_b, fg_bcat,
                             fg_agg_b, sc_b2, mol_b, f_bo]),
        "bias_e": jnp.stack([ff_b1, ff_b2, ln_g, ln_b]),
    }


# --------------------------------- forward -----------------------------------

def hierarchical_forward(params, atom_features, atom_mask, fg_counts,
                         scaffold_feats, mol_feats, *,
                         atomic_heads=8, fusion_heads=4, block_b=128):
    B, N, A = atom_features.shape
    d = params["pos"].shape[1]
    E = params["ff_w2"].shape[1]

    # Tile of BT molecules per grid step (multiple of 8 for sublane density).
    BT = int(min(block_b, _round_up(max(B, 1), 8)))
    B_pad = _round_up(B, BT)
    grid = B_pad // BT

    def pad_b(x):
        return jnp.pad(x, ((0, B_pad - B),) + ((0, 0),) * (x.ndim - 1))

    atoms = pad_b(atom_features.astype(jnp.float32))                       # (Bp, N, 9)
    mask = pad_b(atom_mask.astype(jnp.float32).reshape(B, N))              # (Bp, N)
    side = pad_b(jnp.concatenate(                                          # (Bp, 37)
        [fg_counts.astype(jnp.float32), scaffold_feats.astype(jnp.float32),
         mol_feats.astype(jnp.float32)], axis=1))
    S = side.shape[1]

    data_specs = [
        pl.BlockSpec((BT, N, A), lambda i: (i, 0, 0)),
        pl.BlockSpec((BT, N), lambda i: (i, 0)),
        pl.BlockSpec((BT, S), lambda i: (i, 0)),
    ]
    weights = (
        params["pos"][:N],
        params["atom_w1"], params["w_hd"], params["w_dd"], params["w37"],
        params["sc1_37"],
        params["a_w_in"], params["a_b_in"], params["f_w_in"], params["f_b_in"],
        params["ff_w1"], params["ff_w2"],
        params["bias_h"], params["bias_d"], params["bias_e"],
    )
    weight_specs = [_WHOLE_VMEM] * len(weights)

    out = pl.pallas_call(
        functools.partial(_encoder_kernel, atomic_heads=atomic_heads,
                          fusion_heads=fusion_heads, eps=1e-5),
        grid=(grid,),
        in_specs=data_specs + weight_specs,
        out_specs=pl.BlockSpec((BT, E), lambda i: (i, 0)),
        out_shape=jax.ShapeDtypeStruct((B_pad, E), jnp.float32),
        compiler_params=pltpu.CompilerParams(
            dimension_semantics=("parallel",),      # shard molecule tiles over TCs
            vmem_limit_bytes=32 * 1024 * 1024),     # safe on v5e/v6e/v7x
    )(atoms, mask, side, *weights)
    return out[:B]


# ----------------------------------- demo ------------------------------------

if __name__ == "__main__":
    B, N = 4, 8
    EMBED = 192                  # embed_dim; per-level dim d = 48 (div by 8, 12, 4)
    MAX_ATOMS = 16
    d = EMBED // 4

    key = jax.random.PRNGKey(0)
    kp, k1, k2, k3, k4 = jax.random.split(key, 5)
    params = init_params(kp, d, EMBED, MAX_ATOMS)

    atom_features = jax.random.normal(k1, (B, N, 9), jnp.float32)
    lengths = jnp.array([N, 5, 3, 7])
    atom_mask = (jnp.arange(N)[None, :] < lengths[:, None]).astype(jnp.float32)
    fg_counts = jax.random.randint(k2, (B, 12), 0, 4).astype(jnp.float32)
    scaffold_feats = jax.random.normal(k3, (B, 10), jnp.float32)
    mol_feats = jax.random.normal(k4, (B, 15), jnp.float32)

    fwd = jax.jit(hierarchical_forward)
    out = fwd(params, atom_features, atom_mask, fg_counts, scaffold_feats, mol_feats)
    jax.block_until_ready(out)
    assert out.shape == (B, EMBED)
    assert bool(jnp.all(jnp.isfinite(out)))
    print("KERNEL_OK")
</pallas_src>

<mosaic_0001>
module attributes {stable_mosaic.version = 11 : i64} {
  func.func @_encoder_kernel(%arg0: i32, %arg1: memref<8x8x9xf32, #tpu.memory_space<vmem>>, %arg2: memref<8x8xf32, #tpu.memory_space<vmem>>, %arg3: memref<8x37xf32, #tpu.memory_space<vmem>>, %arg4: memref<8x48xf32, #tpu.memory_space<vmem>>, %arg5: memref<9x24xbf16, #tpu.memory_space<vmem>>, %arg6: memref<2x24x48xbf16, #tpu.memory_space<vmem>>, %arg7: memref<3x48x48xbf16, #tpu.memory_space<vmem>>, %arg8: memref<2x37x48xbf16, #tpu.memory_space<vmem>>, %arg9: memref<37x24xbf16, #tpu.memory_space<vmem>>, %arg10: memref<8x3x48x6xbf16, #tpu.memory_space<vmem>>, %arg11: memref<8x3x1x6xf32, #tpu.memory_space<vmem>>, %arg12: memref<4x3x48x12xbf16, #tpu.memory_space<vmem>>, %arg13: memref<4x3x1x12xf32, #tpu.memory_space<vmem>>, %arg14: memref<4x48x192xbf16, #tpu.memory_space<vmem>>, %arg15: memref<192x192xbf16, #tpu.memory_space<vmem>>, %arg16: memref<2x24xf32, #tpu.memory_space<vmem>>, %arg17: memref<9x48xf32, #tpu.memory_space<vmem>>, %arg18: memref<4x192xf32, #tpu.memory_space<vmem>>, %arg19: memref<8x192xf32, #tpu.memory_space<vmem>>) attributes {dimension_semantics = [#tpu.dimension_semantics<parallel>], iteration_bounds = array<i64: 1>, scalar_prefetch = 0 : i64, scratch_operands = 0 : i64, tpu.core_type = #tpu.core_type<tc>, window_params = [{transform_indices = @transform_0, window_bounds = array<i64: 8, 8, 9>}, {transform_indices = @transform_1, window_bounds = array<i64: 8, 8>}, {transform_indices = @transform_2, window_bounds = array<i64: 8, 37>}, {pipeline_mode = #tpu.pipeline_mode<synchronous>, transform_indices = @transform_3, window_bounds = array<i64: 8, 48>}, {pipeline_mode = #tpu.pipeline_mode<synchronous>, transform_indices = @transform_4, window_bounds = array<i64: 9, 24>}, {pipeline_mode = #tpu.pipeline_mode<synchronous>, transform_indices = @transform_5, window_bounds = array<i64: 2, 24, 48>}, {pipeline_mode = #tpu.pipeline_mode<synchronous>, transform_indices = @transform_6, window_bounds = array<i64: 3, 48, 48>}, {pipeline_mode = #tpu.pipeline_mode<synchronous>, transform_indices = @transform_7, window_bounds = array<i64: 2, 37, 48>}, {pipeline_mode = #tpu.pipeline_mode<synchronous>, transform_indices = @transform_8, window_bounds = array<i64: 37, 24>}, {pipeline_mode = #tpu.pipeline_mode<synchronous>, transform_indices = @transform_9, window_bounds = array<i64: 8, 3, 48, 6>}, {pipeline_mode = #tpu.pipeline_mode<synchronous>, transform_indices = @transform_10, window_bounds = array<i64: 8, 3, 1, 6>}, {pipeline_mode = #tpu.pipeline_mode<synchronous>, transform_indices = @transform_11, window_bounds = array<i64: 4, 3, 48, 12>}, {pipeline_mode = #tpu.pipeline_mode<synchronous>, transform_indices = @transform_12, window_bounds = array<i64: 4, 3, 1, 12>}, {pipeline_mode = #tpu.pipeline_mode<synchronous>, transform_indices = @transform_13, window_bounds = array<i64: 4, 48, 192>}, {pipeline_mode = #tpu.pipeline_mode<synchronous>, transform_indices = @transform_14, window_bounds = array<i64: 192, 192>}, {pipeline_mode = #tpu.pipeline_mode<synchronous>, transform_indices = @transform_15, window_bounds = array<i64: 2, 24>}, {pipeline_mode = #tpu.pipeline_mode<synchronous>, transform_indices = @transform_16, window_bounds = array<i64: 9, 48>}, {pipeline_mode = #tpu.pipeline_mode<synchronous>, transform_indices = @transform_17, window_bounds = array<i64: 4, 192>}, {transform_indices = @transform_18, window_bounds = array<i64: 8, 192>}]} {
    %c0 = arith.constant 0 : index
    %c0_0 = arith.constant 0 : index
    %c0_1 = arith.constant 0 : index
    %0 = vector.load %arg1[%c0, %c0_0, %c0_1] : memref<8x8x9xf32, #tpu.memory_space<vmem>>, vector<8x8x9xf32>
    %1 = vector.shape_cast %0 : vector<8x8x9xf32> to vector<64x9xf32>
    %c0_2 = arith.constant 0 : index
    %c0_3 = arith.constant 0 : index
    %2 = vector.load %arg5[%c0_2, %c0_3] : memref<9x24xbf16, #tpu.memory_space<vmem>>, vector<9x24xbf16>
    %3 = arith.truncf %1 : vector<64x9xf32> to vector<64x9xbf16>
    %cst = arith.constant dense<0.000000e+00> : vector<64x24xf32>
    %4 = tpu.matmul %3, %2, %cst {dimension_numbers = #tpu.dot_dimension_numbers<[1], [0], [0], [1], [0, 0, 1, 1], [], []>} : vector<64x9xbf16>, vector<9x24xbf16>, vector<64x24xf32> -> vector<64x24xf32>
    %c0_4 = arith.constant 0 : index
    %c0_5 = arith.constant 0 : index
    %5 = vector.load %arg16[%c0_4, %c0_5] : memref<2x24xf32, #tpu.memory_space<vmem>>, vector<1x24xf32>
    %6 = vector.broadcast %5 : vector<1x24xf32> to vector<64x24xf32>
    %7 = arith.addf %4, %6 : vector<64x24xf32>
    %cst_6 = arith.constant 0.000000e+00 : f32
    %8 = vector.broadcast %cst_6 : f32 to vector<64x24xf32>
    %9 = arith.maximumf %7, %8 : vector<64x24xf32>
    %c0_7 = arith.constant 0 : index
    %c0_8 = arith.constant 0 : index
    %c0_9 = arith.constant 0 : index
    %10 = vector.load %arg6[%c0_7, %c0_8, %c0_9] : memref<2x24x48xbf16, #tpu.memory_space<vmem>>, vector<1x24x48xbf16>
    %11 = vector.shape_cast %10 : vector<1x24x48xbf16> to vector<24x48xbf16>
    %12 = arith.truncf %9 : vector<64x24xf32> to vector<64x24xbf16>
    %cst_10 = arith.constant dense<0.000000e+00> : vector<64x48xf32>
    %13 = tpu.matmul %12, %11, %cst_10 {dimension_numbers = #tpu.dot_dimension_numbers<[1], [0], [0], [1], [0, 0, 1, 1], [], []>} : vector<64x24xbf16>, vector<24x48xbf16>, vector<64x48xf32> -> vector<64x48xf32>
    %c0_11 = arith.constant 0 : index
    %c0_12 = arith.constant 0 : index
    %14 = vector.load %arg17[%c0_11, %c0_12] : memref<9x48xf32, #tpu.memory_space<vmem>>, vector<1x48xf32>
    %15 = vector.broadcast %14 : vector<1x48xf32> to vector<64x48xf32>
    %16 = arith.addf %13, %15 : vector<64x48xf32>
    %17 = vector.shape_cast %16 : vector<64x48xf32> to vector<8x8x48xf32>
    %c0_13 = arith.constant 0 : index
    %c0_14 = arith.constant 0 : index
    %18 = vector.load %arg4[%c0_13, %c0_14] : memref<8x48xf32, #tpu.memory_space<vmem>>, vector<8x48xf32>
    %19 = vector.shape_cast %18 : vector<8x48xf32> to vector<1x8x48xf32>
    %20 = vector.broadcast %19 : vector<1x8x48xf32> to vector<8x8x48xf32>
    %21 = arith.addf %17, %20 : vector<8x8x48xf32>
    %c0_15 = arith.constant 0 : index
    %c0_16 = arith.constant 0 : index
    %22 = vector.load %arg2[%c0_15, %c0_16] : memref<8x8xf32, #tpu.memory_space<vmem>>, vector<8x8xf32>
    %cst_17 = arith.constant 1.000000e+00 : f32
    %23 = vector.broadcast %cst_17 : f32 to vector<8x8xf32>
    %24 = arith.subf %22, %23 : vector<8x8xf32>
    %cst_18 = arith.constant 1.000000e+30 : f32
    %25 = vector.broadcast %cst_18 : f32 to vector<8x8xf32>
    %26 = arith.mulf %24, %25 : vector<8x8xf32>
    %27 = vector.shape_cast %26 : vector<8x8xf32> to vector<8x1x8xf32>
    %c0_19 = arith.constant 0 : index
    %c0_20 = arith.constant 0 : index
    %c0_21 = arith.constant 0 : index
    %c0_22 = arith.constant 0 : index
    %28 = vector.load %arg10[%c0_19, %c0_20, %c0_21, %c0_22] : memref<8x3x48x6xbf16, #tpu.memory_space<vmem>>, vector<8x3x48x6xbf16>
    %c0_23 = arith.constant 0 : index
    %c0_24 = arith.constant 0 : index
    %c0_25 = arith.constant 0 : index
    %c0_26 = arith.constant 0 : index
    %29 = vector.load %arg11[%c0_23, %c0_24, %c0_25, %c0_26] : memref<8x3x1x6xf32, #tpu.memory_space<vmem>>, vector<8x3x1x6xf32>
    %c0_27 = arith.constant 0 : index
    %c0_28 = arith.constant 0 : index
    %c0_29 = arith.constant 0 : index
    %30 = vector.load %arg7[%c0_27, %c0_28, %c0_29] : memref<3x48x48xbf16, #tpu.memory_space<vmem>>, vector<1x48x48xbf16>
    %31 = vector.shape_cast %30 : vector<1x48x48xbf16> to vector<48x48xbf16>
    %c1 = arith.constant 1 : index
    %c0_30 = arith.constant 0 : index
    %32 = vector.load %arg17[%c1, %c0_30] : memref<9x48xf32, #tpu.memory_space<vmem>>, vector<1x48xf32>
    %33 = vector.shape_cast %21 : vector<8x8x48xf32> to vector<64x48xf32>
    %34 = arith.truncf %33 : vector<64x48xf32> to vector<64x48xbf16>
    %35 = vector.extract_strided_slice %28 {offsets = [0, 0, 0, 0], sizes = [1, 1, 48, 6], strides = [1, 1, 1, 1]} : vector<8x3x48x6xbf16> to vector<1x1x48x6xbf16>
    %36 = vector.shape_cast %35 : vector<1x1x48x6xbf16> to vector<48x6xbf16>
    %cst_31 = arith.constant dense<0.000000e+00> : vector<64x6xf32>
    %37 = tpu.matmul %34, %36, %cst_31 {dimension_numbers = #tpu.dot_dimension_numbers<[1], [0], [0], [1], [0, 0, 1, 1], [], []>} : vector<64x48xbf16>, vector<48x6xbf16>, vector<64x6xf32> -> vector<64x6xf32>
    %38 = vector.extract_strided_slice %29 {offsets = [0, 0, 0, 0], sizes = [1, 1, 1, 6], strides = [1, 1, 1, 1]} : vector<8x3x1x6xf32> to vector<1x1x1x6xf32>
    %39 = vector.shape_cast %38 : vector<1x1x1x6xf32> to vector<1x6xf32>
    %40 = vector.broadcast %39 : vector<1x6xf32> to vector<64x6xf32>
    %41 = arith.addf %37, %40 : vector<64x6xf32>
    %42 = vector.shape_cast %41 : vector<64x6xf32> to vector<8x8x6xf32>
    %43 = vector.extract_strided_slice %28 {offsets = [0, 1, 0, 0], sizes = [1, 1, 48, 6], strides = [1, 1, 1, 1]} : vector<8x3x48x6xbf16> to vector<1x1x48x6xbf16>
    %44 = vector.shape_cast %43 : vector<1x1x48x6xbf16> to vector<48x6xbf16>
    %cst_32 = arith.constant dense<0.000000e+00> : vector<64x6xf32>
    %45 = tpu.matmul %34, %44, %cst_32 {dimension_numbers = #tpu.dot_dimension_numbers<[1], [0], [0], [1], [0, 0, 1, 1], [], []>} : vector<64x48xbf16>, vector<48x6xbf16>, vector<64x6xf32> -> vector<64x6xf32>
    %46 = vector.extract_strided_slice %29 {offsets = [0, 1, 0, 0], sizes = [1, 1, 1, 6], strides = [1, 1, 1, 1]} : vector<8x3x1x6xf32> to vector<1x1x1x6xf32>
    %47 = vector.shape_cast %46 : vector<1x1x1x6xf32> to vector<1x6xf32>
    %48 = vector.broadcast %47 : vector<1x6xf32> to vector<64x6xf32>
    %49 = arith.addf %45, %48 : vector<64x6xf32>
    %50 = vector.shape_cast %49 : vector<64x6xf32> to vector<8x8x6xf32>
    %51 = vector.extract_strided_slice %28 {offsets = [0, 2, 0, 0], sizes = [1, 1, 48, 6], strides = [1, 1, 1, 1]} : vector<8x3x48x6xbf16> to vector<1x1x48x6xbf16>
    %52 = vector.shape_cast %51 : vector<1x1x48x6xbf16> to vector<48x6xbf16>
    %cst_33 = arith.constant dense<0.000000e+00> : vector<64x6xf32>
    %53 = tpu.matmul %34, %52, %cst_33 {dimension_numbers = #tpu.dot_dimension_numbers<[1], [0], [0], [1], [0, 0, 1, 1], [], []>} : vector<64x48xbf16>, vector<48x6xbf16>, vector<64x6xf32> -> vector<64x6xf32>
    %54 = vector.extract_strided_slice %29 {offsets = [0, 2, 0, 0], sizes = [1, 1, 1, 6], strides = [1, 1, 1, 1]} : vector<8x3x1x6xf32> to vector<1x1x1x6xf32>
    %55 = vector.shape_cast %54 : vector<1x1x1x6xf32> to vector<1x6xf32>
    %56 = vector.broadcast %55 : vector<1x6xf32> to vector<64x6xf32>
    %57 = arith.addf %53, %56 : vector<64x6xf32>
    %58 = vector.shape_cast %57 : vector<64x6xf32> to vector<8x8x6xf32>
    %59 = arith.truncf %42 : vector<8x8x6xf32> to vector<8x8x6xbf16>
    %60 = arith.truncf %50 : vector<8x8x6xf32> to vector<8x8x6xbf16>
    "tpu.trace_start"() <{level = 10 : i32, message = "bqd,bkd->bqk"}> : () -> ()
    %cst_34 = arith.constant dense<0.000000e+00> : vector<8x8x8xf32>
    %61 = tpu.matmul %59, %60, %cst_34 {dimension_numbers = #tpu.dot_dimension_numbers<[2], [2], [1], [1], [0, 0, 0, 1, 1, 1], [0], [0]>} : vector<8x8x6xbf16>, vector<8x8x6xbf16>, vector<8x8x8xf32> -> vector<8x8x8xf32>
    "tpu.trace_stop"() : () -> ()
    %cst_35 = arith.constant 0.408248305 : f32
    %62 = vector.broadcast %cst_35 : f32 to vector<8x8x8xf32>
    %63 = arith.mulf %61, %62 : vector<8x8x8xf32>
    %64 = vector.broadcast %27 : vector<8x1x8xf32> to vector<8x8x8xf32>
    %65 = arith.addf %63, %64 : vector<8x8x8xf32>
    %cst_36 = arith.constant dense<0xFF800000> : vector<8x8xf32>
    %66 = vector.multi_reduction <maximumf>, %65, %cst_36 [2] : vector<8x8x8xf32> to vector<8x8xf32>
    %67 = vector.shape_cast %66 : vector<8x8xf32> to vector<8x8x1xf32>
    %68 = vector.broadcast %67 : vector<8x8x1xf32> to vector<8x8x8xf32>
    %69 = arith.subf %65, %68 : vector<8x8x8xf32>
    %70 = math.exp %69 : vector<8x8x8xf32>
    %cst_37 = arith.constant dense<0.000000e+00> : vector<8x8xf32>
    %71 = vector.multi_reduction <add>, %70, %cst_37 [2] : vector<8x8x8xf32> to vector<8x8xf32>
    %72 = vector.shape_cast %71 : vector<8x8xf32> to vector<8x8x1xf32>
    %73 = tpu.reciprocal %72 {approx = true} : vector<8x8x1xf32> -> vector<8x8x1xf32>
    %74 = vector.broadcast %73 : vector<8x8x1xf32> to vector<8x8x8xf32>
    %75 = arith.mulf %70, %74 : vector<8x8x8xf32>
    %76 = arith.truncf %75 : vector<8x8x8xf32> to vector<8x8x8xbf16>
    %77 = arith.truncf %58 : vector<8x8x6xf32> to vector<8x8x6xbf16>
    "tpu.trace_start"() <{level = 10 : i32, message = "bqk,bkd->bqd"}> : () -> ()
    %cst_38 = arith.constant dense<0.000000e+00> : vector<8x8x6xf32>
    %78 = tpu.matmul %76, %77, %cst_38 {dimension_numbers = #tpu.dot_dimension_numbers<[2], [1], [1], [2], [0, 0, 0, 1, 1, 2], [0], [0]>} : vector<8x8x8xbf16>, vector<8x8x6xbf16>, vector<8x8x6xf32> -> vector<8x8x6xf32>
    "tpu.trace_stop"() : () -> ()
    %79 = arith.truncf %78 : vector<8x8x6xf32> to vector<8x8x6xbf16>
    %80 = vector.extract_strided_slice %28 {offsets = [1, 0, 0, 0], sizes = [1, 1, 48, 6], strides = [1, 1, 1, 1]} : vector<8x3x48x6xbf16> to vector<1x1x48x6xbf16>
    %81 = vector.shape_cast %80 : vector<1x1x48x6xbf16> to vector<48x6xbf16>
    %cst_39 = arith.constant dense<0.000000e+00> : vector<64x6xf32>
    %82 = tpu.matmul %34, %81, %cst_39 {dimension_numbers = #tpu.dot_dimension_numbers<[1], [0], [0], [1], [0, 0, 1, 1], [], []>} : vector<64x48xbf16>, vector<48x6xbf16>, vector<64x6xf32> -> vector<64x6xf32>
    %83 = vector.extract_strided_slice %29 {offsets = [1, 0, 0, 0], sizes = [1, 1, 1, 6], strides = [1, 1, 1, 1]} : vector<8x3x1x6xf32> to vector<1x1x1x6xf32>
    %84 = vector.shape_cast %83 : vector<1x1x1x6xf32> to vector<1x6xf32>
    %85 = vector.broadcast %84 : vector<1x6xf32> to vector<64x6xf32>
    %86 = arith.addf %82, %85 : vector<64x6xf32>
    %87 = vector.shape_cast %86 : vector<64x6xf32> to vector<8x8x6xf32>
    %88 = vector.extract_strided_slice %28 {offsets = [1, 1, 0, 0], sizes = [1, 1, 48, 6], strides = [1, 1, 1, 1]} : vector<8x3x48x6xbf16> to vector<1x1x48x6xbf16>
    %89 = vector.shape_cast %88 : vector<1x1x48x6xbf16> to vector<48x6xbf16>
    %cst_40 = arith.constant dense<0.000000e+00> : vector<64x6xf32>
    %90 = tpu.matmul %34, %89, %cst_40 {dimension_numbers = #tpu.dot_dimension_numbers<[1], [0], [0], [1], [0, 0, 1, 1], [], []>} : vector<64x48xbf16>, vector<48x6xbf16>, vector<64x6xf32> -> vector<64x6xf32>
    %91 = vector.extract_strided_slice %29 {offsets = [1, 1, 0, 0], sizes = [1, 1, 1, 6], strides = [1, 1, 1, 1]} : vector<8x3x1x6xf32> to vector<1x1x1x6xf32>
    %92 = vector.shape_cast %91 : vector<1x1x1x6xf32> to vector<1x6xf32>
    %93 = vector.broadcast %92 : vector<1x6xf32> to vector<64x6xf32>
    %94 = arith.addf %90, %93 : vector<64x6xf32>
    %95 = vector.shape_cast %94 : vector<64x6xf32> to vector<8x8x6xf32>
    %96 = vector.extract_strided_slice %28 {offsets = [1, 2, 0, 0], sizes = [1, 1, 48, 6], strides = [1, 1, 1, 1]} : vector<8x3x48x6xbf16> to vector<1x1x48x6xbf16>
    %97 = vector.shape_cast %96 : vector<1x1x48x6xbf16> to vector<48x6xbf16>
    %cst_41 = arith.constant dense<0.000000e+00> : vector<64x6xf32>
    %98 = tpu.matmul %34, %97, %cst_41 {dimension_numbers = #tpu.dot_dimension_numbers<[1], [0], [0], [1], [0, 0, 1, 1], [], []>} : vector<64x48xbf16>, vector<48x6xbf16>, vector<64x6xf32> -> vector<64x6xf32>
    %99 = vector.extract_strided_slice %29 {offsets = [1, 2, 0, 0], sizes = [1, 1, 1, 6], strides = [1, 1, 1, 1]} : vector<8x3x1x6xf32> to vector<1x1x1x6xf32>
    %100 = vector.shape_cast %99 : vector<1x1x1x6xf32> to vector<1x6xf32>
    %101 = vector.broadcast %100 : vector<1x6xf32> to vector<64x6xf32>
    %102 = arith.addf %98, %101 : vector<64x6xf32>
    %103 = vector.shape_cast %102 : vector<64x6xf32> to vector<8x8x6xf32>
    %104 = arith.truncf %87 : vector<8x8x6xf32> to vector<8x8x6xbf16>
    %105 = arith.truncf %95 : vector<8x8x6xf32> to vector<8x8x6xbf16>
    "tpu.trace_start"() <{level = 10 : i32, message = "bqd,bkd->bqk"}> : () -> ()
    %cst_42 = arith.constant dense<0.000000e+00> : vector<8x8x8xf32>
    %106 = tpu.matmul %104, %105, %cst_42 {dimension_numbers = #tpu.dot_dimension_numbers<[2], [2], [1], [1], [0, 0, 0, 1, 1, 1], [0], [0]>} : vector<8x8x6xbf16>, vector<8x8x6xbf16>, vector<8x8x8xf32> -> vector<8x8x8xf32>
    "tpu.trace_stop"() : () -> ()
    %cst_43 = arith.constant 0.408248305 : f32
    %107 = vector.broadcast %cst_43 : f32 to vector<8x8x8xf32>
    %108 = arith.mulf %106, %107 : vector<8x8x8xf32>
    %109 = vector.broadcast %27 : vector<8x1x8xf32> to vector<8x8x8xf32>
    %110 = arith.addf %108, %109 : vector<8x8x8xf32>
    %cst_44 = arith.constant dense<0xFF800000> : vector<8x8xf32>
    %111 = vector.multi_reduction <maximumf>, %110, %cst_44 [2] : vector<8x8x8xf32> to vector<8x8xf32>
    %112 = vector.shape_cast %111 : vector<8x8xf32> to vector<8x8x1xf32>
    %113 = vector.broadcast %112 : vector<8x8x1xf32> to vector<8x8x8xf32>
    %114 = arith.subf %110, %113 : vector<8x8x8xf32>
    %115 = math.exp %114 : vector<8x8x8xf32>
    %cst_45 = arith.constant dense<0.000000e+00> : vector<8x8xf32>
    %116 = vector.multi_reduction <add>, %115, %cst_45 [2] : vector<8x8x8xf32> to vector<8x8xf32>
    %117 = vector.shape_cast %116 : vector<8x8xf32> to vector<8x8x1xf32>
    %118 = tpu.reciprocal %117 {approx = true} : vector<8x8x1xf32> -> vector<8x8x1xf32>
    %119 = vector.broadcast %118 : vector<8x8x1xf32> to vector<8x8x8xf32>
    %120 = arith.mulf %115, %119 : vector<8x8x8xf32>
    %121 = arith.truncf %120 : vector<8x8x8xf32> to vector<8x8x8xbf16>
    %122 = arith.truncf %103 : vector<8x8x6xf32> to vector<8x8x6xbf16>
    "tpu.trace_start"() <{level = 10 : i32, message = "bqk,bkd->bqd"}> : () -> ()
    %cst_46 = arith.constant dense<0.000000e+00> : vector<8x8x6xf32>
    %123 = tpu.matmul %121, %122, %cst_46 {dimension_numbers = #tpu.dot_dimension_numbers<[2], [1], [1], [2], [0, 0, 0, 1, 1, 2], [0], [0]>} : vector<8x8x8xbf16>, vector<8x8x6xbf16>, vector<8x8x6xf32> -> vector<8x8x6xf32>
    "tpu.trace_stop"() : () -> ()
    %124 = arith.truncf %123 : vector<8x8x6xf32> to vector<8x8x6xbf16>
    %125 = vector.extract_strided_slice %28 {offsets = [2, 0, 0, 0], sizes = [1, 1, 48, 6], strides = [1, 1, 1, 1]} : vector<8x3x48x6xbf16> to vector<1x1x48x6xbf16>
    %126 = vector.shape_cast %125 : vector<1x1x48x6xbf16> to vector<48x6xbf16>
    %cst_47 = arith.constant dense<0.000000e+00> : vector<64x6xf32>
    %127 = tpu.matmul %34, %126, %cst_47 {dimension_numbers = #tpu.dot_dimension_numbers<[1], [0], [0], [1], [0, 0, 1, 1], [], []>} : vector<64x48xbf16>, vector<48x6xbf16>, vector<64x6xf32> -> vector<64x6xf32>
    %128 = vector.extract_strided_slice %29 {offsets = [2, 0, 0, 0], sizes = [1, 1, 1, 6], strides = [1, 1, 1, 1]} : vector<8x3x1x6xf32> to vector<1x1x1x6xf32>
    %129 = vector.shape_cast %128 : vector<1x1x1x6xf32> to vector<1x6xf32>
    %130 = vector.broadcast %129 : vector<1x6xf32> to vector<64x6xf32>
    %131 = arith.addf %127, %130 : vector<64x6xf32>
    %132 = vector.shape_cast %131 : vector<64x6xf32> to vector<8x8x6xf32>
    %133 = vector.extract_strided_slice %28 {offsets = [2, 1, 0, 0], sizes = [1, 1, 48, 6], strides = [1, 1, 1, 1]} : vector<8x3x48x6xbf16> to vector<1x1x48x6xbf16>
    %134 = vector.shape_cast %133 : vector<1x1x48x6xbf16> to vector<48x6xbf16>
    %cst_48 = arith.constant dense<0.000000e+00> : vector<64x6xf32>
    %135 = tpu.matmul %34, %134, %cst_48 {dimension_numbers = #tpu.dot_dimension_numbers<[1], [0], [0], [1], [0, 0, 1, 1], [], []>} : vector<64x48xbf16>, vector<48x6xbf16>, vector<64x6xf32> -> vector<64x6xf32>
    %136 = vector.extract_strided_slice %29 {offsets = [2, 1, 0, 0], sizes = [1, 1, 1, 6], strides = [1, 1, 1, 1]} : vector<8x3x1x6xf32> to vector<1x1x1x6xf32>
    %137 = vector.shape_cast %136 : vector<1x1x1x6xf32> to vector<1x6xf32>
    %138 = vector.broadcast %137 : vector<1x6xf32> to vector<64x6xf32>
    %139 = arith.addf %135, %138 : vector<64x6xf32>
    %140 = vector.shape_cast %139 : vector<64x6xf32> to vector<8x8x6xf32>
    %141 = vector.extract_strided_slice %28 {offsets = [2, 2, 0, 0], sizes = [1, 1, 48, 6], strides = [1, 1, 1, 1]} : vector<8x3x48x6xbf16> to vector<1x1x48x6xbf16>
    %142 = vector.shape_cast %141 : vector<1x1x48x6xbf16> to vector<48x6xbf16>
    %cst_49 = arith.constant dense<0.000000e+00> : vector<64x6xf32>
    %143 = tpu.matmul %34, %142, %cst_49 {dimension_numbers = #tpu.dot_dimension_numbers<[1], [0], [0], [1], [0, 0, 1, 1], [], []>} : vector<64x48xbf16>, vector<48x6xbf16>, vector<64x6xf32> -> vector<64x6xf32>
    %144 = vector.extract_strided_slice %29 {offsets = [2, 2, 0, 0], sizes = [1, 1, 1, 6], strides = [1, 1, 1, 1]} : vector<8x3x1x6xf32> to vector<1x1x1x6xf32>
    %145 = vector.shape_cast %144 : vector<1x1x1x6xf32> to vector<1x6xf32>
    %146 = vector.broadcast %145 : vector<1x6xf32> to vector<64x6xf32>
    %147 = arith.addf %143, %146 : vector<64x6xf32>
    %148 = vector.shape_cast %147 : vector<64x6xf32> to vector<8x8x6xf32>
    %149 = arith.truncf %132 : vector<8x8x6xf32> to vector<8x8x6xbf16>
    %150 = arith.truncf %140 : vector<8x8x6xf32> to vector<8x8x6xbf16>
    "tpu.trace_start"() <{level = 10 : i32, message = "bqd,bkd->bqk"}> : () -> ()
    %cst_50 = arith.constant dense<0.000000e+00> : vector<8x8x8xf32>
    %151 = tpu.matmul %149, %150, %cst_50 {dimension_numbers = #tpu.dot_dimension_numbers<[2], [2], [1], [1], [0, 0, 0, 1, 1, 1], [0], [0]>} : vector<8x8x6xbf16>, vector<8x8x6xbf16>, vector<8x8x8xf32> -> vector<8x8x8xf32>
    "tpu.trace_stop"() : () -> ()
    %cst_51 = arith.constant 0.408248305 : f32
    %152 = vector.broadcast %cst_51 : f32 to vector<8x8x8xf32>
    %153 = arith.mulf %151, %152 : vector<8x8x8xf32>
    %154 = vector.broadcast %27 : vector<8x1x8xf32> to vector<8x8x8xf32>
    %155 = arith.addf %153, %154 : vector<8x8x8xf32>
    %cst_52 = arith.constant dense<0xFF800000> : vector<8x8xf32>
    %156 = vector.multi_reduction <maximumf>, %155, %cst_52 [2] : vector<8x8x8xf32> to vector<8x8xf32>
    %157 = vector.shape_cast %156 : vector<8x8xf32> to vector<8x8x1xf32>
    %158 = vector.broadcast %157 : vector<8x8x1xf32> to vector<8x8x8xf32>
    %159 = arith.subf %155, %158 : vector<8x8x8xf32>
    %160 = math.exp %159 : vector<8x8x8xf32>
    %cst_53 = arith.constant dense<0.000000e+00> : vector<8x8xf32>
    %161 = vector.multi_reduction <add>, %160, %cst_53 [2] : vector<8x8x8xf32> to vector<8x8xf32>
    %162 = vector.shape_cast %161 : vector<8x8xf32> to vector<8x8x1xf32>
    %163 = tpu.reciprocal %162 {approx = true} : vector<8x8x1xf32> -> vector<8x8x1xf32>
    %164 = vector.broadcast %163 : vector<8x8x1xf32> to vector<8x8x8xf32>
    %165 = arith.mulf %160, %164 : vector<8x8x8xf32>
    %166 = arith.truncf %165 : vector<8x8x8xf32> to vector<8x8x8xbf16>
    %167 = arith.truncf %148 : vector<8x8x6xf32> to vector<8x8x6xbf16>
    "tpu.trace_start"() <{level = 10 : i32, message = "bqk,bkd->bqd"}> : () -> ()
    %cst_54 = arith.constant dense<0.000000e+00> : vector<8x8x6xf32>
    %168 = tpu.matmul %166, %167, %cst_54 {dimension_numbers = #tpu.dot_dimension_numbers<[2], [1], [1], [2], [0, 0, 0, 1, 1, 2], [0], [0]>} : vector<8x8x8xbf16>, vector<8x8x6xbf16>, vector<8x8x6xf32> -> vector<8x8x6xf32>
    "tpu.trace_stop"() : () -> ()
    %169 = arith.truncf %168 : vector<8x8x6xf32> to vector<8x8x6xbf16>
    %170 = vector.extract_strided_slice %28 {offsets = [3, 0, 0, 0], sizes = [1, 1, 48, 6], strides = [1, 1, 1, 1]} : vector<8x3x48x6xbf16> to vector<1x1x48x6xbf16>
    %171 = vector.shape_cast %170 : vector<1x1x48x6xbf16> to vector<48x6xbf16>
    %cst_55 = arith.constant dense<0.000000e+00> : vector<64x6xf32>
    %172 = tpu.matmul %34, %171, %cst_55 {dimension_numbers = #tpu.dot_dimension_numbers<[1], [0], [0], [1], [0, 0, 1, 1], [], []>} : vector<64x48xbf16>, vector<48x6xbf16>, vector<64x6xf32> -> vector<64x6xf32>
    %173 = vector.extract_strided_slice %29 {offsets = [3, 0, 0, 0], sizes = [1, 1, 1, 6], strides = [1, 1, 1, 1]} : vector<8x3x1x6xf32> to vector<1x1x1x6xf32>
    %174 = vector.shape_cast %173 : vector<1x1x1x6xf32> to vector<1x6xf32>
    %175 = vector.broadcast %174 : vector<1x6xf32> to vector<64x6xf32>
    %176 = arith.addf %172, %175 : vector<64x6xf32>
    %177 = vector.shape_cast %176 : vector<64x6xf32> to vector<8x8x6xf32>
    %178 = vector.extract_strided_slice %28 {offsets = [3, 1, 0, 0], sizes = [1, 1, 48, 6], strides = [1, 1, 1, 1]} : vector<8x3x48x6xbf16> to vector<1x1x48x6xbf16>
    %179 = vector.shape_cast %178 : vector<1x1x48x6xbf16> to vector<48x6xbf16>
    %cst_56 = arith.constant dense<0.000000e+00> : vector<64x6xf32>
    %180 = tpu.matmul %34, %179, %cst_56 {dimension_numbers = #tpu.dot_dimension_numbers<[1], [0], [0], [1], [0, 0, 1, 1], [], []>} : vector<64x48xbf16>, vector<48x6xbf16>, vector<64x6xf32> -> vector<64x6xf32>
    %181 = vector.extract_strided_slice %29 {offsets = [3, 1, 0, 0], sizes = [1, 1, 1, 6], strides = [1, 1, 1, 1]} : vector<8x3x1x6xf32> to vector<1x1x1x6xf32>
    %182 = vector.shape_cast %181 : vector<1x1x1x6xf32> to vector<1x6xf32>
    %183 = vector.broadcast %182 : vector<1x6xf32> to vector<64x6xf32>
    %184 = arith.addf %180, %183 : vector<64x6xf32>
    %185 = vector.shape_cast %184 : vector<64x6xf32> to vector<8x8x6xf32>
    %186 = vector.extract_strided_slice %28 {offsets = [3, 2, 0, 0], sizes = [1, 1, 48, 6], strides = [1, 1, 1, 1]} : vector<8x3x48x6xbf16> to vector<1x1x48x6xbf16>
    %187 = vector.shape_cast %186 : vector<1x1x48x6xbf16> to vector<48x6xbf16>
    %cst_57 = arith.constant dense<0.000000e+00> : vector<64x6xf32>
    %188 = tpu.matmul %34, %187, %cst_57 {dimension_numbers = #tpu.dot_dimension_numbers<[1], [0], [0], [1], [0, 0, 1, 1], [], []>} : vector<64x48xbf16>, vector<48x6xbf16>, vector<64x6xf32> -> vector<64x6xf32>
    %189 = vector.extract_strided_slice %29 {offsets = [3, 2, 0, 0], sizes = [1, 1, 1, 6], strides = [1, 1, 1, 1]} : vector<8x3x1x6xf32> to vector<1x1x1x6xf32>
    %190 = vector.shape_cast %189 : vector<1x1x1x6xf32> to vector<1x6xf32>
    %191 = vector.broadcast %190 : vector<1x6xf32> to vector<64x6xf32>
    %192 = arith.addf %188, %191 : vector<64x6xf32>
    %193 = vector.shape_cast %192 : vector<64x6xf32> to vector<8x8x6xf32>
    %194 = arith.truncf %177 : vector<8x8x6xf32> to vector<8x8x6xbf16>
    %195 = arith.truncf %185 : vector<8x8x6xf32> to vector<8x8x6xbf16>
    "tpu.trace_start"() <{level = 10 : i32, message = "bqd,bkd->bqk"}> : () -> ()
    %cst_58 = arith.constant dense<0.000000e+00> : vector<8x8x8xf32>
    %196 = tpu.matmul %194, %195, %cst_58 {dimension_numbers = #tpu.dot_dimension_numbers<[2], [2], [1], [1], [0, 0, 0, 1, 1, 1], [0], [0]>} : vector<8x8x6xbf16>, vector<8x8x6xbf16>, vector<8x8x8xf32> -> vector<8x8x8xf32>
    "tpu.trace_stop"() : () -> ()
    %cst_59 = arith.constant 0.408248305 : f32
    %197 = vector.broadcast %cst_59 : f32 to vector<8x8x8xf32>
    %198 = arith.mulf %196, %197 : vector<8x8x8xf32>
    %199 = vector.broadcast %27 : vector<8x1x8xf32> to vector<8x8x8xf32>
    %200 = arith.addf %198, %199 : vector<8x8x8xf32>
    %cst_60 = arith.constant dense<0xFF800000> : vector<8x8xf32>
    %201 = vector.multi_reduction <maximumf>, %200, %cst_60 [2] : vector<8x8x8xf32> to vector<8x8xf32>
    %202 = vector.shape_cast %201 : vector<8x8xf32> to vector<8x8x1xf32>
    %203 = vector.broadcast %202 : vector<8x8x1xf32> to vector<8x8x8xf32>
    %204 = arith.subf %200, %203 : vector<8x8x8xf32>
    %205 = math.exp %204 : vector<8x8x8xf32>
    %cst_61 = arith.constant dense<0.000000e+00> : vector<8x8xf32>
    %206 = vector.multi_reduction <add>, %205, %cst_61 [2] : vector<8x8x8xf32> to vector<8x8xf32>
    %207 = vector.shape_cast %206 : vector<8x8xf32> to vector<8x8x1xf32>
    %208 = tpu.reciprocal %207 {approx = true} : vector<8x8x1xf32> -> vector<8x8x1xf32>
    %209 = vector.broadcast %208 : vector<8x8x1xf32> to vector<8x8x8xf32>
    %210 = arith.mulf %205, %209 : vector<8x8x8xf32>
    %211 = arith.truncf %210 : vector<8x8x8xf32> to vector<8x8x8xbf16>
    %212 = arith.truncf %193 : vector<8x8x6xf32> to vector<8x8x6xbf16>
    "tpu.trace_start"() <{level = 10 : i32, message = "bqk,bkd->bqd"}> : () -> ()
    %cst_62 = arith.constant dense<0.000000e+00> : vector<8x8x6xf32>
    %213 = tpu.matmul %211, %212, %cst_62 {dimension_numbers = #tpu.dot_dimension_numbers<[2], [1], [1], [2], [0, 0, 0, 1, 1, 2], [0], [0]>} : vector<8x8x8xbf16>, vector<8x8x6xbf16>, vector<8x8x6xf32> -> vector<8x8x6xf32>
    "tpu.trace_stop"() : () -> ()
    %214 = arith.truncf %213 : vector<8x8x6xf32> to vector<8x8x6xbf16>
    %215 = vector.extract_strided_slice %28 {offsets = [4, 0, 0, 0], sizes = [1, 1, 48, 6], strides = [1, 1, 1, 1]} : vector<8x3x48x6xbf16> to vector<1x1x48x6xbf16>
    %216 = vector.shape_cast %215 : vector<1x1x48x6xbf16> to vector<48x6xbf16>
    %cst_63 = arith.constant dense<0.000000e+00> : vector<64x6xf32>
    %217 = tpu.matmul %34, %216, %cst_63 {dimension_numbers = #tpu.dot_dimension_numbers<[1], [0], [0], [1], [0, 0, 1, 1], [], []>} : vector<64x48xbf16>, vector<48x6xbf16>, vector<64x6xf32> -> vector<64x6xf32>
    %218 = vector.extract_strided_slice %29 {offsets = [4, 0, 0, 0], sizes = [1, 1, 1, 6], strides = [1, 1, 1, 1]} : vector<8x3x1x6xf32> to vector<1x1x1x6xf32>
    %219 = vector.shape_cast %218 : vector<1x1x1x6xf32> to vector<1x6xf32>
    %220 = vector.broadcast %219 : vector<1x6xf32> to vector<64x6xf32>
    %221 = arith.addf %217, %220 : vector<64x6xf32>
    %222 = vector.shape_cast %221 : vector<64x6xf32> to vector<8x8x6xf32>
    %223 = vector.extract_strided_slice %28 {offsets = [4, 1, 0, 0], sizes = [1, 1, 48, 6], strides = [1, 1, 1, 1]} : vector<8x3x48x6xbf16> to vector<1x1x48x6xbf16>
    %224 = vector.shape_cast %223 : vector<1x1x48x6xbf16> to vector<48x6xbf16>
    %cst_64 = arith.constant dense<0.000000e+00> : vector<64x6xf32>
    %225 = tpu.matmul %34, %224, %cst_64 {dimension_numbers = #tpu.dot_dimension_numbers<[1], [0], [0], [1], [0, 0, 1, 1], [], []>} : vector<64x48xbf16>, vector<48x6xbf16>, vector<64x6xf32> -> vector<64x6xf32>
    %226 = vector.extract_strided_slice %29 {offsets = [4, 1, 0, 0], sizes = [1, 1, 1, 6], strides = [1, 1, 1, 1]} : vector<8x3x1x6xf32> to vector<1x1x1x6xf32>
    %227 = vector.shape_cast %226 : vector<1x1x1x6xf32> to vector<1x6xf32>
    %228 = vector.broadcast %227 : vector<1x6xf32> to vector<64x6xf32>
    %229 = arith.addf %225, %228 : vector<64x6xf32>
    %230 = vector.shape_cast %229 : vector<64x6xf32> to vector<8x8x6xf32>
    %231 = vector.extract_strided_slice %28 {offsets = [4, 2, 0, 0], sizes = [1, 1, 48, 6], strides = [1, 1, 1, 1]} : vector<8x3x48x6xbf16> to vector<1x1x48x6xbf16>
    %232 = vector.shape_cast %231 : vector<1x1x48x6xbf16> to vector<48x6xbf16>
    %cst_65 = arith.constant dense<0.000000e+00> : vector<64x6xf32>
    %233 = tpu.matmul %34, %232, %cst_65 {dimension_numbers = #tpu.dot_dimension_numbers<[1], [0], [0], [1], [0, 0, 1, 1], [], []>} : vector<64x48xbf16>, vector<48x6xbf16>, vector<64x6xf32> -> vector<64x6xf32>
    %234 = vector.extract_strided_slice %29 {offsets = [4, 2, 0, 0], sizes = [1, 1, 1, 6], strides = [1, 1, 1, 1]} : vector<8x3x1x6xf32> to vector<1x1x1x6xf32>
    %235 = vector.shape_cast %234 : vector<1x1x1x6xf32> to vector<1x6xf32>
    %236 = vector.broadcast %235 : vector<1x6xf32> to vector<64x6xf32>
    %237 = arith.addf %233, %236 : vector<64x6xf32>
    %238 = vector.shape_cast %237 : vector<64x6xf32> to vector<8x8x6xf32>
    %239 = arith.truncf %222 : vector<8x8x6xf32> to vector<8x8x6xbf16>
    %240 = arith.truncf %230 : vector<8x8x6xf32> to vector<8x8x6xbf16>
    "tpu.trace_start"() <{level = 10 : i32, message = "bqd,bkd->bqk"}> : () -> ()
    %cst_66 = arith.constant dense<0.000000e+00> : vector<8x8x8xf32>
    %241 = tpu.matmul %239, %240, %cst_66 {dimension_numbers = #tpu.dot_dimension_numbers<[2], [2], [1], [1], [0, 0, 0, 1, 1, 1], [0], [0]>} : vector<8x8x6xbf16>, vector<8x8x6xbf16>, vector<8x8x8xf32> -> vector<8x8x8xf32>
    "tpu.trace_stop"() : () -> ()
    %cst_67 = arith.constant 0.408248305 : f32
    %242 = vector.broadcast %cst_67 : f32 to vector<8x8x8xf32>
    %243 = arith.mulf %241, %242 : vector<8x8x8xf32>
    %244 = vector.broadcast %27 : vector<8x1x8xf32> to vector<8x8x8xf32>
    %245 = arith.addf %243, %244 : vector<8x8x8xf32>
    %cst_68 = arith.constant dense<0xFF800000> : vector<8x8xf32>
    %246 = vector.multi_reduction <maximumf>, %245, %cst_68 [2] : vector<8x8x8xf32> to vector<8x8xf32>
    %247 = vector.shape_cast %246 : vector<8x8xf32> to vector<8x8x1xf32>
    %248 = vector.broadcast %247 : vector<8x8x1xf32> to vector<8x8x8xf32>
    %249 = arith.subf %245, %248 : vector<8x8x8xf32>
    %250 = math.exp %249 : vector<8x8x8xf32>
    %cst_69 = arith.constant dense<0.000000e+00> : vector<8x8xf32>
    %251 = vector.multi_reduction <add>, %250, %cst_69 [2] : vector<8x8x8xf32> to vector<8x8xf32>
    %252 = vector.shape_cast %251 : vector<8x8xf32> to vector<8x8x1xf32>
    %253 = tpu.reciprocal %252 {approx = true} : vector<8x8x1xf32> -> vector<8x8x1xf32>
    %254 = vector.broadcast %253 : vector<8x8x1xf32> to vector<8x8x8xf32>
    %255 = arith.mulf %250, %254 : vector<8x8x8xf32>
    %256 = arith.truncf %255 : vector<8x8x8xf32> to vector<8x8x8xbf16>
    %257 = arith.truncf %238 : vector<8x8x6xf32> to vector<8x8x6xbf16>
    "tpu.trace_start"() <{level = 10 : i32, message = "bqk,bkd->bqd"}> : () -> ()
    %cst_70 = arith.constant dense<0.000000e+00> : vector<8x8x6xf32>
    %258 = tpu.matmul %256, %257, %cst_70 {dimension_numbers = #tpu.dot_dimension_numbers<[2], [1], [1], [2], [0, 0, 0, 1, 1, 2], [0], [0]>} : vector<8x8x8xbf16>, vector<8x8x6xbf16>, vector<8x8x6xf32> -> vector<8x8x6xf32>
    "tpu.trace_stop"() : () -> ()
    %259 = arith.truncf %258 : vector<8x8x6xf32> to vector<8x8x6xbf16>
    %260 = vector.extract_strided_slice %28 {offsets = [5, 0, 0, 0], sizes = [1, 1, 48, 6], strides = [1, 1, 1, 1]} : vector<8x3x48x6xbf16> to vector<1x1x48x6xbf16>
    %261 = vector.shape_cast %260 : vector<1x1x48x6xbf16> to vector<48x6xbf16>
    %cst_71 = arith.constant dense<0.000000e+00> : vector<64x6xf32>
    %262 = tpu.matmul %34, %261, %cst_71 {dimension_numbers = #tpu.dot_dimension_numbers<[1], [0], [0], [1], [0, 0, 1, 1], [], []>} : vector<64x48xbf16>, vector<48x6xbf16>, vector<64x6xf32> -> vector<64x6xf32>
    %263 = vector.extract_strided_slice %29 {offsets = [5, 0, 0, 0], sizes = [1, 1, 1, 6], strides = [1, 1, 1, 1]} : vector<8x3x1x6xf32> to vector<1x1x1x6xf32>
    %264 = vector.shape_cast %263 : vector<1x1x1x6xf32> to vector<1x6xf32>
    %265 = vector.broadcast %264 : vector<1x6xf32> to vector<64x6xf32>
    %266 = arith.addf %262, %265 : vector<64x6xf32>
    %267 = vector.shape_cast %266 : vector<64x6xf32> to vector<8x8x6xf32>
    %268 = vector.extract_strided_slice %28 {offsets = [5, 1, 0, 0], sizes = [1, 1, 48, 6], strides = [1, 1, 1, 1]} : vector<8x3x48x6xbf16> to vector<1x1x48x6xbf16>
    %269 = vector.shape_cast %268 : vector<1x1x48x6xbf16> to vector<48x6xbf16>
    %cst_72 = arith.constant dense<0.000000e+00> : vector<64x6xf32>
    %270 = tpu.matmul %34, %269, %cst_72 {dimension_numbers = #tpu.dot_dimension_numbers<[1], [0], [0], [1], [0, 0, 1, 1], [], []>} : vector<64x48xbf16>, vector<48x6xbf16>, vector<64x6xf32> -> vector<64x6xf32>
    %271 = vector.extract_strided_slice %29 {offsets = [5, 1, 0, 0], sizes = [1, 1, 1, 6], strides = [1, 1, 1, 1]} : vector<8x3x1x6xf32> to vector<1x1x1x6xf32>
    %272 = vector.shape_cast %271 : vector<1x1x1x6xf32> to vector<1x6xf32>
    %273 = vector.broadcast %272 : vector<1x6xf32> to vector<64x6xf32>
    %274 = arith.addf %270, %273 : vector<64x6xf32>
    %275 = vector.shape_cast %274 : vector<64x6xf32> to vector<8x8x6xf32>
    %276 = vector.extract_strided_slice %28 {offsets = [5, 2, 0, 0], sizes = [1, 1, 48, 6], strides = [1, 1, 1, 1]} : vector<8x3x48x6xbf16> to vector<1x1x48x6xbf16>
    %277 = vector.shape_cast %276 : vector<1x1x48x6xbf16> to vector<48x6xbf16>
    %cst_73 = arith.constant dense<0.000000e+00> : vector<64x6xf32>
    %278 = tpu.matmul %34, %277, %cst_73 {dimension_numbers = #tpu.dot_dimension_numbers<[1], [0], [0], [1], [0, 0, 1, 1], [], []>} : vector<64x48xbf16>, vector<48x6xbf16>, vector<64x6xf32> -> vector<64x6xf32>
    %279 = vector.extract_strided_slice %29 {offsets = [5, 2, 0, 0], sizes = [1, 1, 1, 6], strides = [1, 1, 1, 1]} : vector<8x3x1x6xf32> to vector<1x1x1x6xf32>
    %280 = vector.shape_cast %279 : vector<1x1x1x6xf32> to vector<1x6xf32>
    %281 = vector.broadcast %280 : vector<1x6xf32> to vector<64x6xf32>
    %282 = arith.addf %278, %281 : vector<64x6xf32>
    %283 = vector.shape_cast %282 : vector<64x6xf32> to vector<8x8x6xf32>
    %284 = arith.truncf %267 : vector<8x8x6xf32> to vector<8x8x6xbf16>
    %285 = arith.truncf %275 : vector<8x8x6xf32> to vector<8x8x6xbf16>
    "tpu.trace_start"() <{level = 10 : i32, message = "bqd,bkd->bqk"}> : () -> ()
    %cst_74 = arith.constant dense<0.000000e+00> : vector<8x8x8xf32>
    %286 = tpu.matmul %284, %285, %cst_74 {dimension_numbers = #tpu.dot_dimension_numbers<[2], [2], [1], [1], [0, 0, 0, 1, 1, 1], [0], [0]>} : vector<8x8x6xbf16>, vector<8x8x6xbf16>, vector<8x8x8xf32> -> vector<8x8x8xf32>
    "tpu.trace_stop"() : () -> ()
    %cst_75 = arith.constant 0.408248305 : f32
    %287 = vector.broadcast %cst_75 : f32 to vector<8x8x8xf32>
    %288 = arith.mulf %286, %287 : vector<8x8x8xf32>
    %289 = vector.broadcast %27 : vector<8x1x8xf32> to vector<8x8x8xf32>
    %290 = arith.addf %288, %289 : vector<8x8x8xf32>
    %cst_76 = arith.constant dense<0xFF800000> : vector<8x8xf32>
    %291 = vector.multi_reduction <maximumf>, %290, %cst_76 [2] : vector<8x8x8xf32> to vector<8x8xf32>
    %292 = vector.shape_cast %291 : vector<8x8xf32> to vector<8x8x1xf32>
    %293 = vector.broadcast %292 : vector<8x8x1xf32> to vector<8x8x8xf32>
    %294 = arith.subf %290, %293 : vector<8x8x8xf32>
    %295 = math.exp %294 : vector<8x8x8xf32>
    %cst_77 = arith.constant dense<0.000000e+00> : vector<8x8xf32>
    %296 = vector.multi_reduction <add>, %295, %cst_77 [2] : vector<8x8x8xf32> to vector<8x8xf32>
    %297 = vector.shape_cast %296 : vector<8x8xf32> to vector<8x8x1xf32>
    %298 = tpu.reciprocal %297 {approx = true} : vector<8x8x1xf32> -> vector<8x8x1xf32>
    %299 = vector.broadcast %298 : vector<8x8x1xf32> to vector<8x8x8xf32>
    %300 = arith.mulf %295, %299 : vector<8x8x8xf32>
    %301 = arith.truncf %300 : vector<8x8x8xf32> to vector<8x8x8xbf16>
    %302 = arith.truncf %283 : vector<8x8x6xf32> to vector<8x8x6xbf16>
    "tpu.trace_start"() <{level = 10 : i32, message = "bqk,bkd->bqd"}> : () -> ()
    %cst_78 = arith.constant dense<0.000000e+00> : vector<8x8x6xf32>
    %303 = tpu.matmul %301, %302, %cst_78 {dimension_numbers = #tpu.dot_dimension_numbers<[2], [1], [1], [2], [0, 0, 0, 1, 1, 2], [0], [0]>} : vector<8x8x8xbf16>, vector<8x8x6xbf16>, vector<8x8x6xf32> -> vector<8x8x6xf32>
    "tpu.trace_stop"() : () -> ()
    %304 = arith.truncf %303 : vector<8x8x6xf32> to vector<8x8x6xbf16>
    %305 = vector.extract_strided_slice %28 {offsets = [6, 0, 0, 0], sizes = [1, 1, 48, 6], strides = [1, 1, 1, 1]} : vector<8x3x48x6xbf16> to vector<1x1x48x6xbf16>
    %306 = vector.shape_cast %305 : vector<1x1x48x6xbf16> to vector<48x6xbf16>
    %cst_79 = arith.constant dense<0.000000e+00> : vector<64x6xf32>
    %307 = tpu.matmul %34, %306, %cst_79 {dimension_numbers = #tpu.dot_dimension_numbers<[1], [0], [0], [1], [0, 0, 1, 1], [], []>} : vector<64x48xbf16>, vector<48x6xbf16>, vector<64x6xf32> -> vector<64x6xf32>
    %308 = vector.extract_strided_slice %29 {offsets = [6, 0, 0, 0], sizes = [1, 1, 1, 6], strides = [1, 1, 1, 1]} : vector<8x3x1x6xf32> to vector<1x1x1x6xf32>
    %309 = vector.shape_cast %308 : vector<1x1x1x6xf32> to vector<1x6xf32>
    %310 = vector.broadcast %309 : vector<1x6xf32> to vector<64x6xf32>
    %311 = arith.addf %307, %310 : vector<64x6xf32>
    %312 = vector.shape_cast %311 : vector<64x6xf32> to vector<8x8x6xf32>
    %313 = vector.extract_strided_slice %28 {offsets = [6, 1, 0, 0], sizes = [1, 1, 48, 6], strides = [1, 1, 1, 1]} : vector<8x3x48x6xbf16> to vector<1x1x48x6xbf16>
    %314 = vector.shape_cast %313 : vector<1x1x48x6xbf16> to vector<48x6xbf16>
    %cst_80 = arith.constant dense<0.000000e+00> : vector<64x6xf32>
    %315 = tpu.matmul %34, %314, %cst_80 {dimension_numbers = #tpu.dot_dimension_numbers<[1], [0], [0], [1], [0, 0, 1, 1], [], []>} : vector<64x48xbf16>, vector<48x6xbf16>, vector<64x6xf32> -> vector<64x6xf32>
    %316 = vector.extract_strided_slice %29 {offsets = [6, 1, 0, 0], sizes = [1, 1, 1, 6], strides = [1, 1, 1, 1]} : vector<8x3x1x6xf32> to vector<1x1x1x6xf32>
    %317 = vector.shape_cast %316 : vector<1x1x1x6xf32> to vector<1x6xf32>
    %318 = vector.broadcast %317 : vector<1x6xf32> to vector<64x6xf32>
    %319 = arith.addf %315, %318 : vector<64x6xf32>
    %320 = vector.shape_cast %319 : vector<64x6xf32> to vector<8x8x6xf32>
    %321 = vector.extract_strided_slice %28 {offsets = [6, 2, 0, 0], sizes = [1, 1, 48, 6], strides = [1, 1, 1, 1]} : vector<8x3x48x6xbf16> to vector<1x1x48x6xbf16>
    %322 = vector.shape_cast %321 : vector<1x1x48x6xbf16> to vector<48x6xbf16>
    %cst_81 = arith.constant dense<0.000000e+00> : vector<64x6xf32>
    %323 = tpu.matmul %34, %322, %cst_81 {dimension_numbers = #tpu.dot_dimension_numbers<[1], [0], [0], [1], [0, 0, 1, 1], [], []>} : vector<64x48xbf16>, vector<48x6xbf16>, vector<64x6xf32> -> vector<64x6xf32>
    %324 = vector.extract_strided_slice %29 {offsets = [6, 2, 0, 0], sizes = [1, 1, 1, 6], strides = [1, 1, 1, 1]} : vector<8x3x1x6xf32> to vector<1x1x1x6xf32>
    %325 = vector.shape_cast %324 : vector<1x1x1x6xf32> to vector<1x6xf32>
    %326 = vector.broadcast %325 : vector<1x6xf32> to vector<64x6xf32>
    %327 = arith.addf %323, %326 : vector<64x6xf32>
    %328 = vector.shape_cast %327 : vector<64x6xf32> to vector<8x8x6xf32>
    %329 = arith.truncf %312 : vector<8x8x6xf32> to vector<8x8x6xbf16>
    %330 = arith.truncf %320 : vector<8x8x6xf32> to vector<8x8x6xbf16>
    "tpu.trace_start"() <{level = 10 : i32, message = "bqd,bkd->bqk"}> : () -> ()
    %cst_82 = arith.constant dense<0.000000e+00> : vector<8x8x8xf32>
    %331 = tpu.matmul %329, %330, %cst_82 {dimension_numbers = #tpu.dot_dimension_numbers<[2], [2], [1], [1], [0, 0, 0, 1, 1, 1], [0], [0]>} : vector<8x8x6xbf16>, vector<8x8x6xbf16>, vector<8x8x8xf32> -> vector<8x8x8xf32>
    "tpu.trace_stop"() : () -> ()
    %cst_83 = arith.constant 0.408248305 : f32
    %332 = vector.broadcast %cst_83 : f32 to vector<8x8x8xf32>
    %333 = arith.mulf %331, %332 : vector<8x8x8xf32>
    %334 = vector.broadcast %27 : vector<8x1x8xf32> to vector<8x8x8xf32>
    %335 = arith.addf %333, %334 : vector<8x8x8xf32>
    %cst_84 = arith.constant dense<0xFF800000> : vector<8x8xf32>
    %336 = vector.multi_reduction <maximumf>, %335, %cst_84 [2] : vector<8x8x8xf32> to vector<8x8xf32>
    %337 = vector.shape_cast %336 : vector<8x8xf32> to vector<8x8x1xf32>
    %338 = vector.broadcast %337 : vector<8x8x1xf32> to vector<8x8x8xf32>
    %339 = arith.subf %335, %338 : vector<8x8x8xf32>
    %340 = math.exp %339 : vector<8x8x8xf32>
    %cst_85 = arith.constant dense<0.000000e+00> : vector<8x8xf32>
    %341 = vector.multi_reduction <add>, %340, %cst_85 [2] : vector<8x8x8xf32> to vector<8x8xf32>
    %342 = vector.shape_cast %341 : vector<8x8xf32> to vector<8x8x1xf32>
    %343 = tpu.reciprocal %342 {approx = true} : vector<8x8x1xf32> -> vector<8x8x1xf32>
    %344 = vector.broadcast %343 : vector<8x8x1xf32> to vector<8x8x8xf32>
    %345 = arith.mulf %340, %344 : vector<8x8x8xf32>
    %346 = arith.truncf %345 : vector<8x8x8xf32> to vector<8x8x8xbf16>
    %347 = arith.truncf %328 : vector<8x8x6xf32> to vector<8x8x6xbf16>
    "tpu.trace_start"() <{level = 10 : i32, message = "bqk,bkd->bqd"}> : () -> ()
    %cst_86 = arith.constant dense<0.000000e+00> : vector<8x8x6xf32>
    %348 = tpu.matmul %346, %347, %cst_86 {dimension_numbers = #tpu.dot_dimension_numbers<[2], [1], [1], [2], [0, 0, 0, 1, 1, 2], [0], [0]>} : vector<8x8x8xbf16>, vector<8x8x6xbf16>, vector<8x8x6xf32> -> vector<8x8x6xf32>
    "tpu.trace_stop"() : () -> ()
    %349 = arith.truncf %348 : vector<8x8x6xf32> to vector<8x8x6xbf16>
    %350 = vector.extract_strided_slice %28 {offsets = [7, 0, 0, 0], sizes = [1, 1, 48, 6], strides = [1, 1, 1, 1]} : vector<8x3x48x6xbf16> to vector<1x1x48x6xbf16>
    %351 = vector.shape_cast %350 : vector<1x1x48x6xbf16> to vector<48x6xbf16>
    %cst_87 = arith.constant dense<0.000000e+00> : vector<64x6xf32>
    %352 = tpu.matmul %34, %351, %cst_87 {dimension_numbers = #tpu.dot_dimension_numbers<[1], [0], [0], [1], [0, 0, 1, 1], [], []>} : vector<64x48xbf16>, vector<48x6xbf16>, vector<64x6xf32> -> vector<64x6xf32>
    %353 = vector.extract_strided_slice %29 {offsets = [7, 0, 0, 0], sizes = [1, 1, 1, 6], strides = [1, 1, 1, 1]} : vector<8x3x1x6xf32> to vector<1x1x1x6xf32>
    %354 = vector.shape_cast %353 : vector<1x1x1x6xf32> to vector<1x6xf32>
    %355 = vector.broadcast %354 : vector<1x6xf32> to vector<64x6xf32>
    %356 = arith.addf %352, %355 : vector<64x6xf32>
    %357 = vector.shape_cast %356 : vector<64x6xf32> to vector<8x8x6xf32>
    %358 = vector.extract_strided_slice %28 {offsets = [7, 1, 0, 0], sizes = [1, 1, 48, 6], strides = [1, 1, 1, 1]} : vector<8x3x48x6xbf16> to vector<1x1x48x6xbf16>
    %359 = vector.shape_cast %358 : vector<1x1x48x6xbf16> to vector<48x6xbf16>
    %cst_88 = arith.constant dense<0.000000e+00> : vector<64x6xf32>
    %360 = tpu.matmul %34, %359, %cst_88 {dimension_numbers = #tpu.dot_dimension_numbers<[1], [0], [0], [1], [0, 0, 1, 1], [], []>} : vector<64x48xbf16>, vector<48x6xbf16>, vector<64x6xf32> -> vector<64x6xf32>
    %361 = vector.extract_strided_slice %29 {offsets = [7, 1, 0, 0], sizes = [1, 1, 1, 6], strides = [1, 1, 1, 1]} : vector<8x3x1x6xf32> to vector<1x1x1x6xf32>
    %362 = vector.shape_cast %361 : vector<1x1x1x6xf32> to vector<1x6xf32>
    %363 = vector.broadcast %362 : vector<1x6xf32> to vector<64x6xf32>
    %364 = arith.addf %360, %363 : vector<64x6xf32>
    %365 = vector.shape_cast %364 : vector<64x6xf32> to vector<8x8x6xf32>
    %366 = vector.extract_strided_slice %28 {offsets = [7, 2, 0, 0], sizes = [1, 1, 48, 6], strides = [1, 1, 1, 1]} : vector<8x3x48x6xbf16> to vector<1x1x48x6xbf16>
    %367 = vector.shape_cast %366 : vector<1x1x48x6xbf16> to vector<48x6xbf16>
    %cst_89 = arith.constant dense<0.000000e+00> : vector<64x6xf32>
    %368 = tpu.matmul %34, %367, %cst_89 {dimension_numbers = #tpu.dot_dimension_numbers<[1], [0], [0], [1], [0, 0, 1, 1], [], []>} : vector<64x48xbf16>, vector<48x6xbf16>, vector<64x6xf32> -> vector<64x6xf32>
    %369 = vector.extract_strided_slice %29 {offsets = [7, 2, 0, 0], sizes = [1, 1, 1, 6], strides = [1, 1, 1, 1]} : vector<8x3x1x6xf32> to vector<1x1x1x6xf32>
    %370 = vector.shape_cast %369 : vector<1x1x1x6xf32> to vector<1x6xf32>
    %371 = vector.broadcast %370 : vector<1x6xf32> to vector<64x6xf32>
    %372 = arith.addf %368, %371 : vector<64x6xf32>
    %373 = vector.shape_cast %372 : vector<64x6xf32> to vector<8x8x6xf32>
    %374 = arith.truncf %357 : vector<8x8x6xf32> to vector<8x8x6xbf16>
    %375 = arith.truncf %365 : vector<8x8x6xf32> to vector<8x8x6xbf16>
    "tpu.trace_start"() <{level = 10 : i32, message = "bqd,bkd->bqk"}> : () -> ()
    %cst_90 = arith.constant dense<0.000000e+00> : vector<8x8x8xf32>
    %376 = tpu.matmul %374, %375, %cst_90 {dimension_numbers = #tpu.dot_dimension_numbers<[2], [2], [1], [1], [0, 0, 0, 1, 1, 1], [0], [0]>} : vector<8x8x6xbf16>, vector<8x8x6xbf16>, vector<8x8x8xf32> -> vector<8x8x8xf32>
    "tpu.trace_stop"() : () -> ()
    %cst_91 = arith.constant 0.408248305 : f32
    %377 = vector.broadcast %cst_91 : f32 to vector<8x8x8xf32>
    %378 = arith.mulf %376, %377 : vector<8x8x8xf32>
    %379 = vector.broadcast %27 : vector<8x1x8xf32> to vector<8x8x8xf32>
    %380 = arith.addf %378, %379 : vector<8x8x8xf32>
    %cst_92 = arith.constant dense<0xFF800000> : vector<8x8xf32>
    %381 = vector.multi_reduction <maximumf>, %380, %cst_92 [2] : vector<8x8x8xf32> to vector<8x8xf32>
    %382 = vector.shape_cast %381 : vector<8x8xf32> to vector<8x8x1xf32>
    %383 = vector.broadcast %382 : vector<8x8x1xf32> to vector<8x8x8xf32>
    %384 = arith.subf %380, %383 : vector<8x8x8xf32>
    %385 = math.exp %384 : vector<8x8x8xf32>
    %cst_93 = arith.constant dense<0.000000e+00> : vector<8x8xf32>
    %386 = vector.multi_reduction <add>, %385, %cst_93 [2] : vector<8x8x8xf32> to vector<8x8xf32>
    %387 = vector.shape_cast %386 : vector<8x8xf32> to vector<8x8x1xf32>
    %388 = tpu.reciprocal %387 {approx = true} : vector<8x8x1xf32> -> vector<8x8x1xf32>
    %389 = vector.broadcast %388 : vector<8x8x1xf32> to vector<8x8x8xf32>
    %390 = arith.mulf %385, %389 : vector<8x8x8xf32>
    %391 = arith.truncf %390 : vector<8x8x8xf32> to vector<8x8x8xbf16>
    %392 = arith.truncf %373 : vector<8x8x6xf32> to vector<8x8x6xbf16>
    "tpu.trace_start"() <{level = 10 : i32, message = "bqk,bkd->bqd"}> : () -> ()
    %cst_94 = arith.constant dense<0.000000e+00> : vector<8x8x6xf32>
    %393 = tpu.matmul %391, %392, %cst_94 {dimension_numbers = #tpu.dot_dimension_numbers<[2], [1], [1], [2], [0, 0, 0, 1, 1, 2], [0], [0]>} : vector<8x8x8xbf16>, vector<8x8x6xbf16>, vector<8x8x6xf32> -> vector<8x8x6xf32>
    "tpu.trace_stop"() : () -> ()
    %394 = arith.truncf %393 : vector<8x8x6xf32> to vector<8x8x6xbf16>
    %395 = tpu.concatenate %79, %124, %169, %214, %259, %304, %349, %394 in 2 : vector<8x8x6xbf16>, vector<8x8x6xbf16>, vector<8x8x6xbf16>, vector<8x8x6xbf16>, vector<8x8x6xbf16>, vector<8x8x6xbf16>, vector<8x8x6xbf16>, vector<8x8x6xbf16> -> vector<8x8x48xbf16>
    %396 = vector.shape_cast %395 : vector<8x8x48xbf16> to vector<64x48xbf16>
    %cst_95 = arith.constant dense<0.000000e+00> : vector<64x48xf32>
    %397 = tpu.matmul %396, %31, %cst_95 {dimension_numbers = #tpu.dot_dimension_numbers<[1], [0], [0], [1], [0, 0, 1, 1], [], []>} : vector<64x48xbf16>, vector<48x48xbf16>, vector<64x48xf32> -> vector<64x48xf32>
    %398 = vector.broadcast %32 : vector<1x48xf32> to vector<64x48xf32>
    %399 = arith.addf %397, %398 : vector<64x48xf32>
    %400 = vector.shape_cast %399 : vector<64x48xf32> to vector<8x8x48xf32>
    %c2 = arith.constant 2 : index
    %c0_96 = arith.constant 0 : index
    %401 = vector.load %arg17[%c2, %c0_96] : memref<9x48xf32, #tpu.memory_space<vmem>>, vector<1x48xf32>
    %c3 = arith.constant 3 : index
    %c0_97 = arith.constant 0 : index
    %402 = vector.load %arg17[%c3, %c0_97] : memref<9x48xf32, #tpu.memory_space<vmem>>, vector<1x48xf32>
    %cst_98 = arith.constant dense<0.000000e+00> : vector<8x8xf32>
    %403 = vector.multi_reduction <add>, %400, %cst_98 [2] : vector<8x8x48xf32> to vector<8x8xf32>
    %404 = vector.shape_cast %403 : vector<8x8xf32> to vector<8x8x1xf32>
    %cst_99 = arith.constant 4.800000e+01 : f32
    %405 = vector.broadcast %cst_99 : f32 to vector<8x8x1xf32>
    %406 = arith.divf %404, %405 : vector<8x8x1xf32>
    %407 = vector.broadcast %406 : vector<8x8x1xf32> to vector<8x8x48xf32>
    %408 = arith.subf %400, %407 : vector<8x8x48xf32>
    %409 = arith.mulf %408, %408 : vector<8x8x48xf32>
    %cst_100 = arith.constant dense<0.000000e+00> : vector<8x8xf32>
    %410 = vector.multi_reduction <add>, %409, %cst_100 [2] : vector<8x8x48xf32> to vector<8x8xf32>
    %411 = vector.shape_cast %410 : vector<8x8xf32> to vector<8x8x1xf32>
    %cst_101 = arith.constant 4.800000e+01 : f32
    %412 = vector.broadcast %cst_101 : f32 to vector<8x8x1xf32>
    %413 = arith.divf %411, %412 : vector<8x8x1xf32>
    %414 = vector.broadcast %406 : vector<8x8x1xf32> to vector<8x8x48xf32>
    %415 = arith.subf %400, %414 : vector<8x8x48xf32>
    %cst_102 = arith.constant 9.99999974E-6 : f32
    %416 = vector.broadcast %cst_102 : f32 to vector<8x8x1xf32>
    %417 = arith.addf %413, %416 : vector<8x8x1xf32>
    %418 = math.rsqrt %417 : vector<8x8x1xf32>
    %419 = vector.broadcast %418 : vector<8x8x1xf32> to vector<8x8x48xf32>
    %420 = arith.mulf %415, %419 : vector<8x8x48xf32>
    %421 = vector.shape_cast %401 : vector<1x48xf32> to vector<1x1x48xf32>
    %422 = vector.broadcast %421 : vector<1x1x48xf32> to vector<8x8x48xf32>
    %423 = arith.mulf %420, %422 : vector<8x8x48xf32>
    %424 = vector.shape_cast %402 : vector<1x48xf32> to vector<1x1x48xf32>
    %425 = vector.broadcast %424 : vector<1x1x48xf32> to vector<8x8x48xf32>
    %426 = arith.addf %423, %425 : vector<8x8x48xf32>
    %427 = vector.shape_cast %22 : vector<8x8xf32> to vector<8x8x1xf32>
    %428 = vector.broadcast %427 : vector<8x8x1xf32> to vector<8x8x48xf32>
    %429 = arith.mulf %426, %428 : vector<8x8x48xf32>
    %cst_103 = arith.constant dense<0.000000e+00> : vector<8x48xf32>
    %430 = vector.multi_reduction <add>, %429, %cst_103 [1] : vector<8x8x48xf32> to vector<8x48xf32>
    %cst_104 = arith.constant dense<0.000000e+00> : vector<8xf32>
    %431 = vector.multi_reduction <add>, %22, %cst_104 [1] : vector<8x8xf32> to vector<8xf32>
    %432 = vector.shape_cast %431 : vector<8xf32> to vector<8x1xf32>
    %cst_105 = arith.constant 9.99999993E-9 : f32
    %433 = vector.broadcast %cst_105 : f32 to vector<8x1xf32>
    %434 = arith.addf %432, %433 : vector<8x1xf32>
    %435 = vector.broadcast %434 : vector<8x1xf32> to vector<8x48xf32>
    %436 = arith.divf %430, %435 : vector<8x48xf32>
    %c0_106 = arith.constant 0 : index
    %c0_107 = arith.constant 0 : index
    %437 = vector.load %arg3[%c0_106, %c0_107] : memref<8x37xf32, #tpu.memory_space<vmem>>, vector<8x37xf32>
    %c0_108 = arith.constant 0 : index
    %c0_109 = arith.constant 0 : index
    %c0_110 = arith.constant 0 : index
    %438 = vector.load %arg8[%c0_108, %c0_109, %c0_110] : memref<2x37x48xbf16, #tpu.memory_space<vmem>>, vector<1x37x48xbf16>
    %439 = vector.shape_cast %438 : vector<1x37x48xbf16> to vector<37x48xbf16>
    %440 = arith.truncf %437 : vector<8x37xf32> to vector<8x37xbf16>
    %cst_111 = arith.constant dense<0.000000e+00> : vector<8x48xf32>
    %441 = tpu.matmul %440, %439, %cst_111 {dimension_numbers = #tpu.dot_dimension_numbers<[1], [0], [0], [1], [0, 0, 1, 1], [], []>} : vector<8x37xbf16>, vector<37x48xbf16>, vector<8x48xf32> -> vector<8x48xf32>
    %c4 = arith.constant 4 : index
    %c0_112 = arith.constant 0 : index
    %442 = vector.load %arg17[%c4, %c0_112] : memref<9x48xf32, #tpu.memory_space<vmem>>, vector<1x48xf32>
    %443 = vector.broadcast %442 : vector<1x48xf32> to vector<8x48xf32>
    %444 = arith.addf %441, %443 : vector<8x48xf32>
    %c1_113 = arith.constant 1 : index
    %c0_114 = arith.constant 0 : index
    %c0_115 = arith.constant 0 : index
    %445 = vector.load %arg7[%c1_113, %c0_114, %c0_115] : memref<3x48x48xbf16, #tpu.memory_space<vmem>>, vector<1x48x48xbf16>
    %446 = vector.shape_cast %445 : vector<1x48x48xbf16> to vector<48x48xbf16>
    %447 = arith.truncf %444 : vector<8x48xf32> to vector<8x48xbf16>
    %cst_116 = arith.constant dense<0.000000e+00> : vector<8x48xf32>
    %448 = tpu.matmul %447, %446, %cst_116 {dimension_numbers = #tpu.dot_dimension_numbers<[1], [0], [0], [1], [0, 0, 1, 1], [], []>} : vector<8x48xbf16>, vector<48x48xbf16>, vector<8x48xf32> -> vector<8x48xf32>
    %c5 = arith.constant 5 : index
    %c0_117 = arith.constant 0 : index
    %449 = vector.load %arg17[%c5, %c0_117] : memref<9x48xf32, #tpu.memory_space<vmem>>, vector<1x48xf32>
    %450 = vector.broadcast %449 : vector<1x48xf32> to vector<8x48xf32>
    %451 = arith.addf %448, %450 : vector<8x48xf32>
    %c0_118 = arith.constant 0 : index
    %c0_119 = arith.constant 0 : index
    %452 = vector.load %arg9[%c0_118, %c0_119] : memref<37x24xbf16, #tpu.memory_space<vmem>>, vector<37x24xbf16>
    %453 = arith.truncf %437 : vector<8x37xf32> to vector<8x37xbf16>
    %cst_120 = arith.constant dense<0.000000e+00> : vector<8x24xf32>
    %454 = tpu.matmul %453, %452, %cst_120 {dimension_numbers = #tpu.dot_dimension_numbers<[1], [0], [0], [1], [0, 0, 1, 1], [], []>} : vector<8x37xbf16>, vector<37x24xbf16>, vector<8x24xf32> -> vector<8x24xf32>
    %c1_121 = arith.constant 1 : index
    %c0_122 = arith.constant 0 : index
    %455 = vector.load %arg16[%c1_121, %c0_122] : memref<2x24xf32, #tpu.memory_space<vmem>>, vector<1x24xf32>
    %456 = vector.broadcast %455 : vector<1x24xf32> to vector<8x24xf32>
    %457 = arith.addf %454, %456 : vector<8x24xf32>
    %cst_123 = arith.constant 0.000000e+00 : f32
    %458 = vector.broadcast %cst_123 : f32 to vector<8x24xf32>
    %459 = arith.maximumf %457, %458 : vector<8x24xf32>
    %c1_124 = arith.constant 1 : index
    %c0_125 = arith.constant 0 : index
    %c0_126 = arith.constant 0 : index
    %460 = vector.load %arg6[%c1_124, %c0_125, %c0_126] : memref<2x24x48xbf16, #tpu.memory_space<vmem>>, vector<1x24x48xbf16>
    %461 = vector.shape_cast %460 : vector<1x24x48xbf16> to vector<24x48xbf16>
    %462 = arith.truncf %459 : vector<8x24xf32> to vector<8x24xbf16>
    %cst_127 = arith.constant dense<0.000000e+00> : vector<8x48xf32>
    %463 = tpu.matmul %462, %461, %cst_127 {dimension_numbers = #tpu.dot_dimension_numbers<[1], [0], [0], [1], [0, 0, 1, 1], [], []>} : vector<8x24xbf16>, vector<24x48xbf16>, vector<8x48xf32> -> vector<8x48xf32>
    %c6 = arith.constant 6 : index
    %c0_128 = arith.constant 0 : index
    %464 = vector.load %arg17[%c6, %c0_128] : memref<9x48xf32, #tpu.memory_space<vmem>>, vector<1x48xf32>
    %465 = vector.broadcast %464 : vector<1x48xf32> to vector<8x48xf32>
    %466 = arith.addf %463, %465 : vector<8x48xf32>
    %c1_129 = arith.constant 1 : index
    %c0_130 = arith.constant 0 : index
    %c0_131 = arith.constant 0 : index
    %467 = vector.load %arg8[%c1_129, %c0_130, %c0_131] : memref<2x37x48xbf16, #tpu.memory_space<vmem>>, vector<1x37x48xbf16>
    %468 = vector.shape_cast %467 : vector<1x37x48xbf16> to vector<37x48xbf16>
    %469 = arith.truncf %437 : vector<8x37xf32> to vector<8x37xbf16>
    %cst_132 = arith.constant dense<0.000000e+00> : vector<8x48xf32>
    %470 = tpu.matmul %469, %468, %cst_132 {dimension_numbers = #tpu.dot_dimension_numbers<[1], [0], [0], [1], [0, 0, 1, 1], [], []>} : vector<8x37xbf16>, vector<37x48xbf16>, vector<8x48xf32> -> vector<8x48xf32>
    %c7 = arith.constant 7 : index
    %c0_133 = arith.constant 0 : index
    %471 = vector.load %arg17[%c7, %c0_133] : memref<9x48xf32, #tpu.memory_space<vmem>>, vector<1x48xf32>
    %472 = vector.broadcast %471 : vector<1x48xf32> to vector<8x48xf32>
    %473 = arith.addf %470, %472 : vector<8x48xf32>
    %cst_134 = arith.constant 0.000000e+00 : f32
    %474 = vector.broadcast %cst_134 : f32 to vector<8x48xf32>
    %475 = arith.maximumf %473, %474 : vector<8x48xf32>
    %476 = vector.shape_cast %436 : vector<8x48xf32> to vector<8x1x48xf32>
    %477 = vector.shape_cast %451 : vector<8x48xf32> to vector<8x1x48xf32>
    %478 = vector.shape_cast %466 : vector<8x48xf32> to vector<8x1x48xf32>
    %479 = vector.shape_cast %475 : vector<8x48xf32> to vector<8x1x48xf32>
    %480 = tpu.concatenate %476, %477, %478, %479 in 1 : vector<8x1x48xf32>, vector<8x1x48xf32>, vector<8x1x48xf32>, vector<8x1x48xf32> -> vector<8x4x48xf32>
    %c0_135 = arith.constant 0 : index
    %c0_136 = arith.constant 0 : index
    %c0_137 = arith.constant 0 : index
    %c0_138 = arith.constant 0 : index
    %481 = vector.load %arg12[%c0_135, %c0_136, %c0_137, %c0_138] : memref<4x3x48x12xbf16, #tpu.memory_space<vmem>>, vector<4x3x48x12xbf16>
    %c0_139 = arith.constant 0 : index
    %c0_140 = arith.constant 0 : index
    %c0_141 = arith.constant 0 : index
    %c0_142 = arith.constant 0 : index
    %482 = vector.load %arg13[%c0_139, %c0_140, %c0_141, %c0_142] : memref<4x3x1x12xf32, #tpu.memory_space<vmem>>, vector<4x3x1x12xf32>
    %c2_143 = arith.constant 2 : index
    %c0_144 = arith.constant 0 : index
    %c0_145 = arith.constant 0 : index
    %483 = vector.load %arg7[%c2_143, %c0_144, %c0_145] : memref<3x48x48xbf16, #tpu.memory_space<vmem>>, vector<1x48x48xbf16>
    %484 = vector.shape_cast %483 : vector<1x48x48xbf16> to vector<48x48xbf16>
    %c8 = arith.constant 8 : index
    %c0_146 = arith.constant 0 : index
    %485 = vector.load %arg17[%c8, %c0_146] : memref<9x48xf32, #tpu.memory_space<vmem>>, vector<1x48xf32>
    %486 = vector.shape_cast %480 : vector<8x4x48xf32> to vector<32x48xf32>
    %487 = arith.truncf %486 : vector<32x48xf32> to vector<32x48xbf16>
    %488 = vector.extract_strided_slice %481 {offsets = [0, 0, 0, 0], sizes = [1, 1, 48, 12], strides = [1, 1, 1, 1]} : vector<4x3x48x12xbf16> to vector<1x1x48x12xbf16>
    %489 = vector.shape_cast %488 : vector<1x1x48x12xbf16> to vector<48x12xbf16>
    %cst_147 = arith.constant dense<0.000000e+00> : vector<32x12xf32>
    %490 = tpu.matmul %487, %489, %cst_147 {dimension_numbers = #tpu.dot_dimension_numbers<[1], [0], [0], [1], [0, 0, 1, 1], [], []>} : vector<32x48xbf16>, vector<48x12xbf16>, vector<32x12xf32> -> vector<32x12xf32>
    %491 = vector.extract_strided_slice %482 {offsets = [0, 0, 0, 0], sizes = [1, 1, 1, 12], strides = [1, 1, 1, 1]} : vector<4x3x1x12xf32> to vector<1x1x1x12xf32>
    %492 = vector.shape_cast %491 : vector<1x1x1x12xf32> to vector<1x12xf32>
    %493 = vector.broadcast %492 : vector<1x12xf32> to vector<32x12xf32>
    %494 = arith.addf %490, %493 : vector<32x12xf32>
    %495 = vector.shape_cast %494 : vector<32x12xf32> to vector<8x4x12xf32>
    %496 = vector.extract_strided_slice %481 {offsets = [0, 1, 0, 0], sizes = [1, 1, 48, 12], strides = [1, 1, 1, 1]} : vector<4x3x48x12xbf16> to vector<1x1x48x12xbf16>
    %497 = vector.shape_cast %496 : vector<1x1x48x12xbf16> to vector<48x12xbf16>
    %cst_148 = arith.constant dense<0.000000e+00> : vector<32x12xf32>
    %498 = tpu.matmul %487, %497, %cst_148 {dimension_numbers = #tpu.dot_dimension_numbers<[1], [0], [0], [1], [0, 0, 1, 1], [], []>} : vector<32x48xbf16>, vector<48x12xbf16>, vector<32x12xf32> -> vector<32x12xf32>
    %499 = vector.extract_strided_slice %482 {offsets = [0, 1, 0, 0], sizes = [1, 1, 1, 12], strides = [1, 1, 1, 1]} : vector<4x3x1x12xf32> to vector<1x1x1x12xf32>
    %500 = vector.shape_cast %499 : vector<1x1x1x12xf32> to vector<1x12xf32>
    %501 = vector.broadcast %500 : vector<1x12xf32> to vector<32x12xf32>
    %502 = arith.addf %498, %501 : vector<32x12xf32>
    %503 = vector.shape_cast %502 : vector<32x12xf32> to vector<8x4x12xf32>
    %504 = vector.extract_strided_slice %481 {offsets = [0, 2, 0, 0], sizes = [1, 1, 48, 12], strides = [1, 1, 1, 1]} : vector<4x3x48x12xbf16> to vector<1x1x48x12xbf16>
    %505 = vector.shape_cast %504 : vector<1x1x48x12xbf16> to vector<48x12xbf16>
    %cst_149 = arith.constant dense<0.000000e+00> : vector<32x12xf32>
    %506 = tpu.matmul %487, %505, %cst_149 {dimension_numbers = #tpu.dot_dimension_numbers<[1], [0], [0], [1], [0, 0, 1, 1], [], []>} : vector<32x48xbf16>, vector<48x12xbf16>, vector<32x12xf32> -> vector<32x12xf32>
    %507 = vector.extract_strided_slice %482 {offsets = [0, 2, 0, 0], sizes = [1, 1, 1, 12], strides = [1, 1, 1, 1]} : vector<4x3x1x12xf32> to vector<1x1x1x12xf32>
    %508 = vector.shape_cast %507 : vector<1x1x1x12xf32> to vector<1x12xf32>
    %509 = vector.broadcast %508 : vector<1x12xf32> to vector<32x12xf32>
    %510 = arith.addf %506, %509 : vector<32x12xf32>
    %511 = vector.shape_cast %510 : vector<32x12xf32> to vector<8x4x12xf32>
    %512 = arith.truncf %495 : vector<8x4x12xf32> to vector<8x4x12xbf16>
    %513 = arith.truncf %503 : vector<8x4x12xf32> to vector<8x4x12xbf16>
    "tpu.trace_start"() <{level = 10 : i32, message = "bqd,bkd->bqk"}> : () -> ()
    %cst_150 = arith.constant dense<0.000000e+00> : vector<8x4x4xf32>
    %514 = tpu.matmul %512, %513, %cst_150 {dimension_numbers = #tpu.dot_dimension_numbers<[2], [2], [1], [1], [0, 0, 0, 1, 1, 1], [0], [0]>} : vector<8x4x12xbf16>, vector<8x4x12xbf16>, vector<8x4x4xf32> -> vector<8x4x4xf32>
    "tpu.trace_stop"() : () -> ()
    %cst_151 = arith.constant 0.288675129 : f32
    %515 = vector.broadcast %cst_151 : f32 to vector<8x4x4xf32>
    %516 = arith.mulf %514, %515 : vector<8x4x4xf32>
    %cst_152 = arith.constant dense<0xFF800000> : vector<8x4xf32>
    %517 = vector.multi_reduction <maximumf>, %516, %cst_152 [2] : vector<8x4x4xf32> to vector<8x4xf32>
    %518 = vector.shape_cast %517 : vector<8x4xf32> to vector<8x4x1xf32>
    %519 = vector.broadcast %518 : vector<8x4x1xf32> to vector<8x4x4xf32>
    %520 = arith.subf %516, %519 : vector<8x4x4xf32>
    %521 = math.exp %520 : vector<8x4x4xf32>
    %cst_153 = arith.constant dense<0.000000e+00> : vector<8x4xf32>
    %522 = vector.multi_reduction <add>, %521, %cst_153 [2] : vector<8x4x4xf32> to vector<8x4xf32>
    %523 = vector.shape_cast %522 : vector<8x4xf32> to vector<8x4x1xf32>
    %524 = tpu.reciprocal %523 {approx = true} : vector<8x4x1xf32> -> vector<8x4x1xf32>
    %525 = vector.broadcast %524 : vector<8x4x1xf32> to vector<8x4x4xf32>
    %526 = arith.mulf %521, %525 : vector<8x4x4xf32>
    %527 = arith.truncf %526 : vector<8x4x4xf32> to vector<8x4x4xbf16>
    %528 = arith.truncf %511 : vector<8x4x12xf32> to vector<8x4x12xbf16>
    "tpu.trace_start"() <{level = 10 : i32, message = "bqk,bkd->bqd"}> : () -> ()
    %cst_154 = arith.constant dense<0.000000e+00> : vector<8x4x12xf32>
    %529 = tpu.matmul %527, %528, %cst_154 {dimension_numbers = #tpu.dot_dimension_numbers<[2], [1], [1], [2], [0, 0, 0, 1, 1, 2], [0], [0]>} : vector<8x4x4xbf16>, vector<8x4x12xbf16>, vector<8x4x12xf32> -> vector<8x4x12xf32>
    "tpu.trace_stop"() : () -> ()
    %530 = arith.truncf %529 : vector<8x4x12xf32> to vector<8x4x12xbf16>
    %531 = vector.extract_strided_slice %481 {offsets = [1, 0, 0, 0], sizes = [1, 1, 48, 12], strides = [1, 1, 1, 1]} : vector<4x3x48x12xbf16> to vector<1x1x48x12xbf16>
    %532 = vector.shape_cast %531 : vector<1x1x48x12xbf16> to vector<48x12xbf16>
    %cst_155 = arith.constant dense<0.000000e+00> : vector<32x12xf32>
    %533 = tpu.matmul %487, %532, %cst_155 {dimension_numbers = #tpu.dot_dimension_numbers<[1], [0], [0], [1], [0, 0, 1, 1], [], []>} : vector<32x48xbf16>, vector<48x12xbf16>, vector<32x12xf32> -> vector<32x12xf32>
    %534 = vector.extract_strided_slice %482 {offsets = [1, 0, 0, 0], sizes = [1, 1, 1, 12], strides = [1, 1, 1, 1]} : vector<4x3x1x12xf32> to vector<1x1x1x12xf32>
    %535 = vector.shape_cast %534 : vector<1x1x1x12xf32> to vector<1x12xf32>
    %536 = vector.broadcast %535 : vector<1x12xf32> to vector<32x12xf32>
    %537 = arith.addf %533, %536 : vector<32x12xf32>
    %538 = vector.shape_cast %537 : vector<32x12xf32> to vector<8x4x12xf32>
    %539 = vector.extract_strided_slice %481 {offsets = [1, 1, 0, 0], sizes = [1, 1, 48, 12], strides = [1, 1, 1, 1]} : vector<4x3x48x12xbf16> to vector<1x1x48x12xbf16>
    %540 = vector.shape_cast %539 : vector<1x1x48x12xbf16> to vector<48x12xbf16>
    %cst_156 = arith.constant dense<0.000000e+00> : vector<32x12xf32>
    %541 = tpu.matmul %487, %540, %cst_156 {dimension_numbers = #tpu.dot_dimension_numbers<[1], [0], [0], [1], [0, 0, 1, 1], [], []>} : vector<32x48xbf16>, vector<48x12xbf16>, vector<32x12xf32> -> vector<32x12xf32>
    %542 = vector.extract_strided_slice %482 {offsets = [1, 1, 0, 0], sizes = [1, 1, 1, 12], strides = [1, 1, 1, 1]} : vector<4x3x1x12xf32> to vector<1x1x1x12xf32>
    %543 = vector.shape_cast %542 : vector<1x1x1x12xf32> to vector<1x12xf32>
    %544 = vector.broadcast %543 : vector<1x12xf32> to vector<32x12xf32>
    %545 = arith.addf %541, %544 : vector<32x12xf32>
    %546 = vector.shape_cast %545 : vector<32x12xf32> to vector<8x4x12xf32>
    %547 = vector.extract_strided_slice %481 {offsets = [1, 2, 0, 0], sizes = [1, 1, 48, 12], strides = [1, 1, 1, 1]} : vector<4x3x48x12xbf16> to vector<1x1x48x12xbf16>
    %548 = vector.shape_cast %547 : vector<1x1x48x12xbf16> to vector<48x12xbf16>
    %cst_157 = arith.constant dense<0.000000e+00> : vector<32x12xf32>
    %549 = tpu.matmul %487, %548, %cst_157 {dimension_numbers = #tpu.dot_dimension_numbers<[1], [0], [0], [1], [0, 0, 1, 1], [], []>} : vector<32x48xbf16>, vector<48x12xbf16>, vector<32x12xf32> -> vector<32x12xf32>
    %550 = vector.extract_strided_slice %482 {offsets = [1, 2, 0, 0], sizes = [1, 1, 1, 12], strides = [1, 1, 1, 1]} : vector<4x3x1x12xf32> to vector<1x1x1x12xf32>
    %551 = vector.shape_cast %550 : vector<1x1x1x12xf32> to vector<1x12xf32>
    %552 = vector.broadcast %551 : vector<1x12xf32> to vector<32x12xf32>
    %553 = arith.addf %549, %552 : vector<32x12xf32>
    %554 = vector.shape_cast %553 : vector<32x12xf32> to vector<8x4x12xf32>
    %555 = arith.truncf %538 : vector<8x4x12xf32> to vector<8x4x12xbf16>
    %556 = arith.truncf %546 : vector<8x4x12xf32> to vector<8x4x12xbf16>
    "tpu.trace_start"() <{level = 10 : i32, message = "bqd,bkd->bqk"}> : () -> ()
    %cst_158 = arith.constant dense<0.000000e+00> : vector<8x4x4xf32>
    %557 = tpu.matmul %555, %556, %cst_158 {dimension_numbers = #tpu.dot_dimension_numbers<[2], [2], [1], [1], [0, 0, 0, 1, 1, 1], [0], [0]>} : vector<8x4x12xbf16>, vector<8x4x12xbf16>, vector<8x4x4xf32> -> vector<8x4x4xf32>
    "tpu.trace_stop"() : () -> ()
    %cst_159 = arith.constant 0.288675129 : f32
    %558 = vector.broadcast %cst_159 : f32 to vector<8x4x4xf32>
    %559 = arith.mulf %557, %558 : vector<8x4x4xf32>
    %cst_160 = arith.constant dense<0xFF800000> : vector<8x4xf32>
    %560 = vector.multi_reduction <maximumf>, %559, %cst_160 [2] : vector<8x4x4xf32> to vector<8x4xf32>
    %561 = vector.shape_cast %560 : vector<8x4xf32> to vector<8x4x1xf32>
    %562 = vector.broadcast %561 : vector<8x4x1xf32> to vector<8x4x4xf32>
    %563 = arith.subf %559, %562 : vector<8x4x4xf32>
    %564 = math.exp %563 : vector<8x4x4xf32>
    %cst_161 = arith.constant dense<0.000000e+00> : vector<8x4xf32>
    %565 = vector.multi_reduction <add>, %564, %cst_161 [2] : vector<8x4x4xf32> to vector<8x4xf32>
    %566 = vector.shape_cast %565 : vector<8x4xf32> to vector<8x4x1xf32>
    %567 = tpu.reciprocal %566 {approx = true} : vector<8x4x1xf32> -> vector<8x4x1xf32>
    %568 = vector.broadcast %567 : vector<8x4x1xf32> to vector<8x4x4xf32>
    %569 = arith.mulf %564, %568 : vector<8x4x4xf32>
    %570 = arith.truncf %569 : vector<8x4x4xf32> to vector<8x4x4xbf16>
    %571 = arith.truncf %554 : vector<8x4x12xf32> to vector<8x4x12xbf16>
    "tpu.trace_start"() <{level = 10 : i32, message = "bqk,bkd->bqd"}> : () -> ()
    %cst_162 = arith.constant dense<0.000000e+00> : vector<8x4x12xf32>
    %572 = tpu.matmul %570, %571, %cst_162 {dimension_numbers = #tpu.dot_dimension_numbers<[2], [1], [1], [2], [0, 0, 0, 1, 1, 2], [0], [0]>} : vector<8x4x4xbf16>, vector<8x4x12xbf16>, vector<8x4x12xf32> -> vector<8x4x12xf32>
    "tpu.trace_stop"() : () -> ()
    %573 = arith.truncf %572 : vector<8x4x12xf32> to vector<8x4x12xbf16>
    %574 = vector.extract_strided_slice %481 {offsets = [2, 0, 0, 0], sizes = [1, 1, 48, 12], strides = [1, 1, 1, 1]} : vector<4x3x48x12xbf16> to vector<1x1x48x12xbf16>
    %575 = vector.shape_cast %574 : vector<1x1x48x12xbf16> to vector<48x12xbf16>
    %cst_163 = arith.constant dense<0.000000e+00> : vector<32x12xf32>
    %576 = tpu.matmul %487, %575, %cst_163 {dimension_numbers = #tpu.dot_dimension_numbers<[1], [0], [0], [1], [0, 0, 1, 1], [], []>} : vector<32x48xbf16>, vector<48x12xbf16>, vector<32x12xf32> -> vector<32x12xf32>
    %577 = vector.extract_strided_slice %482 {offsets = [2, 0, 0, 0], sizes = [1, 1, 1, 12], strides = [1, 1, 1, 1]} : vector<4x3x1x12xf32> to vector<1x1x1x12xf32>
    %578 = vector.shape_cast %577 : vector<1x1x1x12xf32> to vector<1x12xf32>
    %579 = vector.broadcast %578 : vector<1x12xf32> to vector<32x12xf32>
    %580 = arith.addf %576, %579 : vector<32x12xf32>
    %581 = vector.shape_cast %580 : vector<32x12xf32> to vector<8x4x12xf32>
    %582 = vector.extract_strided_slice %481 {offsets = [2, 1, 0, 0], sizes = [1, 1, 48, 12], strides = [1, 1, 1, 1]} : vector<4x3x48x12xbf16> to vector<1x1x48x12xbf16>
    %583 = vector.shape_cast %582 : vector<1x1x48x12xbf16> to vector<48x12xbf16>
    %cst_164 = arith.constant dense<0.000000e+00> : vector<32x12xf32>
    %584 = tpu.matmul %487, %583, %cst_164 {dimension_numbers = #tpu.dot_dimension_numbers<[1], [0], [0], [1], [0, 0, 1, 1], [], []>} : vector<32x48xbf16>, vector<48x12xbf16>, vector<32x12xf32> -> vector<32x12xf32>
    %585 = vector.extract_strided_slice %482 {offsets = [2, 1, 0, 0], sizes = [1, 1, 1, 12], strides = [1, 1, 1, 1]} : vector<4x3x1x12xf32> to vector<1x1x1x12xf32>
    %586 = vector.shape_cast %585 : vector<1x1x1x12xf32> to vector<1x12xf32>
    %587 = vector.broadcast %586 : vector<1x12xf32> to vector<32x12xf32>
    %588 = arith.addf %584, %587 : vector<32x12xf32>
    %589 = vector.shape_cast %588 : vector<32x12xf32> to vector<8x4x12xf32>
    %590 = vector.extract_strided_slice %481 {offsets = [2, 2, 0, 0], sizes = [1, 1, 48, 12], strides = [1, 1, 1, 1]} : vector<4x3x48x12xbf16> to vector<1x1x48x12xbf16>
    %591 = vector.shape_cast %590 : vector<1x1x48x12xbf16> to vector<48x12xbf16>
    %cst_165 = arith.constant dense<0.000000e+00> : vector<32x12xf32>
    %592 = tpu.matmul %487, %591, %cst_165 {dimension_numbers = #tpu.dot_dimension_numbers<[1], [0], [0], [1], [0, 0, 1, 1], [], []>} : vector<32x48xbf16>, vector<48x12xbf16>, vector<32x12xf32> -> vector<32x12xf32>
    %593 = vector.extract_strided_slice %482 {offsets = [2, 2, 0, 0], sizes = [1, 1, 1, 12], strides = [1, 1, 1, 1]} : vector<4x3x1x12xf32> to vector<1x1x1x12xf32>
    %594 = vector.shape_cast %593 : vector<1x1x1x12xf32> to vector<1x12xf32>
    %595 = vector.broadcast %594 : vector<1x12xf32> to vector<32x12xf32>
    %596 = arith.addf %592, %595 : vector<32x12xf32>
    %597 = vector.shape_cast %596 : vector<32x12xf32> to vector<8x4x12xf32>
    %598 = arith.truncf %581 : vector<8x4x12xf32> to vector<8x4x12xbf16>
    %599 = arith.truncf %589 : vector<8x4x12xf32> to vector<8x4x12xbf16>
    "tpu.trace_start"() <{level = 10 : i32, message = "bqd,bkd->bqk"}> : () -> ()
    %cst_166 = arith.constant dense<0.000000e+00> : vector<8x4x4xf32>
    %600 = tpu.matmul %598, %599, %cst_166 {dimension_numbers = #tpu.dot_dimension_numbers<[2], [2], [1], [1], [0, 0, 0, 1, 1, 1], [0], [0]>} : vector<8x4x12xbf16>, vector<8x4x12xbf16>, vector<8x4x4xf32> -> vector<8x4x4xf32>
    "tpu.trace_stop"() : () -> ()
    %cst_167 = arith.constant 0.288675129 : f32
    %601 = vector.broadcast %cst_167 : f32 to vector<8x4x4xf32>
    %602 = arith.mulf %600, %601 : vector<8x4x4xf32>
    %cst_168 = arith.constant dense<0xFF800000> : vector<8x4xf32>
    %603 = vector.multi_reduction <maximumf>, %602, %cst_168 [2] : vector<8x4x4xf32> to vector<8x4xf32>
    %604 = vector.shape_cast %603 : vector<8x4xf32> to vector<8x4x1xf32>
    %605 = vector.broadcast %604 : vector<8x4x1xf32> to vector<8x4x4xf32>
    %606 = arith.subf %602, %605 : vector<8x4x4xf32>
    %607 = math.exp %606 : vector<8x4x4xf32>
    %cst_169 = arith.constant dense<0.000000e+00> : vector<8x4xf32>
    %608 = vector.multi_reduction <add>, %607, %cst_169 [2] : vector<8x4x4xf32> to vector<8x4xf32>
    %609 = vector.shape_cast %608 : vector<8x4xf32> to vector<8x4x1xf32>
    %610 = tpu.reciprocal %609 {approx = true} : vector<8x4x1xf32> -> vector<8x4x1xf32>
    %611 = vector.broadcast %610 : vector<8x4x1xf32> to vector<8x4x4xf32>
    %612 = arith.mulf %607, %611 : vector<8x4x4xf32>
    %613 = arith.truncf %612 : vector<8x4x4xf32> to vector<8x4x4xbf16>
    %614 = arith.truncf %597 : vector<8x4x12xf32> to vector<8x4x12xbf16>
    "tpu.trace_start"() <{level = 10 : i32, message = "bqk,bkd->bqd"}> : () -> ()
    %cst_170 = arith.constant dense<0.000000e+00> : vector<8x4x12xf32>
    %615 = tpu.matmul %613, %614, %cst_170 {dimension_numbers = #tpu.dot_dimension_numbers<[2], [1], [1], [2], [0, 0, 0, 1, 1, 2], [0], [0]>} : vector<8x4x4xbf16>, vector<8x4x12xbf16>, vector<8x4x12xf32> -> vector<8x4x12xf32>
    "tpu.trace_stop"() : () -> ()
    %616 = arith.truncf %615 : vector<8x4x12xf32> to vector<8x4x12xbf16>
    %617 = vector.extract_strided_slice %481 {offsets = [3, 0, 0, 0], sizes = [1, 1, 48, 12], strides = [1, 1, 1, 1]} : vector<4x3x48x12xbf16> to vector<1x1x48x12xbf16>
    %618 = vector.shape_cast %617 : vector<1x1x48x12xbf16> to vector<48x12xbf16>
    %cst_171 = arith.constant dense<0.000000e+00> : vector<32x12xf32>
    %619 = tpu.matmul %487, %618, %cst_171 {dimension_numbers = #tpu.dot_dimension_numbers<[1], [0], [0], [1], [0, 0, 1, 1], [], []>} : vector<32x48xbf16>, vector<48x12xbf16>, vector<32x12xf32> -> vector<32x12xf32>
    %620 = vector.extract_strided_slice %482 {offsets = [3, 0, 0, 0], sizes = [1, 1, 1, 12], strides = [1, 1, 1, 1]} : vector<4x3x1x12xf32> to vector<1x1x1x12xf32>
    %621 = vector.shape_cast %620 : vector<1x1x1x12xf32> to vector<1x12xf32>
    %622 = vector.broadcast %621 : vector<1x12xf32> to vector<32x12xf32>
    %623 = arith.addf %619, %622 : vector<32x12xf32>
    %624 = vector.shape_cast %623 : vector<32x12xf32> to vector<8x4x12xf32>
    %625 = vector.extract_strided_slice %481 {offsets = [3, 1, 0, 0], sizes = [1, 1, 48, 12], strides = [1, 1, 1, 1]} : vector<4x3x48x12xbf16> to vector<1x1x48x12xbf16>
    %626 = vector.shape_cast %625 : vector<1x1x48x12xbf16> to vector<48x12xbf16>
    %cst_172 = arith.constant dense<0.000000e+00> : vector<32x12xf32>
    %627 = tpu.matmul %487, %626, %cst_172 {dimension_numbers = #tpu.dot_dimension_numbers<[1], [0], [0], [1], [0, 0, 1, 1], [], []>} : vector<32x48xbf16>, vector<48x12xbf16>, vector<32x12xf32> -> vector<32x12xf32>
    %628 = vector.extract_strided_slice %482 {offsets = [3, 1, 0, 0], sizes = [1, 1, 1, 12], strides = [1, 1, 1, 1]} : vector<4x3x1x12xf32> to vector<1x1x1x12xf32>
    %629 = vector.shape_cast %628 : vector<1x1x1x12xf32> to vector<1x12xf32>
    %630 = vector.broadcast %629 : vector<1x12xf32> to vector<32x12xf32>
    %631 = arith.addf %627, %630 : vector<32x12xf32>
    %632 = vector.shape_cast %631 : vector<32x12xf32> to vector<8x4x12xf32>
    %633 = vector.extract_strided_slice %481 {offsets = [3, 2, 0, 0], sizes = [1, 1, 48, 12], strides = [1, 1, 1, 1]} : vector<4x3x48x12xbf16> to vector<1x1x48x12xbf16>
    %634 = vector.shape_cast %633 : vector<1x1x48x12xbf16> to vector<48x12xbf16>
    %cst_173 = arith.constant dense<0.000000e+00> : vector<32x12xf32>
    %635 = tpu.matmul %487, %634, %cst_173 {dimension_numbers = #tpu.dot_dimension_numbers<[1], [0], [0], [1], [0, 0, 1, 1], [], []>} : vector<32x48xbf16>, vector<48x12xbf16>, vector<32x12xf32> -> vector<32x12xf32>
    %636 = vector.extract_strided_slice %482 {offsets = [3, 2, 0, 0], sizes = [1, 1, 1, 12], strides = [1, 1, 1, 1]} : vector<4x3x1x12xf32> to vector<1x1x1x12xf32>
    %637 = vector.shape_cast %636 : vector<1x1x1x12xf32> to vector<1x12xf32>
    %638 = vector.broadcast %637 : vector<1x12xf32> to vector<32x12xf32>
    %639 = arith.addf %635, %638 : vector<32x12xf32>
    %640 = vector.shape_cast %639 : vector<32x12xf32> to vector<8x4x12xf32>
    %641 = arith.truncf %624 : vector<8x4x12xf32> to vector<8x4x12xbf16>
    %642 = arith.truncf %632 : vector<8x4x12xf32> to vector<8x4x12xbf16>
    "tpu.trace_start"() <{level = 10 : i32, message = "bqd,bkd->bqk"}> : () -> ()
    %cst_174 = arith.constant dense<0.000000e+00> : vector<8x4x4xf32>
    %643 = tpu.matmul %641, %642, %cst_174 {dimension_numbers = #tpu.dot_dimension_numbers<[2], [2], [1], [1], [0, 0, 0, 1, 1, 1], [0], [0]>} : vector<8x4x12xbf16>, vector<8x4x12xbf16>, vector<8x4x4xf32> -> vector<8x4x4xf32>
    "tpu.trace_stop"() : () -> ()
    %cst_175 = arith.constant 0.288675129 : f32
    %644 = vector.broadcast %cst_175 : f32 to vector<8x4x4xf32>
    %645 = arith.mulf %643, %644 : vector<8x4x4xf32>
    %cst_176 = arith.constant dense<0xFF800000> : vector<8x4xf32>
    %646 = vector.multi_reduction <maximumf>, %645, %cst_176 [2] : vector<8x4x4xf32> to vector<8x4xf32>
    %647 = vector.shape_cast %646 : vector<8x4xf32> to vector<8x4x1xf32>
    %648 = vector.broadcast %647 : vector<8x4x1xf32> to vector<8x4x4xf32>
    %649 = arith.subf %645, %648 : vector<8x4x4xf32>
    %650 = math.exp %649 : vector<8x4x4xf32>
    %cst_177 = arith.constant dense<0.000000e+00> : vector<8x4xf32>
    %651 = vector.multi_reduction <add>, %650, %cst_177 [2] : vector<8x4x4xf32> to vector<8x4xf32>
    %652 = vector.shape_cast %651 : vector<8x4xf32> to vector<8x4x1xf32>
    %653 = tpu.reciprocal %652 {approx = true} : vector<8x4x1xf32> -> vector<8x4x1xf32>
    %654 = vector.broadcast %653 : vector<8x4x1xf32> to vector<8x4x4xf32>
    %655 = arith.mulf %650, %654 : vector<8x4x4xf32>
    %656 = arith.truncf %655 : vector<8x4x4xf32> to vector<8x4x4xbf16>
    %657 = arith.truncf %640 : vector<8x4x12xf32> to vector<8x4x12xbf16>
    "tpu.trace_start"() <{level = 10 : i32, message = "bqk,bkd->bqd"}> : () -> ()
    %cst_178 = arith.constant dense<0.000000e+00> : vector<8x4x12xf32>
    %658 = tpu.matmul %656, %657, %cst_178 {dimension_numbers = #tpu.dot_dimension_numbers<[2], [1], [1], [2], [0, 0, 0, 1, 1, 2], [0], [0]>} : vector<8x4x4xbf16>, vector<8x4x12xbf16>, vector<8x4x12xf32> -> vector<8x4x12xf32>
    "tpu.trace_stop"() : () -> ()
    %659 = arith.truncf %658 : vector<8x4x12xf32> to vector<8x4x12xbf16>
    %660 = tpu.concatenate %530, %573, %616, %659 in 2 : vector<8x4x12xbf16>, vector<8x4x12xbf16>, vector<8x4x12xbf16>, vector<8x4x12xbf16> -> vector<8x4x48xbf16>
    %661 = vector.shape_cast %660 : vector<8x4x48xbf16> to vector<32x48xbf16>
    %cst_179 = arith.constant dense<0.000000e+00> : vector<32x48xf32>
    %662 = tpu.matmul %661, %484, %cst_179 {dimension_numbers = #tpu.dot_dimension_numbers<[1], [0], [0], [1], [0, 0, 1, 1], [], []>} : vector<32x48xbf16>, vector<48x48xbf16>, vector<32x48xf32> -> vector<32x48xf32>
    %663 = vector.broadcast %485 : vector<1x48xf32> to vector<32x48xf32>
    %664 = arith.addf %662, %663 : vector<32x48xf32>
    %665 = vector.shape_cast %664 : vector<32x48xf32> to vector<8x4x48xf32>
    %666 = vector.extract_strided_slice %665 {offsets = [0, 0, 0], sizes = [8, 1, 48], strides = [1, 1, 1]} : vector<8x4x48xf32> to vector<8x1x48xf32>
    %667 = vector.shape_cast %666 : vector<8x1x48xf32> to vector<8x48xf32>
    %c0_180 = arith.constant 0 : index
    %c0_181 = arith.constant 0 : index
    %c0_182 = arith.constant 0 : index
    %668 = vector.load %arg14[%c0_180, %c0_181, %c0_182] : memref<4x48x192xbf16, #tpu.memory_space<vmem>>, vector<1x48x192xbf16>
    %669 = vector.shape_cast %668 : vector<1x48x192xbf16> to vector<48x192xbf16>
    %670 = arith.truncf %667 : vector<8x48xf32> to vector<8x48xbf16>
    %cst_183 = arith.constant dense<0.000000e+00> : vector<8x192xf32>
    %671 = tpu.matmul %670, %669, %cst_183 {dimension_numbers = #tpu.dot_dimension_numbers<[1], [0], [0], [1], [0, 0, 1, 1], [], []>} : vector<8x48xbf16>, vector<48x192xbf16>, vector<8x192xf32> -> vector<8x192xf32>
    %672 = vector.extract_strided_slice %665 {offsets = [0, 1, 0], sizes = [8, 1, 48], strides = [1, 1, 1]} : vector<8x4x48xf32> to vector<8x1x48xf32>
    %673 = vector.shape_cast %672 : vector<8x1x48xf32> to vector<8x48xf32>
    %c1_184 = arith.constant 1 : index
    %c0_185 = arith.constant 0 : index
    %c0_186 = arith.constant 0 : index
    %674 = vector.load %arg14[%c1_184, %c0_185, %c0_186] : memref<4x48x192xbf16, #tpu.memory_space<vmem>>, vector<1x48x192xbf16>
    %675 = vector.shape_cast %674 : vector<1x48x192xbf16> to vector<48x192xbf16>
    %676 = arith.truncf %673 : vector<8x48xf32> to vector<8x48xbf16>
    %cst_187 = arith.constant dense<0.000000e+00> : vector<8x192xf32>
    %677 = tpu.matmul %676, %675, %cst_187 {dimension_numbers = #tpu.dot_dimension_numbers<[1], [0], [0], [1], [0, 0, 1, 1], [], []>} : vector<8x48xbf16>, vector<48x192xbf16>, vector<8x192xf32> -> vector<8x192xf32>
    %678 = arith.addf %671, %677 : vector<8x192xf32>
    %679 = vector.extract_strided_slice %665 {offsets = [0, 2, 0], sizes = [8, 1, 48], strides = [1, 1, 1]} : vector<8x4x48xf32> to vector<8x1x48xf32>
    %680 = vector.shape_cast %679 : vector<8x1x48xf32> to vector<8x48xf32>
    %c2_188 = arith.constant 2 : index
    %c0_189 = arith.constant 0 : index
    %c0_190 = arith.constant 0 : index
    %681 = vector.load %arg14[%c2_188, %c0_189, %c0_190] : memref<4x48x192xbf16, #tpu.memory_space<vmem>>, vector<1x48x192xbf16>
    %682 = vector.shape_cast %681 : vector<1x48x192xbf16> to vector<48x192xbf16>
    %683 = arith.truncf %680 : vector<8x48xf32> to vector<8x48xbf16>
    %cst_191 = arith.constant dense<0.000000e+00> : vector<8x192xf32>
    %684 = tpu.matmul %683, %682, %cst_191 {dimension_numbers = #tpu.dot_dimension_numbers<[1], [0], [0], [1], [0, 0, 1, 1], [], []>} : vector<8x48xbf16>, vector<48x192xbf16>, vector<8x192xf32> -> vector<8x192xf32>
    %685 = arith.addf %678, %684 : vector<8x192xf32>
    %686 = vector.extract_strided_slice %665 {offsets = [0, 3, 0], sizes = [8, 1, 48], strides = [1, 1, 1]} : vector<8x4x48xf32> to vector<8x1x48xf32>
    %687 = vector.shape_cast %686 : vector<8x1x48xf32> to vector<8x48xf32>
    %c3_192 = arith.constant 3 : index
    %c0_193 = arith.constant 0 : index
    %c0_194 = arith.constant 0 : index
    %688 = vector.load %arg14[%c3_192, %c0_193, %c0_194] : memref<4x48x192xbf16, #tpu.memory_space<vmem>>, vector<1x48x192xbf16>
    %689 = vector.shape_cast %688 : vector<1x48x192xbf16> to vector<48x192xbf16>
    %690 = arith.truncf %687 : vector<8x48xf32> to vector<8x48xbf16>
    %cst_195 = arith.constant dense<0.000000e+00> : vector<8x192xf32>
    %691 = tpu.matmul %690, %689, %cst_195 {dimension_numbers = #tpu.dot_dimension_numbers<[1], [0], [0], [1], [0, 0, 1, 1], [], []>} : vector<8x48xbf16>, vector<48x192xbf16>, vector<8x192xf32> -> vector<8x192xf32>
    %692 = arith.addf %685, %691 : vector<8x192xf32>
    %c0_196 = arith.constant 0 : index
    %c0_197 = arith.constant 0 : index
    %693 = vector.load %arg18[%c0_196, %c0_197] : memref<4x192xf32, #tpu.memory_space<vmem>>, vector<1x192xf32>
    %694 = vector.broadcast %693 : vector<1x192xf32> to vector<8x192xf32>
    %695 = arith.addf %692, %694 : vector<8x192xf32>
    %cst_198 = arith.constant 0.000000e+00 : f32
    %696 = vector.broadcast %cst_198 : f32 to vector<8x192xf32>
    %697 = arith.maximumf %695, %696 : vector<8x192xf32>
    %c0_199 = arith.constant 0 : index
    %c0_200 = arith.constant 0 : index
    %698 = vector.load %arg15[%c0_199, %c0_200] : memref<192x192xbf16, #tpu.memory_space<vmem>>, vector<192x192xbf16>
    %699 = arith.truncf %697 : vector<8x192xf32> to vector<8x192xbf16>
    %cst_201 = arith.constant dense<0.000000e+00> : vector<8x192xf32>
    %700 = tpu.matmul %699, %698, %cst_201 {dimension_numbers = #tpu.dot_dimension_numbers<[1], [0], [0], [1], [0, 0, 1, 1], [], []>} : vector<8x192xbf16>, vector<192x192xbf16>, vector<8x192xf32> -> vector<8x192xf32>
    %c1_202 = arith.constant 1 : index
    %c0_203 = arith.constant 0 : index
    %701 = vector.load %arg18[%c1_202, %c0_203] : memref<4x192xf32, #tpu.memory_space<vmem>>, vector<1x192xf32>
    %702 = vector.broadcast %701 : vector<1x192xf32> to vector<8x192xf32>
    %703 = arith.addf %700, %702 : vector<8x192xf32>
    %c2_204 = arith.constant 2 : index
    %c0_205 = arith.constant 0 : index
    %704 = vector.load %arg18[%c2_204, %c0_205] : memref<4x192xf32, #tpu.memory_space<vmem>>, vector<1x192xf32>
    %c3_206 = arith.constant 3 : index
    %c0_207 = arith.constant 0 : index
    %705 = vector.load %arg18[%c3_206, %c0_207] : memref<4x192xf32, #tpu.memory_space<vmem>>, vector<1x192xf32>
    %cst_208 = arith.constant dense<0.000000e+00> : vector<8xf32>
    %706 = vector.multi_reduction <add>, %703, %cst_208 [1] : vector<8x192xf32> to vector<8xf32>
    %707 = vector.shape_cast %706 : vector<8xf32> to vector<8x1xf32>
    %cst_209 = arith.constant 1.920000e+02 : f32
    %708 = vector.broadcast %cst_209 : f32 to vector<8x1xf32>
    %709 = arith.divf %707, %708 : vector<8x1xf32>
    %710 = vector.broadcast %709 : vector<8x1xf32> to vector<8x192xf32>
    %711 = arith.subf %703, %710 : vector<8x192xf32>
    %712 = arith.mulf %711, %711 : vector<8x192xf32>
    %cst_210 = arith.constant dense<0.000000e+00> : vector<8xf32>
    %713 = vector.multi_reduction <add>, %712, %cst_210 [1] : vector<8x192xf32> to vector<8xf32>
    %714 = vector.shape_cast %713 : vector<8xf32> to vector<8x1xf32>
    %cst_211 = arith.constant 1.920000e+02 : f32
    %715 = vector.broadcast %cst_211 : f32 to vector<8x1xf32>
    %716 = arith.divf %714, %715 : vector<8x1xf32>
    %717 = vector.broadcast %709 : vector<8x1xf32> to vector<8x192xf32>
    %718 = arith.subf %703, %717 : vector<8x192xf32>
    %cst_212 = arith.constant 9.99999974E-6 : f32
    %719 = vector.broadcast %cst_212 : f32 to vector<8x1xf32>
    %720 = arith.addf %716, %719 : vector<8x1xf32>
    %721 = math.rsqrt %720 : vector<8x1xf32>
    %722 = vector.broadcast %721 : vector<8x1xf32> to vector<8x192xf32>
    %723 = arith.mulf %718, %722 : vector<8x192xf32>
    %724 = vector.broadcast %704 : vector<1x192xf32> to vector<8x192xf32>
    %725 = arith.mulf %723, %724 : vector<8x192xf32>
    %726 = vector.broadcast %705 : vector<1x192xf32> to vector<8x192xf32>
    %727 = arith.addf %725, %726 : vector<8x192xf32>
    %c0_213 = arith.constant 0 : index
    %c0_214 = arith.constant 0 : index
    %728 = vector.load %arg19[%c0_213, %c0_214] : memref<8x192xf32, #tpu.memory_space<vmem>>, vector<8x192xf32>
    tpu.vector_store %arg19[%c0_213, %c0_214], %727 {strides = array<i32>} : memref<8x192xf32, #tpu.memory_space<vmem>>, vector<8x192xf32>,
    return
  }
  func.func @transform_0(%arg0: i32) -> (i32, i32, i32) {
    %c0_i32 = arith.constant 0 : i32
    %c0_i32_0 = arith.constant 0 : i32
    %c0_i32_1 = arith.constant 0 : i32
    return %arg0, %c0_i32, %c0_i32_0 : i32, i32, i32
  }
  func.func @transform_1(%arg0: i32) -> (i32, i32) {
    %c0_i32 = arith.constant 0 : i32
    %c0_i32_0 = arith.constant 0 : i32
    return %arg0, %c0_i32 : i32, i32
  }
  func.func @transform_2(%arg0: i32) -> (i32, i32) {
    %c0_i32 = arith.constant 0 : i32
    %c0_i32_0 = arith.constant 0 : i32
    return %arg0, %c0_i32 : i32, i32
  }
  func.func @transform_3(%arg0: i32) -> (i32, i32) {
    %c0_i32 = arith.constant 0 : i32
    %c0_i32_0 = arith.constant 0 : i32
    %c0_i32_1 = arith.constant 0 : i32
    return %c0_i32, %c0_i32_0 : i32, i32
  }
  func.func @transform_4(%arg0: i32) -> (i32, i32) {
    %c0_i32 = arith.constant 0 : i32
    %c0_i32_0 = arith.constant 0 : i32
    %c0_i32_1 = arith.constant 0 : i32
    return %c0_i32, %c0_i32_0 : i32, i32
  }
  func.func @transform_5(%arg0: i32) -> (i32, i32, i32) {
    %c0_i32 = arith.constant 0 : i32
    %c0_i32_0 = arith.constant 0 : i32
    %c0_i32_1 = arith.constant 0 : i32
    %c0_i32_2 = arith.constant 0 : i32
    return %c0_i32, %c0_i32_0, %c0_i32_1 : i32, i32, i32
  }
  func.func @transform_6(%arg0: i32) -> (i32, i32, i32) {
    %c0_i32 = arith.constant 0 : i32
    %c0_i32_0 = arith.constant 0 : i32
    %c0_i32_1 = arith.constant 0 : i32
    %c0_i32_2 = arith.constant 0 : i32
    return %c0_i32, %c0_i32_0, %c0_i32_1 : i32, i32, i32
  }
  func.func @transform_7(%arg0: i32) -> (i32, i32, i32) {
    %c0_i32 = arith.constant 0 : i32
    %c0_i32_0 = arith.constant 0 : i32
    %c0_i32_1 = arith.constant 0 : i32
    %c0_i32_2 = arith.constant 0 : i32
    return %c0_i32, %c0_i32_0, %c0_i32_1 : i32, i32, i32
  }
  func.func @transform_8(%arg0: i32) -> (i32, i32) {
    %c0_i32 = arith.constant 0 : i32
    %c0_i32_0 = arith.constant 0 : i32
    %c0_i32_1 = arith.constant 0 : i32
    return %c0_i32, %c0_i32_0 : i32, i32
  }
  func.func @transform_9(%arg0: i32) -> (i32, i32, i32, i32) {
    %c0_i32 = arith.constant 0 : i32
    %c0_i32_0 = arith.constant 0 : i32
    %c0_i32_1 = arith.constant 0 : i32
    %c0_i32_2 = arith.constant 0 : i32
    %c0_i32_3 = arith.constant 0 : i32
    return %c0_i32, %c0_i32_0, %c0_i32_1, %c0_i32_2 : i32, i32, i32, i32
  }
  func.func @transform_10(%arg0: i32) -> (i32, i32, i32, i32) {
    %c0_i32 = arith.constant 0 : i32
    %c0_i32_0 = arith.constant 0 : i32
    %c0_i32_1 = arith.constant 0 : i32
    %c0_i32_2 = arith.constant 0 : i32
    %c0_i32_3 = arith.constant 0 : i32
    return %c0_i32, %c0_i32_0, %c0_i32_1, %c0_i32_2 : i32, i32, i32, i32
  }
  func.func @transform_11(%arg0: i32) -> (i32, i32, i32, i32) {
    %c0_i32 = arith.constant 0 : i32
    %c0_i32_0 = arith.constant 0 : i32
    %c0_i32_1 = arith.constant 0 : i32
    %c0_i32_2 = arith.constant 0 : i32
    %c0_i32_3 = arith.constant 0 : i32
    return %c0_i32, %c0_i32_0, %c0_i32_1, %c0_i32_2 : i32, i32, i32, i32
  }
  func.func @transform_12(%arg0: i32) -> (i32, i32, i32, i32) {
    %c0_i32 = arith.constant 0 : i32
    %c0_i32_0 = arith.constant 0 : i32
    %c0_i32_1 = arith.constant 0 : i32
    %c0_i32_2 = arith.constant 0 : i32
    %c0_i32_3 = arith.constant 0 : i32
    return %c0_i32, %c0_i32_0, %c0_i32_1, %c0_i32_2 : i32, i32, i32, i32
  }
  func.func @transform_13(%arg0: i32) -> (i32, i32, i32) {
    %c0_i32 = arith.constant 0 : i32
    %c0_i32_0 = arith.constant 0 : i32
    %c0_i32_1 = arith.constant 0 : i32
    %c0_i32_2 = arith.constant 0 : i32
    return %c0_i32, %c0_i32_0, %c0_i32_1 : i32, i32, i32
  }
  func.func @transform_14(%arg0: i32) -> (i32, i32) {
    %c0_i32 = arith.constant 0 : i32
    %c0_i32_0 = arith.constant 0 : i32
    %c0_i32_1 = arith.constant 0 : i32
    return %c0_i32, %c0_i32_0 : i32, i32
  }
  func.func @transform_15(%arg0: i32) -> (i32, i32) {
    %c0_i32 = arith.constant 0 : i32
    %c0_i32_0 = arith.constant 0 : i32
    %c0_i32_1 = arith.constant 0 : i32
    return %c0_i32, %c0_i32_0 : i32, i32
  }
  func.func @transform_16(%arg0: i32) -> (i32, i32) {
    %c0_i32 = arith.constant 0 : i32
    %c0_i32_0 = arith.constant 0 : i32
    %c0_i32_1 = arith.constant 0 : i32
    return %c0_i32, %c0_i32_0 : i32, i32
  }
  func.func @transform_17(%arg0: i32) -> (i32, i32) {
    %c0_i32 = arith.constant 0 : i32
    %c0_i32_0 = arith.constant 0 : i32
    %c0_i32_1 = arith.constant 0 : i32
    return %c0_i32, %c0_i32_0 : i32, i32
  }
  func.func @transform_18(%arg0: i32) -> (i32, i32) {
    %c0_i32 = arith.constant 0 : i32
    %c0_i32_0 = arith.constant 0 : i32
    return %arg0, %c0_i32 : i32, i32
  }
}

</mosaic_0001>

<bundles_post_ra>
// kernel: hierarchical_forward.1
= control target key start
LH: loop header
LB: loop body
LE: loop exit
PB: predicated region body
PF: predicated region fallthrough
CT: control target
= control target key end

     0   :  { %vm94_vm0 = vcmask 1043456   ;;  %vm95_vm1 = vcmask 1044480   ;;  %v15172_v2 = vmov 65535   ;;  %vm81_vm2 = vcmask 72704   ;;  %s11604_s30 = smov 18   ;;  %s11606_s19 = smov 36   ;;  %s15150_s4 = inlined_call_operand.vmem [shape: bf16[9,24], index: 4, kind: input, shape index: {}]   ;;  %s15151_s0 = inlined_call_operand.vmem [shape: f32[8,8,9], index: 0, kind: input, shape index: {}]   ;;  %s15152_s15 = inlined_call_operand.vmem [shape: f32[2,24], index: 15, kind: input, shape index: {}]   ;;  %s15153_s16 = inlined_call_operand.vmem [shape: f32[9,48], index: 16, kind: input, shape index: {}]   ;;  %s15154_s5 = inlined_call_operand.vmem [shape: bf16[2,24,48], index: 5, kind: input, shape index: {}]   ;;  %s15155_s10 = inlined_call_operand.vmem [shape: f32[8,3,1,6], index: 10, kind: input, shape index: {}]   ;;  %s15156_s9 = inlined_call_operand.vmem [shape: bf16[8,3,48,6], index: 9, kind: input, shape index: {}]   ;;  %s15157_s3 = inlined_call_operand.vmem [shape: f32[8,48], index: 3, kind: input, shape index: {}]   ;;  %s15158_s1 = inlined_call_operand.vmem [shape: f32[8,8], index: 1, kind: input, shape index: {}]   ;;  %s15159_s7 = inlined_call_operand.vmem [shape: bf16[2,37,48], index: 7, kind: input, shape index: {}]   ;;  %s15160_s8 = inlined_call_operand.vmem [shape: bf16[37,24], index: 8, kind: input, shape index: {}]   ;;  %s15161_s6 = inlined_call_operand.vmem [shape: bf16[3,48,48], index: 6, kind: input, shape index: {}]   ;;  %s15162_s2 = inlined_call_operand.vmem [shape: f32[8,37], index: 2, kind: input, shape index: {}]   ;;  %s15163_s12 = inlined_call_operand.vmem [shape: f32[4,3,1,12], index: 12, kind: input, shape index: {}]   ;;  %s15164_s11 = inlined_call_operand.vmem [shape: bf16[4,3,48,12], index: 11, kind: input, shape index: {}]   ;;  %s15165_s13 = inlined_call_operand.vmem [shape: bf16[4,48,192], index: 13, kind: input, shape index: {}]   ;;  %s15166_s14 = inlined_call_operand.vmem [shape: bf16[192,192], index: 14, kind: input, shape index: {}]   ;;  %s15167_s17 = inlined_call_operand.vmem [shape: f32[4,192], index: 17, kind: input, shape index: {}]   ;;  %s15168_s18 = inlined_call_operand.vmem [shape: f32[8,192], index: 18, kind: output, shape index: {}]  }
   0x1   :  { %15173 = sst [smem:[#allocation21_spill]] %s15150_s4  ;;  %v96_v3 = vsel %vm94_vm0, 4294967295, %v15172_v2  ;;  %v140_v19 = vld [vmem:[%s15154_s5 + $0x8] sm:$0xf]  ;;  %v10945_v23 = vld [vmem:[%s15154_s5] sm:$0xff]  ;;  %vm156_vm3 = vcmask 195584  }
   0x2   :  { %15174 = sst [smem:[#allocation22_spill]] %s15151_s0  ;;  %v97_v5 = vsel %vm95_vm1, %v96_v3, 0  ;;  %v152_v20 = vunpack.c.l.b16 %v140_v19  ;;  %v10948_v53 = vld [vmem:[%s15156_s9 + $0x10] sm:$0xff]  ;;  %v10951_v54 = vld [vmem:[%s15156_s9 + $0x28] sm:$0xff]  ;;  %v10954_v55 = vld [vmem:[%s15156_s9 + $0x40] sm:$0xff]  ;;  %vm421_vm4 = vcmask 392192  }
   0x3   :  { %15175 = sst [smem:[#allocation23_spill]] %s15152_s15  ;;  %439 = vmatpush.bf16.msra.mxu2 %v10948_v53  ;;  %489 = vmatpush.bf16.msra.mxu3 %v10951_v54  ;;  %v10947_v56 = vld [vmem:[%s15156_s9 + $0x8] sm:$0xff]  ;;  %v10950_v57 = vld [vmem:[%s15156_s9 + $0x20] sm:$0xff]  ;;  %v10953_v58 = vld [vmem:[%s15156_s9 + $0x38] sm:$0xff]  ;;  %vm579_vm5 = vcmask 48128   ;;  %vm764_vm6 = vcmask 64512  }
   0x4   :  { %s15176_s29 = sld [smem:[#allocation21_spill]]  ;;  %v154_v21 = vpack.c.b16 %v152_v20, %v152_v20  ;;  %v10946_v59 = vld [vmem:[%s15156_s9] sm:$0xff]  ;;  %v10949_v60 = vld [vmem:[%s15156_s9 + $0x18] sm:$0xff]  ;;  %v10952_v61 = vld [vmem:[%s15156_s9 + $0x30] sm:$0xff]  ;;  %s11605_s4 = smov 30   ;;  %vm6191_vm7 = vcmask 1041408  }
   0x5   :  { %s15177_s20 = sld [smem:[#allocation22_spill]]  ;;  %v11132_v63 = vld [vmem:[%s15153_s16] ss:$0 sm:$0xff]  ;;  %s11607_s0 = smov 24   ;;  %vm6192_vm8 = vcmask 1042432   ;;  %vm5519_vm9 = vcmask 97280  }
   0x6   :  { %v170_v22 = vsel %vm94_vm0, %v154_v21, 0  ;;  %s11608_s23 = smov 42   ;;  %vm5536_vm10 = vcmask 146432   ;;  %vm5569_vm11 = vcmask 244736   ;;  %vm5586_vm12 = vcmask 293888  }
   0x7   :  { %178 = vmatpush.bf16.msra.mxu1 %v170_v22  ;;  %440 = vmatpush.bf16.msra.mxu2 %v10947_v56  ;;  %vm5603_vm13 = vcmask 343040   ;;  %vm6187_vm14 = vcmask 302080  }
   0x8   :  { %490 = vmatpush.bf16.msra.mxu3 %v10950_v57 }
   0xa   :  { %v9867_v0 = vld [vmem:[%s15176_s29] sm:$0xf]  ;;  %v10944_v1 = vld [vmem:[%s15176_s29] sm:$0x10]  ;;  %s11603_s29 = smov 12  }
   0xb   :  { %v9868_v4 = vor.u32 %v10944_v1, %v9867_v0  ;;  %v60_v6 = vld [vmem:[%s15177_s20] sm:$0xff]  ;;  %v61_v7 = vld [vmem:[%s15177_s20 + $0x8] sm:$0xff]  ;;  %v62_v10 = vld [vmem:[%s15177_s20 + $0x10] sm:$0xff]  ;;  %179 = vmatpush.bf16.msra.mxu1 %v10945_v23  ;;  %441 = vmatpush.bf16.msra.mxu2 %v10946_v59 }
   0xc   :  { %v70_v9 = vpack.c.bf16 %v61_v7, %v60_v6  ;;  %v63_v11 = vld [vmem:[%s15177_s20 + $0x18] sm:$0xff]  ;;  %v64_v13 = vld [vmem:[%s15177_s20 + $0x20] sm:$0xff]  ;;  %v65_v14 = vld [vmem:[%s15177_s20 + $0x28] sm:$0xff]  ;;  %491 = vmatpush.bf16.msra.mxu3 %v10949_v60 }
   0xd   :  { %v99_v8 = vand.u32 %v9868_v4, %v97_v5  ;;  %v71_v12 = vpack.c.bf16 %v63_v11, %v62_v10  ;;  %v72_v15 = vpack.c.bf16 %v65_v14, %v64_v13  ;;  %v66_v16 = vld [vmem:[%s15177_s20 + $0x30] sm:$0xff]  ;;  %v67_v17 = vld [vmem:[%s15177_s20 + $0x38] sm:$0xff]  ;;  %s15178_s20 = sld [smem:[#allocation23_spill]]  ;;  %v201_v1 = vld [vmem:[%s15157_s3] sm:$0xff] }
   0xe   :  { %v73_v18 = vpack.c.bf16 %v67_v17, %v66_v16 }
   0xf   :  { %108 = vmatpush.bf16.msra.mxu0 %v99_v8 }
  0x12   :  { %9869 = vmatmul.msk.bf16.vlgmr.msra.gmra.mxu0 %vm81_vm2, %v70_v9 }
  0x13   :  { %v11131_v25 = vld [vmem:[%s15178_s20] ss:$0 sm:$0xff]  ;;  %539 = vmatpush.bf16.msrb.mxu0 %v10954_v55 }
  0x17   :  { %540 = vmatpush.bf16.msrb.mxu0 %v10953_v58  ;;  %v11844_v58 = vld [vmem:[%s15155_s10 + $0x2] ss:$0 sm:$0xff] }
  0x1b   :  { %541 = vmatpush.bf16.msrb.mxu0 %v10952_v61 }
  0x22   :  { %9870 = vmatmul.msk.bf16.gmra.mxu0 %vm81_vm2, %v71_v12 }
  0x32   :  { %9871 = vmatmul.msk.bf16.gmra.mxu0 %vm81_vm2, %v72_v15 }
  0x42   :  { %9872 = vmatmul.msk.bf16.gmra.mxu0 %vm81_vm2, %v73_v18 }
  0x8f   :  { %v110_v24 = vpop.f32.mrf.mxu0 }
  0x90   :  { %v111_v26 = vadd.f32 %v11131_v25, %v110_v24 }
  0x92   :  { %v130_v29 = vmax.f32 %v111_v26, 0.0 }
  0x97   :  { %v112_v27 = vpop.f32.mrf.mxu0 }
  0x98   :  { %v113_v28 = vadd.f32 %v11131_v25, %v112_v27 }
  0x9a   :  { %v131_v30 = vmax.f32 %v113_v28, 0.0 }
  0x9c   :  { %v141_v31 = vpack.c.bf16 %v131_v30, %v130_v29  ;;  %v11820_v30 = vld [vmem:[%s15155_s10 + $0x1] ss:$0 sm:$0xff] }
  0x9e   :  { %9877 = vmatmul.msk.bf16.vlgmr.msra.gmra.mxu1 %vm156_vm3, %v141_v31 }
  0x9f   :  { %v115_v32 = vpop.f32.mrf.mxu0 }
  0xa0   :  { %v116_v33 = vadd.f32 %v11131_v25, %v115_v32 }
  0xa2   :  { %v132_v36 = vmax.f32 %v116_v33, 0.0 }
  0xa7   :  { %v117_v34 = vpop.f32.mrf.mxu0 }
  0xa8   :  { %v118_v35 = vadd.f32 %v11131_v25, %v117_v34  ;;  %v11826_v34 = vld [vmem:[%s15155_s10] ss:$0 sm:$0xff] }
  0xaa   :  { %v133_v37 = vmax.f32 %v118_v35, 0.0 }
  0xac   :  { %v142_v38 = vpack.c.bf16 %v133_v37, %v132_v36 }
  0xae   :  { %9878 = vmatmul.msk.bf16.gmra.mxu1 %vm156_vm3, %v142_v38 }
  0xaf   :  { %v120_v39 = vpop.f32.mrf.mxu0 }
  0xb0   :  { %v121_v40 = vadd.f32 %v11131_v25, %v120_v39 }
  0xb2   :  { %v134_v43 = vmax.f32 %v121_v40, 0.0 }
  0xb7   :  { %v122_v41 = vpop.f32.mrf.mxu0 }
  0xb8   :  { %v123_v42 = vadd.f32 %v11131_v25, %v122_v41 }
  0xba   :  { %v135_v44 = vmax.f32 %v123_v42, 0.0 }
  0xbc   :  { %v143_v45 = vpack.c.bf16 %v135_v44, %v134_v43 }
  0xbe   :  { %9879 = vmatmul.msk.bf16.gmra.mxu1 %vm156_vm3, %v143_v45 }
  0xbf   :  { %v125_v46 = vpop.f32.mrf.mxu0 }
  0xc0   :  { %v126_v47 = vadd.f32 %v11131_v25, %v125_v46 }
  0xc2   :  { %v136_v49 = vmax.f32 %v126_v47, 0.0 }
  0xc7   :  { %v127_v48 = vpop.f32.mrf.mxu0 }
  0xc8   :  { %v128_v50 = vadd.f32 %v11131_v25, %v127_v48 }
  0xca   :  { %v137_v51 = vmax.f32 %v128_v50, 0.0 }
  0xcc   :  { %v144_v52 = vpack.c.bf16 %v137_v51, %v136_v49 }
  0xce   :  { %9880 = vmatmul.msk.bf16.gmra.mxu1 %vm156_vm3, %v144_v52 }
 0x11b   :  { %v181_v62 = vpop.f32.mrf.mxu1 }
 0x11c   :  { %v182_v0 = vadd.f32 %v11132_v63, %v181_v62 }
 0x11e   :  { %v202_v5 = vadd.f32 %v201_v1, %v182_v0 }
 0x123   :  { %v183_v3 = vpop.f32.mrf.mxu1 }
 0x124   :  { %v184_v4 = vadd.f32 %v11132_v63, %v183_v3 }
 0x126   :  { %v203_v6 = vadd.f32 %v201_v1, %v184_v4 }
 0x128   :  { %v11785_v7 = vpack.c.bf16 %v203_v6, %v202_v5 }
 0x12a   :  { %9894 = vmatmul.msk.bf16.vlgmr.msra.gmra.mxu2 %vm421_vm4, %v11785_v7  ;;  %9910 = vmatmul.msk.bf16.vlgmr.msra.gmra.mxu3 %vm421_vm4, %v11785_v7 }
 0x12b   :  { %9926 = vmatmul.msk.bf16.vlgmr.msrb.gmra.mxu0 %vm421_vm4, %v11785_v7  ;;  %v186_v8 = vpop.f32.mrf.mxu1 }
 0x12c   :  { %v187_v9 = vadd.f32 %v11132_v63, %v186_v8 }
 0x12e   :  { %v204_v12 = vadd.f32 %v201_v1, %v187_v9 }
 0x133   :  { %v188_v10 = vpop.f32.mrf.mxu1 }
 0x134   :  { %v189_v11 = vadd.f32 %v11132_v63, %v188_v10 }
 0x136   :  { %v205_v13 = vadd.f32 %v201_v1, %v189_v11 }
 0x138   :  { %v11793_v14 = vpack.c.bf16 %v205_v13, %v204_v12 }
 0x13a   :  { %9895 = vmatmul.msk.bf16.gmra.mxu2 %vm421_vm4, %v11793_v14  ;;  %9911 = vmatmul.msk.bf16.gmra.mxu3 %vm421_vm4, %v11793_v14 }
 0x13b   :  { %9927 = vmatmul.msk.bf16.gmra.mxu0 %vm421_vm4, %v11793_v14  ;;  %v191_v15 = vpop.f32.mrf.mxu1 }
 0x13c   :  { %v192_v16 = vadd.f32 %v11132_v63, %v191_v15 }
 0x13e   :  { %v206_v19 = vadd.f32 %v201_v1, %v192_v16 }
 0x143   :  { %v193_v17 = vpop.f32.mrf.mxu1 }
 0x144   :  { %v194_v18 = vadd.f32 %v11132_v63, %v193_v17 }
 0x146   :  { %v207_v20 = vadd.f32 %v201_v1, %v194_v18 }
 0x148   :  { %v11801_v21 = vpack.c.bf16 %v207_v20, %v206_v19 }
 0x14a   :  { %9896 = vmatmul.msk.bf16.gmra.mxu2 %vm421_vm4, %v11801_v21  ;;  %9912 = vmatmul.msk.bf16.gmra.mxu3 %vm421_vm4, %v11801_v21 }
 0x14b   :  { %9928 = vmatmul.msk.bf16.gmra.mxu0 %vm421_vm4, %v11801_v21  ;;  %v196_v22 = vpop.f32.mrf.mxu1 }
 0x14c   :  { %v197_v23 = vadd.f32 %v11132_v63, %v196_v22 }
 0x14e   :  { %v208_v25 = vadd.f32 %v201_v1, %v197_v23 }
 0x153   :  { %v198_v24 = vpop.f32.mrf.mxu1 }
 0x154   :  { %v199_v26 = vadd.f32 %v11132_v63, %v198_v24 }
 0x156   :  { %v209_v27 = vadd.f32 %v201_v1, %v199_v26 }
 0x158   :  { %v11809_v28 = vpack.c.bf16 %v209_v27, %v208_v25 }
 0x15a   :  { %9913 = vmatmul.msk.bf16.gmra.mxu3 %vm421_vm4, %v11809_v28  ;;  %9897 = vmatmul.msk.bf16.gmra.mxu2 %vm421_vm4, %v11809_v28 }
 0x15b   :  { %9929 = vmatmul.msk.bf16.gmra.mxu0 %vm421_vm4, %v11809_v28 }
 0x1a8   :  { %v543_v29 = vpop.f32.mrf.mxu0 }
 0x1a9   :  { %v544_v11 = vadd.f32 %v11844_v58, %v543_v29 }
 0x1ab   :  { %v861_v16 = vpack.c.bf16 %v544_v11, %v544_v11 }
 0x1ad   :  { %v443_v31 = vpop.f32.mrf.mxu2  ;;  %v493_v32 = vpop.f32.mrf.mxu3  ;;  %v873_v23 = vsel %vm94_vm0, %v861_v16, 0 }
 0x1ae   :  { %v494_v33 = vadd.f32 %v11820_v30, %v493_v32  ;;  %v444_v38 = vadd.f32 %v11826_v34, %v443_v31 }
 0x1b0   :  { %v571_v35 = vpack.c.bf16 %v494_v33, %v494_v33  ;;  %v545_v36 = vpop.f32.mrf.mxu0  ;;  %v563_v42 = vpack.c.bf16 %v444_v38, %v444_v38 }
 0x1b1   :  { %v546_v24 = vadd.f32 %v11844_v58, %v545_v36 }
 0x1b2   :  { %v584_v37 = vsel %vm579_vm5, %v571_v35, 0 }
 0x1b3   :  { %593 = vmatpush.bf16.xpose.msra.mxu0 %v584_v37  ;;  %v862_v31 = vpack.c.bf16 %v546_v24, %v546_v24 }
 0x1b5   :  { %v445_v39 = vpop.f32.mrf.mxu2  ;;  %v495_v40 = vpop.f32.mrf.mxu3 }
 0x1b6   :  { %v496_v41 = vadd.f32 %v11820_v30, %v495_v40  ;;  %v446_v46 = vadd.f32 %v11826_v34, %v445_v39 }
 0x1b8   :  { %v572_v43 = vpack.c.bf16 %v496_v41, %v496_v41  ;;  %v11831_v44 = vpop.f32.mrf.mxu0  ;;  %v564_v50 = vpack.c.bf16 %v446_v46, %v446_v46 }
 0x1b9   :  { %v549_v41 = vadd.f32 %v11844_v58, %v11831_v44 }
 0x1ba   :  { %9930 = vmatmul.msk.bf16.vlgmr.msra.gmra.mxu0 %vm579_vm5, %v563_v42  ;;  %v603_v45 = vsel %vm579_vm5, %v572_v43, 0  ;;  %v892_v42 = vsel %vm94_vm0, %v862_v31, 0 }
 0x1bb   :  { %612 = vmatpush.bf16.xpose.msrb.mxu2 %v603_v45 }
 0x1bd   :  { %v448_v47 = vpop.f32.mrf.mxu2  ;;  %v498_v48 = vpop.f32.mrf.mxu3 }
 0x1be   :  { %v499_v49 = vadd.f32 %v11820_v30, %v498_v48  ;;  %v449_v54 = vadd.f32 %v11826_v34, %v448_v47  ;;  %v863_v48 = vpack.c.bf16 %v549_v41, %v549_v41 }
 0x1c0   :  { %v573_v51 = vpack.c.bf16 %v499_v49, %v499_v49  ;;  %v550_v52 = vpop.f32.mrf.mxu0  ;;  %v565_v59 = vpack.c.bf16 %v449_v54, %v449_v54 }
 0x1c1   :  { %v551_v20 = vadd.f32 %v11844_v58, %v550_v52 }
 0x1c2   :  { %9931 = vmatmul.msk.bf16.vlgmr.msrb.gmra.mxu2 %vm579_vm5, %v564_v50  ;;  %v622_v53 = vsel %vm579_vm5, %v573_v51, 0 }
 0x1c3   :  { %631 = vmatpush.bf16.xpose.msrb.mxu3 %v622_v53  ;;  %v864_v27 = vpack.c.bf16 %v551_v20, %v551_v20 }
 0x1c5   :  { %v450_v55 = vpop.f32.mrf.mxu2  ;;  %v500_v56 = vpop.f32.mrf.mxu3  ;;  %v930_v36 = vsel %vm94_vm0, %v864_v27, 0 }
 0x1c6   :  { %v501_v57 = vadd.f32 %v11820_v30, %v500_v56  ;;  %v451_v1 = vadd.f32 %v11826_v34, %v450_v55  ;;  %v911_v55 = vsel %vm94_vm0, %v863_v48, 0 }
 0x1c8   :  { %v574_v60 = vpack.c.bf16 %v501_v57, %v501_v57  ;;  %v553_v61 = vpop.f32.mrf.mxu0  ;;  %v566_v8 = vpack.c.bf16 %v451_v1, %v451_v1 }
 0x1c9   :  { %v554_v62 = vadd.f32 %v11844_v58, %v553_v61  ;;  %v210_v61 = vld [vmem:[%s15158_s1] sm:$0xff] }
 0x1ca   :  { %9932 = vmatmul.msk.bf16.vlgmr.msrb.gmra.mxu3 %vm579_vm5, %v565_v59  ;;  %v641_v63 = vsel %vm579_vm5, %v574_v60, 0 }
 0x1cb   :  { %v865_v0 = vpack.c.bf16 %v554_v62, %v554_v62  ;;  %650 = vmatpush.bf16.xpose.msrb.mxu1 %v641_v63 }
 0x1cd   :  { %v949_v3 = vsel %vm94_vm0, %v865_v0, 0  ;;  %v453_v4 = vpop.f32.mrf.mxu2  ;;  %v503_v5 = vpop.f32.mrf.mxu3 }
 0x1ce   :  { %v504_v6 = vadd.f32 %v11820_v30, %v503_v5  ;;  %958 = vmatpush.bf16.msrb.mxu0 %v949_v3  ;;  %v454_v12 = vadd.f32 %v11826_v34, %v453_v4 }
 0x1d0   :  { %v575_v9 = vpack.c.bf16 %v504_v6, %v504_v6  ;;  %v567_v18 = vpack.c.bf16 %v454_v12, %v454_v12  ;;  %v555_v32 = vpop.f32.mrf.mxu0 }
 0x1d1   :  { %v556_v38 = vadd.f32 %v11844_v58, %v555_v32 }
 0x1d2   :  { %v660_v10 = vsel %vm579_vm5, %v575_v9, 0  ;;  %9933 = vmatmul.msk.bf16.vlgmr.msrb.gmra.mxu1 %vm579_vm5, %v566_v8 }
 0x1d3   :  { %669 = vmatpush.bf16.xpose.msra.mxu2 %v660_v10  ;;  %v866_v45 = vpack.c.bf16 %v556_v38, %v556_v38 }
 0x1d5   :  { %v505_v13 = vpop.f32.mrf.mxu3  ;;  %v455_v17 = vpop.f32.mrf.mxu2  ;;  %v968_v53 = vsel %vm94_vm0, %v866_v45, 0 }
 0x1d6   :  { %v506_v15 = vadd.f32 %v11820_v30, %v505_v13  ;;  %v456_v25 = vadd.f32 %v11826_v34, %v455_v17 }
 0x1d8   :  { %v576_v19 = vpack.c.bf16 %v506_v15, %v506_v15  ;;  %v568_v35 = vpack.c.bf16 %v456_v25, %v456_v25  ;;  %v558_v49 = vpop.f32.mrf.mxu0 }
 0x1d9   :  { %v559_v52 = vadd.f32 %v11844_v58, %v558_v49 }
 0x1da   :  { %9934 = vmatmul.msk.bf16.vlgmr.msra.gmra.mxu2 %vm579_vm5, %v567_v18  ;;  %v679_v22 = vsel %vm579_vm5, %v576_v19, 0 }
 0x1db   :  { %688 = vmatpush.bf16.xpose.msra.mxu3 %v679_v22 }
 0x1dd   :  { %v508_v26 = vpop.f32.mrf.mxu3  ;;  %v458_v33 = vpop.f32.mrf.mxu2 }
 0x1de   :  { %v509_v29 = vadd.f32 %v11820_v30, %v508_v26  ;;  %v459_v40 = vadd.f32 %v11826_v34, %v458_v33 }
 0x1e0   :  { %v577_v37 = vpack.c.bf16 %v509_v29, %v509_v29  ;;  %v569_v47 = vpack.c.bf16 %v459_v40, %v459_v40  ;;  %v11881_v59 = vpop.f32.mrf.mxu0 }
 0x1e2   :  { %v698_v39 = vsel %vm579_vm5, %v577_v37, 0  ;;  %9935 = vmatmul.msk.bf16.vlgmr.msra.gmra.mxu3 %vm579_vm5, %v568_v35 }
 0x1e3   :  { %882 = vmatpush.bf16.msrb.mxu3 %v873_v23  ;;  %707 = vmatpush.bf16.xpose.msra.mxu1 %v698_v39 }
 0x1e5   :  { %v510_v43 = vpop.f32.mrf.mxu3  ;;  %v460_v50 = vpop.f32.mrf.mxu2 }
 0x1e6   :  { %v511_v46 = vadd.f32 %v11820_v30, %v510_v43  ;;  %v461_v54 = vadd.f32 %v11826_v34, %v460_v50  ;;  %v867_v30 = vpack.c.bf16 %v559_v52, %v559_v52  ;;  %v9881_v34 = vadd.f32 -1.0, %v210_v61 }
 0x1e7   :  { %939 = vmatpush.bf16.msra.mxu3 %v930_v36 }
 0x1e8   :  { %v578_v51 = vpack.c.bf16 %v511_v46, %v511_v46  ;;  %v570_v56 = vpack.c.bf16 %v461_v54, %v461_v54  ;;  %v987_v57 = vsel %vm94_vm0, %v867_v30, 0  ;;  %v11886_v62 = vmul.f32 1e+30, %v9881_v34 }
 0x1ea   :  { %9936 = vmatmul.msk.bf16.vlgmr.msra.gmra.mxu1 %vm579_vm5, %v569_v47  ;;  %v717_v44 = vsel %vm579_vm5, %v578_v51, 0  ;;  %v214_v0 = vrot.slane %v11886_v62, 1  ;;  %v217_v13 = vrot.slane %v11886_v62, 4  ;;  %v218_v19 = vrot.slane %v11886_v62, 5 }
 0x1eb   :  { %901 = vmatpush.bf16.msrb.mxu1 %v892_v42  ;;  %726 = vmatpush.bf16.xpose.msrb.mxu2 %v717_v44  ;;  %v11906_v32 = vperm.slane %v11886_v62, 0  ;;  %v216_v43 = vrot.slane %v11886_v62, 3  ;;  %v215_v34 = vrot.slane %v11886_v62, 2 }
 0x1ec   :  { %v11889_v1 = vperm.slane %v214_v0, 0  ;;  %v11894_v15 = vperm.slane %v217_v13, 0  ;;  %v11899_v22 = vperm.slane %v218_v19, 0 }
 0x1ed   :  { %v11912_v48 = vperm.slane %v216_v43, 0 }
 0x1ef   :  { %977 = vmatpush.bf16.msra.mxu1 %v968_v53 }
 0x1f2   :  { %9937 = vmatmul.msk.bf16.vlgmr.msrb.gmra.mxu2 %vm579_vm5, %v570_v56 }
 0x1f3   :  { %920 = vmatpush.bf16.msra.mxu2 %v911_v55 }
 0x1f7   :  { %996 = vmatpush.bf16.msrb.mxu2 %v987_v57 }
 0x237   :  { %v595_v60 = vpop.f32.mrf.mxu0 }
 0x238   :  { %v732_v29 = vmul.f32 0.4082483, %v595_v60 }
 0x23a   :  { %v756_v35 = vadd.f32 %v11906_v32, %v732_v29  ;;  %v10960_v29 = vld [vmem:[%s15156_s9 + $0x70] sm:$0xff] }
 0x23c   :  { %v765_v38 = vsel %vm764_vm6, %v756_v35, -inf }
 0x23f   :  { %v597_v63 = vpop.f32.mrf.mxu0 }
 0x240   :  { %v220_v63 = vrot.slane %v11886_v62, 7 }
 0x245   :  { %v614_v3 = vpop.f32.mrf.mxu2 }
 0x246   :  { %v733_v4 = vmul.f32 0.4082483, %v614_v3 }
 0x248   :  { %v757_v5 = vadd.f32 %v11889_v1, %v733_v4 }
 0x24a   :  { %v768_v6 = vsel %vm764_vm6, %v757_v5, -inf }
 0x24b   :  { %769 = vmax.xlane.f32.xlu0 %v768_v6 }
 0x24d   :  { %v616_v8 = vpop.f32.mrf.mxu2  ;;  %v633_v9 = vpop.f32.mrf.mxu3 }
 0x24e   :  { %v734_v4 = vmul.f32 0.4082483, %v633_v9 }
 0x24f   :  { %v652_v10 = vpop.f32.mrf.mxu1 }
 0x250   :  { %v735_v46 = vmul.f32 0.4082483, %v652_v10 }
 0x252   :  { %v759_v49 = vadd.f32 %v11912_v48, %v735_v46 }
 0x254   :  { %v774_v50 = vsel %vm764_vm6, %v759_v49, -inf }
 0x255   :  { %v635_v11 = vpop.f32.mrf.mxu3 }
 0x256   :  { %v11926_v11 = vperm.slane %v220_v63, 0 }
 0x257   :  { %v654_v12 = vpop.f32.mrf.mxu1 }
 0x25d   :  { %v671_v16 = vpop.f32.mrf.mxu2 }
 0x25e   :  { %v736_v17 = vmul.f32 0.4082483, %v671_v16 }
 0x260   :  { %v760_v18 = vadd.f32 %v11894_v15, %v736_v17 }
 0x262   :  { %v777_v20 = vsel %vm764_vm6, %v760_v18, -inf }
 0x263   :  { %778 = vmax.xlane.f32.xlu1 %v777_v20 }
 0x265   :  { %v673_v23 = vpop.f32.mrf.mxu2  ;;  %v690_v24 = vpop.f32.mrf.mxu3 }
 0x266   :  { %v737_v25 = vmul.f32 0.4082483, %v690_v24 }
 0x267   :  { %v11901_v26 = vpop.f32.mrf.mxu1 }
 0x268   :  { %v761_v27 = vadd.f32 %v11899_v22, %v737_v25 }
 0x26a   :  { %v780_v31 = vsel %vm764_vm6, %v761_v27, -inf }
 0x26b   :  { %781 = vmax.xlane.f32.xlu0 %v780_v31 }
 0x26d   :  { %v692_v33 = vpop.f32.mrf.mxu3 }
 0x26e   :  { %v738_v33 = vmul.f32 0.4082483, %v11901_v26 }
 0x26f   :  { %v711_v37 = vpop.f32.mrf.mxu1 }
 0x273   :  { %766 = vmax.xlane.f32.xlu0 %v765_v38  ;;  %v10959_v38 = vld [vmem:[%s15156_s9 + $0x68] sm:$0xff] }
 0x275   :  { %v728_v39 = vpop.f32.mrf.mxu2 }
 0x276   :  { %v739_v6 = vmul.f32 0.4082483, %v728_v39  ;;  %v10958_v39 = vld [vmem:[%s15156_s9 + $0x60] sm:$0xff] }
 0x278   :  { %v763_v12 = vadd.f32 %v11926_v11, %v739_v6 }
 0x27a   :  { %v786_v16 = vsel %vm764_vm6, %v763_v12, -inf }
 0x27d   :  { %v730_v36 = vpop.f32.mrf.mxu2 }
 0x2be   :  { %v770_v40 = vpop.xlane.xlu0 %769 }
 0x2bf   :  { %v790_v41 = vsub.f32 %v757_v5, %v770_v40  ;;  %v11921_v5 = vperm.slane %v215_v34, 0  ;;  %v10956_v40 = vld [vmem:[%s15156_s9 + $0x50] sm:$0xff] }
 0x2c1   :  { %v799_v42 = vmul.f32 1.442695, %v790_v41  ;;  %v11930_v13 = vadd.f32 %v11921_v5, %v734_v4  ;;  %v10955_v41 = vld [vmem:[%s15156_s9 + $0x48] sm:$0xff] }
 0x2c3   :  { %11178 = vpow2.f32 %v799_v42  ;;  %v771_v9 = vsel %vm764_vm6, %v11930_v13, -inf }
 0x2c9   :  { %v11179_v45 = vpop.eup %11178 }
 0x2ca   :  { %v816_v47 = vsel %vm764_vm6, %v11179_v45, 0.0 }
 0x2cb   :  { %817 = vadd.xlane.f32.xlu1 %v816_v47 }
 0x2d3   :  { %775 = vmax.xlane.f32.xlu1 %v774_v50  ;;  %v561_v50 = vadd.f32 %v11844_v58, %v11881_v59 }
 0x2d6   :  { %v779_v51 = vpop.xlane.xlu1 %778 }
 0x2d7   :  { %v793_v53 = vsub.f32 %v760_v18, %v779_v51 }
 0x2d9   :  { %v805_v55 = vmul.f32 1.442695, %v793_v53 }
 0x2de   :  { %v782_v52 = vpop.xlane.xlu0 %781 }
 0x2df   :  { %v794_v44 = vsub.f32 %v761_v27, %v782_v52  ;;  %v219_v27 = vrot.slane %v11886_v62, 6  ;;  %v10957_v62 = vld [vmem:[%s15156_s9 + $0x58] sm:$0xff] }
 0x2e0   :  { %1055 = vmatpush.bf16.msra.mxu0 %v10957_v62 }
 0x2e1   :  { %v807_v54 = vmul.f32 1.442695, %v794_v44  ;;  %v11945_v37 = vperm.slane %v219_v27, 0 }
 0x2e3   :  { %11180 = vpow2.f32 %v807_v54  ;;  %v762_v26 = vadd.f32 %v11945_v37, %v738_v33 }
 0x2e4   :  { %11182 = vpow2.f32 %v805_v55  ;;  %1056 = vmatpush.bf16.msra.mxu0 %v10956_v40  ;;  %v868_v55 = vpack.c.bf16 %v561_v50, %v561_v50  ;;  %v12015_v50 = vld [vmem:[%s15155_s10 + $0x3] ss:$0 sm:$0xff] }
 0x2e5   :  { %v783_v36 = vsel %vm764_vm6, %v762_v26, -inf }
 0x2e6   :  { %v767_v30 = vpop.xlane.xlu0 %766  ;;  %v1006_v58 = vsel %vm94_vm0, %v868_v55, 0 }
 0x2e7   :  { %v789_v56 = vsub.f32 %v756_v35, %v767_v30 }
 0x2e8   :  { %1057 = vmatpush.bf16.msra.mxu0 %v10955_v41 }
 0x2e9   :  { %v11181_v57 = vpop.eup %11180  ;;  %v797_v60 = vmul.f32 1.442695, %v789_v56 }
 0x2ea   :  { %v828_v61 = vsel %vm764_vm6, %v11181_v57, 0.0  ;;  %v11183_v0 = vpop.eup %11182 }
 0x2eb   :  { %11184 = vpow2.f32 %v797_v60  ;;  %829 = vadd.xlane.f32.xlu2 %v828_v61  ;;  %v825_v8 = vsel %vm764_vm6, %v11183_v0, 0.0 }
 0x2f1   :  { %v11919_v3 = vpop.eup %11184 }
 0x2f2   :  { %v813_v10 = vsel %vm764_vm6, %v11919_v3, 0.0 }
 0x2f3   :  { %826 = vadd.xlane.f32.xlu2 %v825_v8  ;;  %814 = vadd.xlane.f32.xlu0 %v813_v10 }
 0x2fb   :  { %787 = vmax.xlane.f32.xlu2 %v786_v16  ;;  %772 = vmax.xlane.f32.xlu0 %v771_v9 }
 0x33e   :  { %v818_v17 = vpop.xlane.xlu1 %817 }
 0x33f   :  { %11186 = vrcp.f32 %v818_v17 }
 0x345   :  { %v11187_v18 = vpop.eup %11186 }
 0x346   :  { %v846_v19 = vmul.f32 %v11187_v18, %v11179_v45  ;;  %v776_v20 = vpop.xlane.xlu1 %775 }
 0x347   :  { %v792_v23 = vsub.f32 %v759_v49, %v776_v20 }
 0x348   :  { %v854_v24 = vpack.c.bf16 %v846_v19, %v846_v19 }
 0x349   :  { %v803_v25 = vmul.f32 1.442695, %v792_v23 }
 0x34a   :  { %9939 = vmatmul.msk.bf16.vlgmr.msrb.gmra.mxu1 %vm764_vm6, %v854_v24 }
 0x34b   :  { %11188 = vpow2.f32 %v803_v25  ;;  %1105 = vmatpush.bf16.msrb.mxu1 %v10960_v29  ;;  %v12005_v29 = vld [vmem:[%s15155_s10 + $0x4] ss:$0 sm:$0xff] }
 0x34f   :  { %1106 = vmatpush.bf16.msrb.mxu1 %v10959_v38 }
 0x351   :  { %v11940_v31 = vpop.eup %11188 }
 0x352   :  { %v822_v35 = vsel %vm764_vm6, %v11940_v31, 0.0 }
 0x353   :  { %823 = vadd.xlane.f32.xlu1 %v822_v35  ;;  %1107 = vmatpush.bf16.msrb.mxu1 %v10958_v39 }
 0x35b   :  { %784 = vmax.xlane.f32.xlu1 %v783_v36 }
 0x35e   :  { %v830_v42 = vpop.xlane.xlu2 %829 }
 0x35f   :  { %11190 = vrcp.f32 %v830_v42 }
 0x365   :  { %v11191_v43 = vpop.eup %11190 }
 0x366   :  { %v850_v45 = vmul.f32 %v11191_v43, %v11181_v57  ;;  %v827_v46 = vpop.xlane.xlu2 %826  ;;  %v815_v47 = vpop.xlane.xlu0 %814 }
 0x367   :  { %11192 = vrcp.f32 %v827_v46 }
 0x368   :  { %v858_v49 = vpack.c.bf16 %v850_v45, %v850_v45  ;;  %11194 = vrcp.f32 %v815_v47 }
 0x36a   :  { %9943 = vmatmul.msk.bf16.vlgmr.msra.gmra.mxu1 %vm764_vm6, %v858_v49 }
 0x36d   :  { %v11193_v51 = vpop.eup %11192 }
 0x36e   :  { %v11195_v52 = vpop.eup %11194  ;;  %v849_v44 = vmul.f32 %v11193_v51, %v11183_v0  ;;  %v788_v53 = vpop.xlane.xlu2 %787 }
 0x36f   :  { %v773_v54 = vpop.xlane.xlu0 %772  ;;  %v845_v30 = vmul.f32 %v11195_v52, %v11919_v3  ;;  %v796_v56 = vsub.f32 %v763_v12, %v788_v53 }
 0x370   :  { %v857_v57 = vpack.c.bf16 %v849_v44, %v849_v44  ;;  %v791_v34 = vsub.f32 %v11930_v13, %v773_v54 }
 0x371   :  { %v853_v60 = vpack.c.bf16 %v845_v30, %v845_v30  ;;  %v811_v61 = vmul.f32 1.442695, %v796_v56 }
 0x372   :  { %9942 = vmatmul.msk.bf16.vlgmr.msrb.gmra.mxu0 %vm764_vm6, %v857_v57  ;;  %v801_v59 = vmul.f32 1.442695, %v791_v34 }
 0x373   :  { %11196 = vpow2.f32 %v811_v61  ;;  %9938 = vmatmul.msk.bf16.vlgmr.msrb.gmra.mxu3 %vm764_vm6, %v853_v60 }
 0x374   :  { %1015 = vmatpush.bf16.msrb.mxu3 %v1006_v58  ;;  %11198 = vpow2.f32 %v801_v59 }
 0x379   :  { %v11197_v63 = vpop.eup %11196 }
 0x37a   :  { %9974 = vmatmul.msk.bf16.vlgmr.msrb.gmra.mxu1 %vm421_vm4, %v11785_v7  ;;  %v834_v0 = vsel %vm764_vm6, %v11197_v63, 0.0  ;;  %v11199_v3 = vpop.eup %11198 }
 0x37b   :  { %835 = vadd.xlane.f32.xlu2 %v834_v0  ;;  %v819_v4 = vsel %vm764_vm6, %v11199_v3, 0.0 }
 0x382   :  { %9958 = vmatmul.msk.bf16.vlgmr.msra.gmra.mxu0 %vm421_vm4, %v11785_v7 }
 0x383   :  { %820 = vadd.xlane.f32.xlu2 %v819_v4 }
 0x38a   :  { %9975 = vmatmul.msk.bf16.gmra.mxu1 %vm421_vm4, %v11793_v14 }
 0x392   :  { %9959 = vmatmul.msk.bf16.gmra.mxu0 %vm421_vm4, %v11793_v14 }
 0x39a   :  { %9976 = vmatmul.msk.bf16.gmra.mxu1 %vm421_vm4, %v11801_v21 }
 0x3a2   :  { %9960 = vmatmul.msk.bf16.gmra.mxu0 %vm421_vm4, %v11801_v21 }
 0x3aa   :  { %9977 = vmatmul.msk.bf16.gmra.mxu1 %vm421_vm4, %v11809_v28 }
 0x3b2   :  { %9961 = vmatmul.msk.bf16.gmra.mxu0 %vm421_vm4, %v11809_v28 }
 0x3c6   :  { %v824_v6 = vpop.xlane.xlu1 %823 }
 0x3c7   :  { %11200 = vrcp.f32 %v824_v6  ;;  %v11990_v8 = vpop.f32.mrf.mxu1 }
 0x3c8   :  { %15179 = vst [vmem:[#allocation2_spill] sm:$0xff] %v11990_v8 }
 0x3cd   :  { %v11201_v10 = vpop.eup %11200 }
 0x3ce   :  { %v848_v12 = vmul.f32 %v11201_v10, %v11940_v31  ;;  %v785_v13 = vpop.xlane.xlu1 %784 }
 0x3cf   :  { %v795_v16 = vsub.f32 %v762_v26, %v785_v13  ;;  %v905_v9 = vpop.f32.mrf.mxu1 }
 0x3d0   :  { %v856_v17 = vpack.c.bf16 %v848_v12, %v848_v12 }
 0x3d1   :  { %v809_v18 = vmul.f32 1.442695, %v795_v16 }
 0x3d2   :  { %9941 = vmatmul.msk.bf16.vlgmr.msra.gmra.mxu3 %vm764_vm6, %v856_v17 }
 0x3d3   :  { %11202 = vpow2.f32 %v809_v18 }
 0x3d9   :  { %v11994_v19 = vpop.eup %11202 }
 0x3da   :  { %v831_v20 = vsel %vm764_vm6, %v11994_v19, 0.0 }
 0x3db   :  { %832 = vadd.xlane.f32.xlu0 %v831_v20 }
 0x3e7   :  { %v11998_v23 = vpop.f32.mrf.mxu1 }
 0x3e8   :  { %15180 = vst [vmem:[#allocation3_spill] sm:$0xff] %v11998_v23 }
 0x3ee   :  { %v836_v24 = vpop.xlane.xlu2 %835 }
 0x3ef   :  { %11204 = vrcp.f32 %v836_v24  ;;  %v12000_v25 = vpop.f32.mrf.mxu0  ;;  %v981_v27 = vpop.f32.mrf.mxu1 }
 0x3f0   :  { %15181 = vst [vmem:[#allocation4_spill] sm:$0xff] %v12000_v25 }
 0x3f5   :  { %v11205_v31 = vpop.eup %11204 }
 0x3f6   :  { %v852_v33 = vmul.f32 %v11205_v31, %v11197_v63  ;;  %v12007_v35 = vpop.f32.mrf.mxu3  ;;  %v821_v38 = vpop.xlane.xlu2 %820 }
 0x3f7   :  { %15182 = vst [vmem:[#allocation5_spill] sm:$0xff] %v12007_v35  ;;  %11206 = vrcp.f32 %v821_v38  ;;  %v962_v62 = vpop.f32.mrf.mxu0  ;;  %v1109_v39 = vpop.f32.mrf.mxu1 }
 0x3f8   :  { %v860_v26 = vpack.c.bf16 %v852_v33, %v852_v33  ;;  %v1110_v36 = vadd.f32 %v12005_v29, %v1109_v39 }
 0x3fa   :  { %v1187_v40 = vpack.c.bf16 %v1110_v36, %v1110_v36  ;;  %9945 = vmatmul.msk.bf16.vlgmr.msrb.gmra.mxu3 %vm764_vm6, %v860_v26 }
 0x3fc   :  { %v1199_v41 = vsel %vm579_vm5, %v1187_v40, 0 }
 0x3fd   :  { %v11207_v42 = vpop.eup %11206  ;;  %1208 = vmatpush.bf16.xpose.msra.mxu3 %v1199_v41 }
 0x3fe   :  { %v847_v43 = vmul.f32 %v11207_v42, %v11199_v3  ;;  %v886_v45 = vpop.f32.mrf.mxu3 }
 0x3ff   :  { %v1059_v46 = vpop.f32.mrf.mxu0  ;;  %v1111_v47 = vpop.f32.mrf.mxu1 }
 0x400   :  { %v855_v49 = vpack.c.bf16 %v847_v43, %v847_v43  ;;  %v1112_v51 = vadd.f32 %v12005_v29, %v1111_v47  ;;  %v1060_v44 = vadd.f32 %v12015_v50, %v1059_v46  ;;  %v10963_v43 = vld [vmem:[%s15156_s9 + $0x88] sm:$0xff] }
 0x402   :  { %v1188_v52 = vpack.c.bf16 %v1112_v51, %v1112_v51  ;;  %9940 = vmatmul.msk.bf16.vlgmr.msra.gmra.mxu2 %vm764_vm6, %v855_v49  ;;  %v1179_v30 = vpack.c.bf16 %v1060_v44, %v1060_v44  ;;  %v10962_v49 = vld [vmem:[%s15156_s9 + $0x80] sm:$0xff] }
 0x403   :  { %1155 = vmatpush.bf16.msra.mxu2 %v10963_v43 }
 0x404   :  { %v1218_v53 = vsel %vm579_vm5, %v1188_v52, 0  ;;  %v10961_v52 = vld [vmem:[%s15156_s9 + $0x78] sm:$0xff] }
 0x405   :  { %1227 = vmatpush.bf16.xpose.msrb.mxu3 %v1218_v53 }
 0x407   :  { %v1061_v54 = vpop.f32.mrf.mxu0  ;;  %v1114_v55 = vpop.f32.mrf.mxu1  ;;  %1156 = vmatpush.bf16.msra.mxu2 %v10962_v49 }
 0x408   :  { %v1115_v56 = vadd.f32 %v12005_v29, %v1114_v55  ;;  %v1062_v59 = vadd.f32 %v12015_v50, %v1061_v54 }
 0x40a   :  { %v1189_v57 = vpack.c.bf16 %v1115_v56, %v1115_v56  ;;  %9994 = vmatmul.msk.bf16.vlgmr.msra.gmra.mxu3 %vm579_vm5, %v1179_v30  ;;  %v1180_v4 = vpack.c.bf16 %v1062_v59, %v1062_v59 }
 0x40b   :  { %1157 = vmatpush.bf16.msra.mxu2 %v10961_v52 }
 0x40c   :  { %v1237_v60 = vsel %vm579_vm5, %v1189_v57, 0 }
 0x40d   :  { %1246 = vmatpush.bf16.xpose.msra.mxu3 %v1237_v60 }
 0x40f   :  { %v1064_v61 = vpop.f32.mrf.mxu0  ;;  %v1116_v34 = vpop.f32.mrf.mxu1 }
 0x410   :  { %v1117_v58 = vadd.f32 %v12005_v29, %v1116_v34  ;;  %v1065_v27 = vadd.f32 %v12015_v50, %v1064_v61 }
 0x412   :  { %v1190_v63 = vpack.c.bf16 %v1117_v58, %v1117_v58  ;;  %v1181_v62 = vpack.c.bf16 %v1065_v27, %v1065_v27 }
 0x414   :  { %v1256_v12 = vsel %vm579_vm5, %v1190_v63, 0 }
 0x417   :  { %v1066_v0 = vpop.f32.mrf.mxu0  ;;  %v1119_v3 = vpop.f32.mrf.mxu1 }
 0x418   :  { %v1120_v6 = vadd.f32 %v12005_v29, %v1119_v3  ;;  %v1067_v46 = vadd.f32 %v12015_v50, %v1066_v0 }
 0x41a   :  { %v1191_v10 = vpack.c.bf16 %v1120_v6, %v1120_v6  ;;  %9995 = vmatmul.msk.bf16.vlgmr.msrb.gmra.mxu3 %vm579_vm5, %v1180_v4  ;;  %v1182_v51 = vpack.c.bf16 %v1067_v46, %v1067_v46 }
 0x41b   :  { %1265 = vmatpush.bf16.xpose.msrb.mxu3 %v1256_v12 }
 0x41c   :  { %v1275_v13 = vsel %vm579_vm5, %v1191_v10, 0 }
 0x41d   :  { %1284 = vmatpush.bf16.xpose.msrb.mxu0 %v1275_v13 }
 0x41f   :  { %v1069_v16 = vpop.f32.mrf.mxu0  ;;  %v1121_v9 = vpop.f32.mrf.mxu1 }
 0x420   :  { %v1070_v17 = vadd.f32 %v12015_v50, %v1069_v16  ;;  %v1122_v18 = vadd.f32 %v12005_v29, %v1121_v9 }
 0x422   :  { %v1183_v20 = vpack.c.bf16 %v1070_v17, %v1070_v17  ;;  %v1192_v24 = vpack.c.bf16 %v1122_v18, %v1122_v18 }
 0x424   :  { %9998 = vmatmul.msk.bf16.vlgmr.msrb.gmra.mxu0 %vm579_vm5, %v1183_v20  ;;  %v1294_v31 = vsel %vm579_vm5, %v1192_v24, 0 }
 0x425   :  { %1303 = vmatpush.bf16.xpose.msra.mxu1 %v1294_v31 }
 0x427   :  { %v1071_v33 = vpop.f32.mrf.mxu0  ;;  %v1124_v38 = vpop.f32.mrf.mxu1 }
 0x428   :  { %v1072_v39 = vadd.f32 %v12015_v50, %v1071_v33  ;;  %v1125_v30 = vadd.f32 %v12005_v29, %v1124_v38 }
 0x42a   :  { %v1184_v26 = vpack.c.bf16 %v1072_v39, %v1072_v39  ;;  %9996 = vmatmul.msk.bf16.vlgmr.msra.gmra.mxu3 %vm579_vm5, %v1181_v62  ;;  %v1193_v60 = vpack.c.bf16 %v1125_v30, %v1125_v30 }
 0x42c   :  { %9999 = vmatmul.msk.bf16.vlgmr.msra.gmra.mxu1 %vm579_vm5, %v1184_v26  ;;  %v1313_v58 = vsel %vm579_vm5, %v1193_v60, 0 }
 0x42f   :  { %v1074_v36 = vpop.f32.mrf.mxu0  ;;  %v1126_v40 = vpop.f32.mrf.mxu1 }
 0x430   :  { %v1075_v41 = vadd.f32 %v12015_v50, %v1074_v36  ;;  %v1127_v42 = vadd.f32 %v12005_v29, %v1126_v40 }
 0x432   :  { %v1194_v45 = vpack.c.bf16 %v1127_v42, %v1127_v42  ;;  %v1185_v27 = vpack.c.bf16 %v1075_v41, %v1075_v41 }
 0x434   :  { %v1332_v47 = vsel %vm579_vm5, %v1194_v45, 0 }
 0x435   :  { %1341 = vmatpush.bf16.xpose.msra.mxu3 %v1332_v47 }
 0x437   :  { %v1076_v44 = vpop.f32.mrf.mxu0 }
 0x438   :  { %v1077_v53 = vadd.f32 %v12015_v50, %v1076_v44 }
 0x43a   :  { %9997 = vmatmul.msk.bf16.vlgmr.msrb.gmra.mxu3 %vm579_vm5, %v1182_v51  ;;  %v1186_v54 = vpack.c.bf16 %v1077_v53, %v1077_v53  ;;  %v11138_v51 = vld [vmem:[%s15155_s10 + $0x5] ss:$0 sm:$0xff] }
 0x44a   :  { %10001 = vmatmul.msk.bf16.vlgmr.msra.gmra.mxu3 %vm579_vm5, %v1186_v54 }
 0x44e   :  { %v833_v55 = vpop.xlane.xlu0 %832 }
 0x44f   :  { %11208 = vrcp.f32 %v833_v55 }
 0x455   :  { %v11209_v56 = vpop.eup %11208  ;;  %v12055_v57 = vpop.f32.mrf.mxu3 }
 0x456   :  { %15183 = vst [vmem:[#allocation6_spill] sm:$0xff] %v12055_v57  ;;  %v851_v61 = vmul.f32 %v11209_v56, %v11994_v19 }
 0x458   :  { %v859_v34 = vpack.c.bf16 %v851_v61, %v851_v61 }
 0x45a   :  { %9944 = vmatmul.msk.bf16.vlgmr.msrb.gmra.mxu2 %vm764_vm6, %v859_v34 }
 0x45b   :  { %1322 = vmatpush.bf16.xpose.msrb.mxu2 %v1313_v58 }
 0x45d   :  { %v943_v50 = vpop.f32.mrf.mxu3 }
 0x46a   :  { %9990 = vmatmul.msk.bf16.vlgmr.msra.gmra.mxu2 %vm421_vm4, %v11785_v7 }
 0x47a   :  { %9991 = vmatmul.msk.bf16.gmra.mxu2 %vm421_vm4, %v11793_v14 }
 0x47d   :  { %v12064_v29 = vpop.f32.mrf.mxu3 }
 0x47e   :  { %15184 = vst [vmem:[#allocation7_spill] sm:$0xff] %v12064_v29 }
 0x485   :  { %v12066_v59 = vpop.f32.mrf.mxu2  ;;  %v1019_v63 = vpop.f32.mrf.mxu3 }
 0x486   :  { %15185 = vst [vmem:[#allocation8_spill] sm:$0xff] %v12066_v59 }
 0x48a   :  { %9992 = vmatmul.msk.bf16.gmra.mxu2 %vm421_vm4, %v11801_v21 }
 0x48d   :  { %v924_v19 = vpop.f32.mrf.mxu2  ;;  %v1210_v0 = vpop.f32.mrf.mxu3 }
 0x48e   :  { %v1347_v3 = vmul.f32 0.4082483, %v1210_v0 }
 0x490   :  { %v1355_v4 = vadd.f32 %v1347_v3, %v11906_v32 }
 0x492   :  { %v1363_v6 = vsel %vm764_vm6, %v1355_v4, -inf }
 0x493   :  { %1364 = vmax.xlane.f32.xlu2 %v1363_v6 }
 0x495   :  { %v1212_v10 = vpop.f32.mrf.mxu3 }
 0x49a   :  { %9993 = vmatmul.msk.bf16.gmra.mxu2 %vm421_vm4, %v11809_v28 }
 0x49d   :  { %v1229_v12 = vpop.f32.mrf.mxu3 }
 0x49e   :  { %v1348_v13 = vmul.f32 0.4082483, %v1229_v12 }
 0x4a0   :  { %v12075_v16 = vadd.f32 %v1348_v13, %v11889_v1 }
 0x4a1   :  { %v1286_v9 = vpop.f32.mrf.mxu0 }
 0x4a2   :  { %v1351_v17 = vmul.f32 0.4082483, %v1286_v9  ;;  %v1366_v18 = vsel %vm764_vm6, %v12075_v16, -inf }
 0x4a3   :  { %1367 = vmax.xlane.f32.xlu1 %v1366_v18 }
 0x4a4   :  { %v12080_v24 = vadd.f32 %v1351_v17, %v11894_v15 }
 0x4a5   :  { %v1231_v20 = vpop.f32.mrf.mxu3 }
 0x4a6   :  { %v1375_v62 = vsel %vm764_vm6, %v12080_v24, -inf }
 0x4a9   :  { %v1288_v31 = vpop.f32.mrf.mxu0  ;;  %v1305_v33 = vpop.f32.mrf.mxu1 }
 0x4aa   :  { %v1352_v38 = vmul.f32 0.4082483, %v1305_v33  ;;  %10000 = vmatmul.msk.bf16.vlgmr.msrb.gmra.mxu2 %vm579_vm5, %v1185_v27 }
 0x4ab   :  { %1376 = vmax.xlane.f32.xlu1 %v1375_v62 }
 0x4ac   :  { %v12086_v39 = vadd.f32 %v1352_v38, %v11899_v22 }
 0x4ad   :  { %v12088_v26 = vpop.f32.mrf.mxu3 }
 0x4ae   :  { %v1378_v36 = vsel %vm764_vm6, %v12086_v39, -inf }
 0x4af   :  { %1379 = vmax.xlane.f32.xlu0 %v1378_v36 }
 0x4b1   :  { %v1307_v40 = vpop.f32.mrf.mxu1 }
 0x4b5   :  { %v1250_v41 = vpop.f32.mrf.mxu3 }
 0x4bd   :  { %v1267_v42 = vpop.f32.mrf.mxu3 }
 0x4be   :  { %v1350_v20 = vmul.f32 0.4082483, %v1267_v42 }
 0x4c0   :  { %v1358_v62 = vadd.f32 %v1350_v20, %v11912_v48 }
 0x4c5   :  { %v1269_v43 = vpop.f32.mrf.mxu3 }
 0x4cd   :  { %v12092_v45 = vpop.f32.mrf.mxu3 }
 0x4d5   :  { %v1345_v46 = vpop.f32.mrf.mxu3 }
 0x4d6   :  { %v1372_v46 = vsel %vm764_vm6, %v1358_v62, -inf }
 0x4dd   :  { %v12094_v47 = vpop.f32.mrf.mxu2 }
 0x4de   :  { %15186 = vst [vmem:[#allocation9_spill] sm:$0xff] %v12094_v47 }
 0x4e5   :  { %v1000_v49 = vpop.f32.mrf.mxu2 }
 0x4ed   :  { %v1159_v52 = vpop.f32.mrf.mxu2 }
 0x4ee   :  { %v1160_v44 = vadd.f32 %v11138_v51, %v1159_v52 }
 0x4f0   :  { %v1459_v53 = vpack.c.bf16 %v1160_v44, %v1160_v44 }
 0x4f2   :  { %v1471_v54 = vsel %vm94_vm0, %v1459_v53, 0 }
 0x4f3   :  { %1480 = vmatpush.bf16.msra.mxu0 %v1471_v54 }
 0x4f5   :  { %v1161_v55 = vpop.f32.mrf.mxu2 }
 0x4f6   :  { %v1162_v30 = vadd.f32 %v11138_v51, %v1161_v55 }
 0x4f8   :  { %v1460_v56 = vpack.c.bf16 %v1162_v30, %v1162_v30 }
 0x4fa   :  { %v1490_v60 = vsel %vm94_vm0, %v1460_v56, 0 }
 0x4fb   :  { %1499 = vmatpush.bf16.msrb.mxu1 %v1490_v60 }
 0x4fd   :  { %v1164_v61 = vpop.f32.mrf.mxu2 }
 0x4fe   :  { %v1165_v34 = vadd.f32 %v11138_v51, %v1164_v61 }
 0x500   :  { %v1461_v58 = vpack.c.bf16 %v1165_v34, %v1165_v34 }
 0x502   :  { %v1509_v50 = vsel %vm94_vm0, %v1461_v58, 0 }
 0x503   :  { %1518 = vmatpush.bf16.msra.mxu2 %v1509_v50 }
 0x505   :  { %v1166_v63 = vpop.f32.mrf.mxu2 }
 0x506   :  { %v1167_v19 = vadd.f32 %v11138_v51, %v1166_v63  ;;  %v1365_v0 = vpop.xlane.xlu2 %1364 }
 0x507   :  { %v1387_v3 = vsub.f32 %v1355_v4, %v1365_v0 }
 0x508   :  { %v1462_v6 = vpack.c.bf16 %v1167_v19, %v1167_v19 }
 0x509   :  { %v1395_v10 = vmul.f32 1.442695, %v1387_v3 }
 0x50a   :  { %v1528_v12 = vsel %vm94_vm0, %v1462_v6, 0  ;;  %v1354_v6 = vmul.f32 0.4082483, %v12092_v45 }
 0x50b   :  { %11210 = vpow2.f32 %v1395_v10  ;;  %1537 = vmatpush.bf16.msrb.mxu3 %v1528_v12 }
 0x50c   :  { %v1362_v10 = vadd.f32 %v1354_v6, %v11926_v11 }
 0x50d   :  { %v1169_v13 = vpop.f32.mrf.mxu2 }
 0x50e   :  { %v1170_v9 = vadd.f32 %v11138_v51, %v1169_v13  ;;  %v1384_v13 = vsel %vm764_vm6, %v1362_v10, -inf }
 0x510   :  { %v1463_v17 = vpack.c.bf16 %v1170_v9, %v1170_v9 }
 0x511   :  { %v11211_v18 = vpop.eup %11210 }
 0x512   :  { %v1547_v27 = vsel %vm94_vm0, %v1463_v17, 0  ;;  %v1411_v31 = vsel %vm764_vm6, %v11211_v18, 0.0 }
 0x513   :  { %1556 = vmatpush.bf16.msrb.mxu0 %v1547_v27  ;;  %1412 = vadd.xlane.f32.xlu0 %v1411_v31 }
 0x515   :  { %v1171_v33 = vpop.f32.mrf.mxu2 }
 0x516   :  { %v1172_v38 = vadd.f32 %v11138_v51, %v1171_v33  ;;  %v1368_v4 = vpop.xlane.xlu1 %1367 }
 0x517   :  { %v1388_v36 = vsub.f32 %v12075_v16, %v1368_v4 }
 0x518   :  { %v1464_v40 = vpack.c.bf16 %v1172_v38, %v1172_v38  ;;  %v10966_v38 = vld [vmem:[%s15156_s9 + $0xa0] sm:$0xff] }
 0x519   :  { %v1397_v41 = vmul.f32 1.442695, %v1388_v36  ;;  %v10965_v36 = vld [vmem:[%s15156_s9 + $0x98] sm:$0xff] }
 0x51a   :  { %v1566_v43 = vsel %vm94_vm0, %v1464_v40, 0 }
 0x51b   :  { %11212 = vpow2.f32 %v1397_v41  ;;  %1575 = vmatpush.bf16.msra.mxu1 %v1566_v43  ;;  %1373 = vmax.xlane.f32.xlu0 %v1372_v46 }
 0x51d   :  { %v1174_v42 = vpop.f32.mrf.mxu2 }
 0x51e   :  { %v1175_v49 = vadd.f32 %v11138_v51, %v1174_v42  ;;  %v1377_v52 = vpop.xlane.xlu1 %1376 }
 0x51f   :  { %v1391_v44 = vsub.f32 %v12080_v24, %v1377_v52 }
 0x520   :  { %v1465_v53 = vpack.c.bf16 %v1175_v49, %v1175_v49 }
 0x521   :  { %v11213_v54 = vpop.eup %11212  ;;  %v1403_v55 = vmul.f32 1.442695, %v1391_v44  ;;  %v10969_v44 = vld [vmem:[%s15156_s9 + $0xb8] sm:$0xff] }
 0x522   :  { %v1585_v30 = vsel %vm94_vm0, %v1465_v53, 0  ;;  %v1380_v16 = vpop.xlane.xlu0 %1379  ;;  %v1414_v56 = vsel %vm764_vm6, %v11213_v54, 0.0 }
 0x523   :  { %11214 = vpow2.f32 %v1403_v55  ;;  %v1392_v60 = vsub.f32 %v12086_v39, %v1380_v16  ;;  %1594 = vmatpush.bf16.msrb.mxu2 %v1585_v30  ;;  %1415 = vadd.xlane.f32.xlu2 %v1414_v56 }
 0x525   :  { %v1405_v61 = vmul.f32 1.442695, %v1392_v60  ;;  %v1176_v34 = vpop.f32.mrf.mxu2  ;;  %v10967_v60 = vld [vmem:[%s15156_s9 + $0xa8] sm:$0xff] }
 0x526   :  { %v1177_v58 = vadd.f32 %v11138_v51, %v1176_v34  ;;  %v1349_v51 = vmul.f32 0.4082483, %v12088_v26 }
 0x527   :  { %11216 = vpow2.f32 %v1405_v61 }
 0x528   :  { %v1466_v50 = vpack.c.bf16 %v1177_v58, %v1177_v58  ;;  %v1357_v9 = vadd.f32 %v1349_v51, %v11921_v5 }
 0x529   :  { %v11215_v63 = vpop.eup %11214 }
 0x52a   :  { %v1604_v24 = vsel %vm94_vm0, %v1466_v50, 0  ;;  %v1423_v19 = vsel %vm764_vm6, %v11215_v63, 0.0  ;;  %v1369_v17 = vsel %vm764_vm6, %v1357_v9, -inf }
 0x52b   :  { %1613 = vmatpush.bf16.msra.mxu3 %v1604_v24  ;;  %1424 = vadd.xlane.f32.xlu2 %v1423_v19 }
 0x52d   :  { %v11217_v0 = vpop.eup %11216  ;;  %v1324_v3 = vpop.f32.mrf.mxu2 }
 0x52e   :  { %v1426_v39 = vsel %vm764_vm6, %v11217_v0, 0.0  ;;  %v1353_v41 = vmul.f32 0.4082483, %v1324_v3 }
 0x52f   :  { %1427 = vadd.xlane.f32.xlu1 %v1426_v39 }
 0x530   :  { %v1361_v52 = vadd.f32 %v1353_v41, %v11945_v37 }
 0x532   :  { %v1381_v30 = vsel %vm764_vm6, %v1361_v52, -inf }
 0x535   :  { %v1326_v12 = vpop.f32.mrf.mxu2 }
 0x537   :  { %1385 = vmax.xlane.f32.xlu1 %v1384_v13 }
 0x53f   :  { %1370 = vmax.xlane.f32.xlu1 %v1369_v17 }
 0x586   :  { %v1413_v20 = vpop.xlane.xlu0 %1412 }
 0x587   :  { %11218 = vrcp.f32 %v1413_v20 }
 0x58d   :  { %v11219_v27 = vpop.eup %11218 }
 0x58e   :  { %v1443_v45 = vmul.f32 %v11219_v27, %v11211_v18  ;;  %v1374_v31 = vpop.xlane.xlu0 %1373  ;;  %v10964_v18 = vld [vmem:[%s15156_s9 + $0x90] sm:$0xff] }
 0x58f   :  { %v1390_v33 = vsub.f32 %v1358_v62, %v1374_v31 }
 0x590   :  { %v1451_v4 = vpack.c.bf16 %v1443_v45, %v1443_v45 }
 0x591   :  { %v1401_v26 = vmul.f32 1.442695, %v1390_v33 }
 0x592   :  { %10002 = vmatmul.msk.bf16.vlgmr.msra.gmra.mxu0 %vm764_vm6, %v1451_v4 }
 0x593   :  { %11220 = vpow2.f32 %v1401_v26  ;;  %1653 = vmatpush.bf16.msra.mxu0 %v10966_v38 }
 0x596   :  { %v1416_v40 = vpop.xlane.xlu2 %1415 }
 0x597   :  { %11222 = vrcp.f32 %v1416_v40  ;;  %1654 = vmatpush.bf16.msra.mxu0 %v10965_v36 }
 0x599   :  { %v11221_v62 = vpop.eup %11220 }
 0x59a   :  { %v1420_v43 = vsel %vm764_vm6, %v11221_v62, 0.0 }
 0x59b   :  { %1421 = vadd.xlane.f32.xlu2 %v1420_v43  ;;  %1655 = vmatpush.bf16.msra.mxu0 %v10964_v18 }
 0x59d   :  { %v11223_v46 = vpop.eup %11222 }
 0x59e   :  { %v1444_v42 = vmul.f32 %v11223_v46, %v11213_v54  ;;  %v1425_v49 = vpop.xlane.xlu2 %1424  ;;  %v10968_v54 = vld [vmem:[%s15156_s9 + $0xb0] sm:$0xff] }
 0x59f   :  { %11224 = vrcp.f32 %v1425_v49 }
 0x5a0   :  { %v1452_v53 = vpack.c.bf16 %v1444_v42, %v1444_v42 }
 0x5a2   :  { %10003 = vmatmul.msk.bf16.vlgmr.msrb.gmra.mxu1 %vm764_vm6, %v1452_v53  ;;  %v1428_v55 = vpop.xlane.xlu1 %1427 }
 0x5a3   :  { %11226 = vrcp.f32 %v1428_v55  ;;  %1382 = vmax.xlane.f32.xlu2 %v1381_v30  ;;  %1703 = vmatpush.bf16.msrb.mxu1 %v10969_v44 }
 0x5a5   :  { %v11225_v16 = vpop.eup %11224 }
 0x5a6   :  { %v1447_v56 = vmul.f32 %v11225_v16, %v11215_v63  ;;  %v12182_v16 = vld [vmem:[%s15155_s10 + $0x7] ss:$0 sm:$0xff] }
 0x5a7   :  { %1704 = vmatpush.bf16.msrb.mxu1 %v10968_v54 }
 0x5a8   :  { %v1455_v61 = vpack.c.bf16 %v1447_v56, %v1447_v56 }
 0x5a9   :  { %v11227_v34 = vpop.eup %11226 }
 0x5aa   :  { %10006 = vmatmul.msk.bf16.vlgmr.msrb.gmra.mxu0 %vm764_vm6, %v1455_v61  ;;  %v1386_v58 = vpop.xlane.xlu1 %1385  ;;  %v1448_v24 = vmul.f32 %v11227_v34, %v11217_v0  ;;  %v12189_v34 = vld [vmem:[%s15155_s10 + $0x6] ss:$0 sm:$0xff] }
 0x5ab   :  { %v1394_v50 = vsub.f32 %v1362_v10, %v1386_v58  ;;  %1705 = vmatpush.bf16.msrb.mxu1 %v10967_v60 }
 0x5ac   :  { %v1456_v3 = vpack.c.bf16 %v1448_v24, %v1448_v24 }
 0x5ad   :  { %v1409_v19 = vmul.f32 1.442695, %v1394_v50 }
 0x5af   :  { %11228 = vpow2.f32 %v1409_v19 }
 0x5b2   :  { %10007 = vmatmul.msk.bf16.vlgmr.msra.gmra.mxu1 %vm764_vm6, %v1456_v3  ;;  %v1371_v6 = vpop.xlane.xlu1 %1370 }
 0x5b3   :  { %v1389_v63 = vsub.f32 %v1357_v9, %v1371_v6 }
 0x5b5   :  { %v11229_v39 = vpop.eup %11228  ;;  %v1399_v12 = vmul.f32 1.442695, %v1389_v63 }
 0x5b6   :  { %v1432_v51 = vsel %vm764_vm6, %v11229_v39, 0.0 }
 0x5b7   :  { %11230 = vpow2.f32 %v1399_v12  ;;  %1433 = vadd.xlane.f32.xlu0 %v1432_v51 }
 0x5ba   :  { %10022 = vmatmul.msk.bf16.vlgmr.msra.gmra.mxu0 %vm421_vm4, %v11785_v7 }
 0x5bd   :  { %v11231_v13 = vpop.eup %11230 }
 0x5be   :  { %v1417_v10 = vsel %vm764_vm6, %v11231_v13, 0.0 }
 0x5bf   :  { %1418 = vadd.xlane.f32.xlu0 %v1417_v10 }
 0x5c2   :  { %10038 = vmatmul.msk.bf16.vlgmr.msrb.gmra.mxu1 %vm421_vm4, %v11785_v7 }
 0x5ca   :  { %10023 = vmatmul.msk.bf16.gmra.mxu0 %vm421_vm4, %v11793_v14 }
 0x5d2   :  { %10039 = vmatmul.msk.bf16.gmra.mxu1 %vm421_vm4, %v11793_v14 }
 0x5da   :  { %10024 = vmatmul.msk.bf16.gmra.mxu0 %vm421_vm4, %v11801_v21 }
 0x5e2   :  { %10040 = vmatmul.msk.bf16.gmra.mxu1 %vm421_vm4, %v11801_v21 }
 0x5ea   :  { %10025 = vmatmul.msk.bf16.gmra.mxu0 %vm421_vm4, %v11809_v28 }
 0x5f2   :  { %10041 = vmatmul.msk.bf16.gmra.mxu1 %vm421_vm4, %v11809_v28 }
 0x60e   :  { %v1422_v0 = vpop.xlane.xlu2 %1421 }
 0x60f   :  { %11232 = vrcp.f32 %v1422_v0  ;;  %v12165_v9 = vpop.f32.mrf.mxu0 }
 0x615   :  { %v11233_v17 = vpop.eup %11232 }
 0x616   :  { %v1446_v20 = vmul.f32 %v11233_v17, %v11221_v62  ;;  %v1383_v27 = vpop.xlane.xlu2 %1382 }
 0x617   :  { %v1393_v45 = vsub.f32 %v1361_v52, %v1383_v27  ;;  %v1484_v31 = vpop.f32.mrf.mxu0 }
 0x618   :  { %v1454_v33 = vpack.c.bf16 %v1446_v20, %v1446_v20 }
 0x619   :  { %v1407_v38 = vmul.f32 1.442695, %v1393_v45 }
 0x61a   :  { %10005 = vmatmul.msk.bf16.vlgmr.msrb.gmra.mxu3 %vm764_vm6, %v1454_v33 }
 0x61b   :  { %11234 = vpow2.f32 %v1407_v38 }
 0x61f   :  { %v12168_v4 = vpop.f32.mrf.mxu1 }
 0x621   :  { %v12170_v26 = vpop.eup %11234 }
 0x622   :  { %v1429_v36 = vsel %vm764_vm6, %v12170_v26, 0.0 }
 0x623   :  { %1430 = vadd.xlane.f32.xlu1 %v1429_v36 }
 0x627   :  { %v1503_v40 = vpop.f32.mrf.mxu1  ;;  %v12174_v18 = vpop.f32.mrf.mxu0 }
 0x62a   :  { %v1434_v62 = vpop.xlane.xlu0 %1433 }
 0x62b   :  { %11236 = vrcp.f32 %v1434_v62 }
 0x62f   :  { %v1560_v41 = vpop.f32.mrf.mxu0  ;;  %v12176_v43 = vpop.f32.mrf.mxu1 }
 0x631   :  { %v11237_v46 = vpop.eup %11236 }
 0x632   :  { %v1450_v42 = vmul.f32 %v11237_v46, %v11229_v39  ;;  %v1419_v49 = vpop.xlane.xlu0 %1418 }
 0x633   :  { %11238 = vrcp.f32 %v1419_v49 }
 0x634   :  { %v1458_v52 = vpack.c.bf16 %v1450_v42, %v1450_v42 }
 0x636   :  { %10009 = vmatmul.msk.bf16.vlgmr.msra.gmra.mxu3 %vm764_vm6, %v1458_v52 }
 0x637   :  { %v1579_v44 = vpop.f32.mrf.mxu1  ;;  %v1657_v53 = vpop.f32.mrf.mxu0 }
 0x638   :  { %v1658_v24 = vadd.f32 %v12189_v34, %v1657_v53 }
 0x639   :  { %v11239_v55 = vpop.eup %11238 }
 0x63a   :  { %v1445_v30 = vmul.f32 %v11239_v55, %v11231_v13  ;;  %v1777_v63 = vpack.c.bf16 %v1658_v24, %v1658_v24 }
 0x63c   :  { %v1453_v54 = vpack.c.bf16 %v1445_v30, %v1445_v30 }
 0x63e   :  { %10004 = vmatmul.msk.bf16.vlgmr.msra.gmra.mxu2 %vm764_vm6, %v1453_v54 }
 0x63f   :  { %v1659_v56 = vpop.f32.mrf.mxu0  ;;  %v1707_v60 = vpop.f32.mrf.mxu1 }
 0x640   :  { %v1708_v61 = vadd.f32 %v12182_v16, %v1707_v60  ;;  %v1660_v20 = vadd.f32 %v12189_v34, %v1659_v56 }
 0x642   :  { %v1785_v58 = vpack.c.bf16 %v1708_v61, %v1708_v61  ;;  %v1778_v33 = vpack.c.bf16 %v1660_v20, %v1660_v20 }
 0x644   :  { %v1797_v50 = vsel %vm579_vm5, %v1785_v58, 0 }
 0x645   :  { %1806 = vmatpush.bf16.xpose.msrb.mxu3 %v1797_v50 }
 0x647   :  { %v1662_v19 = vpop.f32.mrf.mxu0  ;;  %v1709_v3 = vpop.f32.mrf.mxu1 }
 0x648   :  { %v1710_v6 = vadd.f32 %v12182_v16, %v1709_v3  ;;  %v1663_v49 = vadd.f32 %v12189_v34, %v1662_v19 }
 0x64a   :  { %v1786_v39 = vpack.c.bf16 %v1710_v6, %v1710_v6  ;;  %v1779_v54 = vpack.c.bf16 %v1663_v49, %v1663_v49 }
 0x64c   :  { %10058 = vmatmul.msk.bf16.vlgmr.msrb.gmra.mxu3 %vm579_vm5, %v1777_v63  ;;  %v1816_v12 = vsel %vm579_vm5, %v1786_v39, 0  ;;  %v10972_v63 = vld [vmem:[%s15156_s9 + $0xd0] sm:$0xff] }
 0x64d   :  { %1825 = vmatpush.bf16.xpose.msra.mxu3 %v1816_v12  ;;  %1753 = vmatpush.bf16.msra.mxu2 %v10972_v63 }
 0x64f   :  { %v1664_v51 = vpop.f32.mrf.mxu0  ;;  %v1712_v13 = vpop.f32.mrf.mxu1 }
 0x650   :  { %v1713_v10 = vadd.f32 %v12182_v16, %v1712_v13  ;;  %v1665_v19 = vadd.f32 %v12189_v34, %v1664_v51  ;;  %v10970_v51 = vld [vmem:[%s15156_s9 + $0xc0] sm:$0xff] }
 0x652   :  { %v1787_v0 = vpack.c.bf16 %v1713_v10, %v1713_v10  ;;  %v1780_v39 = vpack.c.bf16 %v1665_v19, %v1665_v19  ;;  %v10971_v10 = vld [vmem:[%s15156_s9 + $0xc8] sm:$0xff] }
 0x653   :  { %1754 = vmatpush.bf16.msra.mxu2 %v10971_v10 }
 0x654   :  { %v1835_v17 = vsel %vm579_vm5, %v1787_v0, 0 }
 0x655   :  { %1844 = vmatpush.bf16.xpose.msrb.mxu3 %v1835_v17 }
 0x657   :  { %v1667_v27 = vpop.f32.mrf.mxu0  ;;  %v1714_v45 = vpop.f32.mrf.mxu1  ;;  %1755 = vmatpush.bf16.msra.mxu2 %v10970_v51 }
 0x658   :  { %v1715_v31 = vadd.f32 %v12182_v16, %v1714_v45  ;;  %v1668_v52 = vadd.f32 %v12189_v34, %v1667_v27 }
 0x65a   :  { %v1788_v38 = vpack.c.bf16 %v1715_v31, %v1715_v31  ;;  %v1781_v56 = vpack.c.bf16 %v1668_v52, %v1668_v52 }
 0x65c   :  { %10059 = vmatmul.msk.bf16.vlgmr.msra.gmra.mxu3 %vm579_vm5, %v1778_v33  ;;  %v1854_v36 = vsel %vm579_vm5, %v1788_v38, 0 }
 0x65d   :  { %1863 = vmatpush.bf16.xpose.msra.mxu3 %v1854_v36 }
 0x65f   :  { %v1669_v40 = vpop.f32.mrf.mxu0  ;;  %v1717_v62 = vpop.f32.mrf.mxu1 }
 0x660   :  { %v1718_v41 = vadd.f32 %v12182_v16, %v1717_v62  ;;  %v1670_v58 = vadd.f32 %v12189_v34, %v1669_v40 }
 0x662   :  { %v1789_v46 = vpack.c.bf16 %v1718_v41, %v1718_v41  ;;  %v1782_v24 = vpack.c.bf16 %v1670_v58, %v1670_v58 }
 0x664   :  { %v1873_v42 = vsel %vm579_vm5, %v1789_v46, 0 }
 0x665   :  { %1882 = vmatpush.bf16.xpose.msrb.mxu0 %v1873_v42 }
 0x667   :  { %v1672_v44 = vpop.f32.mrf.mxu0  ;;  %v1719_v53 = vpop.f32.mrf.mxu1 }
 0x668   :  { %v12207_v55 = vadd.f32 %v12189_v34, %v1672_v44  ;;  %v1720_v30 = vadd.f32 %v12182_v16, %v1719_v53 }
 0x66a   :  { %v1790_v60 = vpack.c.bf16 %v1720_v30, %v1720_v30 }
 0x66c   :  { %10060 = vmatmul.msk.bf16.vlgmr.msrb.gmra.mxu3 %vm579_vm5, %v1779_v54  ;;  %10062 = vmatmul.msk.bf16.vlgmr.msrb.gmra.mxu0 %vm579_vm5, %v1781_v56  ;;  %v1892_v61 = vsel %vm579_vm5, %v1790_v60, 0 }
 0x66d   :  { %1901 = vmatpush.bf16.xpose.msra.mxu1 %v1892_v61 }
 0x66f   :  { %v1722_v50 = vpop.f32.mrf.mxu1  ;;  %v1674_v0 = vpop.f32.mrf.mxu0 }
 0x670   :  { %v1675_v17 = vadd.f32 %v12189_v34, %v1674_v0  ;;  %v1723_v45 = vadd.f32 %v12182_v16, %v1722_v50 }
 0x672   :  { %v1784_v20 = vpack.c.bf16 %v1675_v17, %v1675_v17  ;;  %v1791_v38 = vpack.c.bf16 %v1723_v45, %v1723_v45 }
 0x674   :  { %10063 = vmatmul.msk.bf16.vlgmr.msra.gmra.mxu1 %vm579_vm5, %v1782_v24  ;;  %v1911_v62 = vsel %vm579_vm5, %v1791_v38, 0  ;;  %v12274_v38 = vld [vmem:[%s15155_s10 + $0x8] ss:$0 sm:$0xff] }
 0x677   :  { %v1724_v3 = vpop.f32.mrf.mxu1 }
 0x678   :  { %v1725_v6 = vadd.f32 %v12182_v16, %v1724_v3 }
 0x67a   :  { %v1792_v12 = vpack.c.bf16 %v1725_v6, %v1725_v6  ;;  %v1783_v6 = vpack.c.bf16 %v12207_v55, %v12207_v55 }
 0x67c   :  { %10061 = vmatmul.msk.bf16.vlgmr.msra.gmra.mxu3 %vm579_vm5, %v1780_v39  ;;  %v1930_v13 = vsel %vm579_vm5, %v1792_v12, 0 }
 0x67d   :  { %1939 = vmatpush.bf16.xpose.msrb.mxu3 %v1930_v13 }
 0x68c   :  { %10065 = vmatmul.msk.bf16.vlgmr.msrb.gmra.mxu3 %vm579_vm5, %v1784_v20 }
 0x696   :  { %v1431_v27 = vpop.xlane.xlu1 %1430 }
 0x697   :  { %11240 = vrcp.f32 %v1431_v27 }
 0x69d   :  { %v11241_v31 = vpop.eup %11240  ;;  %v12231_v33 = vpop.f32.mrf.mxu3 }
 0x69e   :  { %v1449_v36 = vmul.f32 %v11241_v31, %v12170_v26 }
 0x6a0   :  { %v1457_v40 = vpack.c.bf16 %v1449_v36, %v1449_v36 }
 0x6a2   :  { %10008 = vmatmul.msk.bf16.vlgmr.msrb.gmra.mxu2 %vm764_vm6, %v1457_v40 }
 0x6a3   :  { %1920 = vmatpush.bf16.xpose.msrb.mxu2 %v1911_v62 }
 0x6a5   :  { %v1541_v34 = vpop.f32.mrf.mxu3 }
 0x6b2   :  { %10054 = vmatmul.msk.bf16.vlgmr.msra.gmra.mxu2 %vm421_vm4, %v11785_v7 }
 0x6b9   :  { %v12238_v41 = vpop.f32.mrf.mxu3 }
 0x6ba   :  { %15187 = vst [vmem:[#allocation10_spill] sm:$0xff] %v12238_v41 }
 0x6c1   :  { %v12240_v46 = vpop.f32.mrf.mxu2  ;;  %v1617_v16 = vpop.f32.mrf.mxu3 }
 0x6c2   :  { %10055 = vmatmul.msk.bf16.gmra.mxu2 %vm421_vm4, %v11793_v14 }
 0x6c9   :  { %v1522_v42 = vpop.f32.mrf.mxu2 }
 0x6cf   :  { %v1808_v26 = vpop.f32.mrf.mxu3 }
 0x6d0   :  { %v1945_v49 = vmul.f32 0.4082483, %v1808_v26 }
 0x6d2   :  { %10056 = vmatmul.msk.bf16.gmra.mxu2 %vm421_vm4, %v11801_v21  ;;  %v1953_v52 = vadd.f32 %v1945_v49, %v11906_v32 }
 0x6d4   :  { %v1961_v44 = vsel %vm764_vm6, %v1953_v52, -inf }
 0x6d5   :  { %1962 = vmax.xlane.f32.xlu0 %v1961_v44 }
 0x6d7   :  { %v1810_v53 = vpop.f32.mrf.mxu3 }
 0x6df   :  { %v1827_v30 = vpop.f32.mrf.mxu3 }
 0x6e0   :  { %v1946_v54 = vmul.f32 0.4082483, %v1827_v30 }
 0x6e2   :  { %10057 = vmatmul.msk.bf16.gmra.mxu2 %vm421_vm4, %v11809_v28  ;;  %v1954_v56 = vadd.f32 %v1946_v54, %v11889_v1 }
 0x6e4   :  { %v1964_v60 = vsel %vm764_vm6, %v1954_v56, -inf }
 0x6e5   :  { %1965 = vmax.xlane.f32.xlu2 %v1964_v60 }
 0x6e7   :  { %v1829_v61 = vpop.f32.mrf.mxu3 }
 0x6e9   :  { %v1884_v58 = vpop.f32.mrf.mxu0 }
 0x6ea   :  { %v1949_v50 = vmul.f32 0.4082483, %v1884_v58 }
 0x6ec   :  { %v12253_v24 = vadd.f32 %v1949_v50, %v11894_v15 }
 0x6ee   :  { %v1973_v19 = vsel %vm764_vm6, %v12253_v24, -inf }
 0x6ef   :  { %1974 = vmax.xlane.f32.xlu2 %v1973_v19  ;;  %v12257_v3 = vpop.f32.mrf.mxu3 }
 0x6f1   :  { %v1886_v63 = vpop.f32.mrf.mxu0  ;;  %v1903_v39 = vpop.f32.mrf.mxu1 }
 0x6f2   :  { %v1950_v12 = vmul.f32 0.4082483, %v1903_v39  ;;  %10064 = vmatmul.msk.bf16.vlgmr.msrb.gmra.mxu2 %vm579_vm5, %v1783_v6 }
 0x6f4   :  { %v12263_v13 = vadd.f32 %v1950_v12, %v11899_v22 }
 0x6f6   :  { %v1976_v10 = vsel %vm764_vm6, %v12263_v13, -inf }
 0x6f7   :  { %1977 = vmax.xlane.f32.xlu1 %v1976_v10  ;;  %v1848_v51 = vpop.f32.mrf.mxu3 }
 0x6f9   :  { %v1905_v0 = vpop.f32.mrf.mxu1 }
 0x6ff   :  { %v1865_v17 = vpop.f32.mrf.mxu3 }
 0x700   :  { %v1948_v12 = vmul.f32 0.4082483, %v1865_v17 }
 0x707   :  { %v1867_v20 = vpop.f32.mrf.mxu3 }
 0x70f   :  { %v12267_v27 = vpop.f32.mrf.mxu3 }
 0x717   :  { %v1943_v45 = vpop.f32.mrf.mxu3 }
 0x718   :  { %v1956_v45 = vadd.f32 %v1948_v12, %v11912_v48 }
 0x725   :  { %v12269_v55 = vpop.f32.mrf.mxu2 }
 0x726   :  { %15188 = vst [vmem:[#allocation11_spill] sm:$0xff] %v12269_v55 }
 0x72d   :  { %v1598_v31 = vpop.f32.mrf.mxu2 }
 0x735   :  { %v1757_v36 = vpop.f32.mrf.mxu2 }
 0x736   :  { %v1758_v40 = vadd.f32 %v12274_v38, %v1757_v36 }
 0x738   :  { %v2057_v62 = vpack.c.bf16 %v1758_v40, %v1758_v40 }
 0x73a   :  { %v2069_v34 = vsel %vm94_vm0, %v2057_v62, 0  ;;  %v1970_v62 = vsel %vm764_vm6, %v1956_v45, -inf }
 0x73b   :  { %2078 = vmatpush.bf16.msra.mxu0 %v2069_v34 }
 0x73d   :  { %v1759_v16 = vpop.f32.mrf.mxu2 }
 0x73e   :  { %v1760_v42 = vadd.f32 %v12274_v38, %v1759_v16 }
 0x740   :  { %v2058_v26 = vpack.c.bf16 %v1760_v42, %v1760_v42 }
 0x742   :  { %v2088_v49 = vsel %vm94_vm0, %v2058_v26, 0 }
 0x743   :  { %2097 = vmatpush.bf16.msrb.mxu1 %v2088_v49 }
 0x745   :  { %v1762_v44 = vpop.f32.mrf.mxu2 }
 0x746   :  { %v1763_v53 = vadd.f32 %v12274_v38, %v1762_v44 }
 0x748   :  { %v2059_v30 = vpack.c.bf16 %v1763_v53, %v1763_v53  ;;  %v1963_v54 = vpop.xlane.xlu0 %1962 }
 0x749   :  { %v1985_v60 = vsub.f32 %v1953_v52, %v1963_v54 }
 0x74a   :  { %v2107_v61 = vsel %vm94_vm0, %v2059_v30, 0 }
 0x74b   :  { %v1993_v58 = vmul.f32 1.442695, %v1985_v60  ;;  %2116 = vmatpush.bf16.msra.mxu2 %v2107_v61 }
 0x74d   :  { %11242 = vpow2.f32 %v1993_v58  ;;  %v1764_v50 = vpop.f32.mrf.mxu2 }
 0x74e   :  { %v1765_v19 = vadd.f32 %v12274_v38, %v1764_v50 }
 0x750   :  { %v2060_v6 = vpack.c.bf16 %v1765_v19, %v1765_v19 }
 0x752   :  { %v2126_v63 = vsel %vm94_vm0, %v2060_v6, 0 }
 0x753   :  { %v11243_v39 = vpop.eup %11242  ;;  %2135 = vmatpush.bf16.msra.mxu3 %v2126_v63 }
 0x754   :  { %v2009_v10 = vsel %vm764_vm6, %v11243_v39, 0.0 }
 0x755   :  { %v1767_v51 = vpop.f32.mrf.mxu2  ;;  %2010 = vadd.xlane.f32.xlu1 %v2009_v10 }
 0x756   :  { %v1768_v52 = vadd.f32 %v12274_v38, %v1767_v51 }
 0x758   :  { %v2061_v0 = vpack.c.bf16 %v1768_v52, %v1768_v52  ;;  %v1966_v20 = vpop.xlane.xlu2 %1965 }
 0x759   :  { %v1986_v31 = vsub.f32 %v1954_v56, %v1966_v20  ;;  %v1952_v20 = vmul.f32 0.4082483, %v12267_v27 }
 0x75a   :  { %v2145_v36 = vsel %vm94_vm0, %v2061_v0, 0 }
 0x75b   :  { %v1995_v40 = vmul.f32 1.442695, %v1986_v31  ;;  %2154 = vmatpush.bf16.msrb.mxu0 %v2145_v36  ;;  %v1960_v31 = vadd.f32 %v1952_v20, %v11926_v11 }
 0x75d   :  { %11244 = vpow2.f32 %v1995_v40  ;;  %v1769_v34 = vpop.f32.mrf.mxu2  ;;  %1971 = vmax.xlane.f32.xlu1 %v1970_v62  ;;  %v1982_v40 = vsel %vm764_vm6, %v1960_v31, -inf }
 0x75e   :  { %v1770_v17 = vadd.f32 %v12274_v38, %v1769_v34 }
 0x760   :  { %v2062_v16 = vpack.c.bf16 %v1770_v17, %v1770_v17 }
 0x762   :  { %v1975_v42 = vpop.xlane.xlu2 %1974  ;;  %v2164_v26 = vsel %vm94_vm0, %v2062_v16, 0 }
 0x763   :  { %v11245_v49 = vpop.eup %11244  ;;  %v1989_v44 = vsub.f32 %v12253_v24, %v1975_v42  ;;  %2173 = vmatpush.bf16.msra.mxu1 %v2164_v26 }
 0x764   :  { %v2012_v56 = vsel %vm764_vm6, %v11245_v49, 0.0 }
 0x765   :  { %v2001_v53 = vmul.f32 1.442695, %v1989_v44  ;;  %v1772_v30 = vpop.f32.mrf.mxu2  ;;  %2013 = vadd.xlane.f32.xlu0 %v2012_v56 }
 0x766   :  { %v1773_v54 = vadd.f32 %v12274_v38, %v1772_v30 }
 0x767   :  { %11246 = vpow2.f32 %v2001_v53  ;;  %v10974_v53 = vld [vmem:[%s15156_s9 + $0xe0] sm:$0xff] }
 0x768   :  { %v2063_v60 = vpack.c.bf16 %v1773_v54, %v1773_v54 }
 0x76a   :  { %v2183_v61 = vsel %vm94_vm0, %v2063_v60, 0  ;;  %v1978_v58 = vpop.xlane.xlu1 %1977 }
 0x76b   :  { %v1990_v50 = vsub.f32 %v12263_v13, %v1978_v58  ;;  %2192 = vmatpush.bf16.msrb.mxu2 %v2183_v61 }
 0x76d   :  { %v11247_v19 = vpop.eup %11246  ;;  %v2003_v6 = vmul.f32 1.442695, %v1990_v50  ;;  %v1774_v63 = vpop.f32.mrf.mxu2 }
 0x76e   :  { %v1775_v24 = vadd.f32 %v12274_v38, %v1774_v63  ;;  %v2021_v12 = vsel %vm764_vm6, %v11247_v19, 0.0  ;;  %v1947_v38 = vmul.f32 0.4082483, %v12257_v3  ;;  %v10975_v3 = vld [vmem:[%s15156_s9 + $0xe8] sm:$0xff] }
 0x76f   :  { %11248 = vpow2.f32 %v2003_v6  ;;  %2022 = vadd.xlane.f32.xlu0 %v2021_v12  ;;  %v10978_v6 = vld [vmem:[%s15156_s9 + $0x100] sm:$0xff] }
 0x770   :  { %v2064_v10 = vpack.c.bf16 %v1775_v24, %v1775_v24  ;;  %v1955_v62 = vadd.f32 %v1947_v38, %v11921_v5 }
 0x772   :  { %v2202_v51 = vsel %vm94_vm0, %v2064_v10, 0  ;;  %v1967_v34 = vsel %vm764_vm6, %v1955_v62, -inf  ;;  %v10977_v10 = vld [vmem:[%s15156_s9 + $0xf8] sm:$0xff] }
 0x773   :  { %2211 = vmatpush.bf16.msrb.mxu3 %v2202_v51  ;;  %v10976_v51 = vld [vmem:[%s15156_s9 + $0xf0] sm:$0xff] }
 0x775   :  { %v11249_v52 = vpop.eup %11248  ;;  %v1922_v0 = vpop.f32.mrf.mxu2 }
 0x776   :  { %v2024_v13 = vsel %vm764_vm6, %v11249_v52, 0.0  ;;  %v1951_v54 = vmul.f32 0.4082483, %v1922_v0 }
 0x777   :  { %2025 = vadd.xlane.f32.xlu2 %v2024_v13 }
 0x778   :  { %v1959_v50 = vadd.f32 %v1951_v54, %v11945_v37 }
 0x77a   :  { %v1979_v12 = vsel %vm764_vm6, %v1959_v50, -inf }
 0x77d   :  { %v1924_v36 = vpop.f32.mrf.mxu2 }
 0x77f   :  { %1983 = vmax.xlane.f32.xlu2 %v1982_v40 }
 0x787   :  { %1968 = vmax.xlane.f32.xlu2 %v1967_v34 }
 0x7c8   :  { %v2011_v17 = vpop.xlane.xlu1 %2010 }
 0x7c9   :  { %11250 = vrcp.f32 %v2011_v17 }
 0x7cf   :  { %v11251_v16 = vpop.eup %11250 }
 0x7d0   :  { %v2041_v27 = vmul.f32 %v11251_v16, %v11243_v39  ;;  %v1972_v42 = vpop.xlane.xlu1 %1971 }
 0x7d1   :  { %v1988_v26 = vsub.f32 %v1956_v45, %v1972_v42  ;;  %v10973_v45 = vld [vmem:[%s15156_s9 + $0xd8] sm:$0xff] }
 0x7d2   :  { %v2049_v44 = vpack.c.bf16 %v2041_v27, %v2041_v27 }
 0x7d3   :  { %v1999_v56 = vmul.f32 1.442695, %v1988_v26 }
 0x7d4   :  { %10066 = vmatmul.msk.bf16.vlgmr.msra.gmra.mxu0 %vm764_vm6, %v2049_v44 }
 0x7d5   :  { %11252 = vpow2.f32 %v1999_v56  ;;  %2251 = vmatpush.bf16.msra.mxu0 %v10975_v3 }
 0x7d8   :  { %v2014_v30 = vpop.xlane.xlu0 %2013 }
 0x7d9   :  { %11254 = vrcp.f32 %v2014_v30  ;;  %2252 = vmatpush.bf16.msra.mxu0 %v10974_v53 }
 0x7db   :  { %v11253_v39 = vpop.eup %11252 }
 0x7dc   :  { %v2018_v60 = vsel %vm764_vm6, %v11253_v39, 0.0 }
 0x7dd   :  { %2019 = vadd.xlane.f32.xlu0 %v2018_v60  ;;  %2253 = vmatpush.bf16.msra.mxu0 %v10973_v45 }
 0x7df   :  { %v11255_v61 = vpop.eup %11254 }
 0x7e0   :  { %v2042_v58 = vmul.f32 %v11255_v61, %v11245_v49 }
 0x7e2   :  { %v2050_v63 = vpack.c.bf16 %v2042_v58, %v2042_v58  ;;  %v2023_v24 = vpop.xlane.xlu0 %2022 }
 0x7e3   :  { %11256 = vrcp.f32 %v2023_v24 }
 0x7e4   :  { %10067 = vmatmul.msk.bf16.vlgmr.msrb.gmra.mxu1 %vm764_vm6, %v2050_v63 }
 0x7e5   :  { %1980 = vmax.xlane.f32.xlu0 %v1979_v12  ;;  %2301 = vmatpush.bf16.msrb.mxu1 %v10978_v6 }
 0x7e9   :  { %v11257_v49 = vpop.eup %11256  ;;  %2302 = vmatpush.bf16.msrb.mxu1 %v10977_v10 }
 0x7ea   :  { %v2045_v0 = vmul.f32 %v11257_v49, %v11247_v19  ;;  %v2026_v20 = vpop.xlane.xlu2 %2025 }
 0x7eb   :  { %11258 = vrcp.f32 %v2026_v20 }
 0x7ec   :  { %v2053_v13 = vpack.c.bf16 %v2045_v0, %v2045_v0 }
 0x7ed   :  { %2303 = vmatpush.bf16.msrb.mxu1 %v10976_v51 }
 0x7ee   :  { %10070 = vmatmul.msk.bf16.vlgmr.msrb.gmra.mxu0 %vm764_vm6, %v2053_v13 }
 0x7f1   :  { %v11259_v36 = vpop.eup %11258 }
 0x7f2   :  { %v2046_v38 = vmul.f32 %v11259_v36, %v11249_v52  ;;  %v1984_v40 = vpop.xlane.xlu2 %1983 }
 0x7f3   :  { %v1992_v34 = vsub.f32 %v1960_v31, %v1984_v40 }
 0x7f4   :  { %v2054_v17 = vpack.c.bf16 %v2046_v38, %v2046_v38  ;;  %v12366_v38 = vld [vmem:[%s15155_s10 + $0xa] ss:$0 sm:$0xff] }
 0x7f5   :  { %v2007_v16 = vmul.f32 1.442695, %v1992_v34 }
 0x7f6   :  { %10071 = vmatmul.msk.bf16.vlgmr.msra.gmra.mxu1 %vm764_vm6, %v2054_v17 }
 0x7f7   :  { %11260 = vpow2.f32 %v2007_v16 }
 0x7fa   :  { %v1969_v27 = vpop.xlane.xlu2 %1968 }
 0x7fb   :  { %v1987_v42 = vsub.f32 %v1955_v62, %v1969_v27 }
 0x7fd   :  { %v11261_v26 = vpop.eup %11260  ;;  %v1997_v44 = vmul.f32 1.442695, %v1987_v42 }
 0x7fe   :  { %10086 = vmatmul.msk.bf16.vlgmr.msra.gmra.mxu0 %vm421_vm4, %v11785_v7  ;;  %v2030_v19 = vsel %vm764_vm6, %v11261_v26, 0.0 }
 0x7ff   :  { %11262 = vpow2.f32 %v1997_v44  ;;  %2031 = vadd.xlane.f32.xlu1 %v2030_v19 }
 0x805   :  { %v11263_v56 = vpop.eup %11262 }
 0x806   :  { %10102 = vmatmul.msk.bf16.vlgmr.msrb.gmra.mxu1 %vm421_vm4, %v11785_v7  ;;  %v2015_v52 = vsel %vm764_vm6, %v11263_v56, 0.0 }
 0x807   :  { %2016 = vadd.xlane.f32.xlu1 %v2015_v52 }
 0x80e   :  { %10087 = vmatmul.msk.bf16.gmra.mxu0 %vm421_vm4, %v11793_v14 }
 0x816   :  { %10103 = vmatmul.msk.bf16.gmra.mxu1 %vm421_vm4, %v11793_v14 }
 0x81e   :  { %10088 = vmatmul.msk.bf16.gmra.mxu0 %vm421_vm4, %v11801_v21 }
 0x826   :  { %10104 = vmatmul.msk.bf16.gmra.mxu1 %vm421_vm4, %v11801_v21 }
 0x82e   :  { %10089 = vmatmul.msk.bf16.gmra.mxu0 %vm421_vm4, %v11809_v28 }
 0x836   :  { %10105 = vmatmul.msk.bf16.gmra.mxu1 %vm421_vm4, %v11809_v28 }
 0x850   :  { %v2020_v31 = vpop.xlane.xlu0 %2019 }
 0x851   :  { %11264 = vrcp.f32 %v2020_v31  ;;  %v12349_v62 = vpop.f32.mrf.mxu0 }
 0x857   :  { %v11265_v3 = vpop.eup %11264 }
 0x858   :  { %v2044_v53 = vmul.f32 %v11265_v3, %v11253_v39  ;;  %v1981_v30 = vpop.xlane.xlu0 %1980 }
 0x859   :  { %v1991_v45 = vsub.f32 %v1959_v50, %v1981_v30  ;;  %v2082_v54 = vpop.f32.mrf.mxu0 }
 0x85a   :  { %v2052_v60 = vpack.c.bf16 %v2044_v53, %v2044_v53 }
 0x85b   :  { %v2005_v61 = vmul.f32 1.442695, %v1991_v45 }
 0x85c   :  { %10069 = vmatmul.msk.bf16.vlgmr.msra.gmra.mxu3 %vm764_vm6, %v2052_v60 }
 0x85d   :  { %11266 = vpow2.f32 %v2005_v61 }
 0x861   :  { %v12352_v58 = vpop.f32.mrf.mxu1 }
 0x863   :  { %v12354_v6 = vpop.eup %11266 }
 0x864   :  { %v2027_v63 = vsel %vm764_vm6, %v12354_v6, 0.0 }
 0x865   :  { %2028 = vadd.xlane.f32.xlu2 %v2027_v63 }
 0x869   :  { %v2101_v24 = vpop.f32.mrf.mxu1 }
 0x86b   :  { %v12358_v12 = vpop.f32.mrf.mxu0 }
 0x872   :  { %v2032_v39 = vpop.xlane.xlu1 %2031 }
 0x873   :  { %11268 = vrcp.f32 %v2032_v39  ;;  %v2158_v50 = vpop.f32.mrf.mxu0  ;;  %v12360_v10 = vpop.f32.mrf.mxu1 }
 0x879   :  { %v11269_v49 = vpop.eup %11268 }
 0x87a   :  { %v2048_v51 = vmul.f32 %v11269_v49, %v11261_v26  ;;  %v2017_v0 = vpop.xlane.xlu1 %2016  ;;  %v12372_v26 = vld [vmem:[%s15155_s10 + $0x9] ss:$0 sm:$0xff] }
 0x87b   :  { %11270 = vrcp.f32 %v2017_v0  ;;  %v2177_v20 = vpop.f32.mrf.mxu1  ;;  %v2255_v13 = vpop.f32.mrf.mxu0 }
 0x87c   :  { %v2056_v36 = vpack.c.bf16 %v2048_v51, %v2048_v51  ;;  %v2256_v52 = vadd.f32 %v12372_v26, %v2255_v13 }
 0x87e   :  { %10073 = vmatmul.msk.bf16.vlgmr.msrb.gmra.mxu3 %vm764_vm6, %v2056_v36  ;;  %v2375_v53 = vpack.c.bf16 %v2256_v52, %v2256_v52 }
 0x881   :  { %v11271_v40 = vpop.eup %11270 }
 0x882   :  { %v2043_v34 = vmul.f32 %v11271_v40, %v11263_v56 }
 0x883   :  { %v2257_v17 = vpop.f32.mrf.mxu0  ;;  %v2305_v16 = vpop.f32.mrf.mxu1 }
 0x884   :  { %v2051_v27 = vpack.c.bf16 %v2043_v34, %v2043_v34  ;;  %v2306_v42 = vadd.f32 %v12366_v38, %v2305_v16  ;;  %v2258_v39 = vadd.f32 %v12372_v26, %v2257_v17 }
 0x886   :  { %v2383_v44 = vpack.c.bf16 %v2306_v42, %v2306_v42  ;;  %10068 = vmatmul.msk.bf16.vlgmr.msra.gmra.mxu2 %vm764_vm6, %v2051_v27  ;;  %v2376_v0 = vpack.c.bf16 %v2258_v39, %v2258_v39  ;;  %v10981_v39 = vld [vmem:[%s15156_s9 + $0x118] sm:$0xff] }
 0x887   :  { %2351 = vmatpush.bf16.msra.mxu2 %v10981_v39 }
 0x888   :  { %v2395_v19 = vsel %vm579_vm5, %v2383_v44, 0 }
 0x889   :  { %2404 = vmatpush.bf16.xpose.msra.mxu3 %v2395_v19 }
 0x88b   :  { %v2260_v31 = vpop.f32.mrf.mxu0  ;;  %v2307_v56 = vpop.f32.mrf.mxu1 }
 0x88c   :  { %v2308_v3 = vadd.f32 %v12366_v38, %v2307_v56  ;;  %v2261_v17 = vadd.f32 %v12372_v26, %v2260_v31 }
 0x88e   :  { %v2384_v30 = vpack.c.bf16 %v2308_v3, %v2308_v3  ;;  %v2377_v3 = vpack.c.bf16 %v2261_v17, %v2261_v17 }
 0x890   :  { %10122 = vmatmul.msk.bf16.vlgmr.msra.gmra.mxu3 %vm579_vm5, %v2375_v53  ;;  %v2414_v45 = vsel %vm579_vm5, %v2384_v30, 0 }
 0x891   :  { %2423 = vmatpush.bf16.xpose.msrb.mxu3 %v2414_v45 }
 0x893   :  { %v2262_v54 = vpop.f32.mrf.mxu0  ;;  %v2310_v60 = vpop.f32.mrf.mxu1 }
 0x894   :  { %v2311_v61 = vadd.f32 %v12366_v38, %v2310_v60 }
 0x896   :  { %v2385_v63 = vpack.c.bf16 %v2311_v61, %v2311_v61 }
 0x898   :  { %v2433_v24 = vsel %vm579_vm5, %v2385_v63, 0  ;;  %v2263_v63 = vadd.f32 %v12372_v26, %v2262_v54  ;;  %v10979_v54 = vld [vmem:[%s15156_s9 + $0x108] sm:$0xff] }
 0x899   :  { %2442 = vmatpush.bf16.xpose.msra.mxu3 %v2433_v24 }
 0x89b   :  { %v2265_v50 = vpop.f32.mrf.mxu0  ;;  %v2312_v49 = vpop.f32.mrf.mxu1 }
 0x89c   :  { %v2313_v51 = vadd.f32 %v12366_v38, %v2312_v49  ;;  %v2266_v42 = vadd.f32 %v12372_v26, %v2265_v50  ;;  %v2378_v49 = vpack.c.bf16 %v2263_v63, %v2263_v63 }
 0x89e   :  { %v2386_v20 = vpack.c.bf16 %v2313_v51, %v2313_v51  ;;  %v2379_v53 = vpack.c.bf16 %v2266_v42, %v2266_v42 }
 0x8a0   :  { %10123 = vmatmul.msk.bf16.vlgmr.msrb.gmra.mxu3 %vm579_vm5, %v2376_v0  ;;  %v2452_v13 = vsel %vm579_vm5, %v2386_v20, 0  ;;  %v10980_v0 = vld [vmem:[%s15156_s9 + $0x110] sm:$0xff] }
 0x8a1   :  { %2461 = vmatpush.bf16.xpose.msrb.mxu3 %v2452_v13  ;;  %2352 = vmatpush.bf16.msra.mxu2 %v10980_v0 }
 0x8a3   :  { %v2267_v36 = vpop.f32.mrf.mxu0  ;;  %v2315_v40 = vpop.f32.mrf.mxu1 }
 0x8a4   :  { %v2316_v34 = vadd.f32 %v12366_v38, %v2315_v40  ;;  %v2268_v31 = vadd.f32 %v12372_v26, %v2267_v36 }
 0x8a5   :  { %2353 = vmatpush.bf16.msra.mxu2 %v10979_v54 }
 0x8a6   :  { %v2387_v16 = vpack.c.bf16 %v2316_v34, %v2316_v34  ;;  %v2380_v61 = vpack.c.bf16 %v2268_v31, %v2268_v31 }
 0x8a8   :  { %v2471_v27 = vsel %vm579_vm5, %v2387_v16, 0 }
 0x8a9   :  { %2480 = vmatpush.bf16.xpose.msrb.mxu0 %v2471_v27 }
 0x8ab   :  { %v2270_v44 = vpop.f32.mrf.mxu0  ;;  %v2317_v19 = vpop.f32.mrf.mxu1 }
 0x8ac   :  { %v12391_v52 = vadd.f32 %v12372_v26, %v2270_v44  ;;  %v2318_v56 = vadd.f32 %v12366_v38, %v2317_v19 }
 0x8ae   :  { %v2388_v30 = vpack.c.bf16 %v2318_v56, %v2318_v56  ;;  %v2381_v54 = vpack.c.bf16 %v12391_v52, %v12391_v52 }
 0x8b0   :  { %10124 = vmatmul.msk.bf16.vlgmr.msra.gmra.mxu3 %vm579_vm5, %v2377_v3  ;;  %10126 = vmatmul.msk.bf16.vlgmr.msrb.gmra.mxu0 %vm579_vm5, %v2379_v53  ;;  %v2490_v45 = vsel %vm579_vm5, %v2388_v30, 0 }
 0x8b1   :  { %2499 = vmatpush.bf16.xpose.msra.mxu1 %v2490_v45 }
 0x8b3   :  { %v2320_v60 = vpop.f32.mrf.mxu1  ;;  %v2272_v13 = vpop.f32.mrf.mxu0 }
 0x8b4   :  { %v2273_v36 = vadd.f32 %v12372_v26, %v2272_v13  ;;  %v2321_v16 = vadd.f32 %v12366_v38, %v2320_v60 }
 0x8b6   :  { %v2382_v40 = vpack.c.bf16 %v2273_v36, %v2273_v36  ;;  %v2389_v42 = vpack.c.bf16 %v2321_v16, %v2321_v16 }
 0x8b8   :  { %10127 = vmatmul.msk.bf16.vlgmr.msra.gmra.mxu1 %vm579_vm5, %v2380_v61  ;;  %v2509_v56 = vsel %vm579_vm5, %v2389_v42, 0 }
 0x8bb   :  { %v2322_v24 = vpop.f32.mrf.mxu1 }
 0x8bc   :  { %v2323_v50 = vadd.f32 %v12366_v38, %v2322_v24 }
 0x8be   :  { %v2390_v51 = vpack.c.bf16 %v2323_v50, %v2323_v50 }
 0x8c0   :  { %10125 = vmatmul.msk.bf16.vlgmr.msrb.gmra.mxu3 %vm579_vm5, %v2378_v49  ;;  %v2528_v20 = vsel %vm579_vm5, %v2390_v51, 0 }
 0x8c1   :  { %2537 = vmatpush.bf16.xpose.msra.mxu3 %v2528_v20 }
 0x8d0   :  { %10129 = vmatmul.msk.bf16.vlgmr.msra.gmra.mxu3 %vm579_vm5, %v2382_v40 }
 0x8d8   :  { %v2029_v34 = vpop.xlane.xlu2 %2028 }
 0x8d9   :  { %11272 = vrcp.f32 %v2029_v34 }
 0x8df   :  { %v11273_v27 = vpop.eup %11272  ;;  %v12415_v17 = vpop.f32.mrf.mxu3 }
 0x8e0   :  { %v2047_v44 = vmul.f32 %v11273_v27, %v12354_v6 }
 0x8e2   :  { %v2055_v19 = vpack.c.bf16 %v2047_v44, %v2047_v44 }
 0x8e4   :  { %10072 = vmatmul.msk.bf16.vlgmr.msrb.gmra.mxu2 %vm764_vm6, %v2055_v19 }
 0x8e5   :  { %2518 = vmatpush.bf16.xpose.msrb.mxu2 %v2509_v56 }
 0x8e7   :  { %v2139_v26 = vpop.f32.mrf.mxu3 }
 0x8f4   :  { %10118 = vmatmul.msk.bf16.vlgmr.msra.gmra.mxu2 %vm421_vm4, %v11785_v7 }
 0x901   :  { %v12422_v3 = vpop.f32.mrf.mxu3 }
 0x902   :  { %15189 = vst [vmem:[#allocation12_spill] sm:$0xff] %v12422_v3 }
 0x904   :  { %10119 = vmatmul.msk.bf16.gmra.mxu2 %vm421_vm4, %v11793_v14 }
 0x909   :  { %v12426_v38 = vpop.f32.mrf.mxu2  ;;  %v2215_v53 = vpop.f32.mrf.mxu3 }
 0x911   :  { %v2120_v30 = vpop.f32.mrf.mxu2 }
 0x913   :  { %v2406_v6 = vpop.f32.mrf.mxu3 }
 0x914   :  { %v2543_v45 = vmul.f32 0.4082483, %v2406_v6  ;;  %10120 = vmatmul.msk.bf16.gmra.mxu2 %vm421_vm4, %v11801_v21 }
 0x916   :  { %v2551_v31 = vadd.f32 %v2543_v45, %v11906_v32  ;;  %v11144_v45 = vld [vmem:[%s15155_s10 + $0xb] ss:$0 sm:$0xff] }
 0x918   :  { %v2559_v60 = vsel %vm764_vm6, %v2551_v31, -inf }
 0x919   :  { %2560 = vmax.xlane.f32.xlu1 %v2559_v60 }
 0x91b   :  { %v2408_v61 = vpop.f32.mrf.mxu3 }
 0x923   :  { %v2425_v63 = vpop.f32.mrf.mxu3 }
 0x924   :  { %v2544_v24 = vmul.f32 0.4082483, %v2425_v63  ;;  %10121 = vmatmul.msk.bf16.gmra.mxu2 %vm421_vm4, %v11809_v28 }
 0x926   :  { %v12435_v39 = vadd.f32 %v2544_v24, %v11889_v1 }
 0x928   :  { %v2562_v50 = vsel %vm764_vm6, %v12435_v39, -inf }
 0x929   :  { %2563 = vmax.xlane.f32.xlu0 %v2562_v50 }
 0x92b   :  { %v2427_v49 = vpop.f32.mrf.mxu3 }
 0x92d   :  { %v2482_v51 = vpop.f32.mrf.mxu0 }
 0x92e   :  { %v2547_v0 = vmul.f32 0.4082483, %v2482_v51 }
 0x930   :  { %v12440_v20 = vadd.f32 %v2547_v0, %v11894_v15 }
 0x932   :  { %v2571_v13 = vsel %vm764_vm6, %v12440_v20, -inf }
 0x933   :  { %2572 = vmax.xlane.f32.xlu0 %v2571_v13  ;;  %v12446_v36 = vpop.f32.mrf.mxu3 }
 0x934   :  { %10128 = vmatmul.msk.bf16.vlgmr.msrb.gmra.mxu2 %vm579_vm5, %v2381_v54 }
 0x935   :  { %v2484_v40 = vpop.f32.mrf.mxu0  ;;  %v2501_v34 = vpop.f32.mrf.mxu1 }
 0x936   :  { %v2548_v16 = vmul.f32 0.4082483, %v2501_v34 }
 0x938   :  { %v12450_v27 = vadd.f32 %v2548_v16, %v11899_v22 }
 0x93a   :  { %v2574_v42 = vsel %vm764_vm6, %v12450_v27, -inf }
 0x93b   :  { %2575 = vmax.xlane.f32.xlu2 %v2574_v42  ;;  %v2446_v44 = vpop.f32.mrf.mxu3 }
 0x93d   :  { %v2503_v52 = vpop.f32.mrf.mxu1 }
 0x943   :  { %v2463_v19 = vpop.f32.mrf.mxu3 }
 0x94b   :  { %v2465_v56 = vpop.f32.mrf.mxu3 }
 0x953   :  { %v12454_v26 = vpop.f32.mrf.mxu3 }
 0x95b   :  { %v2541_v53 = vpop.f32.mrf.mxu3 }
 0x967   :  { %v12456_v30 = vpop.f32.mrf.mxu2 }
 0x968   :  { %15190 = vst [vmem:[#allocation13_spill] sm:$0xff] %v12456_v30 }
 0x96f   :  { %v2196_v6 = vpop.f32.mrf.mxu2 }
 0x977   :  { %v2355_v60 = vpop.f32.mrf.mxu2 }
 0x978   :  { %v2356_v61 = vadd.f32 %v11144_v45, %v2355_v60 }
 0x97a   :  { %v2655_v63 = vpack.c.bf16 %v2356_v61, %v2356_v61 }
 0x97c   :  { %v2667_v24 = vsel %vm94_vm0, %v2655_v63, 0  ;;  %v2546_v63 = vmul.f32 0.4082483, %v2463_v19 }
 0x97d   :  { %2676 = vmatpush.bf16.msra.mxu0 %v2667_v24 }
 0x97f   :  { %v2357_v50 = vpop.f32.mrf.mxu2 }
 0x980   :  { %v2358_v49 = vadd.f32 %v11144_v45, %v2357_v50 }
 0x982   :  { %v2656_v51 = vpack.c.bf16 %v2358_v49, %v2358_v49 }
 0x984   :  { %v2686_v0 = vsel %vm94_vm0, %v2656_v51, 0 }
 0x985   :  { %2695 = vmatpush.bf16.msrb.mxu1 %v2686_v0  ;;  %v2554_v0 = vadd.f32 %v2546_v63, %v11912_v48 }
 0x987   :  { %v2360_v54 = vpop.f32.mrf.mxu2 }
 0x988   :  { %v2361_v13 = vadd.f32 %v11144_v45, %v2360_v54 }
 0x98a   :  { %v2657_v40 = vpack.c.bf16 %v2361_v13, %v2361_v13 }
 0x98c   :  { %v2705_v34 = vsel %vm94_vm0, %v2657_v40, 0  ;;  %v2561_v16 = vpop.xlane.xlu1 %2560 }
 0x98d   :  { %v2583_v42 = vsub.f32 %v2551_v31, %v2561_v16  ;;  %2714 = vmatpush.bf16.msra.mxu2 %v2705_v34  ;;  %v2568_v16 = vsel %vm764_vm6, %v2554_v0, -inf }
 0x98f   :  { %v2591_v44 = vmul.f32 1.442695, %v2583_v42  ;;  %v2362_v52 = vpop.f32.mrf.mxu2 }
 0x990   :  { %v2363_v56 = vadd.f32 %v11144_v45, %v2362_v52 }
 0x991   :  { %11274 = vpow2.f32 %v2591_v44 }
 0x992   :  { %v2658_v53 = vpack.c.bf16 %v2363_v56, %v2363_v56 }
 0x994   :  { %v2724_v6 = vsel %vm94_vm0, %v2658_v53, 0 }
 0x995   :  { %2733 = vmatpush.bf16.msrb.mxu3 %v2724_v6 }
 0x997   :  { %v11275_v60 = vpop.eup %11274  ;;  %v2365_v61 = vpop.f32.mrf.mxu2 }
 0x998   :  { %v2366_v24 = vadd.f32 %v11144_v45, %v2365_v61  ;;  %v2607_v50 = vsel %vm764_vm6, %v11275_v60, 0.0 }
 0x999   :  { %2608 = vadd.xlane.f32.xlu2 %v2607_v50 }
 0x99a   :  { %v2659_v49 = vpack.c.bf16 %v2366_v24, %v2366_v24 }
 0x99c   :  { %v2743_v51 = vsel %vm94_vm0, %v2659_v49, 0  ;;  %v2564_v31 = vpop.xlane.xlu0 %2563 }
 0x99d   :  { %v2584_v54 = vsub.f32 %v12435_v39, %v2564_v31  ;;  %2752 = vmatpush.bf16.msrb.mxu0 %v2743_v51 }
 0x99f   :  { %v2593_v13 = vmul.f32 1.442695, %v2584_v54  ;;  %v2367_v40 = vpop.f32.mrf.mxu2 }
 0x9a0   :  { %v2368_v34 = vadd.f32 %v11144_v45, %v2367_v40 }
 0x9a1   :  { %11276 = vpow2.f32 %v2593_v13  ;;  %2569 = vmax.xlane.f32.xlu2 %v2568_v16 }
 0x9a2   :  { %v2660_v19 = vpack.c.bf16 %v2368_v34, %v2368_v34 }
 0x9a4   :  { %v2762_v42 = vsel %vm94_vm0, %v2660_v19, 0 }
 0x9a5   :  { %2771 = vmatpush.bf16.msra.mxu1 %v2762_v42  ;;  %v2550_v42 = vmul.f32 0.4082483, %v12454_v26 }
 0x9a6   :  { %v2573_v44 = vpop.xlane.xlu0 %2572 }
 0x9a7   :  { %v11277_v52 = vpop.eup %11276  ;;  %v2587_v56 = vsub.f32 %v12440_v20, %v2573_v44  ;;  %v2370_v53 = vpop.f32.mrf.mxu2 }
 0x9a8   :  { %v2371_v6 = vadd.f32 %v11144_v45, %v2370_v53  ;;  %v2610_v39 = vsel %vm764_vm6, %v11277_v52, 0.0 }
 0x9a9   :  { %v2599_v61 = vmul.f32 1.442695, %v2587_v56  ;;  %2611 = vadd.xlane.f32.xlu1 %v2610_v39  ;;  %v2545_v56 = vmul.f32 0.4082483, %v12446_v36  ;;  %v10984_v36 = vld [vmem:[%s15156_s9 + $0x130] sm:$0xff] }
 0x9aa   :  { %v2661_v63 = vpack.c.bf16 %v2371_v6, %v2371_v6 }
 0x9ab   :  { %11278 = vpow2.f32 %v2599_v61  ;;  %v2553_v6 = vadd.f32 %v2545_v56, %v11921_v5 }
 0x9ac   :  { %v2781_v24 = vsel %vm94_vm0, %v2661_v63, 0 }
 0x9ad   :  { %2790 = vmatpush.bf16.msrb.mxu2 %v2781_v24  ;;  %v2565_v39 = vsel %vm764_vm6, %v2553_v6, -inf }
 0x9ae   :  { %v2576_v50 = vpop.xlane.xlu2 %2575 }
 0x9af   :  { %v2588_v49 = vsub.f32 %v12450_v27, %v2576_v50  ;;  %v2372_v51 = vpop.f32.mrf.mxu2  ;;  %v2558_v27 = vadd.f32 %v2550_v42, %v11926_v11 }
 0x9b0   :  { %v2373_v31 = vadd.f32 %v11144_v45, %v2372_v51 }
 0x9b1   :  { %v11279_v54 = vpop.eup %11278  ;;  %v2601_v13 = vmul.f32 1.442695, %v2588_v49  ;;  %v2580_v53 = vsel %vm764_vm6, %v2558_v27, -inf }
 0x9b2   :  { %v2662_v40 = vpack.c.bf16 %v2373_v31, %v2373_v31  ;;  %v2619_v20 = vsel %vm764_vm6, %v11279_v54, 0.0  ;;  %v10983_v31 = vld [vmem:[%s15156_s9 + $0x128] sm:$0xff] }
 0x9b3   :  { %11280 = vpow2.f32 %v2601_v13  ;;  %2620 = vadd.xlane.f32.xlu1 %v2619_v20 }
 0x9b4   :  { %v2800_v34 = vsel %vm94_vm0, %v2662_v40, 0 }
 0x9b5   :  { %2809 = vmatpush.bf16.msra.mxu3 %v2800_v34 }
 0x9b7   :  { %v2520_v16 = vpop.f32.mrf.mxu2 }
 0x9b8   :  { %v2549_v40 = vmul.f32 0.4082483, %v2520_v16  ;;  %v10986_v16 = vld [vmem:[%s15156_s9 + $0x140] sm:$0xff] }
 0x9b9   :  { %v11281_v19 = vpop.eup %11280 }
 0x9ba   :  { %v2622_v44 = vsel %vm764_vm6, %v11281_v19, 0.0 }
 0x9bb   :  { %2623 = vadd.xlane.f32.xlu0 %v2622_v44  ;;  %v2557_v44 = vadd.f32 %v2549_v40, %v11945_v37 }
 0x9bf   :  { %v2522_v45 = vpop.f32.mrf.mxu2 }
 0x9c0   :  { %v10987_v45 = vld [vmem:[%s15156_s9 + $0x148] sm:$0xff] }
 0x9c3   :  { %2581 = vmax.xlane.f32.xlu0 %v2580_v53 }
 0x9cb   :  { %2566 = vmax.xlane.f32.xlu0 %v2565_v39  ;;  %v2577_v39 = vsel %vm764_vm6, %v2557_v44, -inf }
 0xa0c   :  { %v2609_v61 = vpop.xlane.xlu2 %2608 }
 0xa0d   :  { %11282 = vrcp.f32 %v2609_v61  ;;  %v10985_v61 = vld [vmem:[%s15156_s9 + $0x138] sm:$0xff] }
 0xa13   :  { %v11283_v63 = vpop.eup %11282 }
 0xa14   :  { %v2639_v26 = vmul.f32 %v11283_v63, %v11275_v60  ;;  %v2570_v24 = vpop.xlane.xlu2 %2569 }
 0xa15   :  { %v2586_v50 = vsub.f32 %v2554_v0, %v2570_v24  ;;  %v10982_v0 = vld [vmem:[%s15156_s9 + $0x120] sm:$0xff] }
 0xa16   :  { %v2647_v49 = vpack.c.bf16 %v2639_v26, %v2639_v26 }
 0xa17   :  { %v2597_v51 = vmul.f32 1.442695, %v2586_v50 }
 0xa18   :  { %10130 = vmatmul.msk.bf16.vlgmr.msra.gmra.mxu0 %vm764_vm6, %v2647_v49 }
 0xa19   :  { %11284 = vpow2.f32 %v2597_v51  ;;  %2849 = vmatpush.bf16.msra.mxu0 %v10984_v36 }
 0xa1c   :  { %v2612_v13 = vpop.xlane.xlu1 %2611 }
 0xa1d   :  { %11286 = vrcp.f32 %v2612_v13  ;;  %2850 = vmatpush.bf16.msra.mxu0 %v10983_v31 }
 0xa1f   :  { %v11285_v60 = vpop.eup %11284 }
 0xa20   :  { %v2616_v20 = vsel %vm764_vm6, %v11285_v60, 0.0 }
 0xa21   :  { %2617 = vadd.xlane.f32.xlu1 %v2616_v20  ;;  %2851 = vmatpush.bf16.msra.mxu0 %v10982_v0 }
 0xa23   :  { %v11287_v34 = vpop.eup %11286 }
 0xa24   :  { %v2640_v42 = vmul.f32 %v11287_v34, %v11277_v52 }
 0xa26   :  { %v2648_v56 = vpack.c.bf16 %v2640_v42, %v2640_v42  ;;  %v2621_v53 = vpop.xlane.xlu1 %2620 }
 0xa27   :  { %11288 = vrcp.f32 %v2621_v53 }
 0xa28   :  { %10131 = vmatmul.msk.bf16.vlgmr.msrb.gmra.mxu1 %vm764_vm6, %v2648_v56 }
 0xa29   :  { %2578 = vmax.xlane.f32.xlu1 %v2577_v39  ;;  %2899 = vmatpush.bf16.msrb.mxu1 %v10987_v45 }
 0xa2d   :  { %v11289_v52 = vpop.eup %11288  ;;  %2900 = vmatpush.bf16.msrb.mxu1 %v10986_v16 }
 0xa2e   :  { %v2643_v63 = vmul.f32 %v11289_v52, %v11279_v54  ;;  %v2624_v26 = vpop.xlane.xlu0 %2623 }
 0xa2f   :  { %11290 = vrcp.f32 %v2624_v26 }
 0xa30   :  { %v2651_v24 = vpack.c.bf16 %v2643_v63, %v2643_v63 }
 0xa31   :  { %2901 = vmatpush.bf16.msrb.mxu1 %v10985_v61 }
 0xa32   :  { %10134 = vmatmul.msk.bf16.vlgmr.msrb.gmra.mxu0 %vm764_vm6, %v2651_v24 }
 0xa35   :  { %v11291_v50 = vpop.eup %11290 }
 0xa36   :  { %v2644_v49 = vmul.f32 %v11291_v50, %v11281_v19  ;;  %v2582_v51 = vpop.xlane.xlu0 %2581 }
 0xa37   :  { %v2590_v36 = vsub.f32 %v2558_v27, %v2582_v51 }
 0xa38   :  { %v2652_v31 = vpack.c.bf16 %v2644_v49, %v2644_v49 }
 0xa39   :  { %v2605_v13 = vmul.f32 1.442695, %v2590_v36 }
 0xa3a   :  { %10135 = vmatmul.msk.bf16.vlgmr.msra.gmra.mxu1 %vm764_vm6, %v2652_v31 }
 0xa3b   :  { %11292 = vpow2.f32 %v2605_v13 }
 0xa3e   :  { %v2567_v0 = vpop.xlane.xlu0 %2566 }
 0xa3f   :  { %v2585_v40 = vsub.f32 %v2553_v6, %v2567_v0 }
 0xa41   :  { %v11293_v20 = vpop.eup %11292  ;;  %v2595_v34 = vmul.f32 1.442695, %v2585_v40 }
 0xa42   :  { %10150 = vmatmul.msk.bf16.vlgmr.msra.gmra.mxu0 %vm421_vm4, %v11785_v7  ;;  %v2628_v54 = vsel %vm764_vm6, %v11293_v20, 0.0 }
 0xa43   :  { %11294 = vpow2.f32 %v2595_v34  ;;  %2629 = vadd.xlane.f32.xlu2 %v2628_v54  ;;  %v12544_v54 = vld [vmem:[%s15155_s10 + $0xd] ss:$0 sm:$0xff] }
 0xa49   :  { %v11295_v42 = vpop.eup %11294 }
 0xa4a   :  { %10166 = vmatmul.msk.bf16.vlgmr.msrb.gmra.mxu1 %vm421_vm4, %v11785_v7  ;;  %v2613_v19 = vsel %vm764_vm6, %v11295_v42, 0.0 }
 0xa4b   :  { %2614 = vadd.xlane.f32.xlu2 %v2613_v19 }
 0xa52   :  { %10151 = vmatmul.msk.bf16.gmra.mxu0 %vm421_vm4, %v11793_v14 }
 0xa5a   :  { %10167 = vmatmul.msk.bf16.gmra.mxu1 %vm421_vm4, %v11793_v14 }
 0xa62   :  { %10152 = vmatmul.msk.bf16.gmra.mxu0 %vm421_vm4, %v11801_v21 }
 0xa6a   :  { %10168 = vmatmul.msk.bf16.gmra.mxu1 %vm421_vm4, %v11801_v21 }
 0xa72   :  { %10153 = vmatmul.msk.bf16.gmra.mxu0 %vm421_vm4, %v11809_v28 }
 0xa7a   :  { %10169 = vmatmul.msk.bf16.gmra.mxu1 %vm421_vm4, %v11809_v28 }
 0xa94   :  { %v2618_v27 = vpop.xlane.xlu1 %2617 }
 0xa95   :  { %11296 = vrcp.f32 %v2618_v27  ;;  %v12527_v6 = vpop.f32.mrf.mxu0 }
 0xa9b   :  { %v11297_v45 = vpop.eup %11296 }
 0xa9c   :  { %v2642_v56 = vmul.f32 %v11297_v45, %v11285_v60  ;;  %v2579_v53 = vpop.xlane.xlu1 %2578 }
 0xa9d   :  { %v2589_v39 = vsub.f32 %v2557_v44, %v2579_v53  ;;  %v2680_v16 = vpop.f32.mrf.mxu0 }
 0xa9e   :  { %v2650_v52 = vpack.c.bf16 %v2642_v56, %v2642_v56 }
 0xa9f   :  { %v2603_v61 = vmul.f32 1.442695, %v2589_v39 }
 0xaa0   :  { %10133 = vmatmul.msk.bf16.vlgmr.msrb.gmra.mxu3 %vm764_vm6, %v2650_v52 }
 0xaa1   :  { %11298 = vpow2.f32 %v2603_v61 }
 0xaa5   :  { %v12530_v63 = vpop.f32.mrf.mxu1 }
 0xaa7   :  { %v12532_v26 = vpop.eup %11298 }
 0xaa8   :  { %v2625_v24 = vsel %vm764_vm6, %v12532_v26, 0.0 }
 0xaa9   :  { %2626 = vadd.xlane.f32.xlu0 %v2625_v24 }
 0xaad   :  { %v2699_v50 = vpop.f32.mrf.mxu1 }
 0xaaf   :  { %v12536_v49 = vpop.f32.mrf.mxu0 }
 0xab6   :  { %v2630_v60 = vpop.xlane.xlu2 %2629 }
 0xab7   :  { %11300 = vrcp.f32 %v2630_v60  ;;  %v2756_v44 = vpop.f32.mrf.mxu0  ;;  %v12538_v51 = vpop.f32.mrf.mxu1 }
 0xabd   :  { %v11301_v36 = vpop.eup %11300 }
 0xabe   :  { %v2646_v31 = vmul.f32 %v11301_v36, %v11293_v20  ;;  %v2615_v13 = vpop.xlane.xlu2 %2614  ;;  %v12550_v20 = vld [vmem:[%s15155_s10 + $0xc] ss:$0 sm:$0xff] }
 0xabf   :  { %11302 = vrcp.f32 %v2615_v13  ;;  %v2775_v0 = vpop.f32.mrf.mxu1  ;;  %v2853_v40 = vpop.f32.mrf.mxu0 }
 0xac0   :  { %v2654_v34 = vpack.c.bf16 %v2646_v31, %v2646_v31  ;;  %v2854_v61 = vadd.f32 %v12550_v20, %v2853_v40 }
 0xac2   :  { %10137 = vmatmul.msk.bf16.vlgmr.msra.gmra.mxu3 %vm764_vm6, %v2654_v34  ;;  %v2973_v60 = vpack.c.bf16 %v2854_v61, %v2854_v61 }
 0xac5   :  { %v11303_v19 = vpop.eup %11302 }
 0xac6   :  { %v2641_v27 = vmul.f32 %v11303_v19, %v11295_v42 }
 0xac7   :  { %v2855_v45 = vpop.f32.mrf.mxu0  ;;  %v2903_v56 = vpop.f32.mrf.mxu1 }
 0xac8   :  { %v2649_v53 = vpack.c.bf16 %v2641_v27, %v2641_v27  ;;  %v2904_v39 = vadd.f32 %v12544_v54, %v2903_v56  ;;  %v2856_v40 = vadd.f32 %v12550_v20, %v2855_v45 }
 0xaca   :  { %v2981_v16 = vpack.c.bf16 %v2904_v39, %v2904_v39  ;;  %10132 = vmatmul.msk.bf16.vlgmr.msra.gmra.mxu2 %vm764_vm6, %v2649_v53  ;;  %v2974_v39 = vpack.c.bf16 %v2856_v40, %v2856_v40 }
 0xacc   :  { %v2993_v52 = vsel %vm579_vm5, %v2981_v16, 0 }
 0xacd   :  { %3002 = vmatpush.bf16.xpose.msrb.mxu3 %v2993_v52 }
 0xacf   :  { %v2858_v24 = vpop.f32.mrf.mxu0  ;;  %v2905_v42 = vpop.f32.mrf.mxu1 }
 0xad0   :  { %v2906_v50 = vadd.f32 %v12544_v54, %v2905_v42  ;;  %v2859_v45 = vadd.f32 %v12550_v20, %v2858_v24 }
 0xad2   :  { %v2982_v44 = vpack.c.bf16 %v2906_v50, %v2906_v50  ;;  %v2975_v40 = vpack.c.bf16 %v2859_v45, %v2859_v45 }
 0xad4   :  { %10186 = vmatmul.msk.bf16.vlgmr.msrb.gmra.mxu3 %vm579_vm5, %v2973_v60  ;;  %v3012_v36 = vsel %vm579_vm5, %v2982_v44, 0 }
 0xad5   :  { %3021 = vmatpush.bf16.xpose.msra.mxu3 %v3012_v36 }
 0xad7   :  { %v2860_v31 = vpop.f32.mrf.mxu0  ;;  %v2908_v13 = vpop.f32.mrf.mxu1 }
 0xad8   :  { %v2909_v0 = vadd.f32 %v12544_v54, %v2908_v13 }
 0xada   :  { %v2983_v34 = vpack.c.bf16 %v2909_v0, %v2909_v0 }
 0xadc   :  { %v3031_v19 = vsel %vm579_vm5, %v2983_v34, 0 }
 0xadd   :  { %3040 = vmatpush.bf16.xpose.msrb.mxu3 %v3031_v19 }
 0xadf   :  { %v2863_v27 = vpop.f32.mrf.mxu0  ;;  %v2910_v56 = vpop.f32.mrf.mxu1 }
 0xae0   :  { %v2911_v53 = vadd.f32 %v12544_v54, %v2910_v56  ;;  %v2864_v36 = vadd.f32 %v12550_v20, %v2863_v27 }
 0xae2   :  { %v2984_v16 = vpack.c.bf16 %v2911_v53, %v2911_v53  ;;  %v2977_v56 = vpack.c.bf16 %v2864_v36, %v2864_v36 }
 0xae4   :  { %10187 = vmatmul.msk.bf16.vlgmr.msra.gmra.mxu3 %vm579_vm5, %v2974_v39  ;;  %v3050_v52 = vsel %vm579_vm5, %v2984_v16, 0 }
 0xae5   :  { %3059 = vmatpush.bf16.xpose.msra.mxu3 %v3050_v52  ;;  %v2861_v52 = vadd.f32 %v12550_v20, %v2860_v31  ;;  %v10988_v31 = vld [vmem:[%s15156_s9 + $0x150] sm:$0xff] }
 0xae7   :  { %v2865_v61 = vpop.f32.mrf.mxu0  ;;  %v2913_v42 = vpop.f32.mrf.mxu1 }
 0xae8   :  { %v2914_v50 = vadd.f32 %v12544_v54, %v2913_v42  ;;  %v2866_v24 = vadd.f32 %v12550_v20, %v2865_v61  ;;  %v10989_v61 = vld [vmem:[%s15156_s9 + $0x158] sm:$0xff] }
 0xaea   :  { %v2985_v60 = vpack.c.bf16 %v2914_v50, %v2914_v50  ;;  %v2978_v16 = vpack.c.bf16 %v2866_v24, %v2866_v24  ;;  %v10990_v50 = vld [vmem:[%s15156_s9 + $0x160] sm:$0xff] }
 0xaeb   :  { %2949 = vmatpush.bf16.msra.mxu2 %v10990_v50 }
 0xaec   :  { %v3069_v44 = vsel %vm579_vm5, %v2985_v60, 0 }
 0xaed   :  { %3078 = vmatpush.bf16.xpose.msrb.mxu0 %v3069_v44  ;;  %v2976_v44 = vpack.c.bf16 %v2861_v52, %v2861_v52 }
 0xaef   :  { %v2868_v13 = vpop.f32.mrf.mxu0  ;;  %v2915_v0 = vpop.f32.mrf.mxu1  ;;  %2950 = vmatpush.bf16.msra.mxu2 %v10989_v61 }
 0xaf0   :  { %v12569_v34 = vadd.f32 %v12550_v20, %v2868_v13  ;;  %v2916_v19 = vadd.f32 %v12544_v54, %v2915_v0 }
 0xaf2   :  { %v2986_v53 = vpack.c.bf16 %v2916_v19, %v2916_v19 }
 0xaf3   :  { %2951 = vmatpush.bf16.msra.mxu2 %v10988_v31 }
 0xaf4   :  { %10188 = vmatmul.msk.bf16.vlgmr.msrb.gmra.mxu3 %vm579_vm5, %v2975_v40  ;;  %10190 = vmatmul.msk.bf16.vlgmr.msrb.gmra.mxu0 %vm579_vm5, %v2977_v56  ;;  %v3088_v39 = vsel %vm579_vm5, %v2986_v53, 0 }
 0xaf5   :  { %3097 = vmatpush.bf16.xpose.msra.mxu1 %v3088_v39 }
 0xaf7   :  { %v2918_v27 = vpop.f32.mrf.mxu1  ;;  %v2870_v13 = vpop.f32.mrf.mxu0 }
 0xaf8   :  { %v2871_v0 = vadd.f32 %v12550_v20, %v2870_v13  ;;  %v2919_v56 = vadd.f32 %v12544_v54, %v2918_v27 }
 0xafa   :  { %v2980_v19 = vpack.c.bf16 %v2871_v0, %v2871_v0  ;;  %v2987_v24 = vpack.c.bf16 %v2919_v56, %v2919_v56 }
 0xafc   :  { %10191 = vmatmul.msk.bf16.vlgmr.msra.gmra.mxu1 %vm579_vm5, %v2978_v16 }
 0xaff   :  { %v2920_v42 = vpop.f32.mrf.mxu1 }
 0xb00   :  { %v2921_v60 = vadd.f32 %v12544_v54, %v2920_v42  ;;  %v3107_v42 = vsel %vm579_vm5, %v2987_v24, 0 }
 0xb02   :  { %v2988_v45 = vpack.c.bf16 %v2921_v60, %v2921_v60 }
 0xb04   :  { %10189 = vmatmul.msk.bf16.vlgmr.msra.gmra.mxu3 %vm579_vm5, %v2976_v44  ;;  %v3126_v36 = vsel %vm579_vm5, %v2988_v45, 0 }
 0xb05   :  { %3135 = vmatpush.bf16.xpose.msrb.mxu3 %v3126_v36 }
 0xb14   :  { %10193 = vmatmul.msk.bf16.vlgmr.msrb.gmra.mxu3 %vm579_vm5, %v2980_v19 }
 0xb1c   :  { %v2627_v40 = vpop.xlane.xlu0 %2626 }
 0xb1d   :  { %11304 = vrcp.f32 %v2627_v40 }
 0xb23   :  { %v11305_v53 = vpop.eup %11304  ;;  %v12593_v39 = vpop.f32.mrf.mxu3 }
 0xb24   :  { %v2645_v16 = vmul.f32 %v11305_v53, %v12532_v26 }
 0xb26   :  { %v2653_v52 = vpack.c.bf16 %v2645_v16, %v2645_v16  ;;  %v2979_v16 = vpack.c.bf16 %v12569_v34, %v12569_v34 }
 0xb28   :  { %10136 = vmatmul.msk.bf16.vlgmr.msrb.gmra.mxu2 %vm764_vm6, %v2653_v52 }
 0xb29   :  { %3116 = vmatpush.bf16.xpose.msrb.mxu2 %v3107_v42 }
 0xb2b   :  { %v2737_v20 = vpop.f32.mrf.mxu3 }
 0xb38   :  { %10182 = vmatmul.msk.bf16.vlgmr.msra.gmra.mxu2 %vm421_vm4, %v11785_v7 }
 0xb45   :  { %v12600_v50 = vpop.f32.mrf.mxu3 }
 0xb46   :  { %15191 = vst [vmem:[#allocation14_spill] sm:$0xff] %v12600_v50 }
 0xb48   :  { %10183 = vmatmul.msk.bf16.gmra.mxu2 %vm421_vm4, %v11793_v14 }
 0xb4d   :  { %v12604_v54 = vpop.f32.mrf.mxu2  ;;  %v2813_v27 = vpop.f32.mrf.mxu3 }
 0xb55   :  { %v2718_v60 = vpop.f32.mrf.mxu2 }
 0xb57   :  { %v3004_v26 = vpop.f32.mrf.mxu3 }
 0xb58   :  { %v3141_v44 = vmul.f32 0.4082483, %v3004_v26  ;;  %10184 = vmatmul.msk.bf16.gmra.mxu2 %vm421_vm4, %v11801_v21 }
 0xb5a   :  { %v3149_v45 = vadd.f32 %v3141_v44, %v11906_v32 }
 0xb5c   :  { %v3157_v61 = vsel %vm764_vm6, %v3149_v45, -inf }
 0xb5d   :  { %3158 = vmax.xlane.f32.xlu2 %v3157_v61 }
 0xb5f   :  { %v3006_v36 = vpop.f32.mrf.mxu3 }
 0xb67   :  { %v3023_v31 = vpop.f32.mrf.mxu3 }
 0xb68   :  { %v3142_v13 = vmul.f32 0.4082483, %v3023_v31  ;;  %10185 = vmatmul.msk.bf16.gmra.mxu2 %vm421_vm4, %v11809_v28 }
 0xb6a   :  { %v12613_v0 = vadd.f32 %v3142_v13, %v11889_v1 }
 0xb6c   :  { %v3160_v19 = vsel %vm764_vm6, %v12613_v0, -inf }
 0xb6d   :  { %3161 = vmax.xlane.f32.xlu1 %v3160_v19 }
 0xb6f   :  { %v3025_v40 = vpop.f32.mrf.mxu3 }
 0xb71   :  { %v3080_v56 = vpop.f32.mrf.mxu0 }
 0xb72   :  { %v3145_v53 = vmul.f32 0.4082483, %v3080_v56 }
 0xb74   :  { %v12618_v24 = vadd.f32 %v3145_v53, %v11894_v15  ;;  %v11147_v53 = vld [vmem:[%s15155_s10 + $0xe] ss:$0 sm:$0xff] }
 0xb76   :  { %v3169_v52 = vsel %vm764_vm6, %v12618_v24, -inf }
 0xb77   :  { %3170 = vmax.xlane.f32.xlu1 %v3169_v52  ;;  %v12624_v42 = vpop.f32.mrf.mxu3 }
 0xb78   :  { %10192 = vmatmul.msk.bf16.vlgmr.msrb.gmra.mxu2 %vm579_vm5, %v2979_v16 }
 0xb79   :  { %v3082_v20 = vpop.f32.mrf.mxu0  ;;  %v3099_v27 = vpop.f32.mrf.mxu1 }
 0xb7a   :  { %v3146_v60 = vmul.f32 0.4082483, %v3099_v27 }
 0xb7c   :  { %v12628_v26 = vadd.f32 %v3146_v60, %v11899_v22 }
 0xb7e   :  { %v3172_v44 = vsel %vm764_vm6, %v12628_v26, -inf }
 0xb7f   :  { %3173 = vmax.xlane.f32.xlu0 %v3172_v44  ;;  %v3044_v61 = vpop.f32.mrf.mxu3 }
 0xb81   :  { %v3101_v34 = vpop.f32.mrf.mxu1 }
 0xb87   :  { %v3061_v36 = vpop.f32.mrf.mxu3 }
 0xb8f   :  { %v3063_v31 = vpop.f32.mrf.mxu3 }
 0xb97   :  { %v12632_v13 = vpop.f32.mrf.mxu3 }
 0xb9f   :  { %v3139_v19 = vpop.f32.mrf.mxu3 }
 0xbab   :  { %v12634_v40 = vpop.f32.mrf.mxu2 }
 0xbac   :  { %15192 = vst [vmem:[#allocation15_spill] sm:$0xff] %v12634_v40 }
 0xbb3   :  { %v2794_v56 = vpop.f32.mrf.mxu2 }
 0xbbb   :  { %v2953_v16 = vpop.f32.mrf.mxu2 }
 0xbbc   :  { %v2954_v52 = vadd.f32 %v11147_v53, %v2953_v16 }
 0xbbe   :  { %v3253_v20 = vpack.c.bf16 %v2954_v52, %v2954_v52 }
 0xbc0   :  { %v3265_v27 = vsel %vm94_vm0, %v3253_v20, 0 }
 0xbc1   :  { %3274 = vmatpush.bf16.msra.mxu0 %v3265_v27 }
 0xbc3   :  { %v2955_v60 = vpop.f32.mrf.mxu2 }
 0xbc4   :  { %v2956_v44 = vadd.f32 %v11147_v53, %v2955_v60 }
 0xbc6   :  { %v3254_v61 = vpack.c.bf16 %v2956_v44, %v2956_v44 }
 0xbc8   :  { %v3284_v34 = vsel %vm94_vm0, %v3254_v61, 0  ;;  %v3144_v61 = vmul.f32 0.4082483, %v3061_v36 }
 0xbc9   :  { %3293 = vmatpush.bf16.msrb.mxu1 %v3284_v34 }
 0xbcb   :  { %v2958_v31 = vpop.f32.mrf.mxu2 }
 0xbcc   :  { %v2959_v19 = vadd.f32 %v11147_v53, %v2958_v31 }
 0xbce   :  { %v3255_v2 = vpack.c.bf16 %v2959_v19, %v2959_v19 }
 0xbd0   :  { %v3303_v56 = vsel %vm94_vm0, %v3255_v2, 0  ;;  %v3159_v47 = vpop.xlane.xlu2 %3158 }
 0xbd1   :  { %v3181_v29 = vsub.f32 %v3149_v45, %v3159_v47  ;;  %3312 = vmatpush.bf16.msra.mxu2 %v3303_v56 }
 0xbd3   :  { %v3189_v59 = vmul.f32 1.442695, %v3181_v29  ;;  %v2960_v16 = vpop.f32.mrf.mxu2  ;;  %v3152_v29 = vadd.f32 %v3144_v61, %v11912_v48 }
 0xbd4   :  { %v2961_v52 = vadd.f32 %v11147_v53, %v2960_v16 }
 0xbd5   :  { %11306 = vpow2.f32 %v3189_v59 }
 0xbd6   :  { %v3256_v20 = vpack.c.bf16 %v2961_v52, %v2961_v52  ;;  %v3166_v52 = vsel %vm764_vm6, %v3152_v29, -inf }
 0xbd8   :  { %v3322_v27 = vsel %vm94_vm0, %v3256_v20, 0 }
 0xbd9   :  { %3331 = vmatpush.bf16.msra.mxu3 %v3322_v27 }
 0xbdb   :  { %v11307_v60 = vpop.eup %11306  ;;  %v2963_v44 = vpop.f32.mrf.mxu2 }
 0xbdc   :  { %v2964_v34 = vadd.f32 %v11147_v53, %v2963_v44  ;;  %v3205_v31 = vsel %vm764_vm6, %v11307_v60, 0.0 }
 0xbdd   :  { %3206 = vadd.xlane.f32.xlu0 %v3205_v31 }
 0xbde   :  { %v3257_v19 = vpack.c.bf16 %v2964_v34, %v2964_v34 }
 0xbe0   :  { %v3341_v2 = vsel %vm94_vm0, %v3257_v19, 0  ;;  %v3162_v47 = vpop.xlane.xlu1 %3161 }
 0xbe1   :  { %v3182_v45 = vsub.f32 %v12613_v0, %v3162_v47  ;;  %3350 = vmatpush.bf16.msrb.mxu0 %v3341_v2 }
 0xbe3   :  { %v3191_v59 = vmul.f32 1.442695, %v3182_v45  ;;  %v2965_v56 = vpop.f32.mrf.mxu2 }
 0xbe4   :  { %v2966_v16 = vadd.f32 %v11147_v53, %v2965_v56 }
 0xbe5   :  { %11308 = vpow2.f32 %v3191_v59  ;;  %3167 = vmax.xlane.f32.xlu0 %v3166_v52 }
 0xbe6   :  { %v3258_v36 = vpack.c.bf16 %v2966_v16, %v2966_v16 }
 0xbe8   :  { %v3360_v20 = vsel %vm94_vm0, %v3258_v36, 0 }
 0xbe9   :  { %3369 = vmatpush.bf16.msra.mxu1 %v3360_v20 }
 0xbea   :  { %v3171_v27 = vpop.xlane.xlu1 %3170 }
 0xbeb   :  { %v11309_v44 = vpop.eup %11308  ;;  %v3185_v34 = vsub.f32 %v12618_v24, %v3171_v27  ;;  %v2968_v31 = vpop.f32.mrf.mxu2 }
 0xbec   :  { %v2969_v61 = vadd.f32 %v11147_v53, %v2968_v31  ;;  %v3208_v0 = vsel %vm764_vm6, %v11309_v44, 0.0 }
 0xbed   :  { %v3197_v19 = vmul.f32 1.442695, %v3185_v34  ;;  %3209 = vadd.xlane.f32.xlu2 %v3208_v0 }
 0xbee   :  { %v3259_v2 = vpack.c.bf16 %v2969_v61, %v2969_v61  ;;  %v3148_v61 = vmul.f32 0.4082483, %v12632_v13 }
 0xbef   :  { %11310 = vpow2.f32 %v3197_v19  ;;  %v3143_v19 = vmul.f32 0.4082483, %v12624_v42  ;;  %v10993_v42 = vld [vmem:[%s15156_s9 + $0x178] sm:$0xff] }
 0xbf0   :  { %v3379_v47 = vsel %vm94_vm0, %v3259_v2, 0 }
 0xbf1   :  { %3388 = vmatpush.bf16.msrb.mxu2 %v3379_v47  ;;  %v3151_v47 = vadd.f32 %v3143_v19, %v11921_v5 }
 0xbf2   :  { %v3174_v45 = vpop.xlane.xlu0 %3173 }
 0xbf3   :  { %v3186_v59 = vsub.f32 %v12628_v26, %v3174_v45  ;;  %v2970_v56 = vpop.f32.mrf.mxu2  ;;  %v3156_v26 = vadd.f32 %v3148_v61, %v11926_v11  ;;  %v3163_v45 = vsel %vm764_vm6, %v3151_v47, -inf }
 0xbf4   :  { %v2971_v16 = vadd.f32 %v11147_v53, %v2970_v56 }
 0xbf5   :  { %v11311_v52 = vpop.eup %11310  ;;  %v3199_v36 = vmul.f32 1.442695, %v3186_v59  ;;  %v3178_v2 = vsel %vm764_vm6, %v3156_v26, -inf }
 0xbf6   :  { %v3260_v20 = vpack.c.bf16 %v2971_v16, %v2971_v16  ;;  %v3217_v24 = vsel %vm764_vm6, %v11311_v52, 0.0 }
 0xbf7   :  { %11312 = vpow2.f32 %v3199_v36  ;;  %3218 = vadd.xlane.f32.xlu2 %v3217_v24 }
 0xbf8   :  { %v3398_v27 = vsel %vm94_vm0, %v3260_v20, 0 }
 0xbf9   :  { %3407 = vmatpush.bf16.msrb.mxu3 %v3398_v27  ;;  %v10992_v27 = vld [vmem:[%s15156_s9 + $0x170] sm:$0xff] }
 0xbfb   :  { %v3118_v34 = vpop.f32.mrf.mxu2 }
 0xbfd   :  { %v11313_v31 = vpop.eup %11312 }
 0xbfe   :  { %v3220_v0 = vsel %vm764_vm6, %v11313_v31, 0.0 }
 0xbff   :  { %3221 = vadd.xlane.f32.xlu1 %v3220_v0  ;;  %v3147_v0 = vmul.f32 0.4082483, %v3118_v34  ;;  %v10995_v34 = vld [vmem:[%s15156_s9 + $0x188] sm:$0xff] }
 0xc03   :  { %v3120_v53 = vpop.f32.mrf.mxu2 }
 0xc07   :  { %3179 = vmax.xlane.f32.xlu1 %v3178_v2 }
 0xc0f   :  { %3164 = vmax.xlane.f32.xlu1 %v3163_v45  ;;  %v3155_v45 = vadd.f32 %v3147_v0, %v11945_v37 }
 0xc50   :  { %v3207_v59 = vpop.xlane.xlu0 %3206 }
 0xc51   :  { %11314 = vrcp.f32 %v3207_v59  ;;  %v10996_v59 = vld [vmem:[%s15156_s9 + $0x190] sm:$0xff] }
 0xc57   :  { %v11315_v56 = vpop.eup %11314 }
 0xc58   :  { %v3237_v13 = vmul.f32 %v11315_v56, %v11307_v60  ;;  %v3168_v16 = vpop.xlane.xlu0 %3167 }
 0xc59   :  { %v3184_v36 = vsub.f32 %v3152_v29, %v3168_v16  ;;  %v10991_v29 = vld [vmem:[%s15156_s9 + $0x168] sm:$0xff]  ;;  %v3175_v16 = vsel %vm764_vm6, %v3155_v45, -inf }
 0xc5a   :  { %v3245_v20 = vpack.c.bf16 %v3237_v13, %v3237_v13 }
 0xc5b   :  { %v3195_v24 = vmul.f32 1.442695, %v3184_v36  ;;  %v10994_v36 = vld [vmem:[%s15156_s9 + $0x180] sm:$0xff] }
 0xc5c   :  { %10194 = vmatmul.msk.bf16.vlgmr.msra.gmra.mxu0 %vm764_vm6, %v3245_v20 }
 0xc5d   :  { %11316 = vpow2.f32 %v3195_v24  ;;  %3447 = vmatpush.bf16.msra.mxu0 %v10993_v42 }
 0xc60   :  { %v3210_v61 = vpop.xlane.xlu2 %3209 }
 0xc61   :  { %11318 = vrcp.f32 %v3210_v61  ;;  %3448 = vmatpush.bf16.msra.mxu0 %v10992_v27 }
 0xc63   :  { %v11317_v60 = vpop.eup %11316 }
 0xc64   :  { %v3214_v53 = vsel %vm764_vm6, %v11317_v60, 0.0 }
 0xc65   :  { %3215 = vadd.xlane.f32.xlu2 %v3214_v53  ;;  %3449 = vmatpush.bf16.msra.mxu0 %v10991_v29 }
 0xc67   :  { %v11319_v19 = vpop.eup %11318 }
 0xc68   :  { %v3238_v2 = vmul.f32 %v11319_v19, %v11309_v44 }
 0xc6a   :  { %v3246_v56 = vpack.c.bf16 %v3238_v2, %v3238_v2  ;;  %v3219_v13 = vpop.xlane.xlu2 %3218 }
 0xc6b   :  { %11320 = vrcp.f32 %v3219_v13 }
 0xc6c   :  { %10195 = vmatmul.msk.bf16.vlgmr.msrb.gmra.mxu1 %vm764_vm6, %v3246_v56 }
 0xc6d   :  { %3176 = vmax.xlane.f32.xlu2 %v3175_v16  ;;  %3497 = vmatpush.bf16.msrb.mxu1 %v10996_v59 }
 0xc71   :  { %v11321_v44 = vpop.eup %11320  ;;  %3498 = vmatpush.bf16.msrb.mxu1 %v10995_v34 }
 0xc72   :  { %v3241_v20 = vmul.f32 %v11321_v44, %v11311_v52  ;;  %v3222_v24 = vpop.xlane.xlu1 %3221 }
 0xc73   :  { %11322 = vrcp.f32 %v3222_v24 }
 0xc74   :  { %v3249_v42 = vpack.c.bf16 %v3241_v20, %v3241_v20 }
 0xc75   :  { %3499 = vmatpush.bf16.msrb.mxu1 %v10994_v36 }
 0xc76   :  { %10198 = vmatmul.msk.bf16.vlgmr.msrb.gmra.mxu0 %vm764_vm6, %v3249_v42 }
 0xc79   :  { %v11323_v27 = vpop.eup %11322 }
 0xc7a   :  { %v3242_v61 = vmul.f32 %v11323_v27, %v11313_v31  ;;  %v3180_v29 = vpop.xlane.xlu1 %3179 }
 0xc7b   :  { %v3188_v0 = vsub.f32 %v3156_v26, %v3180_v29 }
 0xc7c   :  { %v3250_v53 = vpack.c.bf16 %v3242_v61, %v3242_v61 }
 0xc7d   :  { %v3203_v19 = vmul.f32 1.442695, %v3188_v0 }
 0xc7e   :  { %10199 = vmatmul.msk.bf16.vlgmr.msra.gmra.mxu1 %vm764_vm6, %v3250_v53 }
 0xc7f   :  { %11324 = vpow2.f32 %v3203_v19 }
 0xc82   :  { %v3165_v2 = vpop.xlane.xlu1 %3164 }
 0xc83   :  { %v3183_v59 = vsub.f32 %v3151_v47, %v3165_v2 }
 0xc85   :  { %v11325_v56 = vpop.eup %11324  ;;  %v3193_v13 = vmul.f32 1.442695, %v3183_v59 }
 0xc86   :  { %10214 = vmatmul.msk.bf16.vlgmr.msra.gmra.mxu0 %vm421_vm4, %v11785_v7  ;;  %v3226_v52 = vsel %vm764_vm6, %v11325_v56, 0.0 }
 0xc87   :  { %11326 = vpow2.f32 %v3193_v13  ;;  %3227 = vadd.xlane.f32.xlu0 %v3226_v52 }
 0xc8d   :  { %v11327_v16 = vpop.eup %11326 }
 0xc8e   :  { %10230 = vmatmul.msk.bf16.vlgmr.msrb.gmra.mxu1 %vm421_vm4, %v11785_v7  ;;  %v3211_v31 = vsel %vm764_vm6, %v11327_v16, 0.0 }
 0xc8f   :  { %3212 = vadd.xlane.f32.xlu0 %v3211_v31 }
 0xc96   :  { %10215 = vmatmul.msk.bf16.gmra.mxu0 %vm421_vm4, %v11793_v14 }
 0xc9e   :  { %10231 = vmatmul.msk.bf16.gmra.mxu1 %vm421_vm4, %v11793_v14 }
 0xca6   :  { %10216 = vmatmul.msk.bf16.gmra.mxu0 %vm421_vm4, %v11801_v21 }
 0xcae   :  { %10232 = vmatmul.msk.bf16.gmra.mxu1 %vm421_vm4, %v11801_v21 }
 0xcb6   :  { %10217 = vmatmul.msk.bf16.gmra.mxu0 %vm421_vm4, %v11809_v28 }
 0xcbe   :  { %10233 = vmatmul.msk.bf16.gmra.mxu1 %vm421_vm4, %v11809_v28 }
 0xcd8   :  { %v3216_v26 = vpop.xlane.xlu2 %3215 }
 0xcd9   :  { %11328 = vrcp.f32 %v3216_v26  ;;  %v12705_v47 = vpop.f32.mrf.mxu0 }
 0xcdf   :  { %v11329_v34 = vpop.eup %11328 }
 0xce0   :  { %v3240_v44 = vmul.f32 %v11329_v34, %v11317_v60  ;;  %v3177_v36 = vpop.xlane.xlu2 %3176 }
 0xce1   :  { %v3187_v20 = vsub.f32 %v3155_v45, %v3177_v36  ;;  %v3278_v24 = vpop.f32.mrf.mxu0 }
 0xce2   :  { %v3248_v42 = vpack.c.bf16 %v3240_v44, %v3240_v44  ;;  %v12722_v44 = vld [vmem:[%s15155_s10 + $0x10] ss:$0 sm:$0xff] }
 0xce3   :  { %v3201_v27 = vmul.f32 1.442695, %v3187_v20 }
 0xce4   :  { %10197 = vmatmul.msk.bf16.vlgmr.msra.gmra.mxu3 %vm764_vm6, %v3248_v42 }
 0xce5   :  { %11330 = vpow2.f32 %v3201_v27 }
 0xce9   :  { %v12708_v61 = vpop.f32.mrf.mxu1 }
 0xceb   :  { %v12710_v29 = vpop.eup %11330 }
 0xcec   :  { %v3223_v0 = vsel %vm764_vm6, %v12710_v29, 0.0 }
 0xced   :  { %3224 = vadd.xlane.f32.xlu1 %v3223_v0 }
 0xcf1   :  { %v3297_v53 = vpop.f32.mrf.mxu1 }
 0xcf3   :  { %v12714_v19 = vpop.f32.mrf.mxu0 }
 0xcfa   :  { %v3228_v60 = vpop.xlane.xlu0 %3227 }
 0xcfb   :  { %11332 = vrcp.f32 %v3228_v60  ;;  %v3354_v45 = vpop.f32.mrf.mxu0  ;;  %v12716_v2 = vpop.f32.mrf.mxu1 }
 0xd01   :  { %v11333_v59 = vpop.eup %11332 }
 0xd02   :  { %v3244_v13 = vmul.f32 %v11333_v59, %v11325_v56  ;;  %v3213_v52 = vpop.xlane.xlu0 %3212  ;;  %v12728_v56 = vld [vmem:[%s15155_s10 + $0xf] ss:$0 sm:$0xff] }
 0xd03   :  { %11334 = vrcp.f32 %v3213_v52  ;;  %v3373_v31 = vpop.f32.mrf.mxu1  ;;  %v3451_v26 = vpop.f32.mrf.mxu0 }
 0xd04   :  { %v3252_v34 = vpack.c.bf16 %v3244_v13, %v3244_v13  ;;  %v3452_v45 = vadd.f32 %v12728_v56, %v3451_v26 }
 0xd06   :  { %10201 = vmatmul.msk.bf16.vlgmr.msrb.gmra.mxu3 %vm764_vm6, %v3252_v34  ;;  %v3571_v52 = vpack.c.bf16 %v3452_v45, %v3452_v45 }
 0xd09   :  { %v11335_v36 = vpop.eup %11334 }
 0xd0a   :  { %v3239_v20 = vmul.f32 %v11335_v36, %v11327_v16 }
 0xd0b   :  { %v3453_v24 = vpop.f32.mrf.mxu0  ;;  %v3501_v42 = vpop.f32.mrf.mxu1 }
 0xd0c   :  { %v3247_v27 = vpack.c.bf16 %v3239_v20, %v3239_v20  ;;  %v3502_v0 = vadd.f32 %v12722_v44, %v3501_v42  ;;  %v3454_v26 = vadd.f32 %v12728_v56, %v3453_v24 }
 0xd0e   :  { %v3579_v53 = vpack.c.bf16 %v3502_v0, %v3502_v0  ;;  %10196 = vmatmul.msk.bf16.vlgmr.msra.gmra.mxu2 %vm764_vm6, %v3247_v27 }
 0xd10   :  { %v3591_v60 = vsel %vm579_vm5, %v3579_v53, 0 }
 0xd11   :  { %3600 = vmatpush.bf16.xpose.msra.mxu3 %v3591_v60 }
 0xd13   :  { %v3456_v59 = vpop.f32.mrf.mxu0  ;;  %v3503_v16 = vpop.f32.mrf.mxu1 }
 0xd14   :  { %v3504_v13 = vadd.f32 %v12722_v44, %v3503_v16  ;;  %v3572_v16 = vpack.c.bf16 %v3454_v26, %v3454_v26  ;;  %v3457_v24 = vadd.f32 %v12728_v56, %v3456_v59 }
 0xd16   :  { %v3580_v31 = vpack.c.bf16 %v3504_v13, %v3504_v13 }
 0xd18   :  { %10250 = vmatmul.msk.bf16.vlgmr.msra.gmra.mxu3 %vm579_vm5, %v3571_v52  ;;  %v3610_v34 = vsel %vm579_vm5, %v3580_v31, 0 }
 0xd19   :  { %3619 = vmatpush.bf16.xpose.msrb.mxu3 %v3610_v34 }
 0xd1b   :  { %v3458_v36 = vpop.f32.mrf.mxu0  ;;  %v3506_v20 = vpop.f32.mrf.mxu1 }
 0xd1c   :  { %v3507_v42 = vadd.f32 %v12722_v44, %v3506_v20 }
 0xd1e   :  { %v3581_v27 = vpack.c.bf16 %v3507_v42, %v3507_v42 }
 0xd20   :  { %v3629_v0 = vsel %vm579_vm5, %v3581_v27, 0 }
 0xd21   :  { %3638 = vmatpush.bf16.xpose.msra.mxu3 %v3629_v0 }
 0xd23   :  { %v3461_v53 = vpop.f32.mrf.mxu0  ;;  %v3508_v60 = vpop.f32.mrf.mxu1 }
 0xd24   :  { %v3509_v45 = vadd.f32 %v12722_v44, %v3508_v60  ;;  %v3462_v0 = vadd.f32 %v12728_v56, %v3461_v53 }
 0xd26   :  { %v3582_v13 = vpack.c.bf16 %v3509_v45, %v3509_v45 }
 0xd28   :  { %10251 = vmatmul.msk.bf16.vlgmr.msrb.gmra.mxu3 %vm579_vm5, %v3572_v16  ;;  %v3648_v52 = vsel %vm579_vm5, %v3582_v13, 0  ;;  %v3573_v13 = vpack.c.bf16 %v3457_v24, %v3457_v24  ;;  %v10999_v24 = vld [vmem:[%s15156_s9 + $0x1a8] sm:$0xff] }
 0xd29   :  { %3657 = vmatpush.bf16.xpose.msrb.mxu3 %v3648_v52  ;;  %v3575_v52 = vpack.c.bf16 %v3462_v0, %v3462_v0  ;;  %3547 = vmatpush.bf16.msra.mxu2 %v10999_v24 }
 0xd2b   :  { %v3463_v31 = vpop.f32.mrf.mxu0  ;;  %v3511_v34 = vpop.f32.mrf.mxu1 }
 0xd2c   :  { %v3512_v20 = vadd.f32 %v12722_v44, %v3511_v34  ;;  %v3464_v59 = vadd.f32 %v12728_v56, %v3463_v31 }
 0xd2e   :  { %v3583_v42 = vpack.c.bf16 %v3512_v20, %v3512_v20  ;;  %v3576_v20 = vpack.c.bf16 %v3464_v59, %v3464_v59 }
 0xd30   :  { %v3667_v27 = vsel %vm579_vm5, %v3583_v42, 0  ;;  %v3459_v42 = vadd.f32 %v12728_v56, %v3458_v36  ;;  %v10997_v36 = vld [vmem:[%s15156_s9 + $0x198] sm:$0xff] }
 0xd31   :  { %3676 = vmatpush.bf16.xpose.msrb.mxu0 %v3667_v27 }
 0xd33   :  { %v3466_v60 = vpop.f32.mrf.mxu0  ;;  %v3513_v26 = vpop.f32.mrf.mxu1 }
 0xd34   :  { %v12747_v45 = vadd.f32 %v12728_v56, %v3466_v60  ;;  %v3514_v16 = vadd.f32 %v12722_v44, %v3513_v26  ;;  %v3574_v60 = vpack.c.bf16 %v3459_v42, %v3459_v42 }
 0xd36   :  { %v3584_v35 = vpack.c.bf16 %v3514_v16, %v3514_v16 }
 0xd38   :  { %10252 = vmatmul.msk.bf16.vlgmr.msra.gmra.mxu3 %vm579_vm5, %v3573_v13  ;;  %10254 = vmatmul.msk.bf16.vlgmr.msrb.gmra.mxu0 %vm579_vm5, %v3575_v52  ;;  %v3686_v34 = vsel %vm579_vm5, %v3584_v35, 0  ;;  %v10998_v35 = vld [vmem:[%s15156_s9 + $0x1a0] sm:$0xff] }
 0xd39   :  { %3695 = vmatpush.bf16.xpose.msra.mxu1 %v3686_v34  ;;  %3548 = vmatpush.bf16.msra.mxu2 %v10998_v35 }
 0xd3b   :  { %v3516_v53 = vpop.f32.mrf.mxu1  ;;  %v3468_v16 = vpop.f32.mrf.mxu0 }
 0xd3c   :  { %v3469_v13 = vadd.f32 %v12728_v56, %v3468_v16  ;;  %v3517_v59 = vadd.f32 %v12722_v44, %v3516_v53 }
 0xd3d   :  { %3549 = vmatpush.bf16.msra.mxu2 %v10997_v36 }
 0xd3e   :  { %v3578_v52 = vpack.c.bf16 %v3469_v13, %v3469_v13 }
 0xd40   :  { %10255 = vmatmul.msk.bf16.vlgmr.msra.gmra.mxu1 %vm579_vm5, %v3576_v20 }
 0xd43   :  { %v3518_v27 = vpop.f32.mrf.mxu1 }
 0xd44   :  { %v3519_v0 = vadd.f32 %v12722_v44, %v3518_v27  ;;  %v3585_v27 = vpack.c.bf16 %v3517_v59, %v3517_v59 }
 0xd46   :  { %v3586_v26 = vpack.c.bf16 %v3519_v0, %v3519_v0 }
 0xd48   :  { %10253 = vmatmul.msk.bf16.vlgmr.msrb.gmra.mxu3 %vm579_vm5, %v3574_v60  ;;  %v3724_v31 = vsel %vm579_vm5, %v3586_v26, 0  ;;  %v3705_v60 = vsel %vm579_vm5, %v3585_v27, 0 }
 0xd49   :  { %3733 = vmatpush.bf16.xpose.msra.mxu3 %v3724_v31 }
 0xd58   :  { %10257 = vmatmul.msk.bf16.vlgmr.msra.gmra.mxu3 %vm579_vm5, %v3578_v52 }
 0xd60   :  { %v3225_v34 = vpop.xlane.xlu1 %3224 }
 0xd61   :  { %11336 = vrcp.f32 %v3225_v34 }
 0xd67   :  { %v11337_v20 = vpop.eup %11336  ;;  %v12771_v42 = vpop.f32.mrf.mxu3 }
 0xd68   :  { %v3243_v24 = vmul.f32 %v11337_v20, %v12710_v29 }
 0xd6a   :  { %v3251_v0 = vpack.c.bf16 %v3243_v24, %v3243_v24 }
 0xd6c   :  { %10200 = vmatmul.msk.bf16.vlgmr.msrb.gmra.mxu2 %vm764_vm6, %v3251_v0 }
 0xd6d   :  { %3714 = vmatpush.bf16.xpose.msrb.mxu2 %v3705_v60 }
 0xd6f   :  { %v3335_v56 = vpop.f32.mrf.mxu3 }
 0xd70   :  { %v3577_v56 = vpack.c.bf16 %v12747_v45, %v12747_v45 }
 0xd7c   :  { %10246 = vmatmul.msk.bf16.vlgmr.msra.gmra.mxu2 %vm421_vm4, %v11785_v7 }
 0xd89   :  { %v12778_v26 = vpop.f32.mrf.mxu3 }
 0xd8a   :  { %15193 = vst [vmem:[#allocation16_spill] sm:$0xff] %v12778_v26 }
 0xd8c   :  { %10247 = vmatmul.msk.bf16.gmra.mxu2 %vm421_vm4, %v11793_v14 }
 0xd91   :  { %v12782_v44 = vpop.f32.mrf.mxu2  ;;  %v3411_v53 = vpop.f32.mrf.mxu3 }
 0xd99   :  { %v3316_v35 = vpop.f32.mrf.mxu2 }
 0xd9b   :  { %v3602_v29 = vpop.f32.mrf.mxu3 }
 0xd9c   :  { %v3739_v31 = vmul.f32 0.4082483, %v3602_v29  ;;  %10248 = vmatmul.msk.bf16.gmra.mxu2 %vm421_vm4, %v11801_v21 }
 0xd9e   :  { %v3747_v36 = vadd.f32 %v3739_v31, %v11906_v32 }
 0xda0   :  { %v3755_v16 = vsel %vm764_vm6, %v3747_v36, -inf }
 0xda1   :  { %3756 = vmax.xlane.f32.xlu0 %v3755_v16 }
 0xda3   :  { %v3604_v13 = vpop.f32.mrf.mxu3 }
 0xdab   :  { %v3621_v52 = vpop.f32.mrf.mxu3 }
 0xdac   :  { %v3740_v34 = vmul.f32 0.4082483, %v3621_v52  ;;  %10249 = vmatmul.msk.bf16.gmra.mxu2 %vm421_vm4, %v11809_v28 }
 0xdae   :  { %v12791_v59 = vadd.f32 %v3740_v34, %v11889_v1 }
 0xdb0   :  { %v3758_v20 = vsel %vm764_vm6, %v12791_v59, -inf }
 0xdb1   :  { %3759 = vmax.xlane.f32.xlu2 %v3758_v20 }
 0xdb3   :  { %v3623_v27 = vpop.f32.mrf.mxu3 }
 0xdb5   :  { %v3678_v24 = vpop.f32.mrf.mxu0 }
 0xdb6   :  { %v3743_v0 = vmul.f32 0.4082483, %v3678_v24 }
 0xdb8   :  { %v12796_v60 = vadd.f32 %v3743_v0, %v11894_v15 }
 0xdba   :  { %v3767_v53 = vsel %vm764_vm6, %v12796_v60, -inf }
 0xdbb   :  { %3768 = vmax.xlane.f32.xlu2 %v3767_v53  ;;  %v12802_v35 = vpop.f32.mrf.mxu3 }
 0xdbc   :  { %10256 = vmatmul.msk.bf16.vlgmr.msrb.gmra.mxu2 %vm579_vm5, %v3577_v56 }
 0xdbd   :  { %v3680_v29 = vpop.f32.mrf.mxu0  ;;  %v3697_v31 = vpop.f32.mrf.mxu1 }
 0xdbe   :  { %v3744_v16 = vmul.f32 0.4082483, %v3697_v31  ;;  %v11150_v29 = vld [vmem:[%s15155_s10 + $0x11] ss:$0 sm:$0xff] }
 0xdc0   :  { %v12806_v13 = vadd.f32 %v3744_v16, %v11899_v22 }
 0xdc2   :  { %v3770_v52 = vsel %vm764_vm6, %v12806_v13, -inf }
 0xdc3   :  { %3771 = vmax.xlane.f32.xlu1 %v3770_v52  ;;  %v3642_v34 = vpop.f32.mrf.mxu3 }
 0xdc5   :  { %v3699_v45 = vpop.f32.mrf.mxu1 }
 0xdcb   :  { %v3659_v20 = vpop.f32.mrf.mxu3 }
 0xdd3   :  { %v3661_v27 = vpop.f32.mrf.mxu3 }
 0xddb   :  { %v12810_v24 = vpop.f32.mrf.mxu3 }
 0xde3   :  { %v3737_v0 = vpop.f32.mrf.mxu3 }
 0xdef   :  { %v12812_v53 = vpop.f32.mrf.mxu2 }
 0xdf0   :  { %15194 = vst [vmem:[#allocation17_spill] sm:$0xff] %v12812_v53 }
 0xdf7   :  { %v3392_v56 = vpop.f32.mrf.mxu2 }
 0xdff   :  { %v3551_v31 = vpop.f32.mrf.mxu2 }
 0xe00   :  { %v3552_v16 = vadd.f32 %v11150_v29, %v3551_v31 }
 0xe02   :  { %v3851_v8 = vpack.c.bf16 %v3552_v16, %v3552_v16 }
 0xe04   :  { %v3863_v50 = vsel %vm94_vm0, %v3851_v8, 0 }
 0xe05   :  { %3872 = vmatpush.bf16.msra.mxu0 %v3863_v50 }
 0xe07   :  { %v3553_v52 = vpop.f32.mrf.mxu2 }
 0xe08   :  { %v3554_v34 = vadd.f32 %v11150_v29, %v3553_v52 }
 0xe0a   :  { %v3852_v45 = vpack.c.bf16 %v3554_v34, %v3554_v34 }
 0xe0c   :  { %v3882_v27 = vsel %vm94_vm0, %v3852_v45, 0  ;;  %v3742_v45 = vmul.f32 0.4082483, %v3659_v20 }
 0xe0d   :  { %3891 = vmatpush.bf16.msrb.mxu1 %v3882_v27 }
 0xe0f   :  { %v3556_v0 = vpop.f32.mrf.mxu2 }
 0xe10   :  { %v3557_v3 = vadd.f32 %v11150_v29, %v3556_v0 }
 0xe12   :  { %v3853_v53 = vpack.c.bf16 %v3557_v3, %v3557_v3 }
 0xe14   :  { %v3901_v56 = vsel %vm94_vm0, %v3853_v53, 0  ;;  %v3757_v30 = vpop.xlane.xlu0 %3756 }
 0xe15   :  { %v3779_v26 = vsub.f32 %v3747_v36, %v3757_v30  ;;  %3910 = vmatpush.bf16.msra.mxu2 %v3901_v56 }
 0xe17   :  { %v3787_v40 = vmul.f32 1.442695, %v3779_v26  ;;  %v3558_v31 = vpop.f32.mrf.mxu2  ;;  %v3750_v26 = vadd.f32 %v3742_v45, %v11912_v48 }
 0xe18   :  { %v3559_v16 = vadd.f32 %v11150_v29, %v3558_v31 }
 0xe19   :  { %11338 = vpow2.f32 %v3787_v40 }
 0xe1a   :  { %v3854_v8 = vpack.c.bf16 %v3559_v16, %v3559_v16  ;;  %v3764_v16 = vsel %vm764_vm6, %v3750_v26, -inf }
 0xe1c   :  { %v3920_v50 = vsel %vm94_vm0, %v3854_v8, 0 }
 0xe1d   :  { %3929 = vmatpush.bf16.msrb.mxu3 %v3920_v50 }
 0xe1f   :  { %v11339_v52 = vpop.eup %11338  ;;  %v3561_v34 = vpop.f32.mrf.mxu2 }
 0xe20   :  { %v3562_v27 = vadd.f32 %v11150_v29, %v3561_v34  ;;  %v3803_v0 = vsel %vm764_vm6, %v11339_v52, 0.0 }
 0xe21   :  { %3804 = vadd.xlane.f32.xlu1 %v3803_v0 }
 0xe22   :  { %v3855_v3 = vpack.c.bf16 %v3562_v27, %v3562_v27 }
 0xe24   :  { %v3939_v53 = vsel %vm94_vm0, %v3855_v3, 0  ;;  %v3760_v30 = vpop.xlane.xlu2 %3759 }
 0xe25   :  { %v3780_v36 = vsub.f32 %v12791_v59, %v3760_v30  ;;  %3948 = vmatpush.bf16.msrb.mxu0 %v3939_v53 }
 0xe27   :  { %v3789_v40 = vmul.f32 1.442695, %v3780_v36  ;;  %v3563_v56 = vpop.f32.mrf.mxu2 }
 0xe28   :  { %v3564_v31 = vadd.f32 %v11150_v29, %v3563_v56 }
 0xe29   :  { %11340 = vpow2.f32 %v3789_v40  ;;  %3765 = vmax.xlane.f32.xlu1 %v3764_v16 }
 0xe2a   :  { %v3856_v20 = vpack.c.bf16 %v3564_v31, %v3564_v31 }
 0xe2c   :  { %v3958_v8 = vsel %vm94_vm0, %v3856_v20, 0 }
 0xe2d   :  { %3967 = vmatpush.bf16.msra.mxu1 %v3958_v8 }
 0xe2e   :  { %v3769_v50 = vpop.xlane.xlu2 %3768 }
 0xe2f   :  { %v11341_v34 = vpop.eup %11340  ;;  %v3783_v27 = vsub.f32 %v12796_v60, %v3769_v50  ;;  %v3566_v0 = vpop.f32.mrf.mxu2 }
 0xe30   :  { %v3567_v45 = vadd.f32 %v11150_v29, %v3566_v0  ;;  %v3806_v59 = vsel %vm764_vm6, %v11341_v34, 0.0 }
 0xe31   :  { %v3795_v3 = vmul.f32 1.442695, %v3783_v27  ;;  %3807 = vadd.xlane.f32.xlu0 %v3806_v59 }
 0xe32   :  { %v3857_v53 = vpack.c.bf16 %v3567_v45, %v3567_v45  ;;  %v3746_v45 = vmul.f32 0.4082483, %v12810_v24 }
 0xe33   :  { %11342 = vpow2.f32 %v3795_v3  ;;  %v3741_v3 = vmul.f32 0.4082483, %v12802_v35  ;;  %v11002_v35 = vld [vmem:[%s15156_s9 + $0x1c0] sm:$0xff] }
 0xe34   :  { %v3977_v30 = vsel %vm94_vm0, %v3857_v53, 0 }
 0xe35   :  { %3986 = vmatpush.bf16.msrb.mxu2 %v3977_v30  ;;  %v3749_v30 = vadd.f32 %v3741_v3, %v11921_v5 }
 0xe36   :  { %v3772_v36 = vpop.xlane.xlu1 %3771 }
 0xe37   :  { %v3784_v40 = vsub.f32 %v12806_v13, %v3772_v36  ;;  %v3568_v56 = vpop.f32.mrf.mxu2  ;;  %v3754_v13 = vadd.f32 %v3746_v45, %v11926_v11  ;;  %v3761_v36 = vsel %vm764_vm6, %v3749_v30, -inf }
 0xe38   :  { %v3569_v31 = vadd.f32 %v11150_v29, %v3568_v56 }
 0xe39   :  { %v11343_v16 = vpop.eup %11342  ;;  %v3797_v20 = vmul.f32 1.442695, %v3784_v40  ;;  %v3776_v53 = vsel %vm764_vm6, %v3754_v13, -inf }
 0xe3a   :  { %v3858_v8 = vpack.c.bf16 %v3569_v31, %v3569_v31  ;;  %v3815_v60 = vsel %vm764_vm6, %v11343_v16, 0.0 }
 0xe3b   :  { %11344 = vpow2.f32 %v3797_v20  ;;  %3816 = vadd.xlane.f32.xlu0 %v3815_v60 }
 0xe3c   :  { %v3996_v50 = vsel %vm94_vm0, %v3858_v8, 0 }
 0xe3d   :  { %4005 = vmatpush.bf16.msra.mxu3 %v3996_v50  ;;  %v11001_v50 = vld [vmem:[%s15156_s9 + $0x1b8] sm:$0xff] }
 0xe3f   :  { %v3716_v27 = vpop.f32.mrf.mxu2 }
 0xe41   :  { %v11345_v0 = vpop.eup %11344 }
 0xe42   :  { %v3818_v59 = vsel %vm764_vm6, %v11345_v0, 0.0 }
 0xe43   :  { %3819 = vadd.xlane.f32.xlu2 %v3818_v59  ;;  %v3745_v59 = vmul.f32 0.4082483, %v3716_v27  ;;  %v11004_v27 = vld [vmem:[%s15156_s9 + $0x1d0] sm:$0xff] }
 0xe47   :  { %v3718_v29 = vpop.f32.mrf.mxu2 }
 0xe4b   :  { %3777 = vmax.xlane.f32.xlu2 %v3776_v53 }
 0xe53   :  { %3762 = vmax.xlane.f32.xlu2 %v3761_v36  ;;  %v3753_v36 = vadd.f32 %v3745_v59, %v11945_v37 }
 0xe94   :  { %v3805_v40 = vpop.xlane.xlu1 %3804 }
 0xe95   :  { %11346 = vrcp.f32 %v3805_v40  ;;  %v11005_v40 = vld [vmem:[%s15156_s9 + $0x1d8] sm:$0xff] }
 0xe9b   :  { %v11347_v56 = vpop.eup %11346 }
 0xe9c   :  { %v3835_v24 = vmul.f32 %v11347_v56, %v11339_v52  ;;  %v3766_v31 = vpop.xlane.xlu1 %3765 }
 0xe9d   :  { %v3782_v20 = vsub.f32 %v3750_v26, %v3766_v31  ;;  %v11000_v26 = vld [vmem:[%s15156_s9 + $0x1b0] sm:$0xff]  ;;  %v3773_v31 = vsel %vm764_vm6, %v3753_v36, -inf }
 0xe9e   :  { %v3843_v8 = vpack.c.bf16 %v3835_v24, %v3835_v24 }
 0xe9f   :  { %v3793_v60 = vmul.f32 1.442695, %v3782_v20  ;;  %v11003_v20 = vld [vmem:[%s15156_s9 + $0x1c8] sm:$0xff] }
 0xea0   :  { %10258 = vmatmul.msk.bf16.vlgmr.msra.gmra.mxu0 %vm764_vm6, %v3843_v8 }
 0xea1   :  { %11348 = vpow2.f32 %v3793_v60  ;;  %4045 = vmatpush.bf16.msra.mxu0 %v11002_v35 }
 0xea4   :  { %v3808_v45 = vpop.xlane.xlu0 %3807 }
 0xea5   :  { %11350 = vrcp.f32 %v3808_v45  ;;  %4046 = vmatpush.bf16.msra.mxu0 %v11001_v50 }
 0xea7   :  { %v11349_v52 = vpop.eup %11348 }
 0xea8   :  { %v3812_v29 = vsel %vm764_vm6, %v11349_v52, 0.0 }
 0xea9   :  { %3813 = vadd.xlane.f32.xlu0 %v3812_v29  ;;  %4047 = vmatpush.bf16.msra.mxu0 %v11000_v26 }
 0xeab   :  { %v11351_v3 = vpop.eup %11350 }
 0xeac   :  { %v3836_v53 = vmul.f32 %v11351_v3, %v11341_v34 }
 0xeae   :  { %v3844_v56 = vpack.c.bf16 %v3836_v53, %v3836_v53  ;;  %v3817_v24 = vpop.xlane.xlu0 %3816 }
 0xeaf   :  { %11352 = vrcp.f32 %v3817_v24 }
 0xeb0   :  { %10259 = vmatmul.msk.bf16.vlgmr.msrb.gmra.mxu1 %vm764_vm6, %v3844_v56 }
 0xeb1   :  { %3774 = vmax.xlane.f32.xlu0 %v3773_v31  ;;  %4095 = vmatpush.bf16.msrb.mxu1 %v11005_v40 }
 0xeb5   :  { %v11353_v34 = vpop.eup %11352  ;;  %4096 = vmatpush.bf16.msrb.mxu1 %v11004_v27 }
 0xeb6   :  { %v3839_v8 = vmul.f32 %v11353_v34, %v11343_v16  ;;  %v3820_v60 = vpop.xlane.xlu2 %3819 }
 0xeb7   :  { %11354 = vrcp.f32 %v3820_v60 }
 0xeb8   :  { %v3847_v35 = vpack.c.bf16 %v3839_v8, %v3839_v8 }
 0xeb9   :  { %4097 = vmatpush.bf16.msrb.mxu1 %v11003_v20 }
 0xeba   :  { %10262 = vmatmul.msk.bf16.vlgmr.msrb.gmra.mxu0 %vm764_vm6, %v3847_v35 }
 0xebd   :  { %v11355_v50 = vpop.eup %11354 }
 0xebe   :  { %v3840_v45 = vmul.f32 %v11355_v50, %v11345_v0  ;;  %v3778_v26 = vpop.xlane.xlu2 %3777 }
 0xebf   :  { %v3786_v59 = vsub.f32 %v3754_v13, %v3778_v26 }
 0xec0   :  { %v3848_v29 = vpack.c.bf16 %v3840_v45, %v3840_v45 }
 0xec1   :  { %v3801_v3 = vmul.f32 1.442695, %v3786_v59 }
 0xec2   :  { %10263 = vmatmul.msk.bf16.vlgmr.msra.gmra.mxu1 %vm764_vm6, %v3848_v29 }
 0xec3   :  { %11356 = vpow2.f32 %v3801_v3 }
 0xec6   :  { %v3763_v53 = vpop.xlane.xlu2 %3762 }
 0xec7   :  { %v3781_v40 = vsub.f32 %v3749_v30, %v3763_v53 }
 0xec9   :  { %v11357_v56 = vpop.eup %11356  ;;  %v3791_v24 = vmul.f32 1.442695, %v3781_v40 }
 0xeca   :  { %10278 = vmatmul.msk.bf16.vlgmr.msra.gmra.mxu0 %vm421_vm4, %v11785_v7  ;;  %v3824_v16 = vsel %vm764_vm6, %v11357_v56, 0.0 }
 0xecb   :  { %11358 = vpow2.f32 %v3791_v24  ;;  %3825 = vadd.xlane.f32.xlu1 %v3824_v16 }
 0xed1   :  { %v11359_v31 = vpop.eup %11358 }
 0xed2   :  { %10294 = vmatmul.msk.bf16.vlgmr.msrb.gmra.mxu1 %vm421_vm4, %v11785_v7  ;;  %v3809_v0 = vsel %vm764_vm6, %v11359_v31, 0.0 }
 0xed3   :  { %3810 = vadd.xlane.f32.xlu1 %v3809_v0 }
 0xeda   :  { %10279 = vmatmul.msk.bf16.gmra.mxu0 %vm421_vm4, %v11793_v14 }
 0xee2   :  { %10295 = vmatmul.msk.bf16.gmra.mxu1 %vm421_vm4, %v11793_v14 }
 0xeea   :  { %10280 = vmatmul.msk.bf16.gmra.mxu0 %vm421_vm4, %v11801_v21 }
 0xef2   :  { %10296 = vmatmul.msk.bf16.gmra.mxu1 %vm421_vm4, %v11801_v21 }
 0xefa   :  { %10281 = vmatmul.msk.bf16.gmra.mxu0 %vm421_vm4, %v11809_v28 }
 0xf02   :  { %10297 = vmatmul.msk.bf16.gmra.mxu1 %vm421_vm4, %v11809_v28 }
 0xf1c   :  { %v3814_v13 = vpop.xlane.xlu0 %3813 }
 0xf1d   :  { %11360 = vrcp.f32 %v3814_v13  ;;  %v12883_v30 = vpop.f32.mrf.mxu0 }
 0xf23   :  { %v11361_v27 = vpop.eup %11360 }
 0xf24   :  { %v3838_v34 = vmul.f32 %v11361_v27, %v11349_v52  ;;  %v3775_v20 = vpop.xlane.xlu0 %3774 }
 0xf25   :  { %v3785_v8 = vsub.f32 %v3753_v36, %v3775_v20  ;;  %v3876_v60 = vpop.f32.mrf.mxu0 }
 0xf26   :  { %v3846_v35 = vpack.c.bf16 %v3838_v34, %v3838_v34  ;;  %v12900_v34 = vld [vmem:[%s15155_s10 + $0x13] ss:$0 sm:$0xff] }
 0xf27   :  { %v3799_v50 = vmul.f32 1.442695, %v3785_v8 }
 0xf28   :  { %10261 = vmatmul.msk.bf16.vlgmr.msrb.gmra.mxu3 %vm764_vm6, %v3846_v35 }
 0xf29   :  { %11362 = vpow2.f32 %v3799_v50 }
 0xf2d   :  { %v12886_v45 = vpop.f32.mrf.mxu1 }
 0xf2f   :  { %v12888_v26 = vpop.eup %11362 }
 0xf30   :  { %v3821_v59 = vsel %vm764_vm6, %v12888_v26, 0.0 }
 0xf31   :  { %3822 = vadd.xlane.f32.xlu2 %v3821_v59 }
 0xf35   :  { %v3895_v29 = vpop.f32.mrf.mxu1 }
 0xf37   :  { %v12892_v3 = vpop.f32.mrf.mxu0 }
 0xf3e   :  { %v3826_v52 = vpop.xlane.xlu1 %3825 }
 0xf3f   :  { %11364 = vrcp.f32 %v3826_v52  ;;  %v3952_v36 = vpop.f32.mrf.mxu0  ;;  %v12894_v53 = vpop.f32.mrf.mxu1 }
 0xf40   :  { %15195 = vst [vmem:[#allocation18_spill] sm:$0xff] %v12894_v53 }
 0xf45   :  { %v11365_v40 = vpop.eup %11364 }
 0xf46   :  { %v3842_v24 = vmul.f32 %v11365_v40, %v11357_v56  ;;  %v3811_v16 = vpop.xlane.xlu1 %3810  ;;  %v12906_v56 = vld [vmem:[%s15155_s10 + $0x12] ss:$0 sm:$0xff] }
 0xf47   :  { %11366 = vrcp.f32 %v3811_v16  ;;  %v3971_v0 = vpop.f32.mrf.mxu1  ;;  %v4049_v13 = vpop.f32.mrf.mxu0 }
 0xf48   :  { %v3850_v27 = vpack.c.bf16 %v3842_v24, %v3842_v24  ;;  %v4050_v36 = vadd.f32 %v12906_v56, %v4049_v13 }
 0xf4a   :  { %10265 = vmatmul.msk.bf16.vlgmr.msra.gmra.mxu3 %vm764_vm6, %v3850_v27  ;;  %v4169_v16 = vpack.c.bf16 %v4050_v36, %v4050_v36 }
 0xf4d   :  { %v11367_v20 = vpop.eup %11366 }
 0xf4e   :  { %v3837_v8 = vmul.f32 %v11367_v20, %v11359_v31 }
 0xf4f   :  { %v4051_v60 = vpop.f32.mrf.mxu0  ;;  %v4099_v35 = vpop.f32.mrf.mxu1 }
 0xf50   :  { %v3845_v50 = vpack.c.bf16 %v3837_v8, %v3837_v8  ;;  %v4100_v59 = vadd.f32 %v12900_v34, %v4099_v35  ;;  %v4052_v13 = vadd.f32 %v12906_v56, %v4051_v60 }
 0xf52   :  { %v4177_v29 = vpack.c.bf16 %v4100_v59, %v4100_v59  ;;  %10260 = vmatmul.msk.bf16.vlgmr.msra.gmra.mxu2 %vm764_vm6, %v3845_v50 }
 0xf54   :  { %v4189_v52 = vsel %vm579_vm5, %v4177_v29, 0 }
 0xf55   :  { %4198 = vmatpush.bf16.xpose.msrb.mxu3 %v4189_v52 }
 0xf57   :  { %v4054_v40 = vpop.f32.mrf.mxu0  ;;  %v4101_v31 = vpop.f32.mrf.mxu1 }
 0xf58   :  { %v4102_v24 = vadd.f32 %v12900_v34, %v4101_v31  ;;  %v4170_v31 = vpack.c.bf16 %v4052_v13, %v4052_v13  ;;  %v4055_v60 = vadd.f32 %v12906_v56, %v4054_v40 }
 0xf5a   :  { %v4178_v0 = vpack.c.bf16 %v4102_v24, %v4102_v24 }
 0xf5c   :  { %10314 = vmatmul.msk.bf16.vlgmr.msrb.gmra.mxu3 %vm579_vm5, %v4169_v16  ;;  %v4208_v27 = vsel %vm579_vm5, %v4178_v0, 0 }
 0xf5d   :  { %4217 = vmatpush.bf16.xpose.msra.mxu3 %v4208_v27 }
 0xf5f   :  { %v4056_v20 = vpop.f32.mrf.mxu0  ;;  %v4104_v8 = vpop.f32.mrf.mxu1 }
 0xf60   :  { %v4105_v35 = vadd.f32 %v12900_v34, %v4104_v8 }
 0xf62   :  { %v4179_v50 = vpack.c.bf16 %v4105_v35, %v4105_v35 }
 0xf64   :  { %v4227_v59 = vsel %vm579_vm5, %v4179_v50, 0 }
 0xf65   :  { %4236 = vmatpush.bf16.xpose.msrb.mxu3 %v4227_v59 }
 0xf67   :  { %v4059_v29 = vpop.f32.mrf.mxu0  ;;  %v4106_v52 = vpop.f32.mrf.mxu1 }
 0xf68   :  { %v4107_v36 = vadd.f32 %v12900_v34, %v4106_v52  ;;  %v4060_v59 = vadd.f32 %v12906_v56, %v4059_v29 }
 0xf6a   :  { %v4180_v24 = vpack.c.bf16 %v4107_v36, %v4107_v36 }
 0xf6c   :  { %10315 = vmatmul.msk.bf16.vlgmr.msra.gmra.mxu3 %vm579_vm5, %v4170_v31  ;;  %v4246_v16 = vsel %vm579_vm5, %v4180_v24, 0  ;;  %v4171_v24 = vpack.c.bf16 %v4055_v60, %v4055_v60  ;;  %v11008_v60 = vld [vmem:[%s15156_s9 + $0x1f0] sm:$0xff] }
 0xf6d   :  { %4255 = vmatpush.bf16.xpose.msra.mxu3 %v4246_v16  ;;  %v4173_v16 = vpack.c.bf16 %v4060_v59, %v4060_v59  ;;  %4145 = vmatpush.bf16.msra.mxu2 %v11008_v60 }
 0xf6f   :  { %v4061_v0 = vpop.f32.mrf.mxu0  ;;  %v4109_v27 = vpop.f32.mrf.mxu1 }
 0xf70   :  { %v4110_v8 = vadd.f32 %v12900_v34, %v4109_v27  ;;  %v4062_v40 = vadd.f32 %v12906_v56, %v4061_v0 }
 0xf72   :  { %v4181_v35 = vpack.c.bf16 %v4110_v8, %v4110_v8  ;;  %v4174_v8 = vpack.c.bf16 %v4062_v40, %v4062_v40 }
 0xf74   :  { %v4265_v50 = vsel %vm579_vm5, %v4181_v35, 0  ;;  %v4057_v35 = vadd.f32 %v12906_v56, %v4056_v20  ;;  %v11006_v20 = vld [vmem:[%s15156_s9 + $0x1e0] sm:$0xff] }
 0xf75   :  { %4274 = vmatpush.bf16.xpose.msrb.mxu0 %v4265_v50 }
 0xf77   :  { %v4064_v52 = vpop.f32.mrf.mxu0  ;;  %v4111_v13 = vpop.f32.mrf.mxu1 }
 0xf78   :  { %v12925_v36 = vadd.f32 %v12906_v56, %v4064_v52  ;;  %v4112_v31 = vadd.f32 %v12900_v34, %v4111_v13  ;;  %v4172_v52 = vpack.c.bf16 %v4057_v35, %v4057_v35 }
 0xf7a   :  { %v4182_v23 = vpack.c.bf16 %v4112_v31, %v4112_v31 }
 0xf7c   :  { %10316 = vmatmul.msk.bf16.vlgmr.msrb.gmra.mxu3 %vm579_vm5, %v4171_v24  ;;  %10318 = vmatmul.msk.bf16.vlgmr.msrb.gmra.mxu0 %vm579_vm5, %v4173_v16  ;;  %v4284_v27 = vsel %vm579_vm5, %v4182_v23, 0  ;;  %v11007_v23 = vld [vmem:[%s15156_s9 + $0x1e8] sm:$0xff] }
 0xf7d   :  { %4293 = vmatpush.bf16.xpose.msra.mxu1 %v4284_v27  ;;  %4146 = vmatpush.bf16.msra.mxu2 %v11007_v23 }
 0xf7f   :  { %v4114_v29 = vpop.f32.mrf.mxu1  ;;  %v4066_v31 = vpop.f32.mrf.mxu0 }
 0xf80   :  { %v4067_v24 = vadd.f32 %v12906_v56, %v4066_v31  ;;  %v4115_v40 = vadd.f32 %v12900_v34, %v4114_v29 }
 0xf81   :  { %4147 = vmatpush.bf16.msra.mxu2 %v11006_v20 }
 0xf82   :  { %v4176_v16 = vpack.c.bf16 %v4067_v24, %v4067_v24 }
 0xf84   :  { %10319 = vmatmul.msk.bf16.vlgmr.msra.gmra.mxu1 %vm579_vm5, %v4174_v8 }
 0xf87   :  { %v4116_v50 = vpop.f32.mrf.mxu1 }
 0xf88   :  { %v4117_v59 = vadd.f32 %v12900_v34, %v4116_v50  ;;  %v4183_v50 = vpack.c.bf16 %v4115_v40, %v4115_v40 }
 0xf8a   :  { %v4184_v13 = vpack.c.bf16 %v4117_v59, %v4117_v59 }
 0xf8c   :  { %10317 = vmatmul.msk.bf16.vlgmr.msra.gmra.mxu3 %vm579_vm5, %v4172_v52  ;;  %v4322_v0 = vsel %vm579_vm5, %v4184_v13, 0  ;;  %v4303_v52 = vsel %vm579_vm5, %v4183_v50, 0 }
 0xf8d   :  { %4331 = vmatpush.bf16.xpose.msrb.mxu3 %v4322_v0 }
 0xf9c   :  { %10321 = vmatmul.msk.bf16.vlgmr.msrb.gmra.mxu3 %vm579_vm5, %v4176_v16 }
 0xfa4   :  { %v3823_v27 = vpop.xlane.xlu2 %3822 }
 0xfa5   :  { %11368 = vrcp.f32 %v3823_v27 }
 0xfab   :  { %v11369_v8 = vpop.eup %11368  ;;  %v12949_v35 = vpop.f32.mrf.mxu3 }
 0xfac   :  { %v3841_v60 = vmul.f32 %v11369_v8, %v12888_v26 }
 0xfae   :  { %v3849_v59 = vpack.c.bf16 %v3841_v60, %v3841_v60 }
 0xfb0   :  { %10264 = vmatmul.msk.bf16.vlgmr.msrb.gmra.mxu2 %vm764_vm6, %v3849_v59 }
 0xfb1   :  { %4312 = vmatpush.bf16.xpose.msrb.mxu2 %v4303_v52 }
 0xfb3   :  { %v3933_v56 = vpop.f32.mrf.mxu3 }
 0xfb4   :  { %v4175_v56 = vpack.c.bf16 %v12925_v36, %v12925_v36 }
 0xfc0   :  { %10310 = vmatmul.msk.bf16.vlgmr.msra.gmra.mxu2 %vm421_vm4, %v11785_v7 }
 0xfcd   :  { %v12956_v13 = vpop.f32.mrf.mxu3 }
 0xfce   :  { %15196 = vst [vmem:[#allocation19_spill] sm:$0xff] %v12956_v13 }
 0xfd0   :  { %10311 = vmatmul.msk.bf16.gmra.mxu2 %vm421_vm4, %v11793_v14 }
 0xfd5   :  { %v12960_v34 = vpop.f32.mrf.mxu2  ;;  %v4009_v29 = vpop.f32.mrf.mxu3 }
 0xfdd   :  { %v3914_v23 = vpop.f32.mrf.mxu2 }
 0xfdf   :  { %v4200_v26 = vpop.f32.mrf.mxu3 }
 0xfe0   :  { %v4337_v0 = vmul.f32 0.4082483, %v4200_v26  ;;  %10312 = vmatmul.msk.bf16.gmra.mxu2 %vm421_vm4, %v11801_v21 }
 0xfe2   :  { %v4345_v20 = vadd.f32 %v4337_v0, %v11906_v32 }
 0xfe4   :  { %v4353_v31 = vsel %vm764_vm6, %v4345_v20, -inf }
 0xfe5   :  { %4354 = vmax.xlane.f32.xlu1 %v4353_v31 }
 0xfe7   :  { %v4202_v24 = vpop.f32.mrf.mxu3 }
 0xfef   :  { %v4219_v16 = vpop.f32.mrf.mxu3 }
 0xff0   :  { %v4338_v27 = vmul.f32 0.4082483, %v4219_v16  ;;  %10313 = vmatmul.msk.bf16.gmra.mxu2 %vm421_vm4, %v11809_v28 }
 0xff2   :  { %v12969_v40 = vadd.f32 %v4338_v27, %v11889_v1 }
 0xff4   :  { %v4356_v8 = vsel %vm764_vm6, %v12969_v40, -inf }
 0xff5   :  { %4357 = vmax.xlane.f32.xlu0 %v4356_v8 }
 0xff7   :  { %v4221_v50 = vpop.f32.mrf.mxu3 }
 0xff9   :  { %v4276_v60 = vpop.f32.mrf.mxu0 }
 0xffa   :  { %v4341_v59 = vmul.f32 0.4082483, %v4276_v60 }
 0xffc   :  { %v12974_v52 = vadd.f32 %v4341_v59, %v11894_v15 }
 0xffe   :  { %v4365_v29 = vsel %vm764_vm6, %v12974_v52, -inf }
 0xfff   :  { %4366 = vmax.xlane.f32.xlu0 %v4365_v29  ;;  %v12980_v23 = vpop.f32.mrf.mxu3 }
0x1000   :  { %10320 = vmatmul.msk.bf16.vlgmr.msrb.gmra.mxu2 %vm579_vm5, %v4175_v56 }
0x1001   :  { %v4278_v26 = vpop.f32.mrf.mxu0  ;;  %v4295_v0 = vpop.f32.mrf.mxu1 }
0x1002   :  { %v4342_v31 = vmul.f32 0.4082483, %v4295_v0  ;;  %v11153_v26 = vld [vmem:[%s15155_s10 + $0x14] ss:$0 sm:$0xff] }
0x1004   :  { %v12984_v24 = vadd.f32 %v4342_v31, %v11899_v22 }
0x1006   :  { %v4368_v16 = vsel %vm764_vm6, %v12984_v24, -inf }
0x1007   :  { %4369 = vmax.xlane.f32.xlu2 %v4368_v16  ;;  %v4240_v27 = vpop.f32.mrf.mxu3 }
0x1009   :  { %v4297_v36 = vpop.f32.mrf.mxu1 }
0x100f   :  { %v4257_v8 = vpop.f32.mrf.mxu3 }
0x1017   :  { %v4259_v50 = vpop.f32.mrf.mxu3 }
0x101f   :  { %v12988_v60 = vpop.f32.mrf.mxu3 }
0x1027   :  { %v4335_v59 = vpop.f32.mrf.mxu3 }
0x1033   :  { %v12990_v29 = vpop.f32.mrf.mxu2 }
0x1034   :  { %15197 = vst [vmem:[#allocation20_spill] sm:$0xff] %v12990_v29 }
0x103b   :  { %v3990_v56 = vpop.f32.mrf.mxu2 }
0x1043   :  { %v4149_v0 = vpop.f32.mrf.mxu2 }
0x1044   :  { %v4150_v31 = vadd.f32 %v11153_v26, %v4149_v0 }
0x1046   :  { %v4449_v13 = vpack.c.bf16 %v4150_v31, %v4150_v31 }
0x1048   :  { %v4461_v25 = vsel %vm94_vm0, %v4449_v13, 0 }
0x1049   :  { %4470 = vmatpush.bf16.msra.mxu0 %v4461_v25 }
0x104b   :  { %v4151_v16 = vpop.f32.mrf.mxu2 }
0x104c   :  { %v4152_v27 = vadd.f32 %v11153_v26, %v4151_v16 }
0x104e   :  { %v4450_v36 = vpack.c.bf16 %v4152_v27, %v4152_v27 }
0x1050   :  { %v4480_v50 = vsel %vm94_vm0, %v4450_v36, 0  ;;  %v4340_v36 = vmul.f32 0.4082483, %v4257_v8 }
0x1051   :  { %4489 = vmatpush.bf16.msrb.mxu1 %v4480_v50 }
0x1053   :  { %v4154_v59 = vpop.f32.mrf.mxu2 }
0x1054   :  { %v4155_v41 = vadd.f32 %v11153_v26, %v4154_v59 }
0x1056   :  { %v4451_v29 = vpack.c.bf16 %v4155_v41, %v4155_v41 }
0x1058   :  { %v4499_v56 = vsel %vm94_vm0, %v4451_v29, 0  ;;  %v4355_v55 = vpop.xlane.xlu1 %4354 }
0x1059   :  { %v4377_v57 = vsub.f32 %v4345_v20, %v4355_v55  ;;  %4508 = vmatpush.bf16.msra.mxu2 %v4499_v56  ;;  %v4348_v20 = vadd.f32 %v4340_v36, %v11912_v48 }
0x105b   :  { %v4385_v53 = vmul.f32 1.442695, %v4377_v57  ;;  %v4156_v0 = vpop.f32.mrf.mxu2 }
0x105c   :  { %v4157_v31 = vadd.f32 %v11153_v26, %v4156_v0 }
0x105d   :  { %11370 = vpow2.f32 %v4385_v53 }
0x105e   :  { %v4452_v13 = vpack.c.bf16 %v4157_v31, %v4157_v31  ;;  %v4362_v31 = vsel %vm764_vm6, %v4348_v20, -inf }
0x1060   :  { %v4518_v25 = vsel %vm94_vm0, %v4452_v13, 0 }
0x1061   :  { %4527 = vmatpush.bf16.msra.mxu3 %v4518_v25 }
0x1063   :  { %v12999_v16 = vpop.eup %11370  ;;  %v4159_v27 = vpop.f32.mrf.mxu2 }
0x1064   :  { %v4160_v50 = vadd.f32 %v11153_v26, %v4159_v27  ;;  %v4401_v41 = vsel %vm764_vm6, %v12999_v16, 0.0 }
0x1065   :  { %4402 = vadd.xlane.f32.xlu2 %v4401_v41 }
0x1066   :  { %v4453_v29 = vpack.c.bf16 %v4160_v50, %v4160_v50 }
0x1068   :  { %v4537_v55 = vsel %vm94_vm0, %v4453_v29, 0  ;;  %v4358_v57 = vpop.xlane.xlu0 %4357 }
0x1069   :  { %v4378_v53 = vsub.f32 %v12969_v40, %v4358_v57  ;;  %4546 = vmatpush.bf16.msrb.mxu0 %v4537_v55 }
0x106b   :  { %v4387_v59 = vmul.f32 1.442695, %v4378_v53  ;;  %v4161_v56 = vpop.f32.mrf.mxu2 }
0x106c   :  { %v4162_v0 = vadd.f32 %v11153_v26, %v4161_v56 }
0x106d   :  { %11372 = vpow2.f32 %v4387_v59  ;;  %4363 = vmax.xlane.f32.xlu2 %v4362_v31 }
0x106e   :  { %v4454_v8 = vpack.c.bf16 %v4162_v0, %v4162_v0 }
0x1070   :  { %v4556_v13 = vsel %vm94_vm0, %v4454_v8, 0 }
0x1071   :  { %4565 = vmatpush.bf16.msra.mxu1 %v4556_v13 }
0x1072   :  { %v4367_v25 = vpop.xlane.xlu0 %4366 }
0x1073   :  { %v11373_v27 = vpop.eup %11372  ;;  %v4381_v50 = vsub.f32 %v12974_v52, %v4367_v25  ;;  %v4164_v41 = vpop.f32.mrf.mxu2  ;;  %v4344_v52 = vmul.f32 0.4082483, %v12988_v60 }
0x1074   :  { %v4165_v36 = vadd.f32 %v11153_v26, %v4164_v41  ;;  %v4404_v40 = vsel %vm764_vm6, %v11373_v27, 0.0 }
0x1075   :  { %v4393_v29 = vmul.f32 1.442695, %v4381_v50  ;;  %4405 = vadd.xlane.f32.xlu1 %v4404_v40  ;;  %v4352_v41 = vadd.f32 %v4344_v52, %v11926_v11 }
0x1076   :  { %v4455_v55 = vpack.c.bf16 %v4165_v36, %v4165_v36 }
0x1077   :  { %11374 = vpow2.f32 %v4393_v29 }
0x1078   :  { %v4575_v57 = vsel %vm94_vm0, %v4455_v55, 0  ;;  %v4374_v55 = vsel %vm764_vm6, %v4352_v41, -inf }
0x1079   :  { %4584 = vmatpush.bf16.msrb.mxu2 %v4575_v57 }
0x107a   :  { %v4370_v53 = vpop.xlane.xlu2 %4369 }
0x107b   :  { %v4382_v59 = vsub.f32 %v12984_v24, %v4370_v53  ;;  %v4166_v56 = vpop.f32.mrf.mxu2  ;;  %v4339_v24 = vmul.f32 0.4082483, %v12980_v23 }
0x107c   :  { %v4167_v0 = vadd.f32 %v11153_v26, %v4166_v56 }
0x107d   :  { %v11375_v31 = vpop.eup %11374  ;;  %v4395_v8 = vmul.f32 1.442695, %v4382_v59  ;;  %v4347_v53 = vadd.f32 %v4339_v24, %v11921_v5 }
0x107e   :  { %v4456_v13 = vpack.c.bf16 %v4167_v0, %v4167_v0  ;;  %v4413_v25 = vsel %vm764_vm6, %v11375_v31, 0.0 }
0x107f   :  { %11376 = vpow2.f32 %v4395_v8  ;;  %4414 = vadd.xlane.f32.xlu1 %v4413_v25  ;;  %v4359_v56 = vsel %vm764_vm6, %v4347_v53, -inf }
0x1080   :  { %v4594_v50 = vsel %vm94_vm0, %v4456_v13, 0 }
0x1081   :  { %4603 = vmatpush.bf16.msrb.mxu3 %v4594_v50 }
0x1083   :  { %v4314_v36 = vpop.f32.mrf.mxu2 }
0x1084   :  { %v4343_v40 = vmul.f32 0.4082483, %v4314_v36  ;;  %v11011_v36 = vld [vmem:[%s15156_s9 + $0x208] sm:$0xff] }
0x1085   :  { %v11377_v29 = vpop.eup %11376 }
0x1086   :  { %v4416_v26 = vsel %vm764_vm6, %v11377_v29, 0.0  ;;  %v4351_v60 = vadd.f32 %v4343_v40, %v11945_v37  ;;  %v11010_v40 = vld [vmem:[%s15156_s9 + $0x200] sm:$0xff] }
0x1087   :  { %4417 = vadd.xlane.f32.xlu0 %v4416_v26  ;;  %4375 = vmax.xlane.f32.xlu1 %v4374_v55 }
0x1088   :  { %v4371_v57 = vsel %vm764_vm6, %v4351_v60, -inf }
0x1089   :  { %4372 = vmax.xlane.f32.xlu2 %v4371_v57 }
0x108b   :  { %v4316_v59 = vpop.f32.mrf.mxu2 }
0x108c   :  { %v11014_v59 = vld [vmem:[%s15156_s9 + $0x220] sm:$0xff] }
0x108f   :  { %4360 = vmax.xlane.f32.xlu0 %v4359_v56 }
0x10d8   :  { %v4403_v0 = vpop.xlane.xlu2 %4402 }
0x10d9   :  { %11378 = vrcp.f32 %v4403_v0 }
0x10df   :  { %v11379_v23 = vpop.eup %11378 }
0x10e0   :  { %v4433_v8 = vmul.f32 %v11379_v23, %v12999_v16  ;;  %v4364_v52 = vpop.xlane.xlu2 %4363  ;;  %v11009_v16 = vld [vmem:[%s15156_s9 + $0x1f8] sm:$0xff] }
0x10e1   :  { %v4380_v13 = vsub.f32 %v4348_v20, %v4364_v52  ;;  %v11013_v23 = vld [vmem:[%s15156_s9 + $0x218] sm:$0xff] }
0x10e2   :  { %v4441_v25 = vpack.c.bf16 %v4433_v8, %v4433_v8 }
0x10e3   :  { %v4391_v50 = vmul.f32 1.442695, %v4380_v13 }
0x10e4   :  { %10322 = vmatmul.msk.bf16.vlgmr.msra.gmra.mxu0 %vm764_vm6, %v4441_v25 }
0x10e5   :  { %11380 = vpow2.f32 %v4391_v50  ;;  %4643 = vmatpush.bf16.msra.mxu0 %v11011_v36 }
0x10e8   :  { %v4406_v24 = vpop.xlane.xlu1 %4405 }
0x10e9   :  { %11382 = vrcp.f32 %v4406_v24  ;;  %4644 = vmatpush.bf16.msra.mxu0 %v11010_v40 }
0x10eb   :  { %v11381_v20 = vpop.eup %11380 }
0x10ec   :  { %v4410_v26 = vsel %vm764_vm6, %v11381_v20, 0.0 }
0x10ed   :  { %4411 = vadd.xlane.f32.xlu0 %v4410_v26  ;;  %4645 = vmatpush.bf16.msra.mxu0 %v11009_v16 }
0x10ef   :  { %v11383_v55 = vpop.eup %11382 }
0x10f0   :  { %v4434_v57 = vmul.f32 %v11383_v55, %v11373_v27  ;;  %v11012_v27 = vld [vmem:[%s15156_s9 + $0x210] sm:$0xff] }
0x10f2   :  { %v4442_v56 = vpack.c.bf16 %v4434_v57, %v4434_v57  ;;  %v4415_v0 = vpop.xlane.xlu1 %4414 }
0x10f3   :  { %11384 = vrcp.f32 %v4415_v0 }
0x10f4   :  { %10323 = vmatmul.msk.bf16.vlgmr.msrb.gmra.mxu1 %vm764_vm6, %v4442_v56 }
0x10f5   :  { %4693 = vmatpush.bf16.msrb.mxu1 %v11014_v59 }
0x10f9   :  { %v11385_v8 = vpop.eup %11384  ;;  %4694 = vmatpush.bf16.msrb.mxu1 %v11013_v23 }
0x10fa   :  { %v4437_v52 = vmul.f32 %v11385_v8, %v11375_v31  ;;  %v4418_v13 = vpop.xlane.xlu0 %4417  ;;  %v4376_v25 = vpop.xlane.xlu1 %4375 }
0x10fb   :  { %11386 = vrcp.f32 %v4418_v13  ;;  %v4384_v50 = vsub.f32 %v4352_v41, %v4376_v25 }
0x10fc   :  { %v4445_v36 = vpack.c.bf16 %v4437_v52, %v4437_v52  ;;  %v4373_v40 = vpop.xlane.xlu2 %4372 }
0x10fd   :  { %v4399_v24 = vmul.f32 1.442695, %v4384_v50  ;;  %v4383_v16 = vsub.f32 %v4351_v60, %v4373_v40  ;;  %4695 = vmatpush.bf16.msrb.mxu1 %v11012_v27 }
0x10fe   :  { %10326 = vmatmul.msk.bf16.vlgmr.msrb.gmra.mxu0 %vm764_vm6, %v4445_v36 }
0x10ff   :  { %11388 = vpow2.f32 %v4399_v24  ;;  %v4397_v26 = vmul.f32 1.442695, %v4383_v16 }
0x1101   :  { %v11387_v55 = vpop.eup %11386  ;;  %11390 = vpow2.f32 %v4397_v26 }
0x1102   :  { %v4438_v57 = vmul.f32 %v11387_v55, %v11377_v29  ;;  %v4361_v59 = vpop.xlane.xlu0 %4360 }
0x1103   :  { %v4379_v56 = vsub.f32 %v4347_v53, %v4361_v59 }
0x1104   :  { %v4446_v0 = vpack.c.bf16 %v4438_v57, %v4438_v57 }
0x1105   :  { %v11389_v31 = vpop.eup %11388  ;;  %v4389_v23 = vmul.f32 1.442695, %v4379_v56 }
0x1106   :  { %10327 = vmatmul.msk.bf16.vlgmr.msra.gmra.mxu1 %vm764_vm6, %v4446_v0  ;;  %v4422_v41 = vsel %vm764_vm6, %v11389_v31, 0.0 }
0x1107   :  { %v11391_v8 = vpop.eup %11390  ;;  %11392 = vpow2.f32 %v4389_v23  ;;  %4423 = vadd.xlane.f32.xlu2 %v4422_v41 }
0x1108   :  { %v4419_v60 = vsel %vm764_vm6, %v11391_v8, 0.0 }
0x1109   :  { %4420 = vadd.xlane.f32.xlu0 %v4419_v60 }
0x110d   :  { %v11393_v27 = vpop.eup %11392 }
0x110e   :  { %10342 = vmatmul.msk.bf16.vlgmr.msra.gmra.mxu0 %vm421_vm4, %v11785_v7  ;;  %v4407_v29 = vsel %vm764_vm6, %v11393_v27, 0.0 }
0x110f   :  { %4408 = vadd.xlane.f32.xlu1 %v4407_v29  ;;  %v11017_v29 = vld [vmem:[%s15156_s9 + $0x238] sm:$0xff] }
0x1116   :  { %10358 = vmatmul.msk.bf16.vlgmr.msrb.gmra.mxu1 %vm421_vm4, %v11785_v7 }
0x111e   :  { %10343 = vmatmul.msk.bf16.gmra.mxu0 %vm421_vm4, %v11793_v14 }
0x1126   :  { %10359 = vmatmul.msk.bf16.gmra.mxu1 %vm421_vm4, %v11793_v14 }
0x112e   :  { %10344 = vmatmul.msk.bf16.gmra.mxu0 %vm421_vm4, %v11801_v21 }
0x1136   :  { %10360 = vmatmul.msk.bf16.gmra.mxu1 %vm421_vm4, %v11801_v21 }
0x113e   :  { %10345 = vmatmul.msk.bf16.gmra.mxu0 %vm421_vm4, %v11809_v28 }
0x1146   :  { %10361 = vmatmul.msk.bf16.gmra.mxu1 %vm421_vm4, %v11809_v28 }
0x1160   :  { %v4412_v53 = vpop.xlane.xlu0 %4411 }
0x1161   :  { %11394 = vrcp.f32 %v4412_v53  ;;  %v13066_v52 = vpop.f32.mrf.mxu0 }
0x1167   :  { %v11395_v13 = vpop.eup %11394 }
0x1168   :  { %v4436_v25 = vmul.f32 %v11395_v13, %v11381_v20 }
0x1169   :  { %v4474_v50 = vpop.f32.mrf.mxu0 }
0x116a   :  { %v4444_v36 = vpack.c.bf16 %v4436_v25, %v4436_v25 }
0x116c   :  { %10325 = vmatmul.msk.bf16.vlgmr.msra.gmra.mxu3 %vm764_vm6, %v4444_v36  ;;  %v11015_v36 = vld [vmem:[%s15156_s9 + $0x228] sm:$0xff] }
0x1171   :  { %v13069_v40 = vpop.f32.mrf.mxu1 }
0x1179   :  { %v4493_v24 = vpop.f32.mrf.mxu1 }
0x117a   :  { %v4424_v16 = vpop.xlane.xlu2 %4423 }
0x117b   :  { %11396 = vrcp.f32 %v4424_v16  ;;  %v13071_v26 = vpop.f32.mrf.mxu0 }
0x117c   :  { %v4421_v53 = vpop.xlane.xlu0 %4420 }
0x1181   :  { %v11397_v55 = vpop.eup %11396 }
0x1182   :  { %v4440_v57 = vmul.f32 %v11397_v55, %v11389_v31  ;;  %v4409_v59 = vpop.xlane.xlu1 %4408  ;;  %v11016_v31 = vld [vmem:[%s15156_s9 + $0x230] sm:$0xff] }
0x1183   :  { %11398 = vrcp.f32 %v4409_v59  ;;  %v4550_v56 = vpop.f32.mrf.mxu0  ;;  %v13073_v0 = vpop.f32.mrf.mxu1  ;;  %v13095_v55 = vld [vmem:[%s15155_s10 + $0x15] ss:$0 sm:$0xff] }
0x1184   :  { %v4448_v23 = vpack.c.bf16 %v4440_v57, %v4440_v57  ;;  %11400 = vrcp.f32 %v4421_v53 }
0x1186   :  { %10329 = vmatmul.msk.bf16.vlgmr.msrb.gmra.mxu3 %vm764_vm6, %v4448_v23 }
0x1189   :  { %v11399_v20 = vpop.eup %11398 }
0x118a   :  { %v4435_v41 = vmul.f32 %v11399_v20, %v11393_v27  ;;  %v13086_v27 = vld [vmem:[%s15155_s10 + $0x16] ss:$0 sm:$0xff]  ;;  %v11401_v16 = vpop.eup %11400 }
0x118b   :  { %v4569_v60 = vpop.f32.mrf.mxu1  ;;  %v4647_v25 = vpop.f32.mrf.mxu0  ;;  %v4439_v56 = vmul.f32 %v11401_v16, %v11391_v8 }
0x118c   :  { %v4443_v13 = vpack.c.bf16 %v4435_v41, %v4435_v41  ;;  %v4648_v20 = vadd.f32 %v13095_v55, %v4647_v25 }
0x118d   :  { %v4447_v60 = vpack.c.bf16 %v4439_v56, %v4439_v56 }
0x118e   :  { %10324 = vmatmul.msk.bf16.vlgmr.msra.gmra.mxu2 %vm764_vm6, %v4443_v13  ;;  %v4767_v53 = vpack.c.bf16 %v4648_v20, %v4648_v20 }
0x118f   :  { %4743 = vmatpush.bf16.msra.mxu2 %v11017_v29 }
0x1193   :  { %v4697_v50 = vpop.f32.mrf.mxu1  ;;  %4744 = vmatpush.bf16.msra.mxu2 %v11016_v31  ;;  %v4649_v59 = vpop.f32.mrf.mxu0 }
0x1194   :  { %v4698_v24 = vadd.f32 %v13086_v27, %v4697_v50  ;;  %v4650_v16 = vadd.f32 %v13095_v55, %v4649_v59 }
0x1196   :  { %v4775_v57 = vpack.c.bf16 %v4698_v24, %v4698_v24  ;;  %v4768_v20 = vpack.c.bf16 %v4650_v16, %v4650_v16 }
0x1197   :  { %4745 = vmatpush.bf16.msra.mxu2 %v11015_v36 }
0x1198   :  { %v4787_v23 = vsel %vm579_vm5, %v4775_v57, 0 }
0x1199   :  { %4796 = vmatpush.bf16.xpose.msra.mxu3 %v4787_v23 }
0x119b   :  { %v4699_v41 = vpop.f32.mrf.mxu1  ;;  %v4652_v50 = vpop.f32.mrf.mxu0 }
0x119c   :  { %v4700_v29 = vadd.f32 %v13086_v27, %v4699_v41 }
0x119e   :  { %v4776_v13 = vpack.c.bf16 %v4700_v29, %v4700_v29  ;;  %10328 = vmatmul.msk.bf16.vlgmr.msrb.gmra.mxu2 %vm764_vm6, %v4447_v60 }
0x11a0   :  { %10378 = vmatmul.msk.bf16.vlgmr.msra.gmra.mxu3 %vm579_vm5, %v4767_v53  ;;  %v4806_v31 = vsel %vm579_vm5, %v4776_v13, 0 }
0x11a1   :  { %4815 = vmatpush.bf16.xpose.msrb.mxu3 %v4806_v31 }
0x11a3   :  { %v4702_v8 = vpop.f32.mrf.mxu1  ;;  %v4654_v57 = vpop.f32.mrf.mxu0 }
0x11a4   :  { %v4703_v36 = vadd.f32 %v13086_v27, %v4702_v8  ;;  %v4653_v8 = vadd.f32 %v13095_v55, %v4652_v50 }
0x11a6   :  { %v4777_v24 = vpack.c.bf16 %v4703_v36, %v4703_v36 }
0x11a8   :  { %v4825_v25 = vsel %vm579_vm5, %v4777_v24, 0 }
0x11a9   :  { %4834 = vmatpush.bf16.xpose.msra.mxu3 %v4825_v25  ;;  %v4769_v25 = vpack.c.bf16 %v4653_v8, %v4653_v8 }
0x11ab   :  { %v4704_v56 = vpop.f32.mrf.mxu1  ;;  %v4657_v13 = vpop.f32.mrf.mxu0 }
0x11ac   :  { %v4705_v23 = vadd.f32 %v13086_v27, %v4704_v56  ;;  %v4658_v36 = vadd.f32 %v13095_v55, %v4657_v13 }
0x11ae   :  { %v4778_v41 = vpack.c.bf16 %v4705_v23, %v4705_v23  ;;  %10374 = vmatmul.msk.bf16.vlgmr.msra.gmra.mxu2 %vm421_vm4, %v11785_v7  ;;  %v4771_v16 = vpack.c.bf16 %v4658_v36, %v4658_v36 }
0x11b0   :  { %10379 = vmatmul.msk.bf16.vlgmr.msrb.gmra.mxu3 %vm579_vm5, %v4768_v20  ;;  %v4844_v60 = vsel %vm579_vm5, %v4778_v41, 0 }
0x11b1   :  { %4853 = vmatpush.bf16.xpose.msrb.mxu3 %v4844_v60 }
0x11b3   :  { %v4707_v29 = vpop.f32.mrf.mxu1  ;;  %v4659_v23 = vpop.f32.mrf.mxu0 }
0x11b4   :  { %v4708_v53 = vadd.f32 %v13086_v27, %v4707_v29  ;;  %v4660_v50 = vadd.f32 %v13095_v55, %v4659_v23 }
0x11b6   :  { %v4779_v31 = vpack.c.bf16 %v4708_v53, %v4708_v53  ;;  %v4772_v29 = vpack.c.bf16 %v4660_v50, %v4660_v50 }
0x11b8   :  { %v4863_v59 = vsel %vm579_vm5, %v4779_v31, 0 }
0x11b9   :  { %4872 = vmatpush.bf16.xpose.msrb.mxu0 %v4863_v59 }
0x11bb   :  { %v4709_v24 = vpop.f32.mrf.mxu1  ;;  %v4662_v8 = vpop.f32.mrf.mxu0 }
0x11bc   :  { %v4710_v7 = vadd.f32 %v13086_v27, %v4709_v24 }
0x11be   :  { %v4780_v56 = vpack.c.bf16 %v4710_v7, %v4710_v7  ;;  %10375 = vmatmul.msk.bf16.gmra.mxu2 %vm421_vm4, %v11793_v14  ;;  %v4655_v14 = vadd.f32 %v13095_v55, %v4654_v57 }
0x11c0   :  { %10380 = vmatmul.msk.bf16.vlgmr.msra.gmra.mxu3 %vm579_vm5, %v4769_v25  ;;  %10382 = vmatmul.msk.bf16.vlgmr.msrb.gmra.mxu0 %vm579_vm5, %v4771_v16  ;;  %v4882_v20 = vsel %vm579_vm5, %v4780_v56, 0  ;;  %v4770_v36 = vpack.c.bf16 %v4655_v14, %v4655_v14 }
0x11c1   :  { %4891 = vmatpush.bf16.xpose.msra.mxu1 %v4882_v20 }
0x11c3   :  { %v4712_v41 = vpop.f32.mrf.mxu1  ;;  %v4664_v25 = vpop.f32.mrf.mxu0 }
0x11c4   :  { %v4713_v60 = vadd.f32 %v13086_v27, %v4712_v41  ;;  %v4665_v16 = vadd.f32 %v13095_v55, %v4664_v25 }
0x11c6   :  { %v4781_v53 = vpack.c.bf16 %v4713_v60, %v4713_v60  ;;  %v4774_v56 = vpack.c.bf16 %v4665_v16, %v4665_v16 }
0x11c8   :  { %v4901_v13 = vsel %vm579_vm5, %v4781_v53, 0  ;;  %10383 = vmatmul.msk.bf16.vlgmr.msra.gmra.mxu1 %vm579_vm5, %v4772_v29 }
0x11c9   :  { %4910 = vmatpush.bf16.xpose.msrb.mxu2 %v4901_v13 }
0x11cb   :  { %v4714_v31 = vpop.f32.mrf.mxu1 }
0x11cc   :  { %v4715_v59 = vadd.f32 %v13086_v27, %v4714_v31  ;;  %v4663_v27 = vadd.f32 %v13095_v55, %v4662_v8 }
0x11ce   :  { %v4782_v24 = vpack.c.bf16 %v4715_v59, %v4715_v59  ;;  %10376 = vmatmul.msk.bf16.gmra.mxu2 %vm421_vm4, %v11801_v21  ;;  %v4773_v57 = vpack.c.bf16 %v4663_v27, %v4663_v27  ;;  %v13153_v59 = vld [vmem:[%s15155_s10 + $0x17] ss:$0 sm:$0xff]  ;;  %s11602_s10 = smov 6  }
0x11d0   :  { %10381 = vmatmul.msk.bf16.vlgmr.msrb.gmra.mxu3 %vm579_vm5, %v4770_v36  ;;  %v4920_v7 = vsel %vm579_vm5, %v4782_v24, 0 }
0x11d1   :  { %4929 = vmatpush.bf16.xpose.msra.mxu3 %v4920_v7 }
0x11de   :  { %10377 = vmatmul.msk.bf16.gmra.mxu2 %vm421_vm4, %v11809_v28 }
0x11e0   :  { %10385 = vmatmul.msk.bf16.vlgmr.msra.gmra.mxu3 %vm579_vm5, %v4774_v56 }
0x11ee   :  { %10384 = vmatmul.msk.bf16.vlgmr.msrb.gmra.mxu2 %vm579_vm5, %v4773_v57 }
0x11ef   :  { %v13137_v21 = vpop.f32.mrf.mxu3 }
0x11f7   :  { %v4531_v23 = vpop.f32.mrf.mxu3 }
0x1209   :  { %v13139_v20 = vpop.f32.mrf.mxu3 }
0x1211   :  { %v13141_v50 = vpop.f32.mrf.mxu2  ;;  %v4607_v41 = vpop.f32.mrf.mxu3 }
0x1219   :  { %v4512_v60 = vpop.f32.mrf.mxu2 }
0x1221   :  { %v13143_v29 = vpop.f32.mrf.mxu2 }
0x1223   :  { %v4798_v53 = vpop.f32.mrf.mxu3 }
0x1224   :  { %v4935_v28 = vmul.f32 0.4082483, %v4798_v53 }
0x1226   :  { %v13146_v13 = vadd.f32 %v4935_v28, %v11906_v32 }
0x1228   :  { %v4951_v55 = vsel %vm764_vm6, %v13146_v13, -inf }
0x1229   :  { %v4588_v14 = vpop.f32.mrf.mxu2  ;;  %4952 = vmax.xlane.f32.xlu1 %v4951_v55 }
0x122b   :  { %v4800_v31 = vpop.f32.mrf.mxu3 }
0x1231   :  { %v4747_v8 = vpop.f32.mrf.mxu2 }
0x1232   :  { %v4748_v36 = vadd.f32 %v13153_v59, %v4747_v8 }
0x1233   :  { %v4817_v24 = vpop.f32.mrf.mxu3 }
0x1234   :  { %v5047_v7 = vpack.c.bf16 %v4748_v36, %v4748_v36  ;;  %v4936_v25 = vmul.f32 0.4082483, %v4817_v24 }
0x1236   :  { %v5059_v32 = vsel %vm94_vm0, %v5047_v7, 0  ;;  %v13158_v16 = vadd.f32 %v4936_v25, %v11889_v1 }
0x1237   :  { %5068 = vmatpush.bf16.msra.mxu0 %v5059_v32 }
0x1238   :  { %v4954_v56 = vsel %vm764_vm6, %v13158_v16, -inf }
0x1239   :  { %v4749_v27 = vpop.f32.mrf.mxu2  ;;  %4955 = vmax.xlane.f32.xlu2 %v4954_v56 }
0x123a   :  { %v4750_v57 = vadd.f32 %v13153_v59, %v4749_v27 }
0x123b   :  { %v4819_v23 = vpop.f32.mrf.mxu3 }
0x123c   :  { %v5048_v41 = vpack.c.bf16 %v4750_v57, %v4750_v57 }
0x123d   :  { %v4874_v60 = vpop.f32.mrf.mxu0 }
0x123e   :  { %v4939_v53 = vmul.f32 0.4082483, %v4874_v60  ;;  %v5078_v28 = vsel %vm94_vm0, %v5048_v41, 0 }
0x123f   :  { %5087 = vmatpush.bf16.msrb.mxu1 %v5078_v28 }
0x1240   :  { %v13165_v55 = vadd.f32 %v4939_v53, %v11894_v15 }
0x1241   :  { %v4752_v1 = vpop.f32.mrf.mxu2 }
0x1242   :  { %v4753_v14 = vadd.f32 %v13153_v59, %v4752_v1  ;;  %v4963_v31 = vsel %vm764_vm6, %v13165_v55, -inf }
0x1243   :  { %4964 = vmax.xlane.f32.xlu2 %v4963_v31  ;;  %v4836_v8 = vpop.f32.mrf.mxu3 }
0x1244   :  { %v5049_v36 = vpack.c.bf16 %v4753_v14, %v4753_v14  ;;  %v4937_v24 = vmul.f32 0.4082483, %v4836_v8 }
0x1245   :  { %v4876_v7 = vpop.f32.mrf.mxu0  ;;  %v4893_v25 = vpop.f32.mrf.mxu1 }
0x1246   :  { %v5097_v32 = vsel %vm94_vm0, %v5049_v36, 0  ;;  %v13172_v56 = vadd.f32 %v4937_v24, %v11921_v5  ;;  %v4940_v15 = vmul.f32 0.4082483, %v4893_v25 }
0x1247   :  { %5106 = vmatpush.bf16.msra.mxu2 %v5097_v32 }
0x1248   :  { %v4957_v27 = vsel %vm764_vm6, %v13172_v56, -inf  ;;  %v13178_v53 = vadd.f32 %v4940_v15, %v11899_v22 }
0x1249   :  { %v4754_v57 = vpop.f32.mrf.mxu2  ;;  %4958 = vmax.xlane.f32.xlu0 %v4957_v27 }
0x124a   :  { %v4755_v23 = vadd.f32 %v13153_v59, %v4754_v57  ;;  %v4966_v5 = vsel %vm764_vm6, %v13178_v53, -inf }
0x124b   :  { %v4838_v41 = vpop.f32.mrf.mxu3 }
0x124c   :  { %v5050_v60 = vpack.c.bf16 %v4755_v23, %v4755_v23 }
0x124d   :  { %v4895_v28 = vpop.f32.mrf.mxu1 }
0x124e   :  { %v5116_v1 = vsel %vm94_vm0, %v5050_v60, 0 }
0x124f   :  { %5125 = vmatpush.bf16.msrb.mxu3 %v5116_v1 }
0x1251   :  { %v4757_v14 = vpop.f32.mrf.mxu2  ;;  %4967 = vmax.xlane.f32.xlu0 %v4966_v5 }
0x1252   :  { %v4758_v31 = vadd.f32 %v13153_v59, %v4757_v14 }
0x1253   :  { %v4855_v8 = vpop.f32.mrf.mxu3 }
0x1254   :  { %v5051_v36 = vpack.c.bf16 %v4758_v31, %v4758_v31  ;;  %v4938_v24 = vmul.f32 0.4082483, %v4855_v8 }
0x1256   :  { %v5135_v7 = vsel %vm94_vm0, %v5051_v36, 0  ;;  %v13186_v25 = vadd.f32 %v4938_v24, %v11912_v48 }
0x1257   :  { %5144 = vmatpush.bf16.msrb.mxu0 %v5135_v7 }
0x1258   :  { %v4960_v22 = vsel %vm764_vm6, %v13186_v25, -inf }
0x1259   :  { %v4759_v32 = vpop.f32.mrf.mxu2  ;;  %4961 = vmax.xlane.f32.xlu1 %v4960_v22 }
0x125a   :  { %v4760_v15 = vadd.f32 %v13153_v59, %v4759_v32 }
0x125b   :  { %v4857_v27 = vpop.f32.mrf.mxu3 }
0x125c   :  { %v5052_v57 = vpack.c.bf16 %v4760_v15, %v4760_v15 }
0x125e   :  { %v5154_v23 = vsel %vm94_vm0, %v5052_v57, 0 }
0x125f   :  { %5163 = vmatpush.bf16.msra.mxu1 %v5154_v23 }
0x1261   :  { %v4762_v41 = vpop.f32.mrf.mxu2 }
0x1262   :  { %v4763_v60 = vadd.f32 %v13153_v59, %v4762_v41 }
0x1263   :  { %v4931_v28 = vpop.f32.mrf.mxu3 }
0x1264   :  { %v5053_v1 = vpack.c.bf16 %v4763_v60, %v4763_v60  ;;  %v4942_v48 = vmul.f32 0.4082483, %v4931_v28 }
0x1266   :  { %v5173_v5 = vsel %vm94_vm0, %v5053_v1, 0  ;;  %v4950_v14 = vadd.f32 %v4942_v48, %v11926_v11 }
0x1267   :  { %5182 = vmatpush.bf16.msrb.mxu2 %v5173_v5 }
0x1268   :  { %v4972_v31 = vsel %vm764_vm6, %v4950_v14, -inf }
0x1269   :  { %v4764_v8 = vpop.f32.mrf.mxu2  ;;  %4973 = vmax.xlane.f32.xlu2 %v4972_v31 }
0x126a   :  { %v4765_v36 = vadd.f32 %v13153_v59, %v4764_v8 }
0x126b   :  { %v4933_v24 = vpop.f32.mrf.mxu3 }
0x126c   :  { %v5054_v7 = vpack.c.bf16 %v4765_v36, %v4765_v36 }
0x126e   :  { %v5192_v22 = vsel %vm94_vm0, %v5054_v7, 0 }
0x126f   :  { %5201 = vmatpush.bf16.msra.mxu3 %v5192_v22 }
0x1271   :  { %v4912_v32 = vpop.f32.mrf.mxu2 }
0x1272   :  { %v4941_v15 = vmul.f32 0.4082483, %v4912_v32 }
0x1274   :  { %v4949_v27 = vadd.f32 %v4941_v15, %v11945_v37 }
0x1276   :  { %v4969_v57 = vsel %vm764_vm6, %v4949_v27, -inf }
0x1277   :  { %4970 = vmax.xlane.f32.xlu1 %v4969_v57 }
0x1279   :  { %v4914_v11 = vpop.f32.mrf.mxu2 }
0x129c   :  { %v4953_v23 = vpop.xlane.xlu1 %4952 }
0x129d   :  { %v4975_v41 = vsub.f32 %v13146_v13, %v4953_v23 }
0x129f   :  { %v4983_v60 = vmul.f32 1.442695, %v4975_v41 }
0x12a1   :  { %11402 = vpow2.f32 %v4983_v60 }
0x12a7   :  { %v13201_v28 = vpop.eup %11402 }
0x12a8   :  { %v4999_v59 = vsel %vm764_vm6, %v13201_v28, 0.0 }
0x12a9   :  { %5000 = vadd.xlane.f32.xlu0 %v4999_v59 }
0x12ac   :  { %v4956_v1 = vpop.xlane.xlu2 %4955 }
0x12ad   :  { %v4976_v48 = vsub.f32 %v13158_v16, %v4956_v1 }
0x12af   :  { %v4985_v5 = vmul.f32 1.442695, %v4976_v48 }
0x12b1   :  { %11404 = vpow2.f32 %v4985_v5 }
0x12b6   :  { %v4965_v37 = vpop.xlane.xlu2 %4964 }
0x12b7   :  { %v13206_v31 = vpop.eup %11404  ;;  %v4979_v8 = vsub.f32 %v13165_v55, %v4965_v37 }
0x12b8   :  { %v5002_v13 = vsel %vm764_vm6, %v13206_v31, 0.0 }
0x12b9   :  { %v4991_v36 = vmul.f32 1.442695, %v4979_v8  ;;  %5003 = vadd.xlane.f32.xlu1 %v5002_v13  ;;  %v1619_v8 = vpack.c.bf16 %v12165_v9, %v12165_v9 }
0x12bb   :  { %11406 = vpow2.f32 %v4991_v36  ;;  %v5223_v13 = vunpack.c.l.b16 %v1619_v8  ;;  %v3413_v8 = vpack.c.bf16 %v12705_v47, %v12705_v47 }
0x12bc   :  { %v4959_v24 = vpop.xlane.xlu0 %4958 }
0x12bd   :  { %v4977_v7 = vsub.f32 %v13172_v56, %v4959_v24  ;;  %v5231_v24 = vpack.c.b16 %v5223_v13, %v5223_v13 }
0x12bf   :  { %v4987_v22 = vmul.f32 1.442695, %v4977_v7  ;;  %v2218_v7 = vpack.c.bf16 %v12352_v58, %v12352_v58 }
0x12c1   :  { %v13212_v32 = vpop.eup %11406  ;;  %11408 = vpow2.f32 %v4987_v22 }
0x12c2   :  { %v5011_v16 = vsel %vm764_vm6, %v13212_v32, 0.0 }
0x12c3   :  { %5012 = vadd.xlane.f32.xlu1 %v5011_v16  ;;  %v5264_v16 = vunpack.c.l.b16 %v2218_v7 }
0x12c4   :  { %v4968_v15 = vpop.xlane.xlu0 %4967 }
0x12c5   :  { %v4980_v55 = vsub.f32 %v13178_v53, %v4968_v15 }
0x12c7   :  { %v13217_v57 = vpop.eup %11408  ;;  %v4993_v11 = vmul.f32 1.442695, %v4980_v55  ;;  %v5272_v55 = vpack.c.b16 %v5264_v16, %v5264_v16 }
0x12c8   :  { %v5005_v23 = vsel %vm764_vm6, %v13217_v57, 0.0 }
0x12c9   :  { %11410 = vpow2.f32 %v4993_v11  ;;  %5006 = vadd.xlane.f32.xlu2 %v5005_v23  ;;  %v2816_v11 = vpack.c.bf16 %v12530_v63, %v12530_v63 }
0x12cb   :  { %v5304_v58 = vunpack.c.l.b16 %v2816_v11  ;;  %v3414_v11 = vpack.c.bf16 %v12708_v61, %v12708_v61  ;;  %v4609_v61 = vpack.c.bf16 %v13066_v52, %v13066_v52  ;;  %v2219_v52 = vpack.c.bf16 %v12426_v38, %v12426_v38 }
0x12cc   :  { %v4962_v56 = vpop.xlane.xlu1 %4961  ;;  %v4611_v38 = vpack.c.bf16 %v13141_v50, %v13141_v50 }
0x12cd   :  { %v4978_v41 = vsub.f32 %v13186_v25, %v4962_v56 }
0x12cf   :  { %v13222_v60 = vpop.eup %11410  ;;  %v4989_v59 = vmul.f32 1.442695, %v4978_v41  ;;  %v5312_v41 = vpack.c.b16 %v5304_v58, %v5304_v58 }
0x12d0   :  { %v5014_v1 = vsel %vm764_vm6, %v13222_v60, 0.0 }
0x12d1   :  { %11412 = vpow2.f32 %v4989_v59  ;;  %5015 = vadd.xlane.f32.xlu2 %v5014_v1  ;;  %v4011_v59 = vpack.c.bf16 %v12883_v30, %v12883_v30  ;;  %v1620_v30 = vpack.c.bf16 %v12168_v4, %v12168_v4  ;;  %v2815_v4 = vpack.c.bf16 %v12527_v6, %v12527_v6 }
0x12d3   :  { %v5383_v63 = vunpack.c.l.b16 %v4011_v59  ;;  %v5224_v13 = vunpack.c.l.b16 %v1620_v30  ;;  %v3416_v30 = vpack.c.bf16 %v12771_v42, %v12771_v42  ;;  %v1624_v42 = vpack.c.bf16 %v12176_v43, %v12176_v43 }
0x12d5   :  { %v5232_v47 = vpack.c.b16 %v5224_v13, %v5224_v13  ;;  %v5228_v43 = vunpack.c.l.b16 %v1624_v42 }
0x12d7   :  { %v13226_v53 = vpop.eup %11412 }
0x12d8   :  { %v5008_v48 = vsel %vm764_vm6, %v13226_v53, 0.0 }
0x12d9   :  { %5009 = vadd.xlane.f32.xlu0 %v5008_v48  ;;  %v5391_v48 = vpack.c.b16 %v5383_v63, %v5383_v63 }
0x12dc   :  { %v4974_v5 = vpop.xlane.xlu2 %4973 }
0x12dd   :  { %v4982_v37 = vsub.f32 %v4950_v14, %v4974_v5  ;;  %v4610_v5 = vpack.c.bf16 %v13069_v40, %v13069_v40 }
0x12df   :  { %v4997_v25 = vmul.f32 1.442695, %v4982_v37 }
0x12e1   :  { %11414 = vpow2.f32 %v4997_v25  ;;  %v5343_v25 = vunpack.c.l.b16 %v3413_v8  ;;  %v4014_v8 = vpack.c.bf16 %v12949_v35, %v12949_v35  ;;  %v5265_v35 = vunpack.c.l.b16 %v2219_v52 }
0x12e3   :  { %v5351_v40 = vpack.c.b16 %v5343_v25, %v5343_v25  ;;  %v5386_v13 = vunpack.c.l.b16 %v4014_v8 }
0x12e7   :  { %v13232_v36 = vpop.eup %11414 }
0x12e8   :  { %v5020_v22 = vsel %vm764_vm6, %v13232_v36, 0.0 }
0x12e9   :  { %5239 = vrot.lane.b32.xlu2 %v5231_v24, %s11602_s10  ;;  %5021 = vadd.xlane.f32.xlu1 %v5020_v22  ;;  %v1621_v24 = vpack.c.bf16 %v12240_v46, %v12240_v46  ;;  %v4012_v22 = vpack.c.bf16 %v12886_v45, %v12886_v45  ;;  %v5303_v46 = vunpack.c.l.b16 %v2815_v4  ;;  %v1622_v45 = vpack.c.bf16 %v12231_v33, %v12231_v33 }
0x12ea   :  { %v4971_v14 = vpop.xlane.xlu1 %4970  ;;  %v2817_v33 = vpack.c.bf16 %v12604_v54, %v12604_v54  ;;  %v5273_v4 = vpack.c.b16 %v5265_v35, %v5265_v35 }
0x12eb   :  { %v4981_v15 = vsub.f32 %v4949_v27, %v4971_v14  ;;  %v2217_v27 = vpack.c.bf16 %v12349_v62, %v12349_v62  ;;  %v5424_v62 = vunpack.c.l.b16 %v4610_v5  ;;  %v5225_v14 = vunpack.c.l.b16 %v1621_v24 }
0x12ec   :  { %v5384_v16 = vunpack.c.l.b16 %v4012_v22  ;;  %v5311_v6 = vpack.c.b16 %v5303_v46, %v5303_v46  ;;  %v5346_v24 = vunpack.c.l.b16 %v3416_v30  ;;  %v5394_v22 = vpack.c.b16 %v5386_v13, %v5386_v13 }
0x12ed   :  { %v4995_v9 = vmul.f32 1.442695, %v4981_v15  ;;  %v5263_v1 = vunpack.c.l.b16 %v2217_v27  ;;  %v5432_v7 = vpack.c.b16 %v5424_v62, %v5424_v62  ;;  %v5233_v15 = vpack.c.b16 %v5225_v14, %v5225_v14 }
0x12ee   :  { %v2818_v14 = vpack.c.bf16 %v12593_v39, %v12593_v39  ;;  %v4015_v13 = vpack.c.bf16 %v12892_v3, %v12892_v3 }
0x12ef   :  { %11416 = vpow2.f32 %v4995_v9  ;;  %v5271_v37 = vpack.c.b16 %v5263_v1, %v5263_v1  ;;  %v2220_v9 = vpack.c.bf16 %v12415_v17, %v12415_v17  ;;  %v3415_v17 = vpack.c.bf16 %v12782_v44, %v12782_v44 }
0x12f1   :  { %5281 = vrot.lane.b32.xlu2 %v5272_v55, %s11603_s29  ;;  %v5392_v55 = vpack.c.b16 %v5384_v16, %v5384_v16  ;;  %v5266_v58 = vunpack.c.l.b16 %v2220_v9  ;;  %v5345_v1 = vunpack.c.l.b16 %v3415_v17  ;;  %v5425_v16 = vunpack.c.l.b16 %v4611_v38 }
0x12f2   :  { %v15198_v9 = vmov 65535  }
0x12f3   :  { %v5274_v59 = vpack.c.b16 %v5266_v58, %v5266_v58  ;;  %v5353_v44 = vpack.c.b16 %v5345_v1, %v5345_v1  ;;  %v6193_v39 = vsel %vm6191_vm7, 4294967295, %v15198_v9 }
0x12f5   :  { %v13242_v23 = vpop.eup %11416 }
0x12f6   :  { %v5017_v56 = vsel %vm764_vm6, %v13242_v23, 0.0 }
0x12f7   :  { %5018 = vadd.xlane.f32.xlu0 %v5017_v56  ;;  %v5226_v56 = vunpack.c.l.b16 %v1622_v45  ;;  %v5236_v45 = vpack.c.b16 %v5228_v43, %v5228_v43 }
0x12f9   :  { %5321 = vrot.lane.b32.xlu2 %v5312_v41, %s11604_s30  ;;  %v5344_v41 = vunpack.c.l.b16 %v3414_v11  ;;  %v5234_v27 = vpack.c.b16 %v5226_v56, %v5226_v56  ;;  %v5433_v11 = vpack.c.b16 %v5425_v16, %v5425_v16 }
0x12fb   :  { %v5352_v63 = vpack.c.b16 %v5344_v41, %v5344_v41  ;;  %v4013_v41 = vpack.c.bf16 %v12960_v34, %v12960_v34 }
0x1301   :  { %5399 = vrot.lane.b32.xlu2 %v5391_v48, %s11605_s4  ;;  %v5305_v48 = vunpack.c.l.b16 %v2817_v33 }
0x1302   :  { %5279 = vrot.lane.b32.xlu1 %v5271_v37, %s11603_s29  ;;  %v5423_v37 = vunpack.c.l.b16 %v4609_v61 }
0x1303   :  { %v5313_v54 = vpack.c.b16 %v5305_v48, %v5305_v48  ;;  %v3418_v48 = vpack.c.bf16 %v12716_v2, %v12716_v2 }
0x1304   :  { %v5431_v62 = vpack.c.b16 %v5423_v37, %v5423_v37  ;;  %v2820_v37 = vpack.c.bf16 %v12538_v51, %v12538_v51 }
0x1305   :  { %v5348_v8 = vunpack.c.l.b16 %v3418_v48 }
0x1306   :  { %v5308_v2 = vunpack.c.l.b16 %v2820_v37 }
0x1309   :  { %5441 = vrot.lane.b32.xlu2 %v5432_v7, %s11606_s19 }
0x130a   :  { %5359 = vrot.lane.b32.xlu1 %v5351_v40, %s11607_s0 }
0x130b   :  { %5241 = vrot.lane.b32.xlu0 %v5232_v47, %s11602_s10  ;;  %v5354_v47 = vpack.c.b16 %v5346_v24, %v5346_v24 }
0x1311   :  { %5243 = vrot.lane.b32.xlu2 %v5233_v15, %s11602_s10  ;;  %v5306_v15 = vunpack.c.l.b16 %v2818_v14 }
0x1312   :  { %5401 = vrot.lane.b32.xlu1 %v5392_v55, %s11605_s4  ;;  %v2819_v55 = vpack.c.bf16 %v12536_v49, %v12536_v49 }
0x1313   :  { %5319 = vrot.lane.b32.xlu0 %v5311_v6, %s11604_s30  ;;  %v2221_v6 = vpack.c.bf16 %v12358_v12, %v12358_v12  ;;  %v5314_v56 = vpack.c.b16 %v5306_v15, %v5306_v15 }
0x1315   :  { %v5267_v49 = vunpack.c.l.b16 %v2221_v6 }
0x1319   :  { %5285 = vrot.lane.b32.xlu2 %v5274_v59, %s11603_s29  ;;  %v13319_v59 = vsel %vm6192_vm8, %v6193_v39, 0 }
0x131a   :  { %5245 = vrot.lane.b32.xlu1 %v5234_v27, %s11602_s10  ;;  %v5307_v27 = vunpack.c.l.b16 %v2819_v55  ;;  %v3417_v55 = vpack.c.bf16 %v12714_v19, %v12714_v19 }
0x131b   :  { %5361 = vrot.lane.b32.xlu0 %v5352_v63, %s11607_s0  ;;  %v5385_v63 = vunpack.c.l.b16 %v4013_v41 }
0x131c   :  { %v5001_v5 = vpop.xlane.xlu0 %5000  ;;  %v5315_v34 = vpack.c.b16 %v5307_v27, %v5307_v27 }
0x131d   :  { %11418 = vrcp.f32 %v5001_v5  ;;  %v5275_v5 = vpack.c.b16 %v5267_v49, %v5267_v49 }
0x1321   :  { %5363 = vrot.lane.b32.xlu2 %v5353_v44, %s11607_s0  ;;  %v5393_v44 = vpack.c.b16 %v5385_v63, %v5385_v63 }
0x1322   :  { %5323 = vrot.lane.b32.xlu1 %v5313_v54, %s11604_s30 }
0x1323   :  { %v11419_v25 = vpop.eup %11418  ;;  %5439 = vrot.lane.b32.xlu0 %v5431_v62, %s11606_s19  ;;  %v5356_v62 = vpack.c.b16 %v5348_v8, %v5348_v8 }
0x1324   :  { %v5031_v7 = vmul.f32 %v11419_v25, %v13201_v28  ;;  %v6168_v28 = vld [vmem:[%s15159_s7 + $0x10] sm:$0x7]  ;;  %v4613_v25 = vpack.c.bf16 %v13071_v26, %v13071_v26  ;;  %v5387_v26 = vunpack.c.l.b16 %v4015_v13 }
0x1325   :  { %v6181_v46 = vunpack.c.l.b16 %v6168_v28  ;;  %v2222_v28 = vpack.c.bf16 %v12360_v10, %v12360_v10 }
0x1326   :  { %v5039_v40 = vpack.c.bf16 %v5031_v7, %v5031_v7  ;;  %v1623_v7 = vpack.c.bf16 %v12174_v18, %v12174_v18  ;;  %v5395_v18 = vpack.c.b16 %v5387_v26, %v5387_v26 }
0x1327   :  { %v6184_v58 = vpack.c.b16 %v6181_v46, %v6181_v46  ;;  %v5268_v15 = vunpack.c.l.b16 %v2222_v28 }
0x1328   :  { %10386 = vmatmul.msk.bf16.vlgmr.msra.gmra.mxu0 %vm764_vm6, %v5039_v40  ;;  %v5427_v40 = vunpack.c.l.b16 %v4613_v25  ;;  %v5227_v3 = vunpack.c.l.b16 %v1623_v7 }
0x1329   :  { %5405 = vrot.lane.b32.xlu2 %v5394_v22, %s11605_s4  ;;  %v6196_v33 = vand.u32 %v13319_v59, %v6184_v58  ;;  %v5347_v58 = vunpack.c.l.b16 %v3417_v55 }
0x132a   :  { %5365 = vrot.lane.b32.xlu1 %v5354_v47, %s11607_s0  ;;  %v5435_v38 = vpack.c.b16 %v5427_v40, %v5427_v40  ;;  %v5235_v14 = vpack.c.b16 %v5227_v3, %v5227_v3  ;;  %v15201_v3 = vld [vmem:[#allocation11_spill] sm:$0xff] }
0x132b   :  { %5283 = vrot.lane.b32.xlu0 %v5273_v4, %s11603_s29  ;;  %v4614_v4 = vpack.c.bf16 %v13073_v0, %v13073_v0  ;;  %v5355_v41 = vpack.c.b16 %v5347_v58, %v5347_v58 }
0x132c   :  { %v5004_v50 = vpop.xlane.xlu1 %5003 }
0x132d   :  { %11420 = vrcp.f32 %v5004_v50  ;;  %v5428_v16 = vunpack.c.l.b16 %v4614_v4 }
0x132f   :  { %v5436_v10 = vpack.c.b16 %v5428_v16, %v5428_v16 }
0x1331   :  { %5249 = vrot.lane.b32.xlu2 %v5236_v45, %s11602_s10  ;;  %v5276_v45 = vpack.c.b16 %v5268_v15, %v5268_v15 }
0x1332   :  { %5443 = vrot.lane.b32.xlu1 %v5433_v11, %s11606_s19 }
0x1333   :  { %v11421_v17 = vpop.eup %11420  ;;  %5325 = vrot.lane.b32.xlu0 %v5314_v56, %s11604_s30 }
0x1334   :  { %v5032_v12 = vmul.f32 %v11421_v17, %v13206_v31  ;;  %v4612_v31 = vpack.c.bf16 %v13137_v21, %v13137_v21  ;;  %v5316_v21 = vpack.c.b16 %v5308_v2, %v5308_v2  ;;  %v15199_v17 = vld [vmem:[#allocation18_spill] sm:$0xff] }
0x1335   :  { %v4016_v27 = vpack.c.bf16 %v15199_v17, %v15199_v17 }
0x1336   :  { %v5040_v61 = vpack.c.bf16 %v5032_v12, %v5032_v12  ;;  %v5013_v1 = vpop.xlane.xlu1 %5012  ;;  %v5426_v52 = vunpack.c.l.b16 %v4612_v31 }
0x1337   :  { %11422 = vrcp.f32 %v5013_v1  ;;  %v5388_v49 = vunpack.c.l.b16 %v4016_v27 }
0x1338   :  { %10387 = vmatmul.msk.bf16.vlgmr.msrb.gmra.mxu1 %vm764_vm6, %v5040_v61  ;;  %v5434_v35 = vpack.c.b16 %v5426_v52, %v5426_v52 }
0x1339   :  { %5327 = vrot.lane.b32.xlu2 %v5315_v34, %s11604_s30  ;;  %6203 = vmatpush.bf16.msrb.mxu1 %v6196_v33  ;;  %v5396_v12 = vpack.c.b16 %v5388_v49, %v5388_v49 }
0x133a   :  { %5287 = vrot.lane.b32.xlu1 %v5275_v5, %s11603_s29 }
0x133b   :  { %5403 = vrot.lane.b32.xlu0 %v5393_v44, %s11605_s4 }
0x133c   :  { %v5007_v54 = vpop.xlane.xlu2 %5006 }
0x133d   :  { %v11423_v30 = vpop.eup %11422  ;;  %11424 = vrcp.f32 %v5007_v54 }
0x133e   :  { %v5035_v51 = vmul.f32 %v11423_v30, %v13212_v32 }
0x1340   :  { %v5043_v24 = vpack.c.bf16 %v5035_v51, %v5035_v51 }
0x1341   :  { %5369 = vrot.lane.b32.xlu2 %v5356_v62, %s11607_s0 }
0x1342   :  { %10390 = vmatmul.msk.bf16.vlgmr.msrb.gmra.mxu0 %vm764_vm6, %v5043_v24  ;;  %5329 = vrot.lane.b32.xlu1 %v5316_v21, %s11604_s30 }
0x1343   :  { %v11425_v32 = vpop.eup %11424  ;;  %5445 = vrot.lane.b32.xlu0 %v5434_v35, %s11606_s19 }
0x1344   :  { %v5033_v42 = vmul.f32 %v11425_v32, %v13217_v57  ;;  %v5016_v22 = vpop.xlane.xlu2 %5015  ;;  %v6259_v57 = vld [vmem:[%s15160_s8 + $0x10] sm:$0x7] }
0x1345   :  { %11426 = vrcp.f32 %v5016_v22  ;;  %v6271_v46 = vunpack.c.l.b16 %v6259_v57 }
0x1346   :  { %v5041_v47 = vpack.c.bf16 %v5033_v42, %v5033_v42  ;;  %v15200_v42 = vld [vmem:[#allocation6_spill] sm:$0xff] }
0x1347   :  { %v6274_v39 = vpack.c.b16 %v6271_v46, %v6271_v46  ;;  %v1024_v22 = vpack.c.bf16 %v15200_v42, %v15200_v42 }
0x1348   :  { %10388 = vmatmul.msk.bf16.vlgmr.msra.gmra.mxu2 %vm764_vm6, %v5041_v47  ;;  %v1625_v47 = vpack.c.bf16 %v15201_v3, %v15201_v3 }
0x1349   :  { %5447 = vrot.lane.b32.xlu2 %v5435_v38, %s11606_s19  ;;  %v6278_v11 = vand.u32 %v6274_v39, %v13319_v59 }
0x134a   :  { %5407 = vrot.lane.b32.xlu1 %v5395_v18, %s11605_s4  ;;  %v5229_v57 = vunpack.c.l.b16 %v1625_v47 }
0x134b   :  { %v11427_v43 = vpop.eup %11426  ;;  %5247 = vrot.lane.b32.xlu0 %v5235_v14, %s11602_s10 }
0x134c   :  { %v5036_v0 = vmul.f32 %v11427_v43, %v13222_v60  ;;  %v5010_v50 = vpop.xlane.xlu0 %5009 }
0x134d   :  { %11428 = vrcp.f32 %v5010_v50  ;;  %v5237_v50 = vpack.c.b16 %v5229_v57, %v5229_v57 }
0x134e   :  { %v5044_v9 = vpack.c.bf16 %v5036_v0, %v5036_v0 }
0x1350   :  { %10391 = vmatmul.msk.bf16.vlgmr.msra.gmra.mxu1 %vm764_vm6, %v5044_v9 }
0x1352   :  { %5449 = vrot.lane.b32.xlu1 %v5436_v10, %s11606_s19 }
0x1353   :  { %v11429_v6 = vpop.eup %11428  ;;  %5289 = vrot.lane.b32.xlu0 %v5276_v45, %s11603_s29 }
0x1354   :  { %v5034_v60 = vmul.f32 %v11429_v6, %v13226_v53  ;;  %v13371_v53 = vpop.permute.xlu2 %5239 }
0x1356   :  { %v5042_v56 = vpack.c.bf16 %v5034_v60, %v5034_v60  ;;  %v15202_v60 = vld [vmem:[#allocation10_spill] sm:$0xff] }
0x1358   :  { %10389 = vmatmul.msk.bf16.vlgmr.msrb.gmra.mxu3 %vm764_vm6, %v5042_v56 }
0x1359   :  { %6285 = vmatpush.bf16.msrb.mxu3 %v6278_v11  ;;  %v1626_v11 = vpack.c.bf16 %v15202_v60, %v15202_v60 }
0x135b   :  { %5367 = vrot.lane.b32.xlu0 %v5355_v41, %s11607_s0  ;;  %v15203_v41 = vld [vmem:[#allocation4_spill] sm:$0xff]  ;;  %v5230_v49 = vunpack.c.l.b16 %v1626_v11 }
0x135c   :  { %v5022_v19 = vpop.xlane.xlu1 %5021  ;;  %v13375_v34 = vpop.permute.xlu2 %5281  ;;  %v1025_v17 = vpack.c.bf16 %v15203_v41, %v15203_v41 }
0x135d   :  { %11430 = vrcp.f32 %v5022_v19 }
0x1363   :  { %v11431_v33 = vpop.eup %11430  ;;  %5409 = vrot.lane.b32.xlu0 %v5396_v12, %s11605_s4 }
0x1364   :  { %v5038_v63 = vmul.f32 %v11431_v33, %v13232_v36  ;;  %v13381_v31 = vpop.permute.xlu2 %5321 }
0x1366   :  { %v5046_v61 = vpack.c.bf16 %v5038_v63, %v5038_v63  ;;  %v5238_v63 = vpack.c.b16 %v5230_v49, %v5230_v49  ;;  %v4615_v49 = vpack.c.bf16 %v13143_v29, %v13143_v29 }
0x1368   :  { %10393 = vmatmul.msk.bf16.vlgmr.msra.gmra.mxu3 %vm764_vm6, %v5046_v61 }
0x136a   :  { %v5019_v1 = vpop.xlane.xlu0 %5018 }
0x136b   :  { %11432 = vrcp.f32 %v5019_v1 }
0x136c   :  { %v13387_v2 = vpop.permute.xlu2 %5399 }
0x1371   :  { %v11433_v48 = vpop.eup %11432 }
0x1372   :  { %v5037_v5 = vmul.f32 %v11433_v48, %v13242_v23  ;;  %v15204_v48 = vld [vmem:[#allocation3_spill] sm:$0xff] }
0x1374   :  { %v5045_v37 = vpack.c.bf16 %v5037_v5, %v5037_v5  ;;  %v13378_v44 = vpop.permute.xlu1 %5279  ;;  %v13393_v52 = vpop.permute.xlu2 %5441  ;;  %v1026_v5 = vpack.c.bf16 %v15204_v48, %v15204_v48 }
0x1376   :  { %10392 = vmatmul.msk.bf16.vlgmr.msrb.gmra.mxu2 %vm764_vm6, %v5045_v37 }
0x137c   :  { %v13385_v36 = vpop.permute.xlu1 %5359  ;;  %v13399_v25 = vpop.permute.xlu2 %5243 }
0x137d   :  { %v13383_v8 = vpop.permute.xlu0 %5241 }
0x1384   :  { %v13391_v30 = vpop.permute.xlu1 %5401  ;;  %v5286_v24 = vpop.permute.xlu2 %5285 }
0x1385   :  { %v13389_v54 = vpop.permute.xlu0 %5319 }
0x138c   :  { %v5246_v51 = vpop.permute.xlu1 %5245  ;;  %v13409_v38 = vpop.permute.xlu2 %5363 }
0x138d   :  { %v13395_v23 = vpop.permute.xlu0 %5361  ;;  %v5506_v4 = vsel %vm579_vm5, %v1024_v22, %v5246_v51 }
0x138e   :  { %v5527_v43 = vsel %vm5519_vm9, %v5506_v4, %v5286_v24 }
0x1394   :  { %v13401_v21 = vpop.permute.xlu1 %5323  ;;  %v5406_v15 = vpop.permute.xlu2 %5405 }
0x1395   :  { %v13397_v62 = vpop.permute.xlu0 %5439 }
0x139c   :  { %v5366_v32 = vpop.permute.xlu1 %5365  ;;  %v5250_v61 = vpop.permute.xlu2 %5249 }
0x139d   :  { %v13403_v13 = vpop.permute.xlu0 %5283  ;;  %v5512_v51 = vsel %vm579_vm5, %v1026_v5, %v5250_v61  ;;  %v15208_v5 = vld [vmem:[#allocation12_spill] sm:$0xff] }
0x13a4   :  { %v13417_v0 = vpop.permute.xlu1 %5443 }
0x13a5   :  { %v5070_v7 = vpop.f32.mrf.mxu0  ;;  %v5326_v35 = vpop.permute.xlu0 %5325 }
0x13a6   :  { %v5207_v40 = vpack.c.bf16 %v5070_v7, %v5070_v7  ;;  %v5544_v16 = vsel %vm5536_vm10, %v5527_v43, %v5326_v35 }
0x13a7   :  { %v5560_v46 = vsel %vm156_vm3, %v5544_v16, %v5366_v32 }
0x13a8   :  { %v5463_v26 = vunpack.c.l.b16 %v5207_v40  ;;  %v5577_v10 = vsel %vm5569_vm11, %v5560_v46, %v5406_v15 }
0x13aa   :  { %v5471_v18 = vpack.c.b16 %v5463_v26, %v5463_v26  ;;  %v15205_v26 = vld [vmem:[#allocation15_spill] sm:$0xff] }
0x13ab   :  { %v2821_v42 = vpack.c.bf16 %v15205_v26, %v15205_v26 }
0x13ac   :  { %5479 = vrot.lane.b32.xlu1 %v5471_v18, %s11608_s23  ;;  %v5288_v58 = vpop.permute.xlu1 %5287  ;;  %v5328_v18 = vpop.permute.xlu2 %5327 }
0x13ad   :  { %v5072_v14 = vpop.f32.mrf.mxu0  ;;  %v13413_v28 = vpop.permute.xlu0 %5403  ;;  %v5309_v43 = vunpack.c.l.b16 %v2821_v42 }
0x13b4   :  { %5251 = vrot.lane.b32.xlu1 %v5237_v50, %s11602_s10  ;;  %v5330_v37 = vpop.permute.xlu1 %5329 }
0x13b5   :  { %v5446_v9 = vpop.permute.xlu0 %5445  ;;  %v5089_v39 = vpop.f32.mrf.mxu1 }
0x13b6   :  { %v13423_v45 = vsel %vm5586_vm12, %v5577_v10, %v5446_v9  ;;  %v5208_v55 = vpack.c.bf16 %v5089_v39, %v5089_v39  ;;  %v5317_v10 = vpack.c.b16 %v5309_v43, %v5309_v43  ;;  %v15206_v39 = vld [vmem:[#allocation16_spill] sm:$0xff] }
0x13b8   :  { %v5464_v6 = vunpack.c.l.b16 %v5208_v55  ;;  %v3420_v55 = vpack.c.bf16 %v15206_v39, %v15206_v39 }
0x13ba   :  { %v5472_v56 = vpack.c.b16 %v5464_v6, %v5464_v6 }
0x13bc   :  { %5481 = vrot.lane.b32.xlu0 %v5472_v56, %s11608_s23  ;;  %v5408_v16 = vpop.permute.xlu1 %5407  ;;  %v5350_v56 = vunpack.c.l.b16 %v3420_v55 }
0x13bd   :  { %v5248_v27 = vpop.permute.xlu0 %5247  ;;  %v5091_v19 = vpop.f32.mrf.mxu1 }
0x13be   :  { %v5509_v12 = vsel %vm579_vm5, %v1025_v17, %v5248_v27  ;;  %v15207_v17 = vld [vmem:[#allocation13_spill] sm:$0xff]  ;;  %v5358_v19 = vpack.c.b16 %v5350_v56, %v5350_v56 }
0x13bf   :  { %v5146_v33 = vpop.f32.mrf.mxu0  ;;  %v5529_v22 = vsel %vm5519_vm9, %v5509_v12, %v5288_v58  ;;  %v2223_v27 = vpack.c.bf16 %v15207_v17, %v15207_v17 }
0x13c0   :  { %v5211_v1 = vpack.c.bf16 %v5146_v33, %v5146_v33  ;;  %v5546_v14 = vsel %vm5536_vm10, %v5529_v22, %v5328_v18 }
0x13c1   :  { %v5269_v61 = vunpack.c.l.b16 %v2223_v27 }
0x13c2   :  { %v5467_v7 = vunpack.c.l.b16 %v5211_v1  ;;  %v5429_v1 = vunpack.c.l.b16 %v4615_v49 }
0x13c4   :  { %5253 = vrot.lane.b32.xlu0 %v5238_v63, %s11602_s10  ;;  %v5475_v3 = vpack.c.b16 %v5467_v7, %v5467_v7  ;;  %v15209_v7 = vld [vmem:[#allocation14_spill] sm:$0xff] }
0x13c5   :  { %v5290_v24 = vpop.permute.xlu0 %5289 }
0x13c6   :  { %v5531_v35 = vsel %vm5519_vm9, %v5512_v51, %v5290_v24  ;;  %v5277_v24 = vpack.c.b16 %v5269_v61, %v5269_v61  ;;  %v11018_v61 = vld [vmem:[%s15161_s6] sm:$0xff] }
0x13c7   :  { %v13437_v32 = vsel %vm5536_vm10, %v5531_v35, %v5330_v37  ;;  %v5148_v40 = vpop.f32.mrf.mxu0  ;;  %v2224_v37 = vpack.c.bf16 %v15208_v5, %v15208_v5  ;;  %v2822_v35 = vpack.c.bf16 %v15209_v7, %v15209_v7  ;;  %v15214_v5 = vld [vmem:[#allocation5_spill] sm:$0xff] }
0x13c8   :  { %v5437_v40 = vpack.c.b16 %v5429_v1, %v5429_v1  ;;  %v15213_v1 = vld [vmem:[#allocation2_spill] sm:$0xff] }
0x13c9   :  { %v5270_v26 = vunpack.c.l.b16 %v2224_v37  ;;  %v5310_v42 = vunpack.c.l.b16 %v2822_v35  ;;  %v1021_v37 = vpack.c.bf16 %v15214_v5, %v15214_v5 }
0x13cb   :  { %v5108_v47 = vpop.f32.mrf.mxu2  ;;  %v5278_v22 = vpack.c.b16 %v5270_v26, %v5270_v26  ;;  %v5318_v18 = vpack.c.b16 %v5310_v42, %v5310_v42  ;;  %v5497_v7 = vsel %vm579_vm5, %v1021_v37, %v13371_v53  ;;  %v5370_v53 = vpop.permute.xlu2 %5369 }
0x13cc   :  { %5487 = vrot.lane.b32.xlu0 %v5475_v3, %s11608_s23  ;;  %v5209_v6 = vpack.c.bf16 %v5108_v47, %v5108_v47  ;;  %v15210_v3 = vld [vmem:[#allocation17_spill] sm:$0xff]  ;;  %v5521_v35 = vsel %vm5519_vm9, %v5497_v7, %v13378_v44 }
0x13cd   :  { %v5368_v4 = vpop.permute.xlu0 %5367  ;;  %v5165_v57 = vpop.f32.mrf.mxu1  ;;  %v3419_v47 = vpack.c.bf16 %v15210_v3, %v15210_v3 }
0x13ce   :  { %v5562_v50 = vsel %vm156_vm3, %v5546_v14, %v5368_v4  ;;  %v5212_v46 = vpack.c.bf16 %v5165_v57, %v5165_v57  ;;  %v5465_v41 = vunpack.c.l.b16 %v5209_v6  ;;  %v15211_v4 = vld [vmem:[#allocation20_spill] sm:$0xff] }
0x13cf   :  { %v13446_v15 = vsel %vm5569_vm11, %v5562_v50, %v5408_v16  ;;  %v4017_v14 = vpack.c.bf16 %v15211_v4, %v15211_v4  ;;  %v5349_v43 = vunpack.c.l.b16 %v3419_v47 }
0x13d0   :  { %v5468_v9 = vunpack.c.l.b16 %v5212_v46  ;;  %v5473_v12 = vpack.c.b16 %v5465_v41, %v5465_v41 }
0x13d1   :  { %v5389_v50 = vunpack.c.l.b16 %v4017_v14 }
0x13d2   :  { %v5476_v60 = vpack.c.b16 %v5468_v9, %v5468_v9  ;;  %v5357_v9 = vpack.c.b16 %v5349_v43, %v5349_v43 }
0x13d3   :  { %v5110_v11 = vpop.f32.mrf.mxu2  ;;  %v5397_v6 = vpack.c.b16 %v5389_v50, %v5389_v50  ;;  %v5448_v14 = vpop.permute.xlu2 %5447 }
0x13d4   :  { %5331 = vrot.lane.b32.xlu0 %v5317_v10, %s11604_s30  ;;  %5489 = vrot.lane.b32.xlu2 %v5476_v60, %s11608_s23  ;;  %v15212_v10 = vld [vmem:[#allocation19_spill] sm:$0xff]  ;;  %v4616_v60 = vpack.c.bf16 %v13139_v20, %v13139_v20 }
0x13d5   :  { %v5167_v58 = vpop.f32.mrf.mxu1  ;;  %v4018_v39 = vpack.c.bf16 %v15212_v10, %v15212_v10  ;;  %v5410_v26 = vpop.permute.xlu0 %5409 }
0x13d6   :  { %v5430_v56 = vunpack.c.l.b16 %v4616_v60 }
0x13d7   :  { %v5390_v58 = vunpack.c.l.b16 %v4018_v39 }
0x13d8   :  { %v5438_v27 = vpack.c.b16 %v5430_v56, %v5430_v56 }
0x13d9   :  { %v5398_v41 = vpack.c.b16 %v5390_v58, %v5390_v58 }
0x13db   :  { %v5127_v33 = vpop.f32.mrf.mxu3 }
0x13dc   :  { %v5210_v63 = vpack.c.bf16 %v5127_v33, %v5127_v33  ;;  %5373 = vrot.lane.b32.xlu0 %v5358_v19, %s11607_s0  ;;  %5483 = vrot.lane.b32.xlu2 %v5473_v12, %s11608_s23  ;;  %v11020_v33 = vld [vmem:[%s15161_s6 + $0x10] sm:$0xff] }
0x13dd   :  { %5676 = vmatpush.bf16.msra.mxu0 %v11020_v33 }
0x13de   :  { %v5466_v48 = vunpack.c.l.b16 %v5210_v63  ;;  %v11019_v63 = vld [vmem:[%s15161_s6 + $0x8] sm:$0xff] }
0x13e0   :  { %v5474_v51 = vpack.c.b16 %v5466_v48, %v5466_v48  ;;  %v1022_v48 = vpack.c.bf16 %v15213_v1, %v15213_v1 }
0x13e1   :  { %5677 = vmatpush.bf16.msra.mxu0 %v11019_v63 }
0x13e2   :  { %5485 = vrot.lane.b32.xlu1 %v5474_v51, %s11608_s23  ;;  %v5500_v51 = vsel %vm579_vm5, %v1022_v48, %v13383_v8 }
0x13e3   :  { %v5129_v29 = vpop.f32.mrf.mxu3 }
0x13e4   :  { %5451 = vrot.lane.b32.xlu0 %v5437_v40, %s11606_s19  ;;  %5291 = vrot.lane.b32.xlu2 %v5277_v24, %s11603_s29  ;;  %v5450_v24 = vpop.permute.xlu1 %5449  ;;  %v5523_v40 = vsel %vm5519_vm9, %v5500_v51, %v13375_v34  ;;  %v5538_v29 = vsel %vm5536_vm10, %v5521_v35, %v13389_v54  ;;  %v15217_v51 = vld [vmem:[#allocation9_spill] sm:$0xff] }
0x13e5   :  { %5678 = vmatpush.bf16.msra.mxu0 %v11018_v61  ;;  %v5540_v42 = vsel %vm5536_vm10, %v5523_v40, %v13381_v31  ;;  %v5554_v8 = vsel %vm156_vm3, %v5538_v29, %v13385_v36 }
0x13e6   :  { %v5571_v34 = vsel %vm5569_vm11, %v5554_v8, %v13387_v2  ;;  %v5564_v2 = vsel %vm156_vm3, %v13437_v32, %v5370_v53 }
0x13e7   :  { %v5588_v54 = vsel %vm5586_vm12, %v5571_v34, %v13397_v62  ;;  %v5581_v62 = vsel %vm5569_vm11, %v5564_v2, %v5410_v26 }
0x13ea   :  { %5293 = vrot.lane.b32.xlu1 %v5278_v22, %s11603_s29  ;;  %v5556_v22 = vsel %vm156_vm3, %v5540_v42, %v13395_v23 }
0x13eb   :  { %v5203_v57 = vpop.f32.mrf.mxu3  ;;  %v5573_v44 = vsel %vm5569_vm11, %v5556_v22, %v13391_v30 }
0x13ec   :  { %v5214_v16 = vpack.c.bf16 %v5203_v57, %v5203_v57  ;;  %5333 = vrot.lane.b32.xlu2 %v5318_v18, %s11604_s30  ;;  %v5590_v36 = vsel %vm5586_vm12, %v5573_v44, %v13393_v52 }
0x13ee   :  { %v5470_v46 = vunpack.c.l.b16 %v5214_v16  ;;  %v5598_v16 = vsel %vm5586_vm12, %v5581_v62, %v5450_v24  ;;  %v6163_v62 = vld [vmem:[%s15162_s2] sm:$0xff] }
0x13f0   :  { %v5478_v55 = vpack.c.b16 %v5470_v46, %v5470_v46  ;;  %v5596_v46 = vsel %vm5586_vm12, %v13446_v15, %v5448_v14  ;;  %v11022_v14 = vld [vmem:[%s15159_s7 + $0x8] sm:$0xff] }
0x13f1   :  { %6204 = vmatpush.bf16.msrb.mxu1 %v11022_v14 }
0x13f2   :  { %5371 = vrot.lane.b32.xlu1 %v5357_v9, %s11607_s0  ;;  %5493 = vrot.lane.b32.xlu0 %v5478_v55, %s11608_s23 }
0x13f3   :  { %v5205_v11 = vpop.f32.mrf.mxu3 }
0x13f4   :  { %5411 = vrot.lane.b32.xlu2 %v5397_v6, %s11605_s4  ;;  %v15215_v6 = vld [vmem:[#allocation8_spill] sm:$0xff] }
0x13f5   :  { %v1023_v60 = vpack.c.bf16 %v15215_v6, %v15215_v6 }
0x13f7   :  { %v5503_v32 = vsel %vm579_vm5, %v1023_v60, %v13399_v25  ;;  %v5904_v60 = vlaneseq }
0x13f8   :  { %v5525_v58 = vsel %vm5519_vm9, %v5503_v32, %v13403_v13 }
0x13f9   :  { %v5184_v17 = vpop.f32.mrf.mxu2  ;;  %v5542_v56 = vsel %vm5536_vm10, %v5525_v58, %v13401_v21  ;;  %v5905_v32 = vshrl.u32 %v5904_v60, 7 }
0x13fa   :  { %v5213_v19 = vpack.c.bf16 %v5184_v17, %v5184_v17  ;;  %5413 = vrot.lane.b32.xlu1 %v5398_v41, %s11605_s4  ;;  %v5558_v15 = vsel %vm156_vm3, %v5542_v56, %v13409_v38 }
0x13fb   :  { %v5575_v17 = vsel %vm5569_vm11, %v5558_v15, %v13413_v28  ;;  %v15216_v28 = vld [vmem:[#allocation7_spill] sm:$0xff]  ;;  %11129 = vset.pattern.permute.xlu2 %v5905_v32  ;;  %11130 = vset.pattern.permute.xlu1 %v5905_v32 }
0x13fc   :  { %v5469_v49 = vunpack.c.l.b16 %v5213_v19  ;;  %5453 = vrot.lane.b32.xlu2 %v5438_v27, %s11606_s19  ;;  %v5592_v19 = vsel %vm5586_vm12, %v5575_v17, %v13417_v0  ;;  %v1028_v1 = vpack.c.bf16 %v15216_v28, %v15216_v28  ;;  %11128 = vset.pattern.permute.xlu0 %v5905_v32  ;;  %v11025_v28 = vld [vmem:[%s15161_s6 + $0x28] sm:$0xff] }
0x13fd   :  { %6247 = vmatpush.bf16.msra.mxu2 %v11025_v28 }
0x13fe   :  { %v5477_v12 = vpack.c.b16 %v5469_v49, %v5469_v49 }
0x1401   :  { %v5186_v20 = vpop.f32.mrf.mxu2 }
0x1402   :  { %5491 = vrot.lane.b32.xlu1 %v5477_v12, %s11608_s23 }
0x141e   :  { %v5480_v3 = vpop.permute.xlu1 %5479 }
0x141f   :  { %v5605_v31 = vsel %vm5603_vm13, %v5588_v54, %v5480_v3 }
0x1420   :  { %v5629_v18 = vunpack.c.l.b16 %v5605_v31 }
0x1426   :  { %v5252_v41 = vpop.permute.xlu1 %5251 }
0x142e   :  { %v5482_v47 = vpop.permute.xlu0 %5481  ;;  %v5490_v43 = vpop.permute.xlu2 %5489 }
0x142f   :  { %v5607_v23 = vsel %vm5603_vm13, %v5590_v36, %v5482_v47  ;;  %v5615_v50 = vsel %vm5603_vm13, %v5598_v16, %v5490_v43  ;;  %v13583_v43 = vpack.c.bf16 %v6163_v62, %v6163_v62  ;;  %v11027_v16 = vld [vmem:[%s15160_s8 + $0x8] sm:$0xff] }
0x1430   :  { %v5630_v4 = vunpack.c.l.b16 %v5607_v23  ;;  %v5634_v10 = vunpack.c.l.b16 %v5615_v50  ;;  %6286 = vmatpush.bf16.msrb.mxu3 %v11027_v16  ;;  %v11026_v50 = vld [vmem:[%s15160_s8] sm:$0xff] }
0x1432   :  { %v5637_v57 = vpack.c.b16 %v5630_v4, %v5629_v18 }
0x1434   :  { %10406 = vmatmul.msk.bf16.vlgmr.msra.gmra.mxu0 %vm421_vm4, %v5637_v57  ;;  %v11021_v57 = vld [vmem:[%s15159_s7] sm:$0xff]  ;;  %6287 = vmatpush.bf16.msrb.mxu3 %v11026_v50  ;;  %v11028_v50 = vld [vmem:[%s15154_s5 + $0xc] sm:$0xff] }
0x1435   :  { %6205 = vmatpush.bf16.msrb.mxu1 %v11021_v57 }
0x1436   :  { %v5254_v30 = vpop.permute.xlu0 %5253  ;;  %v5484_v11 = vpop.permute.xlu2 %5483 }
0x1437   :  { %v5609_v25 = vsel %vm5603_vm13, %v5592_v19, %v5484_v11  ;;  %v5518_v0 = vsel %vm579_vm5, %v1028_v1, %v5254_v30  ;;  %v13576_v30 = vld [vmem:[%s15158_s1] sm:$0xff]  ;;  %10446 = vmatmul.msk.bf16.vlgmr.msrb.gmra.mxu3 %vm6187_vm14, %v13583_v43 }
0x1438   :  { %v5631_v12 = vunpack.c.l.b16 %v5609_v25  ;;  %v6023_v2 = vsel %vm764_vm6, %v13576_v30, 0.0  ;;  %10418 = vmatmul.msk.bf16.vlgmr.msrb.gmra.mxu1 %vm6187_vm14, %v13583_v43 }
0x1439   :  { %6024 = vadd.xlane.f32.xlu1 %v6023_v2 }
0x143e   :  { %v5488_v52 = vpop.permute.xlu0 %5487  ;;  %v5292_v27 = vpop.permute.xlu2 %5291 }
0x143f   :  { %v5613_v9 = vsel %vm5603_vm13, %v5596_v46, %v5488_v52  ;;  %v13598_v52 = vld [vmem:[%s15153_s16 + $0x1] ss:$0 sm:$0xff] }
0x1440   :  { %v5633_v39 = vunpack.c.l.b16 %v5613_v9 }
0x1442   :  { %v5639_v55 = vpack.c.b16 %v5634_v10, %v5633_v39 }
0x1446   :  { %v5332_v20 = vpop.permute.xlu0 %5331  ;;  %v5334_v38 = vpop.permute.xlu2 %5333 }
0x144e   :  { %v5374_v61 = vpop.permute.xlu0 %5373  ;;  %v5412_v5 = vpop.permute.xlu2 %5411 }
0x1454   :  { %v5486_v49 = vpop.permute.xlu1 %5485 }
0x1455   :  { %v5611_v13 = vsel %vm5603_vm13, %v13423_v45, %v5486_v49  ;;  %v1027_v45 = vpack.c.bf16 %v15217_v51, %v15217_v51 }
0x1456   :  { %v5632_v21 = vunpack.c.l.b16 %v5611_v13  ;;  %v5452_v7 = vpop.permute.xlu0 %5451  ;;  %v5454_v53 = vpop.permute.xlu2 %5453 }
0x1457   :  { %v5515_v35 = vsel %vm579_vm5, %v1027_v45, %v5252_v41 }
0x1458   :  { %v5638_v33 = vpack.c.b16 %v5632_v21, %v5631_v12  ;;  %v5533_v40 = vsel %vm5519_vm9, %v5515_v35, %v5292_v27  ;;  %v5917_v21 = vperm.slane %v13576_v30, 2 }
0x1459   :  { %v5550_v42 = vsel %vm5536_vm10, %v5533_v40, %v5332_v20  ;;  %v5910_v20 = vperm.slane %v13576_v30, 1 }
0x145a   :  { %10407 = vmatmul.msk.bf16.gmra.mxu0 %vm421_vm4, %v5638_v33  ;;  %v5903_v33 = vperm.slane %v13576_v30, 0 }
0x145c   :  { %v5294_v63 = vpop.permute.xlu1 %5293 }
0x145d   :  { %v5535_v37 = vsel %vm5519_vm9, %v5518_v0, %v5294_v63  ;;  %v11609_v63 = vmov 48.0   ;;  %v11024_v0 = vld [vmem:[%s15161_s6 + $0x20] sm:$0xff] }
0x145e   :  { %v5552_v24 = vsel %vm5536_vm10, %v5535_v37, %v5334_v38  ;;  %v10459_v38 = vld [vmem:[%s15159_s7 + $0x24] sm:$0x7]  ;;  %11434 = vrcp.f32 %v11609_v63  ;;  %6248 = vmatpush.bf16.msra.mxu2 %v11024_v0  ;;  %v11023_v37 = vld [vmem:[%s15161_s6 + $0x18] sm:$0xff] }
0x145f   :  { %v5568_v29 = vsel %vm156_vm3, %v5552_v24, %v5374_v61  ;;  %v6346_v61 = vunpack.c.l.b16 %v10459_v38 }
0x1461   :  { %v6349_v1 = vpack.c.b16 %v6346_v61, %v6346_v61 }
0x1462   :  { %6249 = vmatpush.bf16.msra.mxu2 %v11023_v37 }
0x1463   :  { %v6353_v51 = vand.u32 %v6349_v1, %v13319_v59  ;;  %v11029_v59 = vld [vmem:[%s15159_s7 + $0x14] sm:$0xff] }
0x1464   :  { %v5372_v48 = vpop.permute.xlu1 %5371  ;;  %v5494_v34 = vpop.permute.xlu0 %5493 }
0x1465   :  { %v5566_v22 = vsel %vm156_vm3, %v5550_v42, %v5372_v48  ;;  %v11435_v48 = vpop.eup %11434 }
0x1466   :  { %v5583_v44 = vsel %vm5569_vm11, %v5566_v22, %v5412_v5  ;;  %v11158_v5 = vld [vmem:[%s15153_s16 + $0x4] ss:$0 sm:$0xff]  ;;  %v5727_v45 = vmul.f32 48.0, %v11435_v48  ;;  %6360 = vmatpush.bf16.msrb.mxu2 %v6353_v51  ;;  %vm5731_vm15 = vweird.f32 %v11435_v48  ;;  %v5945_v51 = vperm.slane %v13576_v30, 6 }
0x1467   :  { %v5600_v31 = vsel %vm5586_vm12, %v5583_v44, %v5452_v7 }
0x1468   :  { %v5728_v35 = vsub.f32 1.0, %v5727_v45 }
0x146a   :  { %10408 = vmatmul.msk.bf16.gmra.mxu0 %vm421_vm4, %v5639_v55  ;;  %v5729_v42 = vmul.f32 %v11435_v48, %v5728_v35 }
0x146c   :  { %v5414_v26 = vpop.permute.xlu1 %5413 }
0x146d   :  { %v5585_v8 = vsel %vm5569_vm11, %v5568_v29, %v5414_v26  ;;  %v11030_v26 = vld [vmem:[%s15159_s7 + $0x1c] sm:$0xff] }
0x146e   :  { %v5602_v3 = vsel %vm5586_vm12, %v5585_v8, %v5454_v53  ;;  %6361 = vmatpush.bf16.msrb.mxu2 %v11030_v26  ;;  %v5730_v53 = vadd.f32 %v11435_v48, %v5729_v42 }
0x146f   :  { %v5619_v54 = vsel %vm5603_vm13, %v5602_v3, %v5494_v34 }
0x1470   :  { %v5636_v18 = vunpack.c.l.b16 %v5619_v54  ;;  %v13661_v34 = vsel %vm5731_vm15, %v11435_v48, %v5730_v53  ;;  %v10449_v54 = vld [vmem:[%s15154_s5 + $0x14] sm:$0xf] }
0x1472   :  { %6362 = vmatpush.bf16.msrb.mxu2 %v11029_v59 }
0x1474   :  { %v5492_v47 = vpop.permute.xlu1 %5491 }
0x1475   :  { %v5617_v36 = vsel %vm5603_vm13, %v5600_v31, %v5492_v47  ;;  %v11159_v31 = vld [vmem:[%s15178_s20 + $0x1] ss:$0 sm:$0xff]  ;;  %v6306_v47 = vunpack.c.l.b16 %v10449_v54  ;;  %vm6441_vm13 = vcmask 1040384  }
0x1476   :  { %v5635_v23 = vunpack.c.l.b16 %v5617_v36 }
0x1477   :  { %v6308_v14 = vpack.c.b16 %v6306_v47, %v6306_v47 }
0x1478   :  { %v5640_v4 = vpack.c.b16 %v5636_v18, %v5635_v23 }
0x1479   :  { %v6314_v62 = vsel %vm94_vm0, %v6308_v14, 0 }
0x147a   :  { %10409 = vmatmul.msk.bf16.gmra.mxu0 %vm421_vm4, %v5640_v4  ;;  %6322 = vmatpush.bf16.msra.mxu1 %v6314_v62 }
0x147e   :  { %6323 = vmatpush.bf16.msra.mxu1 %v11028_v50 }
0x14ac   :  { %v6025_v60 = vpop.xlane.xlu1 %6024 }
0x14b1   :  { %v5680_v46 = vpop.f32.mrf.mxu0 }
0x14b2   :  { %v13601_v9 = vadd.f32 %v13598_v52, %v5680_v46 }
0x14b4   :  { %v5702_v10 = vsel %vm421_vm4, %v13601_v9, 0.0 }
0x14b5   :  { %5703 = vadd.xlane.f32.xlu2 %v5702_v10  ;;  %v6207_v24 = vpop.f32.mrf.mxu1 }
0x14b6   :  { %v6208_v7 = vadd.f32 %v11158_v5, %v6207_v24 }
0x14b8   :  { %v6218_v40 = vpack.c.bf16 %v6208_v7, %v6208_v7 }
0x14b9   :  { %v5682_v39 = vpop.f32.mrf.mxu0 }
0x14ba   :  { %v13606_v55 = vadd.f32 %v13598_v52, %v5682_v39  ;;  %10437 = vmatmul.msk.bf16.vlgmr.msra.gmra.mxu2 %vm421_vm4, %v6218_v40  ;;  %v6289_v4 = vpop.f32.mrf.mxu3 }
0x14bb   :  { %v6290_v57 = vadd.f32 %v11159_v31, %v6289_v4  ;;  %v5952_v4 = vperm.slane %v13576_v30, 7 }
0x14bc   :  { %v5705_v6 = vsel %vm421_vm4, %v13606_v55, 0.0 }
0x14bd   :  { %5706 = vadd.xlane.f32.xlu1 %v5705_v6  ;;  %v6209_v22 = vpop.f32.mrf.mxu1  ;;  %v6293_v16 = vmax.f32 %v6290_v57, 0.0  ;;  %v5931_v6 = vperm.slane %v13576_v30, 4 }
0x14bf   :  { %v6298_v10 = vpack.c.bf16 %v6293_v16, %v6293_v16 }
0x14c1   :  { %10454 = vmatmul.msk.bf16.vlgmr.msra.gmra.mxu1 %vm156_vm3, %v6298_v10 }
0x14c2   :  { %v6291_v39 = vpop.f32.mrf.mxu3 }
0x14c3   :  { %v13752_v39 = vld [vmem:[%s15153_s16 + $0x2] ss:$0 sm:$0xff] }
0x14ca   :  { %10468 = vmatmul.msk.bf16.vlgmr.msrb.gmra.mxu2 %vm6187_vm14, %v13583_v43  ;;  %v5924_v43 = vperm.slane %v13576_v30, 3 }
0x14d7   :  { %v5685_v11 = vpop.f32.mrf.mxu0 }
0x14d8   :  { %v13611_v58 = vadd.f32 %v13598_v52, %v5685_v11 }
0x14da   :  { %v5708_v56 = vsel %vm421_vm4, %v13611_v58, 0.0 }
0x14db   :  { %5709 = vadd.xlane.f32.xlu0 %v5708_v56 }
0x14df   :  { %v5687_v41 = vpop.f32.mrf.mxu0 }
0x14e0   :  { %v13616_v15 = vadd.f32 %v13598_v52, %v5687_v41 }
0x14e2   :  { %v5711_v17 = vsel %vm421_vm4, %v13616_v15, 0.0 }
0x14e3   :  { %5712 = vadd.xlane.f32.xlu2 %v5711_v17 }
0x14e7   :  { %v5690_v27 = vpop.f32.mrf.mxu0 }
0x14e8   :  { %v13621_v19 = vadd.f32 %v13598_v52, %v5690_v27 }
0x14ea   :  { %v5714_v25 = vsel %vm421_vm4, %v13621_v19, 0.0 }
0x14eb   :  { %5715 = vadd.xlane.f32.xlu1 %v5714_v25 }
0x14ef   :  { %v5692_v49 = vpop.f32.mrf.mxu0 }
0x14f0   :  { %v13626_v13 = vadd.f32 %v13598_v52, %v5692_v49 }
0x14f2   :  { %v5717_v12 = vsel %vm421_vm4, %v13626_v13, 0.0 }
0x14f3   :  { %5718 = vadd.xlane.f32.xlu0 %v5717_v12 }
0x14f7   :  { %v5695_v29 = vpop.f32.mrf.mxu0 }
0x14f8   :  { %v13657_v8 = vadd.f32 %v13598_v52, %v5695_v29 }
0x14fa   :  { %v5720_v3 = vsel %vm421_vm4, %v13657_v8, 0.0 }
0x14fb   :  { %5915 = vperm.xlu2 %11129, %v5910_v20  }
0x14ff   :  { %v5697_v44 = vpop.f32.mrf.mxu0 }
0x1500   :  { %v13670_v23 = vadd.f32 %v13598_v52, %v5697_v44 }
0x1502   :  { %v5723_v52 = vsel %vm421_vm4, %v13670_v23, 0.0 }
0x1504   :  { %5922 = vperm.xlu1 %11130, %v5917_v21  }
0x1507   :  { %5908 = vperm.xlu0 %11128, %v5903_v33  }
0x1524   :  { %5721 = vadd.xlane.f32.xlu2 %v5720_v3 }
0x1528   :  { %v5704_v36 = vpop.xlane.xlu2 %5703 }
0x1529   :  { %v5733_v18 = vmul.f32 %v13661_v34, %v5704_v36 }
0x152b   :  { %v13674_v2 = vsub.f32 %v13601_v9, %v5733_v18  ;;  %v13745_v18 = vadd.f32 1e-08, %v6025_v60 }
0x152d   :  { %v5749_v46 = vmul.f32 %v13674_v2, %v13674_v2  ;;  %vm6048_vm5 = vweird.f32 %v13745_v18 }
0x152e   :  { %5724 = vadd.xlane.f32.xlu1 %v5723_v52 }
0x152f   :  { %v5757_v9 = vsel %vm421_vm4, %v5749_v46, 0.0 }
0x1530   :  { %v5707_v32 = vpop.xlane.xlu1 %5706 }
0x1531   :  { %5758 = vadd.xlane.f32.xlu0 %v5757_v9  ;;  %v5734_v41 = vmul.f32 %v13661_v34, %v5707_v32 }
0x1533   :  { %v13698_v25 = vsub.f32 %v13606_v55, %v5734_v41 }
0x1535   :  { %v5750_v21 = vmul.f32 %v13698_v25, %v13698_v25 }
0x1537   :  { %v5760_v63 = vsel %vm421_vm4, %v5750_v21, 0.0 }
0x153c   :  { %5929 = vperm.xlu2 %11129, %v5924_v43  }
0x153d   :  { %v6251_v42 = vpop.f32.mrf.mxu2 }
0x153e   :  { %v6325_v57 = vpop.f32.mrf.mxu1 }
0x1545   :  { %v6253_v31 = vpop.f32.mrf.mxu2 }
0x1546   :  { %v6327_v9 = vpop.f32.mrf.mxu1 }
0x1547   :  { %5936 = vperm.xlu1 %11130, %v5931_v6   ;;  %v13757_v6 = vld [vmem:[%s15153_s16 + $0x3] ss:$0 sm:$0xff]  ;;  %v13806_v9 = vrot.slane %v13745_v18, 4 }
0x154d   :  { %v6364_v14 = vpop.f32.mrf.mxu2 }
0x154e   :  { %v5710_v33 = vpop.xlane.xlu0 %5709 }
0x154f   :  { %v5735_v38 = vmul.f32 %v13661_v34, %v5710_v33  ;;  %v11163_v33 = vld [vmem:[%s15153_s16 + $0x7] ss:$0 sm:$0xff] }
0x1551   :  { %v13710_v55 = vsub.f32 %v13611_v58, %v5735_v38  ;;  %v6054_v38 = vand.u32 2147483648, %v13745_v18 }
0x1553   :  { %v5751_v0 = vmul.f32 %v13710_v55, %v13710_v55 }
0x1555   :  { %v5763_v5 = vsel %vm421_vm4, %v5751_v0, 0.0  ;;  %v6366_v52 = vpop.f32.mrf.mxu2 }
0x1556   :  { %v5713_v11 = vpop.xlane.xlu2 %5712 }
0x1557   :  { %v5736_v56 = vmul.f32 %v13661_v34, %v5713_v11 }
0x1559   :  { %v13693_v17 = vsub.f32 %v13616_v15, %v5736_v56  ;;  %v5938_v56 = vperm.slane %v13576_v30, 5  ;;  %v11162_v30 = vld [vmem:[%s15153_s16 + $0x5] ss:$0 sm:$0xff] }
0x155b   :  { %v5752_v27 = vmul.f32 %v13693_v17, %v13693_v17 }
0x155d   :  { %v5766_v49 = vsel %vm421_vm4, %v5752_v27, 0.0 }
0x155e   :  { %v5716_v12 = vpop.xlane.xlu1 %5715  ;;  %5767 = vadd.xlane.f32.xlu0 %v5766_v49  ;;  %v13726_v45 = vpop.permute.xlu2 %5915 }
0x155f   :  { %v5737_v20 = vmul.f32 %v13661_v34, %v5716_v12 }
0x1561   :  { %v13706_v15 = vsub.f32 %v13621_v19, %v5737_v20 }
0x1563   :  { %v5753_v61 = vmul.f32 %v13706_v15, %v13706_v15 }
0x1565   :  { %5761 = vadd.xlane.f32.xlu2 %v5760_v63  ;;  %v5769_v48 = vsel %vm421_vm4, %v5753_v61, 0.0  ;;  %v11164_v63 = vld [vmem:[%s15153_s16 + $0x6] ss:$0 sm:$0xff] }
0x1566   :  { %v5719_v28 = vpop.xlane.xlu0 %5718 }
0x1567   :  { %v5738_v1 = vmul.f32 %v13661_v34, %v5719_v28  ;;  %v6052_v28 = vand.u32 2147483647, %v13745_v18 }
0x1569   :  { %v13719_v19 = vsub.f32 %v13626_v13, %v5738_v1  ;;  %vm6053_vm11 = vcmp.eq.f32.partialorder %v6052_v28, 8.507059e+37 }
0x156b   :  { %v5754_v58 = vmul.f32 %v13719_v19, %v13719_v19 }
0x156d   :  { %5770 = vadd.xlane.f32.xlu2 %v5769_v48  ;;  %v5772_v37 = vsel %vm421_vm4, %v5754_v58, 0.0  ;;  %v6365_v48 = vadd.f32 %v11163_v33, %v6364_v14  ;;  %v6055_v58 = vor.u32 1.1754944e-38, %v6054_v38  ;;  %v13797_v14 = vrot.slane %v13745_v18, 1 }
0x1571   :  { %5764 = vadd.xlane.f32.xlu1 %v5763_v5  ;;  %v13777_v5 = vadd.f32 %v11162_v30, %v6251_v42 }
0x1576   :  { %v13729_v35 = vpop.permute.xlu1 %5922 }
0x1579   :  { %5773 = vadd.xlane.f32.xlu1 %v5772_v37  ;;  %v5909_v40 = vpop.permute.xlu0 %5908  ;;  %v13779_v37 = vadd.f32 %v11164_v63, %v6325_v57 }
0x1592   :  { %5950 = vperm.xlu1 %11130, %v5945_v51  }
0x1597   :  { %v5722_v24 = vpop.xlane.xlu2 %5721 }
0x1598   :  { %v5739_v7 = vmul.f32 %v13661_v34, %v5722_v24 }
0x159a   :  { %v13732_v13 = vsub.f32 %v13657_v8, %v5739_v7  ;;  %v13781_v7 = vmax.f32 %v6365_v48, 0.0 }
0x159c   :  { %v5755_v29 = vmul.f32 %v13732_v13, %v13732_v13  ;;  %v6425_v42 = vperm.slane %v13781_v7, 0 }
0x159e   :  { %v5775_v26 = vsel %vm421_vm4, %v5755_v29, 0.0  ;;  %v6393_v29 = vperm.slane %v13777_v5, 0 }
0x159f   :  { %5776 = vadd.xlane.f32.xlu0 %v5775_v26 }
0x15a1   :  { %v5725_v59 = vpop.xlane.xlu1 %5724 }
0x15a2   :  { %v5740_v22 = vmul.f32 %v13661_v34, %v5725_v59  ;;  %v6409_v59 = vperm.slane %v13779_v37, 0 }
0x15a4   :  { %v13739_v53 = vsub.f32 %v13670_v23, %v5740_v22  ;;  %v5759_v3 = vpop.xlane.xlu0 %5758  ;;  %v13785_v22 = vpop.permute.xlu2 %5929 }
0x15a5   :  { %v5781_v44 = vmul.f32 %v5759_v3, %v13661_v34 }
0x15a6   :  { %v5756_v8 = vmul.f32 %v13739_v53, %v13739_v53 }
0x15a7   :  { %v5789_v54 = vadd.f32 1e-05, %v5781_v44  ;;  %v13789_v44 = vrot.slane %v13745_v18, 3 }
0x15a8   :  { %v5778_v47 = vsel %vm421_vm4, %v5756_v8, 0.0 }
0x15a9   :  { %11436 = vrsqrt.f32 %v5789_v54  ;;  %5779 = vadd.xlane.f32.xlu2 %v5778_v47  ;;  %vm5803_vm1 = vweird.f32 %v5789_v54 }
0x15aa   :  { %11438 = vrcp.f32 %v13745_v18 }
0x15ab   :  { %11440 = vrcp.f32 %v13789_v44 }
0x15af   :  { %v11437_v36 = vpop.eup %11436 }
0x15b0   :  { %v5798_v23 = vmul.f32 %v11437_v36, %v5789_v54  ;;  %vm5804_vm0 = vweird.f32 %v11437_v36  ;;  %v11439_v10 = vpop.eup %11438 }
0x15b1   :  { %vm5805_vm2 = vmor %vm5803_vm1, %vm5804_vm0  ;;  %v6044_v32 = vmul.f32 %v11439_v10, %v13745_v18  ;;  %vm6049_vm6 = vweird.f32 %v11439_v10  ;;  %vm6093_vm1 = vweird.f32 %v13789_v44 }
0x15b2   :  { %v5799_v62 = vmul.f32 %v11437_v36, %v5798_v23  ;;  %vm6050_vm10 = vmor %vm6048_vm5, %vm6049_vm6 }
0x15b3   :  { %5957 = vperm.xlu0 %11128, %v5952_v4   ;;  %v6045_v27 = vsub.f32 1.0, %v6044_v32  ;;  %v13811_v32 = vrot.slane %v13745_v18, 2 }
0x15b4   :  { %v5800_v16 = vmul.f32 0.5, %v5799_v62  ;;  %v13800_v62 = vpop.eup %11440 }
0x15b5   :  { %v6046_v20 = vmul.f32 %v11439_v10, %v6045_v27 }
0x15b6   :  { %v5801_v50 = vsub.f32 1.5, %v5800_v16 }
0x15b7   :  { %v6047_v61 = vadd.f32 %v11439_v10, %v6046_v20 }
0x15b8   :  { %v5802_v46 = vmul.f32 %v11437_v36, %v5801_v50 }
0x15b9   :  { %v6051_v51 = vsel %vm6050_vm10, %v11439_v10, %v6047_v61  ;;  %v13802_v52 = vpop.permute.xlu1 %5936  ;;  %v6089_v10 = vmul.f32 %v13800_v62, %v13789_v44 }
0x15ba   :  { %v5806_v43 = vsel %vm5805_vm2, %v11437_v36, %v5802_v46  ;;  %v6056_v26 = vsel %vm6053_vm11, %v6055_v58, %v6051_v51  ;;  %vm6094_vm2 = vweird.f32 %v13800_v62 }
0x15bb   :  { %v5877_v60 = vmul.f32 %v5806_v43, %v13674_v2  ;;  %v6090_v27 = vsub.f32 1.0, %v6089_v10  ;;  %vm13841_vm6 = vmor %vm6093_vm1, %vm6094_vm2 }
0x15bd   :  { %v5886_v11 = vmul.f32 %v13752_v39, %v5877_v60  ;;  %v6091_v63 = vmul.f32 %v13800_v62, %v6090_v27 }
0x15bf   :  { %v5895_v41 = vadd.f32 %v13757_v6, %v5886_v11 }
0x15c1   :  { %v5959_v49 = vmul.f32 %v5909_v40, %v5895_v41  ;;  %5943 = vperm.xlu2 %11129, %v5938_v56  }
0x15c3   :  { %v5967_v12 = vsel %vm421_vm4, %v5959_v49, 0.0 }
0x15c4   :  { %v5968_v21 = vrot.slane %v5967_v12, 4 }
0x15c6   :  { %v5969_v2 = vadd.f32 %v5968_v21, %v5967_v12 }
0x15c8   :  { %v5970_v1 = vrot.slane %v5969_v2, 2 }
0x15ca   :  { %v5971_v0 = vadd.f32 %v5970_v1, %v5969_v2 }
0x15cc   :  { %v5972_v24 = vrot.slane %v5971_v0, 1 }
0x15ce   :  { %v5973_v40 = vadd.f32 %v5972_v24, %v5971_v0  ;;  %v6099_v24 = vand.u32 2147483648, %v13789_v44 }
0x15d0   :  { %v6057_v3 = vmul.f32 %v6056_v26, %v5973_v40 }
0x15d1   :  { %v5768_v8 = vpop.xlane.xlu0 %5767 }
0x15d2   :  { %v6442_v54 = vsel %vm6441_vm13, %v6057_v3, %v6393_v29  ;;  %v5784_v31 = vmul.f32 %v5768_v8, %v13661_v34 }
0x15d3   :  { %v6450_v47 = vsel %vm6191_vm7, %v6442_v54, %v6409_v59  ;;  %v6092_v59 = vadd.f32 %v13800_v62, %v6091_v63 }
0x15d4   :  { %v6458_v36 = vsel %vm6192_vm8, %v6450_v47, %v6425_v42  ;;  %v5792_v4 = vadd.f32 1e-05, %v5784_v31 }
0x15d5   :  { %6566 = vst [vmem:[#allocation1] ss:$2 sm:$0xff] %v6458_v36  ;;  %v6100_v36 = vor.u32 1.1754944e-38, %v6099_v24 }
0x15d6   :  { %11442 = vrsqrt.f32 %v5792_v4  ;;  %vm5833_vm15 = vweird.f32 %v5792_v4 }
0x15d8   :  { %v5762_v23 = vpop.xlane.xlu2 %5761 }
0x15d9   :  { %v5782_v57 = vmul.f32 %v5762_v23, %v13661_v34 }
0x15db   :  { %v5790_v16 = vadd.f32 1e-05, %v5782_v57 }
0x15dc   :  { %v11443_v50 = vpop.eup %11442 }
0x15dd   :  { %v5828_v46 = vmul.f32 %v11443_v50, %v5792_v4  ;;  %11444 = vrsqrt.f32 %v5790_v16  ;;  %vm5834_vm14 = vweird.f32 %v11443_v50  ;;  %vm5813_vm10 = vweird.f32 %v5790_v16 }
0x15de   :  { %11446 = vrcp.f32 %v13797_v14  ;;  %vm5835_vm0 = vmor %vm5833_vm15, %vm5834_vm14  ;;  %vm6063_vm15 = vweird.f32 %v13797_v14 }
0x15df   :  { %v5829_v43 = vmul.f32 %v11443_v50, %v5828_v46  ;;  %11448 = vrcp.f32 %v13806_v9 }
0x15e0   :  { %v5771_v60 = vpop.xlane.xlu2 %5770  ;;  %11450 = vrcp.f32 %v13811_v32 }
0x15e1   :  { %v5830_v11 = vmul.f32 0.5, %v5829_v43  ;;  %v5785_v56 = vmul.f32 %v5771_v60, %v13661_v34 }
0x15e3   :  { %v11445_v41 = vpop.eup %11444  ;;  %v5831_v49 = vsub.f32 1.5, %v5830_v11  ;;  %v13815_v12 = vadd.f32 1e-05, %v5785_v56 }
0x15e4   :  { %v13817_v20 = vpop.eup %11446  ;;  %v5808_v21 = vmul.f32 %v11445_v41, %v5790_v16  ;;  %v5765_v33 = vpop.xlane.xlu1 %5764  ;;  %vm5814_vm5 = vweird.f32 %v11445_v41  ;;  %v6096_v16 = vsel %vm13841_vm6, %v13800_v62, %v6092_v59  ;;  %v6372_v59 = vrot.slane %v13777_v5, 3 }
0x15e5   :  { %v5832_v2 = vmul.f32 %v11443_v50, %v5831_v49  ;;  %11452 = vrsqrt.f32 %v13815_v12  ;;  %v5783_v30 = vmul.f32 %v5765_v33, %v13661_v34  ;;  %v6059_v28 = vmul.f32 %v13817_v20, %v13797_v14  ;;  %v13827_v48 = vpop.eup %11448  ;;  %vm5815_vm11 = vmor %vm5813_vm10, %vm5814_vm5 }
0x15e6   :  { %v5809_v38 = vmul.f32 %v11445_v41, %v5808_v21  ;;  %v13833_v51 = vpop.eup %11450  ;;  %v13850_v47 = vmul.f32 %v13827_v48, %v13806_v9  ;;  %vm5843_vm2 = vweird.f32 %v13815_v12 }
0x15e7   :  { %v5836_v61 = vsel %vm5835_vm0, %v11443_v50, %v5832_v2  ;;  %v13825_v1 = vadd.f32 1e-05, %v5783_v30  ;;  %v6060_v3 = vsub.f32 1.0, %v6059_v28  ;;  %vm6064_vm0 = vweird.f32 %v13817_v20  ;;  %v11033_v28 = vld [vmem:[%s15164_s11 + $0x10] sm:$0xff] }
0x15e8   :  { %v5880_v0 = vmul.f32 %v5836_v61, %v13693_v17  ;;  %v5810_v58 = vmul.f32 0.5, %v5809_v38  ;;  %v6097_v17 = vand.u32 2147483647, %v13789_v44  ;;  %v13854_v44 = vmul.f32 %v13833_v51, %v13811_v32  ;;  %vm13903_vm6 = vmor %vm6063_vm15, %vm6064_vm0  ;;  %6623 = vmatpush.bf16.msra.mxu3 %v11033_v28 }
0x15e9   :  { %11454 = vrsqrt.f32 %v13825_v1  ;;  %v6061_v46 = vmul.f32 %v13817_v20, %v6060_v3  ;;  %v6069_v38 = vand.u32 2147483648, %v13797_v14  ;;  %vm6109_vm15 = vweird.f32 %v13827_v48 }
0x15ea   :  { %v5889_v40 = vmul.f32 %v13752_v39, %v5880_v0  ;;  %v5811_v29 = vsub.f32 1.5, %v5810_v58  ;;  %vm6098_vm14 = vcmp.eq.f32.partialorder %v6097_v17, 8.507059e+37  ;;  %v11036_v0 = vld [vmem:[%s15164_s11 + $0x28] sm:$0xff]  ;;  %v11039_v58 = vld [vmem:[%s15164_s11 + $0x40] sm:$0xff]  ;;  %vm5823_vm0 = vweird.f32 %v13825_v1 }
0x15eb   :  { %v13837_v26 = vpop.eup %11452  ;;  %v13872_v27 = vsel %vm6098_vm14, %v6100_v36, %v6096_v16  ;;  %v13877_v33 = vadd.f32 %v13817_v20, %v6061_v46  ;;  %6675 = vmatpush.bf16.msrb.mxu1 %v11036_v0  ;;  %vm6108_vm14 = vweird.f32 %v13806_v9  ;;  %6727 = vmatpush.bf16.msra.mxu2 %v11039_v58  ;;  %v6075_v58 = vsub.f32 1.0, %v13854_v44 }
0x15ec   :  { %v5898_v8 = vadd.f32 %v13757_v6, %v5889_v40  ;;  %v5812_v54 = vmul.f32 %v11445_v41, %v5811_v29  ;;  %v5838_v31 = vmul.f32 %v13837_v26, %v13815_v12  ;;  %v5774_v11 = vpop.xlane.xlu1 %5773  ;;  %vm5844_vm1 = vweird.f32 %v13837_v26 }
0x15ed   :  { %v5786_v30 = vmul.f32 %v5774_v11, %v13661_v34  ;;  %v6105_v29 = vsub.f32 1.0, %v13850_v47  ;;  %v6112_v12 = vand.u32 2147483647, %v13806_v9  ;;  %vm5845_vm5 = vmor %vm5843_vm2, %vm5844_vm1 }
0x15ee   :  { %v5962_v4 = vmul.f32 %v13785_v22, %v5898_v8  ;;  %v5816_v23 = vsel %vm5815_vm11, %v11445_v41, %v5812_v54  ;;  %v5839_v57 = vmul.f32 %v13837_v26, %v5838_v31  ;;  %v6067_v41 = vand.u32 2147483647, %v13797_v14 }
0x15ef   :  { %v13858_v50 = vpop.eup %11454  ;;  %v5878_v10 = vmul.f32 %v5816_v23, %v13698_v25  ;;  %v13917_v31 = vadd.f32 1e-05, %v5786_v30  ;;  %v11035_v23 = vld [vmem:[%s15164_s11 + $0x20] sm:$0xff]  ;;  %vm13959_vm2 = vcmp.eq.f32.partialorder %v6112_v12, 8.507059e+37 }
0x15f0   :  { %v5988_v43 = vsel %vm421_vm4, %v5962_v4, 0.0  ;;  %v5840_v60 = vmul.f32 0.5, %v5839_v57  ;;  %v5818_v22 = vmul.f32 %v13858_v50, %v13825_v1  ;;  %vm5824_vm10 = vweird.f32 %v13858_v50  ;;  %v11032_v4 = vld [vmem:[%s15164_s11 + $0x8] sm:$0xff]  ;;  %6676 = vmatpush.bf16.msrb.mxu1 %v11035_v23 }
0x15f1   :  { %v5989_v56 = vrot.slane %v5988_v43, 4  ;;  %v5887_v62 = vmul.f32 %v13752_v39, %v5878_v10  ;;  %vm13909_vm11 = vcmp.eq.f32.partialorder %v6067_v41, 8.507059e+37  ;;  %v6388_v57 = vrot.slane %v13781_v7, 3  ;;  %vm5825_vm1 = vmor %vm5823_vm0, %vm5824_vm10  ;;  %6624 = vmatpush.bf16.msra.mxu3 %v11032_v4 }
0x15f2   :  { %v5841_v49 = vsub.f32 1.5, %v5840_v60  ;;  %v5819_v25 = vmul.f32 %v13858_v50, %v5818_v22  ;;  %v6066_v1 = vsel %vm13903_vm6, %v13817_v20, %v13877_v33  ;;  %v6396_v10 = vperm.slane %v6372_v59, 0  ;;  %vm13982_vm10 = vmor %vm6108_vm14, %vm6109_vm15 }
0x15f3   :  { %v5990_v21 = vadd.f32 %v5989_v56, %v5988_v43  ;;  %v5896_v2 = vadd.f32 %v13757_v6, %v5887_v62  ;;  %v6070_v43 = vor.u32 1.1754944e-38, %v6069_v38  ;;  %11456 = vrsqrt.f32 %v13917_v31 }
0x15f4   :  { %v5842_v63 = vmul.f32 %v13837_v26, %v5841_v49  ;;  %v5820_v61 = vmul.f32 0.5, %v5819_v25  ;;  %v6106_v49 = vmul.f32 %v13827_v48, %v6105_v29  ;;  %v6114_v25 = vand.u32 2147483648, %v13806_v9 }
0x15f5   :  { %v5991_v24 = vrot.slane %v5990_v21, 2  ;;  %v5960_v40 = vmul.f32 %v13726_v45, %v5896_v2  ;;  %v6428_v33 = vperm.slane %v6388_v57, 0  ;;  %vm6079_vm6 = vweird.f32 %v13833_v51 }
0x15f6   :  { %v5846_v3 = vsel %vm5845_vm5, %v13837_v26, %v5842_v63  ;;  %v5821_v45 = vsub.f32 1.5, %v5820_v61  ;;  %v6380_v26 = vrot.slane %v13779_v37, 3  ;;  %v6370_v63 = vrot.slane %v13777_v5, 1 }
0x15f7   :  { %v5992_v42 = vadd.f32 %v5991_v24, %v5990_v21  ;;  %v5974_v54 = vsel %vm421_vm4, %v5960_v40, 0.0  ;;  %v5881_v14 = vmul.f32 %v5846_v3, %v13706_v15  ;;  %v11038_v15 = vld [vmem:[%s15164_s11 + $0x38] sm:$0xff]  ;;  %v6386_v61 = vrot.slane %v13781_v7, 1 }
0x15f8   :  { %v5975_v47 = vrot.slane %v5974_v54, 4  ;;  %v5822_v36 = vmul.f32 %v13858_v50, %v5821_v45  ;;  %6728 = vmatpush.bf16.msra.mxu2 %v11038_v15  ;;  %v6412_v20 = vperm.slane %v6380_v26, 0  ;;  %v11034_v21 = vld [vmem:[%s15164_s11 + $0x18] sm:$0xff]  ;;  %v6378_v24 = vrot.slane %v13779_v37, 1 }
0x15f9   :  { %v5993_v16 = vrot.slane %v5992_v42, 1  ;;  %v5890_v46 = vmul.f32 %v13752_v39, %v5881_v14  ;;  %6677 = vmatpush.bf16.msrb.mxu1 %v11034_v21  ;;  %vm6078_vm5 = vweird.f32 %v13811_v32  ;;  %v13970_v17 = vpop.eup %11456  ;;  %v6107_v3 = vadd.f32 %v13827_v48, %v6106_v49 }
0x15fa   :  { %v5976_v60 = vadd.f32 %v5975_v47, %v5974_v54  ;;  %v5826_v22 = vsel %vm5825_vm1, %v13858_v50, %v5822_v36  ;;  %v11031_v50 = vld [vmem:[%s15164_s11] sm:$0xff]  ;;  %v6071_v54 = vsel %vm13909_vm11, %v6070_v43, %v6066_v1  ;;  %v6426_v36 = vperm.slane %v6386_v61, 0  ;;  %vm14006_vm11 = vmor %vm6078_vm5, %vm6079_vm6 }
0x15fb   :  { %v5994_v11 = vadd.f32 %v5993_v16, %v5992_v42  ;;  %v5899_v56 = vadd.f32 %v13757_v6, %v5890_v46  ;;  %v5879_v41 = vmul.f32 %v5826_v22, %v13710_v55  ;;  %v11037_v55 = vld [vmem:[%s15164_s11 + $0x30] sm:$0xff]  ;;  %6625 = vmatpush.bf16.msra.mxu3 %v11031_v50  ;;  %v6394_v42 = vperm.slane %v6370_v63, 0 }
0x15fc   :  { %v5977_v62 = vrot.slane %v5976_v60, 2  ;;  %6729 = vmatpush.bf16.msra.mxu2 %v11037_v55  ;;  %v6410_v4 = vperm.slane %v6378_v24, 0  ;;  %v6076_v23 = vmul.f32 %v13833_v51, %v6075_v58  ;;  %v5848_v16 = vmul.f32 %v13970_v17, %v13917_v31 }
0x15fd   :  { %v6102_v2 = vmul.f32 %v13872_v27, %v5994_v11  ;;  %v5963_v30 = vmul.f32 %v13802_v52, %v5899_v56  ;;  %v5888_v38 = vmul.f32 %v13752_v39, %v5879_v41  ;;  %v6111_v9 = vsel %vm13982_vm10, %v13827_v48, %v6107_v3 }
0x15fe   :  { %v5978_v28 = vadd.f32 %v5977_v62, %v5976_v60  ;;  %v6115_v1 = vor.u32 1.1754944e-38, %v6114_v25  ;;  %v6082_v46 = vand.u32 2147483647, %v13811_v32  ;;  %v6373_v43 = vrot.slane %v13777_v5, 4 }
0x15ff   :  { %v6445_v27 = vsel %vm6441_vm13, %v6102_v2, %v6396_v10  ;;  %v5995_v52 = vsel %vm421_vm4, %v5963_v30, 0.0  ;;  %v5897_v40 = vadd.f32 %v13757_v6, %v5888_v38  ;;  %v6084_v10 = vand.u32 2147483648, %v13811_v32 }
0x1600   :  { %v6453_v29 = vsel %vm6191_vm7, %v6445_v27, %v6412_v20  ;;  %v5979_v59 = vrot.slane %v5978_v28, 1  ;;  %v5996_v12 = vrot.slane %v5995_v52, 4  ;;  %v6389_v56 = vrot.slane %v13781_v7, 4 }
0x1601   :  { %v6461_v44 = vsel %vm6192_vm8, %v6453_v29, %v6428_v33  ;;  %v5961_v45 = vmul.f32 %v13729_v35, %v5897_v40  ;;  %v6381_v41 = vrot.slane %v13779_v37, 4  ;;  %v6077_v62 = vadd.f32 %v13833_v51, %v6076_v23 }
0x1602   :  { %6572 = vst [vmem:[#allocation1 + $0x11] ss:$2 sm:$0xff] %v6461_v44  ;;  %v5980_v14 = vadd.f32 %v5979_v59, %v5978_v28  ;;  %v5997_v47 = vadd.f32 %v5996_v12, %v5995_v52  ;;  %v5849_v21 = vmul.f32 %v13970_v17, %v5848_v16  ;;  %v6116_v55 = vsel %vm13959_vm2, %v6115_v1, %v6111_v9 }
0x1603   :  { %v5981_v35 = vsel %vm421_vm4, %v5961_v45, 0.0  ;;  %vm14013_vm14 = vcmp.eq.f32.partialorder %v6082_v46, 8.507059e+37  ;;  %v6085_v2 = vor.u32 1.1754944e-38, %v6084_v10  ;;  %v6371_v30 = vrot.slane %v13777_v5, 2 }
0x1604   :  { %v6072_v15 = vmul.f32 %v6071_v54, %v5980_v14  ;;  %v5998_v57 = vrot.slane %v5997_v47, 2  ;;  %v5982_v8 = vrot.slane %v5981_v35, 4  ;;  %v6397_v38 = vperm.slane %v6373_v43, 0 }
0x1605   :  { %v6387_v61 = vrot.slane %v13781_v7, 2  ;;  %v6379_v28 = vrot.slane %v13779_v37, 2  ;;  %v6413_v58 = vperm.slane %v6381_v41, 0  ;;  %v6081_v0 = vsel %vm14006_vm11, %v13833_v51, %v6077_v62 }
0x1606   :  { %v6443_v60 = vsel %vm6441_vm13, %v6072_v15, %v6394_v42  ;;  %v5999_v22 = vadd.f32 %v5998_v57, %v5997_v47  ;;  %v5983_v11 = vadd.f32 %v5982_v8, %v5981_v35  ;;  %v6429_v24 = vperm.slane %v6389_v56, 0 }
0x1607   :  { %v6451_v20 = vsel %vm6191_vm7, %v6443_v60, %v6410_v4  ;;  %v5850_v40 = vmul.f32 0.5, %v5849_v21  ;;  %v6395_v29 = vperm.slane %v6371_v30, 0  ;;  %v6411_v44 = vperm.slane %v6379_v28, 0 }
0x1608   :  { %v6459_v48 = vsel %vm6192_vm8, %v6451_v20, %v6426_v36  ;;  %v6000_v49 = vrot.slane %v5999_v22, 1  ;;  %v5984_v50 = vrot.slane %v5983_v11, 2  ;;  %v6086_v45 = vsel %vm14013_vm14, %v6085_v2, %v6081_v0 }
0x1609   :  { %6568 = vst [vmem:[#allocation1 + $0x1] ss:$2 sm:$0xff] %v6459_v48  ;;  %v6427_v42 = vperm.slane %v6387_v61, 0  ;;  %v5851_v26 = vsub.f32 1.5, %v5850_v40  ;;  %v14030_v36 = vrot.slane %v13745_v18, 5  ;;  %vm5854_vm15 = vweird.f32 %v13970_v17 }
0x160a   :  { %v6001_v32 = vadd.f32 %v6000_v49, %v5999_v22  ;;  %v5985_v63 = vadd.f32 %v5984_v50, %v5983_v11  ;;  %vm5853_vm0 = vweird.f32 %v13917_v31  ;;  %v14041_v16 = vrot.slane %v13745_v18, 6 }
0x160b   :  { %v5852_v15 = vmul.f32 %v13970_v17, %v5851_v26  ;;  %11458 = vrcp.f32 %v14030_v36  ;;  %vm5855_vm1 = vmor %vm5853_vm0, %vm5854_vm15  ;;  %vm6123_vm10 = vweird.f32 %v14030_v36  ;;  %v6129_v0 = vand.u32 2147483648, %v14030_v36 }
0x160c   :  { %v6117_v27 = vmul.f32 %v6116_v55, %v6001_v32  ;;  %v5986_v52 = vrot.slane %v5985_v63, 1  ;;  %v14063_v55 = vrot.slane %v13745_v18, 7  ;;  %v6127_v18 = vand.u32 2147483647, %v14030_v36 }
0x160d   :  { %v5856_v8 = vsel %vm5855_vm1, %v13970_v17, %v5852_v15 }
0x160e   :  { %v6446_v59 = vsel %vm6441_vm13, %v6117_v27, %v6397_v38  ;;  %v5987_v12 = vadd.f32 %v5986_v52, %v5985_v63  ;;  %v5882_v9 = vmul.f32 %v5856_v8, %v13719_v19  ;;  %vm14082_vm15 = vcmp.eq.f32.partialorder %v6127_v18, 8.507059e+37 }
0x160f   :  { %v6454_v3 = vsel %vm6191_vm7, %v6446_v59, %v6413_v58 }
0x1610   :  { %v6462_v54 = vsel %vm6192_vm8, %v6454_v3, %v6429_v24  ;;  %v6087_v14 = vmul.f32 %v6086_v45, %v5987_v12  ;;  %v6581_v46 = vld.sshfl [vmem:[#allocation1] sm:$0xff pattern:$0x75316420]  ;;  %v5891_v17 = vmul.f32 %v13752_v39, %v5882_v9  ;;  %v5951_v3 = vpop.permute.xlu1 %5950 }
0x1611   :  { %6574 = vst [vmem:[#allocation1 + $0x20] ss:$2 sm:$0xff] %v6462_v54  ;;  %v14044_v1 = vpop.eup %11458 }
0x1612   :  { %v6444_v51 = vsel %vm6441_vm13, %v6087_v14, %v6395_v29  ;;  %v5777_v47 = vpop.xlane.xlu0 %5776  ;;  %v6119_v19 = vmul.f32 %v14044_v1, %v14030_v36  ;;  %v5900_v62 = vadd.f32 %v13757_v6, %v5891_v17  ;;  %vm6124_vm11 = vweird.f32 %v14044_v1 }
0x1613   :  { %v6452_v4 = vsel %vm6191_vm7, %v6444_v51, %v6411_v44  ;;  %v5787_v23 = vmul.f32 %v5777_v47, %v13661_v34  ;;  %vm14077_vm14 = vmor %vm6123_vm10, %vm6124_vm11  ;;  %v6374_v51 = vrot.slane %v13777_v5, 5  ;;  %v6382_v47 = vrot.slane %v13779_v37, 5 }
0x1614   :  { %v6460_v35 = vsel %vm6192_vm8, %v6452_v4, %v6427_v42  ;;  %v6120_v20 = vsub.f32 1.0, %v6119_v19  ;;  %v6130_v42 = vor.u32 1.1754944e-38, %v6129_v0  ;;  %v6144_v17 = vand.u32 2147483648, %v14041_v16 }
0x1615   :  { %6570 = vst [vmem:[#allocation1 + $0x10] ss:$2 sm:$0xff] %v6460_v35  ;;  %v5795_v57 = vadd.f32 1e-05, %v5787_v23  ;;  %v6390_v23 = vrot.slane %v13781_v7, 5 }
0x1616   :  { %v6121_v2 = vmul.f32 %v14044_v1, %v6120_v20  ;;  %v6142_v20 = vand.u32 2147483647, %v14041_v16  ;;  %v6157_v29 = vand.u32 2147483647, %v14063_v55 }
0x1617   :  { %11460 = vrsqrt.f32 %v5795_v57  ;;  %vm5863_vm5 = vweird.f32 %v5795_v57 }
0x1618   :  { %11462 = vrcp.f32 %v14041_v16  ;;  %v6122_v52 = vadd.f32 %v14044_v1, %v6121_v2  ;;  %vm6143_vm11 = vcmp.eq.f32.partialorder %v6142_v20, 8.507059e+37 }
0x161a   :  { %v6126_v26 = vsel %vm14077_vm14, %v14044_v1, %v6122_v52  ;;  %vm6153_vm14 = vweird.f32 %v14063_v55 }
0x161c   :  { %v6582_v10 = vld.sshfl [vmem:[#allocation1 + $0x10] sm:$0xff pattern:$0x75316420]  ;;  %v5780_v43 = vpop.xlane.xlu2 %5779 }
0x161d   :  { %v11461_v60 = vpop.eup %11460  ;;  %v5788_v22 = vmul.f32 %v5780_v43, %v13661_v34  ;;  %v14047_v31 = vpack.c.bf16 %v6582_v10, %v6581_v46  ;;  %v6131_v46 = vsel %vm14082_vm15, %v6130_v42, %v6126_v26  ;;  %v6414_v10 = vperm.slane %v6382_v47, 0 }
0x161e   :  { %v5858_v11 = vmul.f32 %v11461_v60, %v5795_v57  ;;  %vm5864_vm2 = vweird.f32 %v11461_v60  ;;  %v14060_v25 = vpop.eup %11462  ;;  %v6384_v47 = vrot.slane %v13779_v37, 7 }
0x161f   :  { %v5796_v56 = vadd.f32 1e-05, %v5788_v22  ;;  %10487 = vmatmul.msk.bf16.vlgmr.msra.gmra.mxu3 %vm421_vm4, %v14047_v31  ;;  %10501 = vmatmul.msk.bf16.vlgmr.msrb.gmra.mxu1 %vm421_vm4, %v14047_v31  ;;  %vm5865_vm6 = vmor %vm5863_vm5, %vm5864_vm2  ;;  %v6134_v38 = vmul.f32 %v14060_v25, %v14041_v16  ;;  %vm6138_vm2 = vweird.f32 %v14041_v16  ;;  %vm6139_vm5 = vweird.f32 %v14060_v25 }
0x1620   :  { %v5859_v41 = vmul.f32 %v11461_v60, %v5858_v11  ;;  %10515 = vmatmul.msk.bf16.vlgmr.msra.gmra.mxu2 %vm421_vm4, %v14047_v31  ;;  %v6398_v11 = vperm.slane %v6374_v51, 0  ;;  %vm14113_vm10 = vmor %vm6138_vm2, %vm6139_vm5  ;;  %v6376_v51 = vrot.slane %v13777_v5, 7  ;;  %vm9280_vm2 = vcmask 1045509  }
0x1621   :  { %11464 = vrsqrt.f32 %v5796_v56  ;;  %v6135_v59 = vsub.f32 1.0, %v6134_v38  ;;  %vm5873_vm1 = vweird.f32 %v5796_v56  ;;  %vm9283_vm5 = vcmask 1046534  }
0x1622   :  { %v5860_v34 = vmul.f32 0.5, %v5859_v41  ;;  %11466 = vrcp.f32 %v14063_v55 }
0x1623   :  { %v6136_v57 = vmul.f32 %v14060_v25, %v6135_v59 }
0x1624   :  { %v5861_v48 = vsub.f32 1.5, %v5860_v34  ;;  %v5944_v49 = vpop.permute.xlu2 %5943 }
0x1625   :  { %v5964_v50 = vmul.f32 %v5944_v49, %v5900_v62  ;;  %v6137_v34 = vadd.f32 %v14060_v25, %v6136_v57  ;;  %v5958_v2 = vpop.permute.xlu0 %5957 }
0x1626   :  { %v5862_v21 = vmul.f32 %v11461_v60, %v5861_v48 }
0x1627   :  { %v11465_v33 = vpop.eup %11464  ;;  %v6002_v30 = vsel %vm421_vm4, %v5964_v50, 0.0  ;;  %v6141_v16 = vsel %vm14113_vm10, %v14060_v25, %v6137_v34 }
0x1628   :  { %v5866_v32 = vsel %vm5865_vm6, %v11461_v60, %v5862_v21  ;;  %v5868_v63 = vmul.f32 %v11465_v33, %v5796_v56  ;;  %v6003_v61 = vrot.slane %v6002_v30, 4  ;;  %vm5874_vm0 = vweird.f32 %v11465_v33  ;;  %v14091_v36 = vpop.eup %11466 }
0x1629   :  { %v5883_v28 = vmul.f32 %v5866_v32, %v13732_v13  ;;  %vm5875_vm6 = vmor %vm5873_vm1, %vm5874_vm0  ;;  %v6149_v60 = vmul.f32 %v14091_v36, %v14063_v55  ;;  %v6430_v56 = vperm.slane %v6390_v23, 0  ;;  %v6375_v32 = vrot.slane %v13777_v5, 6 }
0x162a   :  { %v5869_v58 = vmul.f32 %v11465_v33, %v5868_v63  ;;  %v6004_v24 = vadd.f32 %v6003_v61, %v6002_v30  ;;  %v6145_v30 = vor.u32 1.1754944e-38, %v6144_v17  ;;  %v6383_v61 = vrot.slane %v13779_v37, 6  ;;  %v11165_v37 = vld [vmem:[%s15163_s12 + $0x1] ss:$0 sm:$0xff] }
0x162b   :  { %v5892_v27 = vmul.f32 %v13752_v39, %v5883_v28  ;;  %v6391_v28 = vrot.slane %v13781_v7, 6  ;;  %vm6154_vm15 = vweird.f32 %v14091_v36  ;;  %vm6158_vm1 = vcmp.eq.f32.partialorder %v6157_v29, 8.507059e+37 }
0x162c   :  { %v5870_v40 = vmul.f32 0.5, %v5869_v58  ;;  %v6005_v13 = vrot.slane %v6004_v24, 2  ;;  %vm6155_vm0 = vmor %vm6153_vm14, %vm6154_vm15 }
0x162d   :  { %v5901_v12 = vadd.f32 %v13757_v6, %v5892_v27  ;;  %v6399_v27 = vperm.slane %v6375_v32, 0  ;;  %v6431_v59 = vperm.slane %v6391_v28, 0  ;;  %v11167_v28 = vld [vmem:[%s15163_s12 + $0x2] ss:$0 sm:$0xff] }
0x162e   :  { %v5871_v45 = vsub.f32 1.5, %v5870_v40  ;;  %v6006_v54 = vadd.f32 %v6005_v13, %v6004_v24  ;;  %v6146_v24 = vsel %vm6143_vm11, %v6145_v30, %v6141_v16  ;;  %v6415_v40 = vperm.slane %v6383_v61, 0 }
0x162f   :  { %v5965_v14 = vmul.f32 %v5951_v3, %v5901_v12  ;;  %v6159_v13 = vand.u32 2147483648, %v14063_v55 }
0x1630   :  { %v5872_v4 = vmul.f32 %v11465_v33, %v5871_v45  ;;  %v6007_v35 = vrot.slane %v6006_v54, 1 }
0x1631   :  { %v6009_v15 = vsel %vm421_vm4, %v5965_v14, 0.0  ;;  %v6160_v14 = vor.u32 1.1754944e-38, %v6159_v13 }
0x1632   :  { %v6010_v8 = vrot.slane %v6009_v15, 4  ;;  %v6008_v9 = vadd.f32 %v6007_v35, %v6006_v54  ;;  %v5876_v1 = vsel %vm5875_vm6, %v11465_v33, %v5872_v4  ;;  %v6150_v33 = vsub.f32 1.0, %v6149_v60 }
0x1633   :  { %v5884_v43 = vmul.f32 %v5876_v1, %v13739_v53  ;;  %v6392_v4 = vrot.slane %v13781_v7, 7  ;;  %vm9286_vm6 = vcmask 1047559  }
0x1634   :  { %v6011_v22 = vadd.f32 %v6010_v8, %v6009_v15  ;;  %v6132_v19 = vmul.f32 %v6131_v46, %v6008_v9  ;;  %v6151_v58 = vmul.f32 %v14091_v36, %v6150_v33  ;;  %v6400_v15 = vperm.slane %v6376_v51, 0 }
0x1635   :  { %v5893_v41 = vmul.f32 %v13752_v39, %v5884_v43  ;;  %v6416_v8 = vperm.slane %v6384_v47, 0  ;;  %v6432_v9 = vperm.slane %v6392_v4, 0 }
0x1636   :  { %v6012_v62 = vrot.slane %v6011_v22, 2  ;;  %v6447_v48 = vsel %vm6441_vm13, %v6132_v19, %v6398_v11  ;;  %v6152_v44 = vadd.f32 %v14091_v36, %v6151_v58 }
0x1637   :  { %v6455_v49 = vsel %vm6191_vm7, %v6447_v48, %v6414_v10  ;;  %v5902_v50 = vadd.f32 %v13757_v6, %v5893_v41 }
0x1638   :  { %v6013_v39 = vadd.f32 %v6012_v62, %v6011_v22  ;;  %v6463_v21 = vsel %vm6192_vm8, %v6455_v49, %v6430_v56  ;;  %v6156_v26 = vsel %vm6155_vm0, %v14091_v36, %v6152_v44  ;;  %v14157_v56 = vld [vmem:[%s15163_s12] ss:$0 sm:$0xff] }
0x1639   :  { %6576 = vst [vmem:[#allocation1 + $0x21] ss:$2 sm:$0xff] %v6463_v21  ;;  %v5966_v38 = vmul.f32 %v5958_v2, %v5902_v50  ;;  %v6161_v35 = vsel %vm6158_vm1, %v6160_v14, %v6156_v26 }
0x163a   :  { %v6014_v63 = vrot.slane %v6013_v39, 1 }
0x163b   :  { %v6016_v6 = vsel %vm421_vm4, %v5966_v38, 0.0 }
0x163c   :  { %v6015_v18 = vadd.f32 %v6014_v63, %v6013_v39  ;;  %v6017_v0 = vrot.slane %v6016_v6, 4 }
0x163e   :  { %v6147_v52 = vmul.f32 %v6146_v24, %v6015_v18  ;;  %v6018_v25 = vadd.f32 %v6017_v0, %v6016_v6 }
0x1640   :  { %v6448_v12 = vsel %vm6441_vm13, %v6147_v52, %v6399_v27  ;;  %v6019_v3 = vrot.slane %v6018_v25, 2  ;;  %v6583_v10 = vld.sshfl [vmem:[#allocation1 + $0x20] sm:$0xff pattern:$0x75316420] }
0x1641   :  { %v6456_v45 = vsel %vm6191_vm7, %v6448_v12, %v6415_v40 }
0x1642   :  { %v6464_v42 = vsel %vm6192_vm8, %v6456_v45, %v6431_v59  ;;  %v6020_v54 = vadd.f32 %v6019_v3, %v6018_v25 }
0x1643   :  { %6578 = vst [vmem:[#allocation1 + $0x30] ss:$2 sm:$0xff] %v6464_v42 }
0x1644   :  { %v6021_v55 = vrot.slane %v6020_v54, 1 }
0x1646   :  { %v6022_v23 = vadd.f32 %v6021_v55, %v6020_v54 }
0x1648   :  { %v6162_v57 = vmul.f32 %v6161_v35, %v6022_v23 }
0x164a   :  { %v6449_v1 = vsel %vm6441_vm13, %v6162_v57, %v6400_v15  ;;  %vm7034_vm13 = vcmask 31744  }
0x164b   :  { %v6457_v46 = vsel %vm6191_vm7, %v6449_v1, %v6416_v8 }
0x164c   :  { %v6465_v36 = vsel %vm6192_vm8, %v6457_v46, %v6432_v9  ;;  %vm6929_vm8 = vcmask 27648  }
0x164d   :  { %6580 = vst [vmem:[#allocation1 + $0x31] ss:$2 sm:$0xff] %v6465_v36 }
0x1654   :  { %v6584_v5 = vld.sshfl [vmem:[#allocation1 + $0x30] sm:$0xff pattern:$0x75316420] }
0x1655   :  { %v14143_v43 = vpack.c.bf16 %v6584_v5, %v6583_v10 }
0x1657   :  { %10488 = vmatmul.msk.bf16.gmra.mxu3 %vm421_vm4, %v14143_v43  ;;  %10502 = vmatmul.msk.bf16.gmra.mxu1 %vm421_vm4, %v14143_v43 }
0x1658   :  { %10516 = vmatmul.msk.bf16.gmra.mxu2 %vm421_vm4, %v14143_v43 }
0x169c   :  { %v6679_v7 = vpop.f32.mrf.mxu1 }
0x169d   :  { %v6680_v60 = vadd.f32 %v11165_v37, %v6679_v7 }
0x169f   :  { %v6693_v22 = vrot.slane %v6680_v60, 4  ;;  %v6761_v11 = vpack.c.bf16 %v6680_v60, %v6680_v60 }
0x16a1   :  { %v6762_v19 = vpack.c.bf16 %v6693_v22, %v6693_v22  ;;  %v6773_v17 = vsel %vm5519_vm9, %v6761_v11, 0 }
0x16a2   :  { %v6627_v41 = vpop.f32.mrf.mxu3  ;;  %6782 = vmatpush.bf16.xpose.msrb.mxu3 %v6773_v17 }
0x16a3   :  { %v6628_v34 = vadd.f32 %v14157_v56, %v6627_v41  ;;  %v6792_v20 = vsel %vm5519_vm9, %v6762_v19, 0  ;;  %v6731_v6 = vpop.f32.mrf.mxu2 }
0x16a4   :  { %v6681_v62 = vpop.f32.mrf.mxu1  ;;  %6801 = vmatpush.bf16.xpose.msrb.mxu0 %v6792_v20  ;;  %v6732_v18 = vadd.f32 %v11167_v28, %v6731_v6 }
0x16a5   :  { %v6641_v48 = vrot.slane %v6628_v34, 4  ;;  %v6682_v53 = vadd.f32 %v11165_v37, %v6681_v62  ;;  %v6753_v49 = vpack.c.bf16 %v6628_v34, %v6628_v34 }
0x16a6   :  { %v6745_v0 = vrot.slane %v6732_v18, 4  ;;  %v7026_v52 = vpack.c.bf16 %v6732_v18, %v6732_v18 }
0x16a7   :  { %v6694_v50 = vrot.slane %v6682_v53, 4  ;;  %v6763_v39 = vpack.c.bf16 %v6682_v53, %v6682_v53  ;;  %v6754_v21 = vpack.c.bf16 %v6641_v48, %v6641_v48 }
0x16a8   :  { %v7027_v29 = vpack.c.bf16 %v6745_v0, %v6745_v0  ;;  %v7039_v3 = vsel %vm6191_vm7, %v7026_v52, 0 }
0x16a9   :  { %v6764_v33 = vpack.c.bf16 %v6694_v50, %v6694_v50  ;;  %10517 = vmatmul.msk.bf16.vlgmr.msrb.gmra.mxu3 %vm5519_vm9, %v6753_v49  ;;  %v6811_v2 = vsel %vm5519_vm9, %v6763_v39, 0 }
0x16aa   :  { %v6629_v30 = vpop.f32.mrf.mxu3  ;;  %6820 = vmatpush.bf16.xpose.msra.mxu1 %v6811_v2  ;;  %v7058_v55 = vsel %vm6191_vm7, %v7027_v29, 0 }
0x16ab   :  { %v6630_v38 = vadd.f32 %v14157_v56, %v6629_v30  ;;  %10518 = vmatmul.msk.bf16.vlgmr.msrb.gmra.mxu0 %vm5519_vm9, %v6754_v21  ;;  %v6830_v32 = vsel %vm5519_vm9, %v6764_v33, 0  ;;  %v6733_v58 = vpop.f32.mrf.mxu2 }
0x16ac   :  { %6839 = vmatpush.bf16.xpose.msrb.mxu2 %v6830_v32  ;;  %v6734_v13 = vadd.f32 %v11167_v28, %v6733_v58 }
0x16ad   :  { %v6642_v16 = vrot.slane %v6630_v38, 4  ;;  %v6755_v63 = vpack.c.bf16 %v6630_v38, %v6630_v38 }
0x16ae   :  { %v6746_v14 = vrot.slane %v6734_v13, 4  ;;  %v7028_v23 = vpack.c.bf16 %v6734_v13, %v6734_v13 }
0x16af   :  { %v6756_v61 = vpack.c.bf16 %v6642_v16, %v6642_v16 }
0x16b0   :  { %v7029_v1 = vpack.c.bf16 %v6746_v14, %v6746_v14 }
0x16b1   :  { %10519 = vmatmul.msk.bf16.vlgmr.msra.gmra.mxu1 %vm5519_vm9, %v6755_v63 }
0x16b2   :  { %v7096_v34 = vsel %vm6191_vm7, %v7029_v1, 0 }
0x16b3   :  { %10520 = vmatmul.msk.bf16.vlgmr.msrb.gmra.mxu2 %vm5519_vm9, %v6756_v61 }
0x16d4   :  { %v6684_v24 = vpop.f32.mrf.mxu1 }
0x16d5   :  { %v6685_v27 = vadd.f32 %v11165_v37, %v6684_v24 }
0x16d7   :  { %v6695_v25 = vrot.slane %v6685_v27, 4  ;;  %v6765_v40 = vpack.c.bf16 %v6685_v27, %v6685_v27 }
0x16d9   :  { %v6766_v59 = vpack.c.bf16 %v6695_v25, %v6695_v25  ;;  %v6849_v12 = vsel %vm5519_vm9, %v6765_v40, 0 }
0x16da   :  { %v6632_v44 = vpop.f32.mrf.mxu3  ;;  %6858 = vmatpush.bf16.xpose.msra.mxu3 %v6849_v12 }
0x16db   :  { %v6633_v45 = vadd.f32 %v14157_v56, %v6632_v44  ;;  %v6736_v42 = vpop.f32.mrf.mxu2  ;;  %v6868_v54 = vsel %vm5519_vm9, %v6766_v59, 0 }
0x16dc   :  { %v6737_v26 = vadd.f32 %v11167_v28, %v6736_v42  ;;  %v6686_v51 = vpop.f32.mrf.mxu1  ;;  %6877 = vmatpush.bf16.xpose.msra.mxu0 %v6868_v54 }
0x16dd   :  { %v6643_v47 = vrot.slane %v6633_v45, 4  ;;  %v6687_v4 = vadd.f32 %v11165_v37, %v6686_v51  ;;  %v6757_v57 = vpack.c.bf16 %v6633_v45, %v6633_v45  ;;  %v7077_v37 = vsel %vm6191_vm7, %v7028_v23, 0 }
0x16de   :  { %v6747_v35 = vrot.slane %v6737_v26, 4  ;;  %v7030_v15 = vpack.c.bf16 %v6737_v26, %v6737_v26 }
0x16df   :  { %v6696_v8 = vrot.slane %v6687_v4, 4  ;;  %v6767_v9 = vpack.c.bf16 %v6687_v4, %v6687_v4  ;;  %v6758_v36 = vpack.c.bf16 %v6643_v47, %v6643_v47 }
0x16e0   :  { %v7031_v46 = vpack.c.bf16 %v6747_v35, %v6747_v35  ;;  %v7115_v7 = vsel %vm6191_vm7, %v7030_v15, 0 }
0x16e1   :  { %v6768_v10 = vpack.c.bf16 %v6696_v8, %v6696_v8  ;;  %10521 = vmatmul.msk.bf16.vlgmr.msra.gmra.mxu3 %vm5519_vm9, %v6757_v57  ;;  %v6887_v5 = vsel %vm5519_vm9, %v6767_v9, 0 }
0x16e2   :  { %7048 = vmatpush.bf16.msrb.mxu3 %v7039_v3  ;;  %v6634_v60 = vpop.f32.mrf.mxu3  ;;  %6896 = vmatpush.bf16.xpose.msrb.mxu1 %v6887_v5  ;;  %v7134_v17 = vsel %vm6191_vm7, %v7031_v46, 0 }
0x16e3   :  { %v6635_v22 = vadd.f32 %v14157_v56, %v6634_v60  ;;  %v6738_v11 = vpop.f32.mrf.mxu2  ;;  %10522 = vmatmul.msk.bf16.vlgmr.msra.gmra.mxu0 %vm5519_vm9, %v6758_v36  ;;  %v6906_v19 = vsel %vm5519_vm9, %v6768_v10, 0 }
0x16e4   :  { %7067 = vmatpush.bf16.msrb.mxu0 %v7058_v55  ;;  %v6739_v41 = vadd.f32 %v11167_v28, %v6738_v11  ;;  %6915 = vmatpush.bf16.xpose.msra.mxu2 %v6906_v19 }
0x16e5   :  { %v6644_v20 = vrot.slane %v6635_v22, 4  ;;  %v6759_v53 = vpack.c.bf16 %v6635_v22, %v6635_v22 }
0x16e6   :  { %7124 = vmatpush.bf16.msra.mxu3 %v7115_v7  ;;  %v6748_v62 = vrot.slane %v6739_v41, 4  ;;  %v7032_v48 = vpack.c.bf16 %v6739_v41, %v6739_v41 }
0x16e7   :  { %v6760_v56 = vpack.c.bf16 %v6644_v20, %v6644_v20 }
0x16e8   :  { %7143 = vmatpush.bf16.msra.mxu0 %v7134_v17  ;;  %v7033_v49 = vpack.c.bf16 %v6748_v62, %v6748_v62  ;;  %v7153_v50 = vsel %vm6191_vm7, %v7032_v48, 0 }
0x16e9   :  { %10523 = vmatmul.msk.bf16.vlgmr.msrb.gmra.mxu1 %vm5519_vm9, %v6759_v53 }
0x16ea   :  { %7086 = vmatpush.bf16.msra.mxu1 %v7077_v37  ;;  %v7172_v39 = vsel %vm6191_vm7, %v7033_v49, 0 }
0x16eb   :  { %10524 = vmatmul.msk.bf16.vlgmr.msra.gmra.mxu2 %vm5519_vm9, %v6760_v56 }
0x16ec   :  { %7105 = vmatpush.bf16.msrb.mxu2 %v7096_v34 }
0x16ee   :  { %7162 = vmatpush.bf16.msrb.mxu1 %v7153_v50 }
0x16f0   :  { %7181 = vmatpush.bf16.msra.mxu2 %v7172_v39 }
0x1728   :  { %v6803_v21 = vpop.f32.mrf.mxu0 }
0x1729   :  { %v6922_v33 = vmul.f32 0.28867513, %v6803_v21 }
0x172b   :  { %v6933_v2 = vsel %vm6929_vm8, %v6922_v33, -inf }
0x172c   :  { %v6784_v30 = vpop.f32.mrf.mxu3  ;;  %6934 = vmax.xlane.f32.xlu2 %v6933_v2 }
0x172d   :  { %v6921_v38 = vmul.f32 0.28867513, %v6784_v30 }
0x172e   :  { %v6822_v32 = vpop.f32.mrf.mxu1 }
0x172f   :  { %v6930_v16 = vsel %vm6929_vm8, %v6921_v38, -inf  ;;  %v6923_v11 = vmul.f32 0.28867513, %v6822_v32 }
0x1730   :  { %6931 = vmax.xlane.f32.xlu1 %v6930_v16  ;;  %v6805_v63 = vpop.f32.mrf.mxu0 }
0x1731   :  { %v6936_v17 = vsel %vm6929_vm8, %v6923_v11, -inf }
0x1734   :  { %v6786_v61 = vpop.f32.mrf.mxu3 }
0x1735   :  { %v11045_v61 = vld [vmem:[%s15164_s11 + $0x70] sm:$0xff] }
0x1736   :  { %v6824_v6 = vpop.f32.mrf.mxu1  ;;  %v6841_v28 = vpop.f32.mrf.mxu2 }
0x1737   :  { %v6924_v23 = vmul.f32 0.28867513, %v6841_v28  ;;  %v11044_v6 = vld [vmem:[%s15164_s11 + $0x68] sm:$0xff]  ;;  %v11042_v28 = vld [vmem:[%s15164_s11 + $0x58] sm:$0xff] }
0x1739   :  { %v6939_v35 = vsel %vm6929_vm8, %v6924_v23, -inf }
0x173e   :  { %v6843_v18 = vpop.f32.mrf.mxu2 }
0x173f   :  { %v11043_v18 = vld [vmem:[%s15164_s11 + $0x60] sm:$0xff] }
0x1760   :  { %v6879_v58 = vpop.f32.mrf.mxu0 }
0x1761   :  { %v6926_v0 = vmul.f32 0.28867513, %v6879_v58  ;;  %v11041_v58 = vld [vmem:[%s15164_s11 + $0x50] sm:$0xff] }
0x1763   :  { %v6945_v24 = vsel %vm6929_vm8, %v6926_v0, -inf }
0x1764   :  { %v6860_v27 = vpop.f32.mrf.mxu3  ;;  %6946 = vmax.xlane.f32.xlu0 %v6945_v24 }
0x1765   :  { %v6925_v52 = vmul.f32 0.28867513, %v6860_v27 }
0x1766   :  { %v6898_v25 = vpop.f32.mrf.mxu1 }
0x1767   :  { %v6942_v40 = vsel %vm6929_vm8, %v6925_v52, -inf  ;;  %v6927_v15 = vmul.f32 0.28867513, %v6898_v25 }
0x1768   :  { %6943 = vmax.xlane.f32.xlu2 %v6942_v40  ;;  %v6881_v29 = vpop.f32.mrf.mxu0 }
0x1769   :  { %v6948_v57 = vsel %vm6929_vm8, %v6927_v15, -inf }
0x176c   :  { %v6862_v13 = vpop.f32.mrf.mxu3 }
0x176e   :  { %v6900_v59 = vpop.f32.mrf.mxu1  ;;  %v6917_v12 = vpop.f32.mrf.mxu2 }
0x176f   :  { %v6928_v37 = vmul.f32 0.28867513, %v6917_v12 }
0x1771   :  { %v6951_v19 = vsel %vm6929_vm8, %v6928_v37, -inf }
0x1776   :  { %v6919_v44 = vpop.f32.mrf.mxu2 }
0x179f   :  { %v6935_v3 = vpop.xlane.xlu2 %6934 }
0x17a0   :  { %v6955_v45 = vsub.f32 %v6922_v33, %v6935_v3 }
0x17a2   :  { %v6964_v42 = vmul.f32 1.442695, %v6955_v45 }
0x17a3   :  { %v6932_v54 = vpop.xlane.xlu1 %6931 }
0x17a4   :  { %11468 = vpow2.f32 %v6964_v42  ;;  %v6954_v14 = vsub.f32 %v6921_v38, %v6932_v54 }
0x17a6   :  { %v6962_v26 = vmul.f32 1.442695, %v6954_v14 }
0x17a8   :  { %11470 = vpow2.f32 %v6962_v26 }
0x17aa   :  { %v11469_v51 = vpop.eup %11468 }
0x17ab   :  { %v6981_v55 = vsel %vm6929_vm8, %v11469_v51, 0.0 }
0x17ac   :  { %6982 = vadd.xlane.f32.xlu1 %v6981_v55 }
0x17ae   :  { %v11471_v47 = vpop.eup %11470 }
0x17af   :  { %v6978_v4 = vsel %vm6929_vm8, %v11471_v47, 0.0 }
0x17b0   :  { %6979 = vadd.xlane.f32.xlu0 %v6978_v4 }
0x17b8   :  { %6940 = vmax.xlane.f32.xlu0 %v6939_v35 }
0x17c0   :  { %6949 = vmax.xlane.f32.xlu0 %v6948_v57 }
0x17d7   :  { %v6947_v8 = vpop.xlane.xlu0 %6946 }
0x17d8   :  { %v6959_v9 = vsub.f32 %v6926_v0, %v6947_v8  ;;  %v11040_v0 = vld [vmem:[%s15164_s11 + $0x48] sm:$0xff] }
0x17da   :  { %v6972_v1 = vmul.f32 1.442695, %v6959_v9 }
0x17db   :  { %v6944_v46 = vpop.xlane.xlu2 %6943 }
0x17dc   :  { %11472 = vpow2.f32 %v6972_v1  ;;  %v6958_v36 = vsub.f32 %v6925_v52, %v6944_v46 }
0x17de   :  { %v6970_v10 = vmul.f32 1.442695, %v6958_v36 }
0x17e0   :  { %11474 = vpow2.f32 %v6970_v10 }
0x17e2   :  { %v11473_v5 = vpop.eup %11472 }
0x17e3   :  { %v6993_v7 = vsel %vm6929_vm8, %v11473_v5, 0.0 }
0x17e4   :  { %6994 = vadd.xlane.f32.xlu2 %v6993_v7 }
0x17e6   :  { %v11475_v60 = vpop.eup %11474 }
0x17e7   :  { %v6990_v22 = vsel %vm6929_vm8, %v11475_v60, 0.0 }
0x17e8   :  { %6991 = vadd.xlane.f32.xlu1 %v6990_v22 }
0x17ec   :  { %6952 = vmax.xlane.f32.xlu2 %v6951_v19  ;;  %v11048_v19 = vld [vmem:[%s15164_s11 + $0x88] sm:$0xff] }
0x17f0   :  { %6937 = vmax.xlane.f32.xlu1 %v6936_v17 }
0x181f   :  { %v6983_v41 = vpop.xlane.xlu1 %6982 }
0x1820   :  { %11476 = vrcp.f32 %v6983_v41 }
0x1823   :  { %v6980_v34 = vpop.xlane.xlu0 %6979 }
0x1824   :  { %11478 = vrcp.f32 %v6980_v34  ;;  %v11168_v34 = vld [vmem:[%s15163_s12 + $0x4] ss:$0 sm:$0xff] }
0x1826   :  { %v11477_v20 = vpop.eup %11476 }
0x1827   :  { %v7011_v62 = vmul.f32 %v11477_v20, %v11469_v51 }
0x1829   :  { %v7019_v48 = vpack.c.bf16 %v7011_v62, %v7011_v62  ;;  %v11047_v62 = vld [vmem:[%s15164_s11 + $0x80] sm:$0xff] }
0x182a   :  { %v11479_v53 = vpop.eup %11478 }
0x182b   :  { %v7010_v49 = vmul.f32 %v11479_v53, %v11471_v47  ;;  %10526 = vmatmul.msk.bf16.vlgmr.msrb.gmra.mxu0 %vm7034_vm13, %v7019_v48  ;;  %v6941_v56 = vpop.xlane.xlu0 %6940 }
0x182c   :  { %v6957_v50 = vsub.f32 %v6924_v23, %v6941_v56  ;;  %7273 = vmatpush.bf16.msrb.mxu0 %v11045_v61 }
0x182d   :  { %v7018_v39 = vpack.c.bf16 %v7010_v49, %v7010_v49 }
0x182e   :  { %v6968_v21 = vmul.f32 1.442695, %v6957_v50  ;;  %v11046_v50 = vld [vmem:[%s15164_s11 + $0x78] sm:$0xff] }
0x182f   :  { %10525 = vmatmul.msk.bf16.vlgmr.msrb.gmra.mxu3 %vm7034_vm13, %v7018_v39 }
0x1830   :  { %11480 = vpow2.f32 %v6968_v21  ;;  %7274 = vmatpush.bf16.msrb.mxu0 %v11044_v6  ;;  %7221 = vmatpush.bf16.msrb.mxu3 %v11042_v28 }
0x1833   :  { %v6950_v33 = vpop.xlane.xlu0 %6949 }
0x1834   :  { %v6960_v2 = vsub.f32 %v6927_v15, %v6950_v33  ;;  %7275 = vmatpush.bf16.msrb.mxu0 %v11043_v18  ;;  %7222 = vmatpush.bf16.msrb.mxu3 %v11041_v58 }
0x1836   :  { %v11481_v30 = vpop.eup %11480  ;;  %v6974_v38 = vmul.f32 1.442695, %v6960_v2 }
0x1837   :  { %v6987_v32 = vsel %vm6929_vm8, %v11481_v30, 0.0 }
0x1838   :  { %11482 = vpow2.f32 %v6974_v38  ;;  %6988 = vadd.xlane.f32.xlu2 %v6987_v32  ;;  %7223 = vmatpush.bf16.msrb.mxu3 %v11040_v0 }
0x183e   :  { %v14205_v16 = vpop.eup %11482 }
0x183f   :  { %v6996_v63 = vsel %vm6929_vm8, %v14205_v16, 0.0 }
0x1840   :  { %6997 = vadd.xlane.f32.xlu2 %v6996_v63 }
0x1857   :  { %v6995_v24 = vpop.xlane.xlu2 %6994 }
0x1858   :  { %11484 = vrcp.f32 %v6995_v24 }
0x185b   :  { %v6992_v27 = vpop.xlane.xlu1 %6991 }
0x185c   :  { %11486 = vrcp.f32 %v6992_v27 }
0x185e   :  { %v11485_v52 = vpop.eup %11484 }
0x185f   :  { %v7015_v25 = vmul.f32 %v11485_v52, %v11473_v5  ;;  %v6953_v40 = vpop.xlane.xlu2 %6952 }
0x1860   :  { %v6961_v29 = vsub.f32 %v6928_v37, %v6953_v40 }
0x1861   :  { %v7023_v13 = vpack.c.bf16 %v7015_v25, %v7015_v25 }
0x1862   :  { %v11487_v59 = vpop.eup %11486  ;;  %v6976_v12 = vmul.f32 1.442695, %v6961_v29 }
0x1863   :  { %v7014_v44 = vmul.f32 %v11487_v59, %v11475_v60  ;;  %v6938_v3 = vpop.xlane.xlu1 %6937  ;;  %10530 = vmatmul.msk.bf16.vlgmr.msra.gmra.mxu0 %vm7034_vm13, %v7023_v13 }
0x1864   :  { %11488 = vpow2.f32 %v6976_v12  ;;  %v6956_v45 = vsub.f32 %v6923_v11, %v6938_v3 }
0x1865   :  { %v7022_v42 = vpack.c.bf16 %v7014_v44, %v7014_v44 }
0x1866   :  { %v6966_v54 = vmul.f32 1.442695, %v6956_v45 }
0x1867   :  { %10529 = vmatmul.msk.bf16.vlgmr.msra.gmra.mxu3 %vm7034_vm13, %v7022_v42 }
0x1868   :  { %11490 = vpow2.f32 %v6966_v54 }
0x186a   :  { %v11489_v14 = vpop.eup %11488 }
0x186b   :  { %v6999_v26 = vsel %vm6929_vm8, %v11489_v14, 0.0 }
0x186c   :  { %7000 = vadd.xlane.f32.xlu1 %v6999_v26 }
0x186e   :  { %v11491_v51 = vpop.eup %11490 }
0x186f   :  { %v6984_v55 = vsel %vm6929_vm8, %v11491_v51, 0.0 }
0x1870   :  { %6985 = vadd.xlane.f32.xlu0 %v6984_v55 }
0x1873   :  { %10559 = vmatmul.msk.bf16.vlgmr.msrb.gmra.mxu0 %vm421_vm4, %v14047_v31 }
0x1877   :  { %10545 = vmatmul.msk.bf16.vlgmr.msrb.gmra.mxu3 %vm421_vm4, %v14047_v31 }
0x1883   :  { %10560 = vmatmul.msk.bf16.gmra.mxu0 %vm421_vm4, %v14143_v43 }
0x1887   :  { %10546 = vmatmul.msk.bf16.gmra.mxu3 %vm421_vm4, %v14143_v43 }
0x18a8   :  { %v14239_v47 = vpop.f32.mrf.mxu0 }
0x18ab   :  { %v6989_v4 = vpop.xlane.xlu2 %6988 }
0x18ac   :  { %11492 = vrcp.f32 %v6989_v4 }
0x18b0   :  { %v7071_v23 = vpop.f32.mrf.mxu0 }
0x18b2   :  { %v11493_v35 = vpop.eup %11492  ;;  %v14241_v15 = vpop.f32.mrf.mxu3 }
0x18b3   :  { %v7013_v57 = vmul.f32 %v11493_v35, %v11481_v30  ;;  %v6998_v17 = vpop.xlane.xlu2 %6997  ;;  %v11169_v30 = vld [vmem:[%s15163_s12 + $0x3] ss:$0 sm:$0xff] }
0x18b5   :  { %v7021_v8 = vpack.c.bf16 %v7013_v57, %v7013_v57 }
0x18b7   :  { %10528 = vmatmul.msk.bf16.vlgmr.msrb.gmra.mxu2 %vm7034_vm13, %v7021_v8 }
0x18ba   :  { %v7052_v9 = vpop.f32.mrf.mxu3 }
0x18df   :  { %v7001_v1 = vpop.xlane.xlu1 %7000 }
0x18e0   :  { %11494 = vrcp.f32 %v7001_v1  ;;  %v14244_v46 = vpop.f32.mrf.mxu0 }
0x18e3   :  { %v6986_v36 = vpop.xlane.xlu0 %6985 }
0x18e4   :  { %11496 = vrcp.f32 %v6986_v36 }
0x18e5   :  { %11498 = vrcp.f32 %v6998_v17 }
0x18e6   :  { %v11495_v10 = vpop.eup %11494 }
0x18e7   :  { %v7017_v5 = vmul.f32 %v11495_v10, %v11489_v14 }
0x18e8   :  { %v7147_v7 = vpop.f32.mrf.mxu0 }
0x18e9   :  { %v7025_v60 = vpack.c.bf16 %v7017_v5, %v7017_v5 }
0x18ea   :  { %v11497_v37 = vpop.eup %11496  ;;  %v14246_v22 = vpop.f32.mrf.mxu3 }
0x18eb   :  { %v7012_v11 = vmul.f32 %v11497_v37, %v11491_v51  ;;  %10532 = vmatmul.msk.bf16.vlgmr.msra.gmra.mxu2 %vm7034_vm13, %v7025_v60  ;;  %v11499_v33 = vpop.eup %11498 }
0x18ec   :  { %v7016_v32 = vmul.f32 %v11499_v33, %v14205_v16  ;;  %v11170_v33 = vld [vmem:[%s15163_s12 + $0x5] ss:$0 sm:$0xff] }
0x18ed   :  { %v7020_v41 = vpack.c.bf16 %v7012_v11, %v7012_v11 }
0x18ee   :  { %v7024_v58 = vpack.c.bf16 %v7016_v32, %v7016_v32 }
0x18ef   :  { %10527 = vmatmul.msk.bf16.vlgmr.msra.gmra.mxu1 %vm7034_vm13, %v7020_v41 }
0x18f0   :  { %v7277_v20 = vpop.f32.mrf.mxu0  ;;  %7325 = vmatpush.bf16.msra.mxu1 %v11048_v19 }
0x18f1   :  { %v7278_v48 = vadd.f32 %v11168_v34, %v7277_v20 }
0x18f2   :  { %v7128_v53 = vpop.f32.mrf.mxu3 }
0x18f3   :  { %v7291_v49 = vrot.slane %v7278_v48, 4  ;;  %v7359_v56 = vpack.c.bf16 %v7278_v48, %v7278_v48 }
0x18f4   :  { %7326 = vmatpush.bf16.msra.mxu1 %v11047_v62 }
0x18f5   :  { %v7360_v39 = vpack.c.bf16 %v7291_v49, %v7291_v49  ;;  %v7371_v21 = vsel %vm5519_vm9, %v7359_v56, 0 }
0x18f6   :  { %7380 = vmatpush.bf16.xpose.msrb.mxu2 %v7371_v21 }
0x18f7   :  { %v7390_v2 = vsel %vm5519_vm9, %v7360_v39, 0 }
0x18f8   :  { %v7279_v38 = vpop.f32.mrf.mxu0  ;;  %7327 = vmatpush.bf16.msra.mxu1 %v11046_v50 }
0x18f9   :  { %v7280_v63 = vadd.f32 %v11168_v34, %v7279_v38 }
0x18fa   :  { %v7225_v61 = vpop.f32.mrf.mxu3 }
0x18fb   :  { %v7292_v6 = vrot.slane %v7280_v63, 4  ;;  %v7361_v28 = vpack.c.bf16 %v7280_v63, %v7280_v63  ;;  %v7226_v18 = vadd.f32 %v11169_v30, %v7225_v61 }
0x18fd   :  { %v7362_v0 = vpack.c.bf16 %v7292_v6, %v7292_v6  ;;  %v7351_v24 = vpack.c.bf16 %v7226_v18, %v7226_v18  ;;  %v7409_v27 = vsel %vm5519_vm9, %v7361_v28, 0  ;;  %v7239_v26 = vrot.slane %v7226_v18, 4 }
0x18fe   :  { %7399 = vmatpush.bf16.xpose.msra.mxu2 %v7390_v2  ;;  %7418 = vmatpush.bf16.xpose.msra.mxu3 %v7409_v27 }
0x18ff   :  { %10531 = vmatmul.msk.bf16.vlgmr.msrb.gmra.mxu1 %vm7034_vm13, %v7024_v58  ;;  %10575 = vmatmul.msk.bf16.vlgmr.msrb.gmra.mxu2 %vm5519_vm9, %v7351_v24  ;;  %v7428_v52 = vsel %vm5519_vm9, %v7362_v0, 0  ;;  %v7352_v35 = vpack.c.bf16 %v7239_v26, %v7239_v26 }
0x1900   :  { %v7282_v25 = vpop.f32.mrf.mxu0  ;;  %7437 = vmatpush.bf16.xpose.msra.mxu0 %v7428_v52 }
0x1901   :  { %v7283_v16 = vadd.f32 %v11168_v34, %v7282_v25 }
0x1902   :  { %v7227_v40 = vpop.f32.mrf.mxu3 }
0x1903   :  { %v7293_v29 = vrot.slane %v7283_v16, 4  ;;  %v7363_v13 = vpack.c.bf16 %v7283_v16, %v7283_v16  ;;  %v7228_v59 = vadd.f32 %v11169_v30, %v7227_v40 }
0x1905   :  { %v7364_v12 = vpack.c.bf16 %v7293_v29, %v7293_v29  ;;  %v7240_v44 = vrot.slane %v7228_v59, 4  ;;  %v7353_v3 = vpack.c.bf16 %v7228_v59, %v7228_v59  ;;  %v7447_v45 = vsel %vm5519_vm9, %v7363_v13, 0 }
0x1906   :  { %7456 = vmatpush.bf16.xpose.msrb.mxu1 %v7447_v45 }
0x1907   :  { %v7354_v42 = vpack.c.bf16 %v7240_v44, %v7240_v44  ;;  %10577 = vmatmul.msk.bf16.vlgmr.msra.gmra.mxu3 %vm5519_vm9, %v7353_v3  ;;  %v7466_v54 = vsel %vm5519_vm9, %v7364_v12, 0 }
0x1908   :  { %v7284_v14 = vpop.f32.mrf.mxu0  ;;  %7475 = vmatpush.bf16.xpose.msrb.mxu2 %v7466_v54 }
0x1909   :  { %v7285_v51 = vadd.f32 %v11168_v34, %v7284_v14  ;;  %10578 = vmatmul.msk.bf16.vlgmr.msra.gmra.mxu0 %vm5519_vm9, %v7354_v42 }
0x190a   :  { %v7230_v55 = vpop.f32.mrf.mxu3 }
0x190b   :  { %v7294_v4 = vrot.slane %v7285_v51, 4  ;;  %v7365_v23 = vpack.c.bf16 %v7285_v51, %v7285_v51  ;;  %v7231_v10 = vadd.f32 %v11169_v30, %v7230_v55 }
0x190d   :  { %v7366_v57 = vpack.c.bf16 %v7294_v4, %v7294_v4  ;;  %v7485_v8 = vsel %vm5519_vm9, %v7365_v23, 0  ;;  %v7241_v37 = vrot.slane %v7231_v10, 4  ;;  %v7355_v19 = vpack.c.bf16 %v7231_v10, %v7231_v10 }
0x190e   :  { %7494 = vmatpush.bf16.xpose.msrb.mxu3 %v7485_v8 }
0x190f   :  { %10573 = vmatmul.msk.bf16.vlgmr.msra.gmra.mxu1 %vm421_vm4, %v14047_v31  ;;  %10576 = vmatmul.msk.bf16.vlgmr.msra.gmra.mxu2 %vm5519_vm9, %v7352_v35  ;;  %v7504_v9 = vsel %vm5519_vm9, %v7366_v57, 0  ;;  %v7356_v11 = vpack.c.bf16 %v7241_v37, %v7241_v37 }
0x1910   :  { %7513 = vmatpush.bf16.xpose.msrb.mxu0 %v7504_v9 }
0x1912   :  { %v7232_v1 = vpop.f32.mrf.mxu3 }
0x1913   :  { %v7233_v36 = vadd.f32 %v11169_v30, %v7232_v1 }
0x1915   :  { %v7242_v5 = vrot.slane %v7233_v36, 4  ;;  %v7357_v7 = vpack.c.bf16 %v7233_v36, %v7233_v36 }
0x1917   :  { %v7358_v60 = vpack.c.bf16 %v7242_v5, %v7242_v5  ;;  %10581 = vmatmul.msk.bf16.vlgmr.msrb.gmra.mxu3 %vm5519_vm9, %v7357_v7 }
0x1919   :  { %10582 = vmatmul.msk.bf16.vlgmr.msrb.gmra.mxu0 %vm5519_vm9, %v7358_v60 }
0x191f   :  { %10574 = vmatmul.msk.bf16.gmra.mxu1 %vm421_vm4, %v14143_v43  ;;  %10580 = vmatmul.msk.bf16.vlgmr.msrb.gmra.mxu2 %vm5519_vm9, %v7356_v11 }
0x192f   :  { %10579 = vmatmul.msk.bf16.vlgmr.msrb.gmra.mxu1 %vm5519_vm9, %v7355_v19 }
0x193a   :  { %v14287_v17 = vpop.f32.mrf.mxu2 }
0x1942   :  { %v7109_v41 = vpop.f32.mrf.mxu2 }
0x196c   :  { %v14289_v34 = vpop.f32.mrf.mxu1 }
0x196e   :  { %v14291_v20 = vpop.f32.mrf.mxu2 }
0x1974   :  { %v7090_v62 = vpop.f32.mrf.mxu1 }
0x1976   :  { %v7185_v48 = vpop.f32.mrf.mxu2 }
0x197c   :  { %v14293_v53 = vpop.f32.mrf.mxu1 }
0x1982   :  { %v7382_v49 = vpop.f32.mrf.mxu2 }
0x1983   :  { %v14295_v56 = vmul.f32 0.28867513, %v7382_v49 }
0x1984   :  { %v7166_v50 = vpop.f32.mrf.mxu1 }
0x1985   :  { %v7527_v39 = vsel %vm6929_vm8, %v14295_v56, -inf }
0x1986   :  { %v14299_v21 = vpop.f32.mrf.mxu0  ;;  %7528 = vmax.xlane.f32.xlu0 %v7527_v39 }
0x198a   :  { %v7384_v2 = vpop.f32.mrf.mxu2  ;;  %v14304_v30 = vpop.f32.mrf.mxu3 }
0x198c   :  { %v7329_v38 = vpop.f32.mrf.mxu1 }
0x198d   :  { %v7330_v32 = vadd.f32 %v11170_v33, %v7329_v38  ;;  %v7521_v38 = vmul.f32 0.28867513, %v14304_v30 }
0x198e   :  { %v7441_v63 = vpop.f32.mrf.mxu0 }
0x198f   :  { %v7343_v61 = vrot.slane %v7330_v32, 4  ;;  %v7623_v6 = vpack.c.bf16 %v7330_v32, %v7330_v32 }
0x1991   :  { %v7624_v28 = vpack.c.bf16 %v7343_v61, %v7343_v61  ;;  %v7635_v18 = vsel %vm6191_vm7, %v7623_v6, 0  ;;  %v7533_v6 = vsel %vm6929_vm8, %v7521_v38, -inf }
0x1992   :  { %v7401_v58 = vpop.f32.mrf.mxu2  ;;  %v7422_v0 = vpop.f32.mrf.mxu3  ;;  %7644 = vmatpush.bf16.msra.mxu1 %v7635_v18 }
0x1993   :  { %v7520_v24 = vmul.f32 0.28867513, %v7401_v58  ;;  %v7654_v27 = vsel %vm6191_vm7, %v7624_v28, 0 }
0x1994   :  { %v7331_v52 = vpop.f32.mrf.mxu1  ;;  %7663 = vmatpush.bf16.msra.mxu2 %v7654_v27 }
0x1995   :  { %v7332_v25 = vadd.f32 %v11170_v33, %v7331_v52  ;;  %v7530_v16 = vsel %vm6929_vm8, %v7520_v24, -inf }
0x1996   :  { %v7515_v40 = vpop.f32.mrf.mxu0  ;;  %7531 = vmax.xlane.f32.xlu1 %v7530_v16 }
0x1997   :  { %v7344_v29 = vrot.slane %v7332_v25, 4  ;;  %v7625_v13 = vpack.c.bf16 %v7332_v25, %v7332_v25  ;;  %v7526_v28 = vmul.f32 0.28867513, %v7515_v40  ;;  %v7522_v40 = vmul.f32 0.28867513, %v14299_v21 }
0x1999   :  { %v7626_v59 = vpack.c.bf16 %v7344_v29, %v7344_v29  ;;  %v7673_v12 = vsel %vm6191_vm7, %v7625_v13, 0  ;;  %v7536_v13 = vsel %vm6929_vm8, %v7522_v40, -inf }
0x199a   :  { %v7403_v44 = vpop.f32.mrf.mxu2  ;;  %v14310_v3 = vpop.f32.mrf.mxu3  ;;  %7682 = vmatpush.bf16.msra.mxu3 %v7673_v12 }
0x199b   :  { %v7692_v45 = vsel %vm6191_vm7, %v7626_v59, 0  ;;  %v7525_v44 = vmul.f32 0.28867513, %v14310_v3 }
0x199c   :  { %v7334_v42 = vpop.f32.mrf.mxu1  ;;  %7701 = vmatpush.bf16.msra.mxu0 %v7692_v45 }
0x199d   :  { %v7335_v54 = vadd.f32 %v11170_v33, %v7334_v42  ;;  %v7545_v45 = vsel %vm6929_vm8, %v7525_v44, -inf }
0x199e   :  { %v7517_v14 = vpop.f32.mrf.mxu0 }
0x199f   :  { %v7345_v26 = vrot.slane %v7335_v54, 4  ;;  %v7627_v51 = vpack.c.bf16 %v7335_v54, %v7335_v54 }
0x19a1   :  { %v7628_v55 = vpack.c.bf16 %v7345_v26, %v7345_v26  ;;  %v7711_v4 = vsel %vm6191_vm7, %v7627_v51, 0 }
0x19a2   :  { %v7477_v23 = vpop.f32.mrf.mxu2  ;;  %v7498_v35 = vpop.f32.mrf.mxu3  ;;  %7720 = vmatpush.bf16.msrb.mxu1 %v7711_v4 }
0x19a3   :  { %v7524_v57 = vmul.f32 0.28867513, %v7477_v23  ;;  %v7730_v8 = vsel %vm6191_vm7, %v7628_v55, 0 }
0x19a4   :  { %v7336_v9 = vpop.f32.mrf.mxu1  ;;  %7739 = vmatpush.bf16.msrb.mxu2 %v7730_v8 }
0x19a5   :  { %v7337_v1 = vadd.f32 %v11170_v33, %v7336_v9  ;;  %v7542_v36 = vsel %vm6929_vm8, %v7524_v57, -inf }
0x19a6   :  { %7543 = vmax.xlane.f32.xlu2 %v7542_v36 }
0x19a7   :  { %v7346_v10 = vrot.slane %v7337_v1, 4  ;;  %v7629_v5 = vpack.c.bf16 %v7337_v1, %v7337_v1  ;;  %v11051_v1 = vld [vmem:[%s15164_s11 + $0xa0] sm:$0xff] }
0x19a9   :  { %v7630_v7 = vpack.c.bf16 %v7346_v10, %v7346_v10  ;;  %v7749_v60 = vsel %vm6191_vm7, %v7629_v5, 0  ;;  %v11054_v10 = vld [vmem:[%s15164_s11 + $0xb8] sm:$0xff] }
0x19aa   :  { %v7479_v37 = vpop.f32.mrf.mxu2  ;;  %7758 = vmatpush.bf16.msrb.mxu3 %v7749_v60 }
0x19ab   :  { %v7768_v11 = vsel %vm6191_vm7, %v7630_v7, 0  ;;  %v11053_v37 = vld [vmem:[%s15164_s11 + $0xb0] sm:$0xff] }
0x19ac   :  { %v7458_v19 = vpop.f32.mrf.mxu1  ;;  %7777 = vmatpush.bf16.msrb.mxu0 %v7768_v11  ;;  %v11050_v11 = vld [vmem:[%s15164_s11 + $0x98] sm:$0xff] }
0x19ad   :  { %v7523_v41 = vmul.f32 0.28867513, %v7458_v19 }
0x19af   :  { %v7539_v62 = vsel %vm6929_vm8, %v7523_v41, -inf }
0x19b0   :  { %7540 = vmax.xlane.f32.xlu1 %v7539_v62  ;;  %v11049_v62 = vld [vmem:[%s15164_s11 + $0x90] sm:$0xff] }
0x19b4   :  { %v7460_v48 = vpop.f32.mrf.mxu1 }
0x19f9   :  { %v7529_v49 = vpop.xlane.xlu0 %7528 }
0x19fa   :  { %v7551_v50 = vsub.f32 %v14295_v56, %v7529_v49  ;;  %v7548_v56 = vsel %vm6929_vm8, %v7526_v28, -inf }
0x19fc   :  { %v7559_v39 = vmul.f32 1.442695, %v7551_v50 }
0x19fe   :  { %11500 = vpow2.f32 %v7559_v39 }
0x1a04   :  { %v11501_v33 = vpop.eup %11500 }
0x1a05   :  { %v7575_v2 = vsel %vm6929_vm8, %v11501_v33, 0.0 }
0x1a06   :  { %7576 = vadd.xlane.f32.xlu2 %v7575_v2 }
0x1a09   :  { %v7532_v32 = vpop.xlane.xlu1 %7531 }
0x1a0a   :  { %v7552_v63 = vsub.f32 %v7520_v24, %v7532_v32 }
0x1a0c   :  { %v7561_v61 = vmul.f32 1.442695, %v7552_v63 }
0x1a0e   :  { %11502 = vpow2.f32 %v7561_v61  ;;  %7534 = vmax.xlane.f32.xlu2 %v7533_v6 }
0x1a14   :  { %v11503_v18 = vpop.eup %11502 }
0x1a15   :  { %v7578_v58 = vsel %vm6929_vm8, %v11503_v18, 0.0 }
0x1a16   :  { %7579 = vadd.xlane.f32.xlu0 %v7578_v58  ;;  %7549 = vmax.xlane.f32.xlu2 %v7548_v56 }
0x1a19   :  { %v7544_v0 = vpop.xlane.xlu2 %7543 }
0x1a1a   :  { %v7556_v27 = vsub.f32 %v7524_v57, %v7544_v0 }
0x1a1c   :  { %v7569_v52 = vmul.f32 1.442695, %v7556_v27 }
0x1a1e   :  { %11504 = vpow2.f32 %v7569_v52 }
0x1a23   :  { %v7541_v30 = vpop.xlane.xlu1 %7540 }
0x1a24   :  { %v11505_v25 = vpop.eup %11504  ;;  %v7555_v24 = vsub.f32 %v7523_v41, %v7541_v30  ;;  %v11052_v41 = vld [vmem:[%s15164_s11 + $0xa8] sm:$0xff] }
0x1a25   :  { %v7590_v16 = vsel %vm6929_vm8, %v11505_v25, 0.0 }
0x1a26   :  { %v7567_v29 = vmul.f32 1.442695, %v7555_v24  ;;  %7591 = vadd.xlane.f32.xlu1 %v7590_v16 }
0x1a28   :  { %11506 = vpow2.f32 %v7567_v29 }
0x1a2e   :  { %v11507_v59 = vpop.eup %11506  ;;  %7537 = vmax.xlane.f32.xlu1 %v7536_v13  ;;  %v11057_v13 = vld [vmem:[%s15164_s11 + $0xd0] sm:$0xff] }
0x1a2f   :  { %v7587_v12 = vsel %vm6929_vm8, %v11507_v59, 0.0 }
0x1a30   :  { %7588 = vadd.xlane.f32.xlu0 %v7587_v12  ;;  %v11056_v12 = vld [vmem:[%s15164_s11 + $0xc8] sm:$0xff] }
0x1a38   :  { %7546 = vmax.xlane.f32.xlu0 %v7545_v45  ;;  %v11055_v45 = vld [vmem:[%s15164_s11 + $0xc0] sm:$0xff] }
0x1a79   :  { %v7577_v42 = vpop.xlane.xlu2 %7576 }
0x1a7a   :  { %11508 = vrcp.f32 %v7577_v42 }
0x1a80   :  { %v11509_v54 = vpop.eup %11508 }
0x1a81   :  { %v7607_v14 = vmul.f32 %v11509_v54, %v11501_v33  ;;  %v7535_v26 = vpop.xlane.xlu2 %7534 }
0x1a82   :  { %v7553_v51 = vsub.f32 %v7521_v38, %v7535_v26 }
0x1a83   :  { %v7615_v55 = vpack.c.bf16 %v7607_v14, %v7607_v14 }
0x1a84   :  { %v7563_v21 = vmul.f32 1.442695, %v7553_v51 }
0x1a85   :  { %10583 = vmatmul.msk.bf16.vlgmr.msra.gmra.mxu1 %vm7034_vm13, %v7615_v55 }
0x1a86   :  { %11510 = vpow2.f32 %v7563_v21  ;;  %7817 = vmatpush.bf16.msra.mxu1 %v11051_v1 }
0x1a89   :  { %v7580_v4 = vpop.xlane.xlu0 %7579  ;;  %v7550_v23 = vpop.xlane.xlu2 %7549 }
0x1a8a   :  { %11512 = vrcp.f32 %v7580_v4  ;;  %v7558_v35 = vsub.f32 %v7526_v28, %v7550_v23  ;;  %7818 = vmatpush.bf16.msra.mxu1 %v11050_v11 }
0x1a8c   :  { %v11511_v57 = vpop.eup %11510  ;;  %v7573_v3 = vmul.f32 1.442695, %v7558_v35 }
0x1a8d   :  { %v7581_v8 = vsel %vm6929_vm8, %v11511_v57, 0.0 }
0x1a8e   :  { %11514 = vpow2.f32 %v7573_v3  ;;  %7582 = vadd.xlane.f32.xlu1 %v7581_v8  ;;  %7819 = vmatpush.bf16.msra.mxu1 %v11049_v62 }
0x1a90   :  { %v11513_v9 = vpop.eup %11512 }
0x1a91   :  { %v7608_v36 = vmul.f32 %v11513_v9, %v11503_v18  ;;  %v11171_v9 = vld [vmem:[%s15163_s12 + $0x7] ss:$0 sm:$0xff] }
0x1a93   :  { %v7616_v5 = vpack.c.bf16 %v7608_v36, %v7608_v36 }
0x1a94   :  { %v14339_v7 = vpop.eup %11514 }
0x1a95   :  { %10584 = vmatmul.msk.bf16.vlgmr.msra.gmra.mxu2 %vm7034_vm13, %v7616_v5  ;;  %v7596_v60 = vsel %vm6929_vm8, %v14339_v7, 0.0 }
0x1a96   :  { %7597 = vadd.xlane.f32.xlu1 %v7596_v60  ;;  %7869 = vmatpush.bf16.msra.mxu2 %v11054_v10 }
0x1a99   :  { %v7592_v19 = vpop.xlane.xlu1 %7591 }
0x1a9a   :  { %11516 = vrcp.f32 %v7592_v19  ;;  %7870 = vmatpush.bf16.msra.mxu2 %v11053_v37 }
0x1a9e   :  { %7871 = vmatpush.bf16.msra.mxu2 %v11052_v41 }
0x1aa0   :  { %v11517_v48 = vpop.eup %11516 }
0x1aa1   :  { %v7612_v49 = vmul.f32 %v11517_v48, %v11505_v25  ;;  %v7538_v50 = vpop.xlane.xlu1 %7537 }
0x1aa2   :  { %v7554_v39 = vsub.f32 %v7522_v40, %v7538_v50 }
0x1aa3   :  { %v7620_v33 = vpack.c.bf16 %v7612_v49, %v7612_v49  ;;  %v7589_v2 = vpop.xlane.xlu0 %7588 }
0x1aa4   :  { %v7565_v38 = vmul.f32 1.442695, %v7554_v39  ;;  %11518 = vrcp.f32 %v7589_v2 }
0x1aa5   :  { %10588 = vmatmul.msk.bf16.vlgmr.msrb.gmra.mxu2 %vm7034_vm13, %v7620_v33 }
0x1aa6   :  { %11520 = vpow2.f32 %v7565_v38 }
0x1aaa   :  { %v11519_v32 = vpop.eup %11518 }
0x1aab   :  { %v7611_v63 = vmul.f32 %v11519_v32, %v11507_v59  ;;  %v7547_v61 = vpop.xlane.xlu0 %7546 }
0x1aac   :  { %v11521_v6 = vpop.eup %11520  ;;  %v7557_v28 = vsub.f32 %v7525_v44, %v7547_v61 }
0x1aad   :  { %v7619_v18 = vpack.c.bf16 %v7611_v63, %v7611_v63  ;;  %v7584_v58 = vsel %vm6929_vm8, %v11521_v6, 0.0 }
0x1aae   :  { %v7571_v56 = vmul.f32 1.442695, %v7557_v28  ;;  %7585 = vadd.xlane.f32.xlu0 %v7584_v58 }
0x1aaf   :  { %10587 = vmatmul.msk.bf16.vlgmr.msrb.gmra.mxu1 %vm7034_vm13, %v7619_v18 }
0x1ab0   :  { %11522 = vpow2.f32 %v7571_v56 }
0x1ab5   :  { %10617 = vmatmul.msk.bf16.vlgmr.msra.gmra.mxu2 %vm421_vm4, %v14047_v31 }
0x1ab6   :  { %v11523_v0 = vpop.eup %11522 }
0x1ab7   :  { %v7593_v27 = vsel %vm6929_vm8, %v11523_v0, 0.0 }
0x1ab8   :  { %7594 = vadd.xlane.f32.xlu2 %v7593_v27 }
0x1abf   :  { %10603 = vmatmul.msk.bf16.vlgmr.msra.gmra.mxu1 %vm421_vm4, %v14047_v31 }
0x1ac5   :  { %10618 = vmatmul.msk.bf16.gmra.mxu2 %vm421_vm4, %v14143_v43 }
0x1acf   :  { %10604 = vmatmul.msk.bf16.gmra.mxu1 %vm421_vm4, %v14143_v43 }
0x1b01   :  { %v7583_v52 = vpop.xlane.xlu1 %7582 }
0x1b02   :  { %11524 = vrcp.f32 %v7583_v52  ;;  %v14368_v30 = vpop.f32.mrf.mxu1 }
0x1b08   :  { %v11525_v25 = vpop.eup %11524 }
0x1b09   :  { %v7609_v24 = vmul.f32 %v11525_v25, %v11511_v57  ;;  %v7598_v26 = vpop.xlane.xlu1 %7597 }
0x1b0a   :  { %v7648_v16 = vpop.f32.mrf.mxu1 }
0x1b0b   :  { %v7617_v29 = vpack.c.bf16 %v7609_v24, %v7609_v24 }
0x1b0d   :  { %10585 = vmatmul.msk.bf16.vlgmr.msra.gmra.mxu3 %vm7034_vm13, %v7617_v29 }
0x1b0e   :  { %7921 = vmatpush.bf16.msra.mxu3 %v11057_v13 }
0x1b12   :  { %7922 = vmatpush.bf16.msra.mxu3 %v11056_v12 }
0x1b16   :  { %7923 = vmatpush.bf16.msra.mxu3 %v11055_v45 }
0x1b18   :  { %v14371_v40 = vpop.f32.mrf.mxu2 }
0x1b20   :  { %v7667_v59 = vpop.f32.mrf.mxu2 }
0x1b21   :  { %v7586_v44 = vpop.xlane.xlu0 %7585 }
0x1b22   :  { %11526 = vrcp.f32 %v7586_v44 }
0x1b28   :  { %v11527_v42 = vpop.eup %11526  ;;  %v14382_v54 = vpop.f32.mrf.mxu2 }
0x1b29   :  { %v7610_v14 = vmul.f32 %v11527_v42, %v11521_v6 }
0x1b2b   :  { %v7618_v51 = vpack.c.bf16 %v7610_v14, %v7610_v14  ;;  %v7595_v55 = vpop.xlane.xlu2 %7594 }
0x1b2c   :  { %11528 = vrcp.f32 %v7595_v55  ;;  %v14384_v21 = vpop.f32.mrf.mxu1 }
0x1b2d   :  { %10586 = vmatmul.msk.bf16.vlgmr.msra.gmra.mxu0 %vm7034_vm13, %v7618_v51  ;;  %11530 = vrcp.f32 %v7598_v26 }
0x1b30   :  { %v7743_v4 = vpop.f32.mrf.mxu2 }
0x1b32   :  { %v11529_v23 = vpop.eup %11528 }
0x1b33   :  { %v7613_v35 = vmul.f32 %v11529_v23, %v11523_v0  ;;  %v11531_v57 = vpop.eup %11530 }
0x1b34   :  { %v7724_v3 = vpop.f32.mrf.mxu1  ;;  %v7614_v1 = vmul.f32 %v11531_v57, %v14339_v7  ;;  %v11172_v7 = vld [vmem:[%s15163_s12 + $0x6] ss:$0 sm:$0xff] }
0x1b35   :  { %v7621_v8 = vpack.c.bf16 %v7613_v35, %v7613_v35 }
0x1b36   :  { %v7622_v5 = vpack.c.bf16 %v7614_v1, %v7614_v1 }
0x1b37   :  { %10589 = vmatmul.msk.bf16.vlgmr.msrb.gmra.mxu3 %vm7034_vm13, %v7621_v8 }
0x1b38   :  { %v7873_v36 = vpop.f32.mrf.mxu2 }
0x1b39   :  { %v7874_v10 = vadd.f32 %v11171_v9, %v7873_v36 }
0x1b3b   :  { %v7887_v60 = vrot.slane %v7874_v10, 4  ;;  %v7955_v37 = vpack.c.bf16 %v7874_v10, %v7874_v10 }
0x1b3c   :  { %v7821_v11 = vpop.f32.mrf.mxu1 }
0x1b3d   :  { %v7956_v19 = vpack.c.bf16 %v7887_v60, %v7887_v60  ;;  %10590 = vmatmul.msk.bf16.vlgmr.msrb.gmra.mxu0 %vm7034_vm13, %v7622_v5  ;;  %v7967_v41 = vsel %vm5519_vm9, %v7955_v37, 0  ;;  %v7822_v63 = vadd.f32 %v11172_v7, %v7821_v11 }
0x1b3e   :  { %7976 = vmatpush.bf16.xpose.msra.mxu0 %v7967_v41 }
0x1b3f   :  { %v7986_v62 = vsel %vm5519_vm9, %v7956_v19, 0  ;;  %v7947_v58 = vpack.c.bf16 %v7822_v63, %v7822_v63  ;;  %v7835_v51 = vrot.slane %v7822_v63, 4 }
0x1b40   :  { %v7875_v48 = vpop.f32.mrf.mxu2 }
0x1b41   :  { %v7876_v49 = vadd.f32 %v11171_v9, %v7875_v48  ;;  %v7948_v23 = vpack.c.bf16 %v7835_v51, %v7835_v51 }
0x1b43   :  { %v7888_v50 = vrot.slane %v7876_v49, 4  ;;  %v7957_v39 = vpack.c.bf16 %v7876_v49, %v7876_v49 }
0x1b44   :  { %v7823_v33 = vpop.f32.mrf.mxu1 }
0x1b45   :  { %v7958_v2 = vpack.c.bf16 %v7888_v50, %v7888_v50  ;;  %v7824_v38 = vadd.f32 %v11172_v7, %v7823_v33  ;;  %v8005_v32 = vsel %vm5519_vm9, %v7957_v39, 0 }
0x1b46   :  { %7995 = vmatpush.bf16.xpose.msrb.mxu0 %v7986_v62  ;;  %8014 = vmatpush.bf16.xpose.msrb.mxu1 %v8005_v32  ;;  %v11173_v62 = vld [vmem:[%s15163_s12 + $0x8] ss:$0 sm:$0xff] }
0x1b47   :  { %10631 = vmatmul.msk.bf16.vlgmr.msra.gmra.mxu3 %vm421_vm4, %v14047_v31  ;;  %v8024_v61 = vsel %vm5519_vm9, %v7958_v2, 0  ;;  %v7836_v28 = vrot.slane %v7824_v38, 4  ;;  %v7949_v56 = vpack.c.bf16 %v7824_v38, %v7824_v38 }
0x1b48   :  { %v7878_v6 = vpop.f32.mrf.mxu2  ;;  %8033 = vmatpush.bf16.xpose.msrb.mxu2 %v8024_v61 }
0x1b49   :  { %v7879_v18 = vadd.f32 %v11171_v9, %v7878_v6  ;;  %v7950_v25 = vpack.c.bf16 %v7836_v28, %v7836_v28 }
0x1b4b   :  { %v7889_v0 = vrot.slane %v7879_v18, 4  ;;  %v7959_v27 = vpack.c.bf16 %v7879_v18, %v7879_v18 }
0x1b4c   :  { %v7826_v52 = vpop.f32.mrf.mxu1 }
0x1b4d   :  { %v7960_v24 = vpack.c.bf16 %v7889_v0, %v7889_v0  ;;  %10633 = vmatmul.msk.bf16.vlgmr.msra.gmra.mxu0 %vm5519_vm9, %v7947_v58  ;;  %10635 = vmatmul.msk.bf16.vlgmr.msrb.gmra.mxu1 %vm5519_vm9, %v7949_v56  ;;  %v8043_v16 = vsel %vm5519_vm9, %v7959_v27, 0  ;;  %v7827_v3 = vadd.f32 %v11172_v7, %v7826_v52 }
0x1b4e   :  { %8052 = vmatpush.bf16.xpose.msrb.mxu3 %v8043_v16 }
0x1b4f   :  { %10636 = vmatmul.msk.bf16.vlgmr.msrb.gmra.mxu2 %vm5519_vm9, %v7950_v25  ;;  %v8062_v29 = vsel %vm5519_vm9, %v7960_v24, 0  ;;  %v7951_v8 = vpack.c.bf16 %v7827_v3, %v7827_v3 }
0x1b50   :  { %v7880_v13 = vpop.f32.mrf.mxu2  ;;  %8071 = vmatpush.bf16.xpose.msra.mxu0 %v8062_v29 }
0x1b51   :  { %v7881_v59 = vadd.f32 %v11171_v9, %v7880_v13  ;;  %v7837_v9 = vrot.slane %v7827_v3, 4 }
0x1b53   :  { %v7890_v12 = vrot.slane %v7881_v59, 4  ;;  %v7961_v44 = vpack.c.bf16 %v7881_v59, %v7881_v59  ;;  %v7952_v1 = vpack.c.bf16 %v7837_v9, %v7837_v9 }
0x1b54   :  { %v7828_v45 = vpop.f32.mrf.mxu1 }
0x1b55   :  { %v7962_v42 = vpack.c.bf16 %v7890_v12, %v7890_v12  ;;  %v7829_v14 = vadd.f32 %v11172_v7, %v7828_v45  ;;  %v8081_v26 = vsel %vm5519_vm9, %v7961_v44, 0 }
0x1b56   :  { %8090 = vmatpush.bf16.xpose.msra.mxu1 %v8081_v26 }
0x1b57   :  { %10632 = vmatmul.msk.bf16.gmra.mxu3 %vm421_vm4, %v14143_v43  ;;  %v8100_v55 = vsel %vm5519_vm9, %v7962_v42, 0  ;;  %v7838_v4 = vrot.slane %v7829_v14, 4  ;;  %v7953_v35 = vpack.c.bf16 %v7829_v14, %v7829_v14 }
0x1b58   :  { %8109 = vmatpush.bf16.xpose.msra.mxu2 %v8100_v55 }
0x1b59   :  { %v7954_v57 = vpack.c.bf16 %v7838_v4, %v7838_v4 }
0x1b5d   :  { %10634 = vmatmul.msk.bf16.vlgmr.msrb.gmra.mxu0 %vm5519_vm9, %v7948_v23  ;;  %10639 = vmatmul.msk.bf16.vlgmr.msra.gmra.mxu1 %vm5519_vm9, %v7953_v35 }
0x1b5f   :  { %10640 = vmatmul.msk.bf16.vlgmr.msra.gmra.mxu2 %vm5519_vm9, %v7954_v57 }
0x1b67   :  { %10637 = vmatmul.msk.bf16.vlgmr.msrb.gmra.mxu3 %vm5519_vm9, %v7951_v8 }
0x1b6d   :  { %10638 = vmatmul.msk.bf16.vlgmr.msra.gmra.mxu0 %vm5519_vm9, %v7952_v1 }
0x1b90   :  { %v14416_v36 = vpop.f32.mrf.mxu3 }
0x1b98   :  { %v7686_v10 = vpop.f32.mrf.mxu3 }
0x1baa   :  { %v14418_v5 = vpop.f32.mrf.mxu0 }
0x1bb2   :  { %v7705_v60 = vpop.f32.mrf.mxu0 }
0x1bba   :  { %v14420_v37 = vpop.f32.mrf.mxu3  ;;  %v14422_v11 = vpop.f32.mrf.mxu0 }
0x1bc2   :  { %v7762_v19 = vpop.f32.mrf.mxu3  ;;  %v7781_v41 = vpop.f32.mrf.mxu0 }
0x1bca   :  { %v7925_v48 = vpop.f32.mrf.mxu3  ;;  %v7978_v49 = vpop.f32.mrf.mxu0 }
0x1bcb   :  { %v7926_v7 = vadd.f32 %v11173_v62, %v7925_v48  ;;  %v14427_v50 = vmul.f32 0.28867513, %v7978_v49  ;;  %v14429_v39 = vpop.f32.mrf.mxu1 }
0x1bcd   :  { %v7939_v33 = vrot.slane %v7926_v7, 4  ;;  %v8219_v2 = vpack.c.bf16 %v7926_v7, %v7926_v7  ;;  %v8123_v38 = vsel %vm6929_vm8, %v14427_v50, -inf }
0x1bce   :  { %8124 = vmax.xlane.f32.xlu2 %v8123_v38 }
0x1bcf   :  { %v8220_v32 = vpack.c.bf16 %v7939_v33, %v7939_v33  ;;  %v8231_v63 = vsel %vm6191_vm7, %v8219_v2, 0 }
0x1bd0   :  { %8240 = vmatpush.bf16.msra.mxu3 %v8231_v63 }
0x1bd1   :  { %v8250_v61 = vsel %vm6191_vm7, %v8220_v32, 0 }
0x1bd2   :  { %v7927_v6 = vpop.f32.mrf.mxu3  ;;  %v7980_v28 = vpop.f32.mrf.mxu0  ;;  %8259 = vmatpush.bf16.msrb.mxu0 %v8250_v61 }
0x1bd3   :  { %v7928_v18 = vadd.f32 %v11173_v62, %v7927_v6  ;;  %v8018_v58 = vpop.f32.mrf.mxu1  ;;  %v8035_v56 = vpop.f32.mrf.mxu2 }
0x1bd5   :  { %v7940_v0 = vrot.slane %v7928_v18, 4  ;;  %v8221_v27 = vpack.c.bf16 %v7928_v18, %v7928_v18  ;;  %v8118_v18 = vmul.f32 0.28867513, %v8035_v56 }
0x1bd7   :  { %v8222_v52 = vpack.c.bf16 %v7940_v0, %v7940_v0  ;;  %v8269_v25 = vsel %vm6191_vm7, %v8221_v27, 0 }
0x1bd8   :  { %8278 = vmatpush.bf16.msrb.mxu1 %v8269_v25 }
0x1bd9   :  { %v8288_v24 = vsel %vm6191_vm7, %v8222_v52, 0  ;;  %v8132_v52 = vsel %vm6929_vm8, %v8118_v18, -inf }
0x1bda   :  { %v7930_v16 = vpop.f32.mrf.mxu3  ;;  %v7997_v29 = vpop.f32.mrf.mxu0  ;;  %8297 = vmatpush.bf16.msrb.mxu2 %v8288_v24 }
0x1bdb   :  { %v7931_v13 = vadd.f32 %v11173_v62, %v7930_v16  ;;  %v8116_v59 = vmul.f32 0.28867513, %v7997_v29  ;;  %v8037_v12 = vpop.f32.mrf.mxu2  ;;  %v8092_v44 = vpop.f32.mrf.mxu1 }
0x1bdc   :  { %v8121_v25 = vmul.f32 0.28867513, %v8092_v44 }
0x1bdd   :  { %v7941_v45 = vrot.slane %v7931_v13, 4  ;;  %v8223_v42 = vpack.c.bf16 %v7931_v13, %v7931_v13  ;;  %v8126_v14 = vsel %vm6929_vm8, %v8116_v59, -inf }
0x1bde   :  { %8127 = vmax.xlane.f32.xlu0 %v8126_v14 }
0x1bdf   :  { %v8224_v26 = vpack.c.bf16 %v7941_v45, %v7941_v45  ;;  %v8307_v51 = vsel %vm6191_vm7, %v8223_v42, 0 }
0x1be0   :  { %8316 = vmatpush.bf16.msrb.mxu3 %v8307_v51 }
0x1be1   :  { %v8326_v55 = vsel %vm6191_vm7, %v8224_v26, 0 }
0x1be2   :  { %v7932_v4 = vpop.f32.mrf.mxu3  ;;  %v7999_v23 = vpop.f32.mrf.mxu0  ;;  %8335 = vmatpush.bf16.msra.mxu0 %v8326_v55  ;;  %v8117_v55 = vmul.f32 0.28867513, %v14429_v39  ;;  %v11060_v39 = vld [vmem:[%s15164_s11 + $0xe8] sm:$0xff] }
0x1be3   :  { %v7933_v35 = vadd.f32 %v11173_v62, %v7932_v4  ;;  %v8094_v57 = vpop.f32.mrf.mxu1  ;;  %v8111_v3 = vpop.f32.mrf.mxu2 }
0x1be4   :  { %v8122_v51 = vmul.f32 0.28867513, %v8111_v3  ;;  %v8129_v23 = vsel %vm6929_vm8, %v8117_v55, -inf }
0x1be5   :  { %v7942_v8 = vrot.slane %v7933_v35, 4  ;;  %v8225_v9 = vpack.c.bf16 %v7933_v35, %v7933_v35 }
0x1be6   :  { %v8144_v4 = vsel %vm6929_vm8, %v8122_v51, -inf }
0x1be7   :  { %v8226_v1 = vpack.c.bf16 %v7942_v8, %v7942_v8  ;;  %v8345_v10 = vsel %vm6191_vm7, %v8225_v9, 0 }
0x1be8   :  { %8354 = vmatpush.bf16.msra.mxu1 %v8345_v10 }
0x1be9   :  { %v8364_v60 = vsel %vm6191_vm7, %v8226_v1, 0 }
0x1bea   :  { %v8054_v19 = vpop.f32.mrf.mxu3  ;;  %v8073_v41 = vpop.f32.mrf.mxu0  ;;  %8373 = vmatpush.bf16.msra.mxu2 %v8364_v60 }
0x1beb   :  { %v8119_v48 = vmul.f32 0.28867513, %v8054_v19  ;;  %v8120_v49 = vmul.f32 0.28867513, %v8073_v41  ;;  %v8113_v7 = vpop.f32.mrf.mxu2 }
0x1bed   :  { %v8135_v33 = vsel %vm6929_vm8, %v8119_v48, -inf  ;;  %v8138_v62 = vsel %vm6929_vm8, %v8120_v49, -inf }
0x1bee   :  { %8136 = vmax.xlane.f32.xlu0 %v8135_v33  ;;  %8139 = vmax.xlane.f32.xlu1 %v8138_v62  ;;  %v11059_v33 = vld [vmem:[%s15164_s11 + $0xe0] sm:$0xff] }
0x1bf2   :  { %v8056_v2 = vpop.f32.mrf.mxu3  ;;  %v8075_v38 = vpop.f32.mrf.mxu0 }
0x1bf3   :  { %v11058_v2 = vld [vmem:[%s15164_s11 + $0xd8] sm:$0xff] }
0x1c41   :  { %v8125_v32 = vpop.xlane.xlu2 %8124 }
0x1c42   :  { %v8147_v63 = vsub.f32 %v14427_v50, %v8125_v32  ;;  %v8141_v50 = vsel %vm6929_vm8, %v8121_v25, -inf  ;;  %v11063_v32 = vld [vmem:[%s15164_s11 + $0x100] sm:$0xff] }
0x1c44   :  { %v8155_v61 = vmul.f32 1.442695, %v8147_v63 }
0x1c46   :  { %11532 = vpow2.f32 %v8155_v61 }
0x1c4c   :  { %v11533_v6 = vpop.eup %11532 }
0x1c4d   :  { %v8171_v28 = vsel %vm6929_vm8, %v11533_v6, 0.0 }
0x1c4e   :  { %8172 = vadd.xlane.f32.xlu1 %v8171_v28  ;;  %v11062_v28 = vld [vmem:[%s15164_s11 + $0xf8] sm:$0xff] }
0x1c51   :  { %v8128_v58 = vpop.xlane.xlu0 %8127 }
0x1c52   :  { %v8148_v0 = vsub.f32 %v8116_v59, %v8128_v58 }
0x1c54   :  { %v8157_v27 = vmul.f32 1.442695, %v8148_v0  ;;  %v11061_v0 = vld [vmem:[%s15164_s11 + $0xf0] sm:$0xff] }
0x1c56   :  { %11534 = vpow2.f32 %v8157_v27  ;;  %8133 = vmax.xlane.f32.xlu1 %v8132_v52 }
0x1c5c   :  { %v11535_v24 = vpop.eup %11534 }
0x1c5d   :  { %v8174_v16 = vsel %vm6929_vm8, %v11535_v24, 0.0 }
0x1c5e   :  { %8175 = vadd.xlane.f32.xlu2 %v8174_v16  ;;  %8142 = vmax.xlane.f32.xlu1 %v8141_v50 }
0x1c61   :  { %v8137_v29 = vpop.xlane.xlu0 %8136  ;;  %v8140_v13 = vpop.xlane.xlu1 %8139 }
0x1c62   :  { %v8151_v12 = vsub.f32 %v8119_v48, %v8137_v29  ;;  %v8152_v45 = vsub.f32 %v8120_v49, %v8140_v13 }
0x1c64   :  { %v8163_v56 = vmul.f32 1.442695, %v8151_v12  ;;  %v8165_v42 = vmul.f32 1.442695, %v8152_v45 }
0x1c66   :  { %11536 = vpow2.f32 %v8163_v56 }
0x1c67   :  { %11538 = vpow2.f32 %v8165_v42 }
0x1c6c   :  { %v11537_v59 = vpop.eup %11536 }
0x1c6d   :  { %v11539_v14 = vpop.eup %11538  ;;  %v8183_v26 = vsel %vm6929_vm8, %v11537_v59, 0.0 }
0x1c6e   :  { %8184 = vadd.xlane.f32.xlu2 %v8183_v26  ;;  %v8186_v44 = vsel %vm6929_vm8, %v11539_v14, 0.0 }
0x1c6f   :  { %8187 = vadd.xlane.f32.xlu0 %v8186_v44 }
0x1c76   :  { %8145 = vmax.xlane.f32.xlu2 %v8144_v4 }
0x1c77   :  { %8130 = vmax.xlane.f32.xlu0 %v8129_v23 }
0x1cc1   :  { %v8173_v35 = vpop.xlane.xlu1 %8172 }
0x1cc2   :  { %11540 = vrcp.f32 %v8173_v35 }
0x1cc8   :  { %v11541_v57 = vpop.eup %11540 }
0x1cc9   :  { %v8203_v8 = vmul.f32 %v11541_v57, %v11533_v6  ;;  %v8134_v9 = vpop.xlane.xlu1 %8133 }
0x1cca   :  { %v8150_v1 = vsub.f32 %v8118_v18, %v8134_v9 }
0x1ccb   :  { %v8211_v10 = vpack.c.bf16 %v8203_v8, %v8203_v8 }
0x1ccc   :  { %v8161_v60 = vmul.f32 1.442695, %v8150_v1 }
0x1ccd   :  { %10641 = vmatmul.msk.bf16.vlgmr.msra.gmra.mxu3 %vm7034_vm13, %v8211_v10 }
0x1cce   :  { %11542 = vpow2.f32 %v8161_v60  ;;  %8413 = vmatpush.bf16.msra.mxu3 %v11060_v39 }
0x1cd1   :  { %v8176_v3 = vpop.xlane.xlu2 %8175  ;;  %v8143_v19 = vpop.xlane.xlu1 %8142 }
0x1cd2   :  { %11544 = vrcp.f32 %v8176_v3  ;;  %v8153_v41 = vsub.f32 %v8121_v25, %v8143_v19  ;;  %8414 = vmatpush.bf16.msra.mxu3 %v11059_v33  ;;  %v11066_v33 = vld [vmem:[%s15164_s11 + $0x118] sm:$0xff] }
0x1cd4   :  { %v11543_v48 = vpop.eup %11542  ;;  %v8167_v49 = vmul.f32 1.442695, %v8153_v41 }
0x1cd5   :  { %v8180_v7 = vsel %vm6929_vm8, %v11543_v48, 0.0 }
0x1cd6   :  { %11546 = vpow2.f32 %v8167_v49  ;;  %8181 = vadd.xlane.f32.xlu0 %v8180_v7  ;;  %8415 = vmatpush.bf16.msra.mxu3 %v11058_v2 }
0x1cd8   :  { %v11545_v62 = vpop.eup %11544 }
0x1cd9   :  { %v8204_v38 = vmul.f32 %v11545_v62, %v11535_v24 }
0x1cdb   :  { %v8212_v63 = vpack.c.bf16 %v8204_v38, %v8204_v38  ;;  %v11065_v38 = vld [vmem:[%s15164_s11 + $0x110] sm:$0xff] }
0x1cdc   :  { %v14468_v61 = vpop.eup %11546 }
0x1cdd   :  { %10642 = vmatmul.msk.bf16.vlgmr.msrb.gmra.mxu0 %vm7034_vm13, %v8212_v63  ;;  %v8189_v6 = vsel %vm6929_vm8, %v14468_v61, 0.0  ;;  %v11174_v63 = vld [vmem:[%s15163_s12 + $0xa] ss:$0 sm:$0xff] }
0x1cde   :  { %8190 = vadd.xlane.f32.xlu0 %v8189_v6  ;;  %8465 = vmatpush.bf16.msrb.mxu0 %v11063_v32 }
0x1ce1   :  { %v8185_v18 = vpop.xlane.xlu2 %8184 }
0x1ce2   :  { %11548 = vrcp.f32 %v8185_v18  ;;  %v8188_v58 = vpop.xlane.xlu0 %8187  ;;  %8466 = vmatpush.bf16.msrb.mxu0 %v11062_v28  ;;  %v11064_v28 = vld [vmem:[%s15164_s11 + $0x108] sm:$0xff] }
0x1ce3   :  { %11550 = vrcp.f32 %v8188_v58 }
0x1ce6   :  { %8467 = vmatpush.bf16.msrb.mxu0 %v11061_v0 }
0x1ce8   :  { %v11549_v27 = vpop.eup %11548 }
0x1ce9   :  { %v11551_v52 = vpop.eup %11550  ;;  %v8207_v25 = vmul.f32 %v11549_v27, %v11537_v59  ;;  %v8146_v24 = vpop.xlane.xlu2 %8145 }
0x1cea   :  { %v8208_v16 = vmul.f32 %v11551_v52, %v11539_v14  ;;  %v8154_v50 = vsub.f32 %v8122_v51, %v8146_v24  ;;  %v8131_v29 = vpop.xlane.xlu0 %8130  ;;  %v11175_v52 = vld [vmem:[%s15163_s12 + $0x9] ss:$0 sm:$0xff] }
0x1ceb   :  { %v8215_v13 = vpack.c.bf16 %v8207_v25, %v8207_v25  ;;  %v8149_v12 = vsub.f32 %v8117_v55, %v8131_v29 }
0x1cec   :  { %v8216_v45 = vpack.c.bf16 %v8208_v16, %v8208_v16  ;;  %v8169_v56 = vmul.f32 1.442695, %v8154_v50 }
0x1ced   :  { %v8159_v42 = vmul.f32 1.442695, %v8149_v12  ;;  %10645 = vmatmul.msk.bf16.vlgmr.msrb.gmra.mxu3 %vm7034_vm13, %v8215_v13 }
0x1cee   :  { %11552 = vpow2.f32 %v8169_v56  ;;  %10646 = vmatmul.msk.bf16.vlgmr.msra.gmra.mxu0 %vm7034_vm13, %v8216_v45 }
0x1cef   :  { %11554 = vpow2.f32 %v8159_v42 }
0x1cf4   :  { %v11553_v26 = vpop.eup %11552 }
0x1cf5   :  { %v11555_v44 = vpop.eup %11554  ;;  %v8192_v4 = vsel %vm6929_vm8, %v11553_v26, 0.0 }
0x1cf6   :  { %8193 = vadd.xlane.f32.xlu1 %v8192_v4  ;;  %v8177_v59 = vsel %vm6929_vm8, %v11555_v44, 0.0 }
0x1cf7   :  { %8178 = vadd.xlane.f32.xlu2 %v8177_v59 }
0x1cfd   :  { %10661 = vmatmul.msk.bf16.vlgmr.msra.gmra.mxu3 %vm421_vm4, %v14047_v31 }
0x1cfe   :  { %10675 = vmatmul.msk.bf16.vlgmr.msrb.gmra.mxu0 %vm421_vm4, %v14047_v31 }
0x1d0d   :  { %10662 = vmatmul.msk.bf16.gmra.mxu3 %vm421_vm4, %v14143_v43 }
0x1d0e   :  { %10676 = vmatmul.msk.bf16.gmra.mxu0 %vm421_vm4, %v14143_v43 }
0x1d49   :  { %v8182_v14 = vpop.xlane.xlu0 %8181 }
0x1d4a   :  { %11556 = vrcp.f32 %v8182_v14 }
0x1d50   :  { %v11557_v51 = vpop.eup %11556  ;;  %v14491_v55 = vpop.f32.mrf.mxu3 }
0x1d51   :  { %v8206_v23 = vmul.f32 %v11557_v51, %v11543_v48  ;;  %v8191_v62 = vpop.xlane.xlu0 %8190 }
0x1d53   :  { %v8214_v35 = vpack.c.bf16 %v8206_v23, %v8206_v23 }
0x1d55   :  { %10644 = vmatmul.msk.bf16.vlgmr.msrb.gmra.mxu2 %vm7034_vm13, %v8214_v35 }
0x1d58   :  { %v8244_v57 = vpop.f32.mrf.mxu3 }
0x1d5a   :  { %v14494_v8 = vpop.f32.mrf.mxu0 }
0x1d62   :  { %v8263_v9 = vpop.f32.mrf.mxu0 }
0x1d69   :  { %v8194_v1 = vpop.xlane.xlu1 %8193 }
0x1d6a   :  { %v8179_v10 = vpop.xlane.xlu2 %8178  ;;  %11558 = vrcp.f32 %v8194_v1 }
0x1d6b   :  { %11560 = vrcp.f32 %v8179_v10  ;;  %v14496_v60 = vpop.f32.mrf.mxu0 }
0x1d6c   :  { %11562 = vrcp.f32 %v8191_v62 }
0x1d70   :  { %v11559_v39 = vpop.eup %11558  ;;  %v14498_v3 = vpop.f32.mrf.mxu3 }
0x1d71   :  { %v11561_v19 = vpop.eup %11560  ;;  %v8210_v41 = vmul.f32 %v11559_v39, %v11553_v26 }
0x1d72   :  { %v8205_v49 = vmul.f32 %v11561_v19, %v11555_v44  ;;  %v11563_v58 = vpop.eup %11562 }
0x1d73   :  { %v8218_v48 = vpack.c.bf16 %v8210_v41, %v8210_v41  ;;  %v8339_v7 = vpop.f32.mrf.mxu0  ;;  %v8209_v25 = vmul.f32 %v11563_v58, %v14468_v61 }
0x1d74   :  { %v8213_v2 = vpack.c.bf16 %v8205_v49, %v8205_v49 }
0x1d75   :  { %10648 = vmatmul.msk.bf16.vlgmr.msra.gmra.mxu2 %vm7034_vm13, %v8218_v48  ;;  %v8217_v45 = vpack.c.bf16 %v8209_v25, %v8209_v25 }
0x1d76   :  { %10643 = vmatmul.msk.bf16.vlgmr.msrb.gmra.mxu1 %vm7034_vm13, %v8213_v2 }
0x1d77   :  { %8517 = vmatpush.bf16.msrb.mxu1 %v11066_v33 }
0x1d78   :  { %v8320_v32 = vpop.f32.mrf.mxu3 }
0x1d7b   :  { %v8469_v6 = vpop.f32.mrf.mxu0  ;;  %8518 = vmatpush.bf16.msrb.mxu1 %v11065_v38 }
0x1d7c   :  { %v8470_v18 = vadd.f32 %v11174_v63, %v8469_v6 }
0x1d7e   :  { %v8483_v0 = vrot.slane %v8470_v18, 4  ;;  %v8551_v27 = vpack.c.bf16 %v8470_v18, %v8470_v18 }
0x1d7f   :  { %8519 = vmatpush.bf16.msrb.mxu1 %v11064_v28 }
0x1d80   :  { %v8552_v24 = vpack.c.bf16 %v8483_v0, %v8483_v0  ;;  %v8417_v16 = vpop.f32.mrf.mxu3  ;;  %v8563_v50 = vsel %vm5519_vm9, %v8551_v27, 0 }
0x1d81   :  { %8572 = vmatpush.bf16.xpose.msrb.mxu2 %v8563_v50  ;;  %v8418_v29 = vadd.f32 %v11175_v52, %v8417_v16 }
0x1d82   :  { %v8582_v13 = vsel %vm5519_vm9, %v8552_v24, 0 }
0x1d83   :  { %v8471_v12 = vpop.f32.mrf.mxu0  ;;  %v8543_v42 = vpack.c.bf16 %v8418_v29, %v8418_v29  ;;  %v8431_v48 = vrot.slane %v8418_v29, 4 }
0x1d84   :  { %v8472_v56 = vadd.f32 %v11174_v63, %v8471_v12 }
0x1d85   :  { %v8544_v2 = vpack.c.bf16 %v8431_v48, %v8431_v48 }
0x1d86   :  { %v8484_v26 = vrot.slane %v8472_v56, 4  ;;  %v8553_v44 = vpack.c.bf16 %v8472_v56, %v8472_v56  ;;  %10647 = vmatmul.msk.bf16.vlgmr.msra.gmra.mxu1 %vm7034_vm13, %v8217_v45 }
0x1d88   :  { %v8554_v4 = vpack.c.bf16 %v8484_v26, %v8484_v26  ;;  %10691 = vmatmul.msk.bf16.vlgmr.msrb.gmra.mxu2 %vm5519_vm9, %v8543_v42  ;;  %v8419_v61 = vpop.f32.mrf.mxu3  ;;  %v8601_v59 = vsel %vm5519_vm9, %v8553_v44, 0 }
0x1d89   :  { %8591 = vmatpush.bf16.xpose.msra.mxu2 %v8582_v13  ;;  %v8420_v14 = vadd.f32 %v11175_v52, %v8419_v61  ;;  %8610 = vmatpush.bf16.xpose.msrb.mxu3 %v8601_v59  ;;  %v11176_v59 = vld [vmem:[%s15163_s12 + $0xb] ss:$0 sm:$0xff] }
0x1d8a   :  { %v8620_v51 = vsel %vm5519_vm9, %v8554_v4, 0 }
0x1d8b   :  { %v8474_v23 = vpop.f32.mrf.mxu0  ;;  %8629 = vmatpush.bf16.xpose.msra.mxu0 %v8620_v51  ;;  %v8432_v35 = vrot.slane %v8420_v14, 4  ;;  %v8545_v9 = vpack.c.bf16 %v8420_v14, %v8420_v14 }
0x1d8c   :  { %v8475_v57 = vadd.f32 %v11174_v63, %v8474_v23 }
0x1d8d   :  { %v8546_v39 = vpack.c.bf16 %v8432_v35, %v8432_v35 }
0x1d8e   :  { %v8485_v1 = vrot.slane %v8475_v57, 4  ;;  %v8555_v10 = vpack.c.bf16 %v8475_v57, %v8475_v57 }
0x1d90   :  { %v8556_v19 = vpack.c.bf16 %v8485_v1, %v8485_v1  ;;  %10693 = vmatmul.msk.bf16.vlgmr.msrb.gmra.mxu3 %vm5519_vm9, %v8545_v9  ;;  %v8422_v41 = vpop.f32.mrf.mxu3  ;;  %v8639_v49 = vsel %vm5519_vm9, %v8555_v10, 0 }
0x1d91   :  { %8648 = vmatpush.bf16.xpose.msra.mxu1 %v8639_v49  ;;  %v8423_v25 = vadd.f32 %v11175_v52, %v8422_v41 }
0x1d92   :  { %10694 = vmatmul.msk.bf16.vlgmr.msra.gmra.mxu0 %vm5519_vm9, %v8546_v39  ;;  %v8658_v7 = vsel %vm5519_vm9, %v8556_v19, 0 }
0x1d93   :  { %v8476_v33 = vpop.f32.mrf.mxu0  ;;  %8667 = vmatpush.bf16.xpose.msrb.mxu2 %v8658_v7  ;;  %v8433_v16 = vrot.slane %v8423_v25, 4  ;;  %v8547_v50 = vpack.c.bf16 %v8423_v25, %v8423_v25 }
0x1d94   :  { %v8477_v62 = vadd.f32 %v11174_v63, %v8476_v33 }
0x1d96   :  { %v8486_v38 = vrot.slane %v8477_v62, 4  ;;  %v8557_v32 = vpack.c.bf16 %v8477_v62, %v8477_v62  ;;  %10689 = vmatmul.msk.bf16.vlgmr.msrb.gmra.mxu1 %vm421_vm4, %v14047_v31  ;;  %v8548_v31 = vpack.c.bf16 %v8433_v16, %v8433_v16 }
0x1d98   :  { %v8558_v6 = vpack.c.bf16 %v8486_v38, %v8486_v38  ;;  %10692 = vmatmul.msk.bf16.vlgmr.msra.gmra.mxu2 %vm5519_vm9, %v8544_v2  ;;  %v8424_v28 = vpop.f32.mrf.mxu3  ;;  %v8677_v18 = vsel %vm5519_vm9, %v8557_v32, 0 }
0x1d99   :  { %v8425_v58 = vadd.f32 %v11175_v52, %v8424_v28  ;;  %8686 = vmatpush.bf16.xpose.msra.mxu3 %v8677_v18 }
0x1d9a   :  { %v8696_v0 = vsel %vm5519_vm9, %v8558_v6, 0 }
0x1d9b   :  { %8705 = vmatpush.bf16.xpose.msrb.mxu0 %v8696_v0  ;;  %v8434_v27 = vrot.slane %v8425_v58, 4  ;;  %v8549_v63 = vpack.c.bf16 %v8425_v58, %v8425_v58 }
0x1d9d   :  { %v8550_v24 = vpack.c.bf16 %v8434_v27, %v8434_v27 }
0x1da0   :  { %10697 = vmatmul.msk.bf16.vlgmr.msra.gmra.mxu3 %vm5519_vm9, %v8549_v63 }
0x1da2   :  { %10698 = vmatmul.msk.bf16.vlgmr.msrb.gmra.mxu0 %vm5519_vm9, %v8550_v24 }
0x1da6   :  { %10690 = vmatmul.msk.bf16.gmra.mxu1 %vm421_vm4, %v14143_v43 }
0x1da8   :  { %10696 = vmatmul.msk.bf16.vlgmr.msrb.gmra.mxu2 %vm5519_vm9, %v8548_v31 }
0x1db6   :  { %10695 = vmatmul.msk.bf16.vlgmr.msra.gmra.mxu1 %vm5519_vm9, %v8547_v50 }
0x1dd8   :  { %v14539_v29 = vpop.f32.mrf.mxu2 }
0x1de0   :  { %v8301_v13 = vpop.f32.mrf.mxu2 }
0x1df3   :  { %v14541_v52 = vpop.f32.mrf.mxu1 }
0x1df8   :  { %v14543_v12 = vpop.f32.mrf.mxu2 }
0x1dfb   :  { %v8282_v45 = vpop.f32.mrf.mxu1 }
0x1e00   :  { %v8377_v56 = vpop.f32.mrf.mxu2 }
0x1e03   :  { %v14545_v42 = vpop.f32.mrf.mxu1 }
0x1e0b   :  { %v8358_v26 = vpop.f32.mrf.mxu1  ;;  %v8574_v44 = vpop.f32.mrf.mxu2 }
0x1e0c   :  { %v14547_v4 = vmul.f32 0.28867513, %v8574_v44 }
0x1e0e   :  { %v8719_v43 = vsel %vm6929_vm8, %v14547_v4, -inf }
0x1e0f   :  { %v8631_v61 = vpop.f32.mrf.mxu0  ;;  %8720 = vmax.xlane.f32.xlu0 %v8719_v43 }
0x1e10   :  { %v14565_v0 = vmul.f32 0.28867513, %v8631_v61 }
0x1e12   :  { %v8728_v45 = vsel %vm6929_vm8, %v14565_v0, -inf }
0x1e13   :  { %v8521_v14 = vpop.f32.mrf.mxu1  ;;  %v8576_v51 = vpop.f32.mrf.mxu2 }
0x1e14   :  { %v8522_v23 = vadd.f32 %v11176_v59, %v8521_v14  ;;  %v8612_v35 = vpop.f32.mrf.mxu3 }
0x1e15   :  { %v14554_v57 = vmul.f32 0.28867513, %v8612_v35 }
0x1e16   :  { %v8535_v9 = vrot.slane %v8522_v23, 4  ;;  %v8815_v1 = vpack.c.bf16 %v8522_v23, %v8522_v23 }
0x1e17   :  { %v8725_v10 = vsel %vm6929_vm8, %v14554_v57, -inf  ;;  %v8633_v39 = vpop.f32.mrf.mxu0 }
0x1e18   :  { %v8816_v19 = vpack.c.bf16 %v8535_v9, %v8535_v9  ;;  %8726 = vmax.xlane.f32.xlu1 %v8725_v10  ;;  %v8827_v41 = vsel %vm6191_vm7, %v8815_v1, 0 }
0x1e19   :  { %8836 = vmatpush.bf16.msrb.mxu1 %v8827_v41 }
0x1e1a   :  { %v8846_v49 = vsel %vm6191_vm7, %v8816_v19, 0 }
0x1e1b   :  { %v8523_v48 = vpop.f32.mrf.mxu1  ;;  %v8593_v7 = vpop.f32.mrf.mxu2  ;;  %8855 = vmatpush.bf16.msra.mxu2 %v8846_v49 }
0x1e1c   :  { %v8524_v33 = vadd.f32 %v11176_v59, %v8523_v48  ;;  %v14560_v62 = vmul.f32 0.28867513, %v8593_v7  ;;  %v8614_v2 = vpop.f32.mrf.mxu3 }
0x1e1e   :  { %v8536_v38 = vrot.slane %v8524_v33, 4  ;;  %v8817_v32 = vpack.c.bf16 %v8524_v33, %v8524_v33  ;;  %v8722_v6 = vsel %vm6929_vm8, %v14560_v62, -inf }
0x1e1f   :  { %v8707_v28 = vpop.f32.mrf.mxu0  ;;  %8723 = vmax.xlane.f32.xlu2 %v8722_v6 }
0x1e20   :  { %v8818_v18 = vpack.c.bf16 %v8536_v38, %v8536_v38  ;;  %v8865_v58 = vsel %vm6191_vm7, %v8817_v32, 0  ;;  %v8718_v49 = vmul.f32 0.28867513, %v8707_v28 }
0x1e21   :  { %8874 = vmatpush.bf16.msrb.mxu3 %v8865_v58 }
0x1e22   :  { %v8884_v27 = vsel %vm6191_vm7, %v8818_v18, 0  ;;  %v8740_v38 = vsel %vm6929_vm8, %v8718_v49, -inf }
0x1e23   :  { %v8526_v25 = vpop.f32.mrf.mxu1  ;;  %v8595_v63 = vpop.f32.mrf.mxu2  ;;  %8893 = vmatpush.bf16.msra.mxu0 %v8884_v27 }
0x1e24   :  { %v8527_v24 = vadd.f32 %v11176_v59, %v8526_v25  ;;  %v8688_v16 = vpop.f32.mrf.mxu3 }
0x1e25   :  { %v8717_v31 = vmul.f32 0.28867513, %v8688_v16 }
0x1e26   :  { %v8537_v50 = vrot.slane %v8527_v24, 4  ;;  %v8819_v13 = vpack.c.bf16 %v8527_v24, %v8527_v24 }
0x1e27   :  { %v8709_v56 = vpop.f32.mrf.mxu0  ;;  %v8737_v26 = vsel %vm6929_vm8, %v8717_v31, -inf  ;;  %8729 = vmax.xlane.f32.xlu2 %v8728_v45 }
0x1e28   :  { %v8820_v44 = vpack.c.bf16 %v8537_v50, %v8537_v50  ;;  %8738 = vmax.xlane.f32.xlu0 %v8737_v26  ;;  %v8903_v43 = vsel %vm6191_vm7, %v8819_v13, 0 }
0x1e29   :  { %8912 = vmatpush.bf16.msra.mxu1 %v8903_v43 }
0x1e2a   :  { %v8922_v61 = vsel %vm6191_vm7, %v8820_v44, 0 }
0x1e2b   :  { %v8528_v14 = vpop.f32.mrf.mxu1  ;;  %v8669_v51 = vpop.f32.mrf.mxu2  ;;  %8931 = vmatpush.bf16.msrb.mxu2 %v8922_v61 }
0x1e2c   :  { %v8529_v23 = vadd.f32 %v11176_v59, %v8528_v14  ;;  %v8716_v35 = vmul.f32 0.28867513, %v8669_v51  ;;  %v8690_v9 = vpop.f32.mrf.mxu3 }
0x1e2e   :  { %v8538_v1 = vrot.slane %v8529_v23, 4  ;;  %v8821_v10 = vpack.c.bf16 %v8529_v23, %v8529_v23  ;;  %v8734_v39 = vsel %vm6929_vm8, %v8716_v35, -inf }
0x1e2f   :  { %8735 = vmax.xlane.f32.xlu1 %v8734_v39 }
0x1e30   :  { %v8822_v19 = vpack.c.bf16 %v8538_v1, %v8538_v1  ;;  %v8941_v41 = vsel %vm6191_vm7, %v8821_v10, 0 }
0x1e31   :  { %8950 = vmatpush.bf16.msra.mxu3 %v8941_v41 }
0x1e32   :  { %v8960_v48 = vsel %vm6191_vm7, %v8822_v19, 0  ;;  %vm9271_vm7 = vcmask 1042434  }
0x1e33   :  { %v8650_v7 = vpop.f32.mrf.mxu1  ;;  %v8671_v33 = vpop.f32.mrf.mxu2  ;;  %8969 = vmatpush.bf16.msrb.mxu0 %v8960_v48 }
0x1e34   :  { %v8715_v2 = vmul.f32 0.28867513, %v8650_v7 }
0x1e36   :  { %v8731_v59 = vsel %vm6929_vm8, %v8715_v2, -inf }
0x1e37   :  { %8732 = vmax.xlane.f32.xlu2 %v8731_v59  ;;  %8741 = vmax.xlane.f32.xlu1 %v8740_v38 }
0x1e3b   :  { %v8652_v32 = vpop.f32.mrf.mxu1 }
0x1e82   :  { %v8721_v6 = vpop.xlane.xlu0 %8720 }
0x1e83   :  { %v8743_v18 = vsub.f32 %v14547_v4, %v8721_v6 }
0x1e85   :  { %v8751_v58 = vmul.f32 1.442695, %v8743_v18 }
0x1e87   :  { %11564 = vpow2.f32 %v8751_v58 }
0x1e8b   :  { %v8727_v27 = vpop.xlane.xlu1 %8726 }
0x1e8c   :  { %v8745_v28 = vsub.f32 %v14554_v57, %v8727_v27  ;;  %v8379_v27 = vpack.c.bf16 %v14491_v55, %v14491_v55 }
0x1e8d   :  { %v14580_v25 = vpop.eup %11564 }
0x1e8e   :  { %v8755_v63 = vmul.f32 1.442695, %v8745_v28  ;;  %v8767_v24 = vsel %vm6929_vm8, %v14580_v25, 0.0  ;;  %v7784_v28 = vpack.c.bf16 %v14371_v40, %v14371_v40 }
0x1e8f   :  { %8768 = vadd.xlane.f32.xlu1 %v8767_v24 }
0x1e90   :  { %11566 = vpow2.f32 %v8755_v63  ;;  %v9031_v63 = vunpack.c.l.b16 %v8379_v27  ;;  %v8992_v24 = vunpack.c.l.b16 %v7784_v28 }
0x1e92   :  { %v8724_v16 = vpop.xlane.xlu2 %8723 }
0x1e93   :  { %v8744_v50 = vsub.f32 %v14560_v62, %v8724_v16  ;;  %v9039_v16 = vpack.c.b16 %v9031_v63, %v9031_v63 }
0x1e95   :  { %v8753_v13 = vmul.f32 1.442695, %v8744_v50  ;;  %v8382_v50 = vpack.c.bf16 %v14539_v29, %v14539_v29 }
0x1e96   :  { %v14585_v45 = vpop.eup %11566 }
0x1e97   :  { %11568 = vpow2.f32 %v8753_v13  ;;  %v8773_v4 = vsel %vm6929_vm8, %v14585_v45, 0.0  ;;  %v9000_v13 = vpack.c.b16 %v8992_v24, %v8992_v24 }
0x1e98   :  { %8774 = vadd.xlane.f32.xlu2 %v8773_v4  ;;  %v7786_v4 = vpack.c.bf16 %v14418_v5, %v14418_v5  ;;  %v8381_v5 = vpack.c.bf16 %v14541_v52, %v14541_v52  ;;  %v7787_v52 = vpack.c.bf16 %v14384_v21, %v14384_v21 }
0x1e9a   :  { %v8730_v57 = vpop.xlane.xlu2 %8729  ;;  %v8994_v40 = vunpack.c.l.b16 %v7786_v4 }
0x1e9b   :  { %v8739_v56 = vpop.xlane.xlu0 %8738  ;;  %v8746_v26 = vsub.f32 %v14565_v0, %v8730_v57  ;;  %v9034_v57 = vunpack.c.l.b16 %v8382_v50 }
0x1e9c   :  { %v8749_v44 = vsub.f32 %v8717_v31, %v8739_v56  ;;  %v9002_v29 = vpack.c.b16 %v8994_v40, %v8994_v40 }
0x1e9d   :  { %v14590_v43 = vpop.eup %11568  ;;  %v8757_v61 = vmul.f32 1.442695, %v8746_v26  ;;  %v8380_v26 = vpack.c.bf16 %v14494_v8, %v14494_v8  ;;  %v7789_v8 = vpack.c.bf16 %v14420_v37, %v14420_v37  ;;  %v8384_v37 = vpack.c.bf16 %v14496_v60, %v14496_v60 }
0x1e9e   :  { %v8763_v14 = vmul.f32 1.442695, %v8749_v44  ;;  %v8770_v62 = vsel %vm6929_vm8, %v14590_v43, 0.0  ;;  %v9042_v44 = vpack.c.b16 %v9034_v57, %v9034_v57 }
0x1e9f   :  { %11570 = vpow2.f32 %v8757_v61  ;;  %8771 = vadd.xlane.f32.xlu0 %v8770_v62  ;;  %v9032_v61 = vunpack.c.l.b16 %v8380_v26  ;;  %v9033_v62 = vunpack.c.l.b16 %v8381_v5  ;;  %v9036_v21 = vunpack.c.l.b16 %v8384_v37 }
0x1ea0   :  { %11572 = vpow2.f32 %v8763_v14 }
0x1ea2   :  { %v8736_v51 = vpop.xlane.xlu1 %8735 }
0x1ea3   :  { %v8748_v23 = vsub.f32 %v8716_v35, %v8736_v51  ;;  %v9040_v51 = vpack.c.b16 %v9032_v61, %v9032_v61 }
0x1ea5   :  { %v14594_v9 = vpop.eup %11570  ;;  %v8761_v1 = vmul.f32 1.442695, %v8748_v23 }
0x1ea6   :  { %v14596_v10 = vpop.eup %11572  ;;  %v8776_v0 = vsel %vm6929_vm8, %v14594_v9, 0.0 }
0x1ea7   :  { %11574 = vpow2.f32 %v8761_v1  ;;  %8777 = vadd.xlane.f32.xlu0 %v8776_v0  ;;  %v8785_v31 = vsel %vm6929_vm8, %v14596_v10, 0.0  ;;  %v9041_v1 = vpack.c.b16 %v9033_v62, %v9033_v62  ;;  %v8997_v0 = vunpack.c.l.b16 %v7789_v8 }
0x1ea8   :  { %8786 = vadd.xlane.f32.xlu1 %v8785_v31 }
0x1eaa   :  { %v8733_v39 = vpop.xlane.xlu2 %8732  ;;  %v8742_v19 = vpop.xlane.xlu1 %8741 }
0x1eab   :  { %v8747_v41 = vsub.f32 %v8715_v2, %v8733_v39  ;;  %v8750_v48 = vsub.f32 %v8718_v49, %v8742_v19  ;;  %v7783_v49 = vpack.c.bf16 %v14368_v30, %v14368_v30  ;;  %v7785_v30 = vpack.c.bf16 %v14416_v36, %v14416_v36 }
0x1eac   :  { %v7788_v36 = vpack.c.bf16 %v14382_v54, %v14382_v54  ;;  %v8383_v54 = vpack.c.bf16 %v14498_v3, %v14498_v3  ;;  %v8995_v39 = vunpack.c.l.b16 %v7787_v52  ;;  %v9005_v19 = vpack.c.b16 %v8997_v0, %v8997_v0 }
0x1ead   :  { %v14602_v7 = vpop.eup %11574  ;;  %v8759_v35 = vmul.f32 1.442695, %v8747_v41  ;;  %v8765_v33 = vmul.f32 1.442695, %v8750_v48  ;;  %v8991_v18 = vunpack.c.l.b16 %v7783_v49  ;;  %v8993_v55 = vunpack.c.l.b16 %v7785_v30 }
0x1eae   :  { %v8782_v59 = vsel %vm6929_vm8, %v14602_v7, 0.0  ;;  %v8996_v14 = vunpack.c.l.b16 %v7788_v36  ;;  %v9035_v31 = vunpack.c.l.b16 %v8383_v54  ;;  %v9003_v3 = vpack.c.b16 %v8995_v39, %v8995_v39 }
0x1eaf   :  { %11576 = vpow2.f32 %v8759_v35  ;;  %8783 = vadd.xlane.f32.xlu2 %v8782_v59  ;;  %v8999_v58 = vpack.c.b16 %v8991_v18, %v8991_v18  ;;  %v9001_v56 = vpack.c.b16 %v8993_v55, %v8993_v55  ;;  %v7790_v48 = vpack.c.bf16 %v14422_v11, %v14422_v11 }
0x1eb0   :  { %11578 = vpow2.f32 %v8765_v33  ;;  %v9004_v23 = vpack.c.b16 %v8996_v14, %v8996_v14  ;;  %v9043_v41 = vpack.c.b16 %v9035_v31, %v9035_v31  ;;  %v9044_v33 = vpack.c.b16 %v9036_v21, %v9036_v21 }
0x1eb1   :  { %v8998_v35 = vunpack.c.l.b16 %v7790_v48 }
0x1eb3   :  { %v9006_v59 = vpack.c.b16 %v8998_v35, %v8998_v35 }
0x1eb5   :  { %v14606_v38 = vpop.eup %11576 }
0x1eb6   :  { %v14608_v32 = vpop.eup %11578  ;;  %v8779_v6 = vsel %vm6929_vm8, %v14606_v38, 0.0 }
0x1eb7   :  { %8780 = vadd.xlane.f32.xlu0 %v8779_v6  ;;  %v8788_v2 = vsel %vm6929_vm8, %v14608_v32, 0.0 }
0x1eb8   :  { %8789 = vadd.xlane.f32.xlu2 %v8788_v2 }
0x1ec1   :  { %9007 = vrot.lane.b32.xlu1 %v8999_v58, %s11603_s29 }
0x1ec9   :  { %9047 = vrot.lane.b32.xlu1 %v9039_v16, %s11607_s0 }
0x1ecb   :  { %9009 = vrot.lane.b32.xlu0 %v9000_v13, %s11603_s29 }
0x1ed0   :  { %9011 = vrot.lane.b32.xlu2 %v9001_v56, %s11603_s29 }
0x1ed1   :  { %9053 = vrot.lane.b32.xlu1 %v9042_v44, %s11607_s0 }
0x1ed3   :  { %9013 = vrot.lane.b32.xlu0 %v9002_v29, %s11603_s29 }
0x1ed8   :  { %9049 = vrot.lane.b32.xlu2 %v9040_v51, %s11607_s0 }
0x1ed9   :  { %9017 = vrot.lane.b32.xlu1 %v9004_v23, %s11603_s29 }
0x1edb   :  { %9051 = vrot.lane.b32.xlu0 %v9041_v1, %s11607_s0  ;;  %v7193_v1 = vpack.c.bf16 %v14293_v53, %v14293_v53 }
0x1ee0   :  { %9019 = vrot.lane.b32.xlu2 %v9005_v19, %s11603_s29  ;;  %v7192_v19 = vpack.c.bf16 %v14244_v46, %v14244_v46  ;;  %v8386_v46 = vpack.c.bf16 %v14543_v12, %v14543_v12 }
0x1ee1   :  { %9055 = vrot.lane.b32.xlu1 %v9043_v41, %s11607_s0 }
0x1ee3   :  { %9015 = vrot.lane.b32.xlu0 %v9003_v3, %s11603_s29 }
0x1ee8   :  { %9057 = vrot.lane.b32.xlu2 %v9044_v33, %s11607_s0 }
0x1eeb   :  { %9021 = vrot.lane.b32.xlu0 %v9006_v59, %s11603_s29 }
0x1f02   :  { %v8769_v60 = vpop.xlane.xlu1 %8768 }
0x1f03   :  { %11580 = vrcp.f32 %v8769_v60 }
0x1f09   :  { %v11581_v6 = vpop.eup %11580 }
0x1f0a   :  { %v8799_v49 = vmul.f32 %v11581_v6, %v14580_v25 }
0x1f0b   :  { %v8775_v2 = vpop.xlane.xlu2 %8774 }
0x1f0c   :  { %v8807_v18 = vpack.c.bf16 %v8799_v49, %v8799_v49  ;;  %11582 = vrcp.f32 %v8775_v2 }
0x1f0e   :  { %10699 = vmatmul.msk.bf16.vlgmr.msrb.gmra.mxu1 %vm7034_vm13, %v8807_v18 }
0x1f12   :  { %v11583_v11 = vpop.eup %11582  ;;  %v8772_v58 = vpop.xlane.xlu0 %8771 }
0x1f13   :  { %v8801_v27 = vmul.f32 %v11583_v11, %v14585_v45  ;;  %11584 = vrcp.f32 %v8772_v58  ;;  %v9038_v58 = vunpack.c.l.b16 %v8386_v46 }
0x1f15   :  { %v8809_v28 = vpack.c.bf16 %v8801_v27, %v8801_v27 }
0x1f17   :  { %10701 = vmatmul.msk.bf16.vlgmr.msrb.gmra.mxu3 %vm7034_vm13, %v8809_v28 }
0x1f19   :  { %v11585_v63 = vpop.eup %11584 }
0x1f1a   :  { %v8800_v24 = vmul.f32 %v11585_v63, %v14590_v43  ;;  %v8778_v30 = vpop.xlane.xlu0 %8777 }
0x1f1b   :  { %11586 = vrcp.f32 %v8778_v30  ;;  %v8787_v16 = vpop.xlane.xlu1 %8786 }
0x1f1c   :  { %v8808_v25 = vpack.c.bf16 %v8800_v24, %v8800_v24  ;;  %11588 = vrcp.f32 %v8787_v16  ;;  %v8385_v24 = vpack.c.bf16 %v14545_v42, %v14545_v42 }
0x1f1e   :  { %10700 = vmatmul.msk.bf16.vlgmr.msra.gmra.mxu2 %vm7034_vm13, %v8808_v25  ;;  %v9046_v25 = vpack.c.b16 %v9038_v58, %v9038_v58 }
0x1f21   :  { %v11587_v50 = vpop.eup %11586 }
0x1f22   :  { %v11589_v13 = vpop.eup %11588  ;;  %v8802_v4 = vmul.f32 %v11587_v50, %v14594_v9  ;;  %v8784_v55 = vpop.xlane.xlu2 %8783 }
0x1f23   :  { %v8805_v45 = vmul.f32 %v11589_v13, %v14596_v10  ;;  %11590 = vrcp.f32 %v8784_v55  ;;  %v7189_v10 = vpack.c.bf16 %v14289_v34, %v14289_v34  ;;  %v7188_v34 = vpack.c.bf16 %v14239_v47, %v14239_v47 }
0x1f24   :  { %v8810_v57 = vpack.c.bf16 %v8802_v4, %v8802_v4  ;;  %v9037_v13 = vunpack.c.l.b16 %v8385_v24 }
0x1f25   :  { %v8813_v40 = vpack.c.bf16 %v8805_v45, %v8805_v45 }
0x1f26   :  { %10702 = vmatmul.msk.bf16.vlgmr.msra.gmra.mxu0 %vm7034_vm13, %v8810_v57 }
0x1f27   :  { %10705 = vmatmul.msk.bf16.vlgmr.msra.gmra.mxu3 %vm7034_vm13, %v8813_v40  ;;  %v9045_v40 = vpack.c.b16 %v9037_v13, %v9037_v13 }
0x1f29   :  { %v11591_v43 = vpop.eup %11590 }
0x1f2a   :  { %v8804_v56 = vmul.f32 %v11591_v43, %v14602_v7  ;;  %v8781_v26 = vpop.xlane.xlu0 %8780 }
0x1f2b   :  { %11592 = vrcp.f32 %v8781_v26  ;;  %v8790_v36 = vpop.xlane.xlu2 %8789 }
0x1f2c   :  { %v8812_v44 = vpack.c.bf16 %v8804_v56, %v8804_v56  ;;  %11594 = vrcp.f32 %v8790_v36 }
0x1f2e   :  { %10704 = vmatmul.msk.bf16.vlgmr.msrb.gmra.mxu2 %vm7034_vm13, %v8812_v44 }
0x1f31   :  { %v11593_v9 = vpop.eup %11592 }
0x1f32   :  { %v11595_v29 = vpop.eup %11594  ;;  %v8803_v5 = vmul.f32 %v11593_v9, %v14606_v38 }
0x1f33   :  { %v8806_v61 = vmul.f32 %v11595_v29, %v14608_v32  ;;  %v9012_v14 = vpop.permute.xlu2 %9011  ;;  %v14672_v62 = vpop.permute.xlu1 %9007 }
0x1f34   :  { %v8811_v7 = vpack.c.bf16 %v8803_v5, %v8803_v5  ;;  %v14675_v8 = vsel %vm5519_vm9, %v7189_v10, %v9012_v14 }
0x1f35   :  { %v8814_v51 = vpack.c.bf16 %v8806_v61, %v8806_v61 }
0x1f36   :  { %10703 = vmatmul.msk.bf16.vlgmr.msra.gmra.mxu1 %vm7034_vm13, %v8811_v7 }
0x1f37   :  { %10706 = vmatmul.msk.bf16.vlgmr.msrb.gmra.mxu0 %vm7034_vm13, %v8814_v51 }
0x1f3b   :  { %v9050_v23 = vpop.permute.xlu2 %9049  ;;  %v14679_v54 = vpop.permute.xlu1 %9047 }
0x1f3d   :  { %v9010_v38 = vpop.permute.xlu0 %9009 }
0x1f3e   :  { %v9108_v32 = vsel %vm5519_vm9, %v7188_v34, %v9010_v38 }
0x1f3f   :  { %v14685_v52 = vsel %vm156_vm3, %v9108_v32, %v9050_v23  ;;  %v7187_v32 = vpack.c.bf16 %v14241_v15, %v14241_v15  ;;  %v11068_v15 = vld [vmem:[%s15161_s6 + $0x38] sm:$0xff] }
0x1f43   :  { %v9020_v0 = vpop.permute.xlu2 %9019  ;;  %v14689_v31 = vpop.permute.xlu1 %9053 }
0x1f44   :  { %v14692_v39 = vsel %vm5519_vm9, %v7193_v1, %v9020_v0  ;;  %v9105_v1 = vsel %vm5519_vm9, %v7187_v32, %v14672_v62  ;;  %v11067_v62 = vld [vmem:[%s15161_s6 + $0x30] sm:$0xff] }
0x1f45   :  { %v9128_v0 = vsel %vm156_vm3, %v9105_v1, %v14679_v54  ;;  %v7190_v54 = vpack.c.bf16 %v14287_v17, %v14287_v17  ;;  %v10827_v1 = vld [vmem:[%s15165_s13 + $0xa0] sm:$0xf] }
0x1f4b   :  { %v9058_v37 = vpop.permute.xlu2 %9057  ;;  %v9018_v47 = vpop.permute.xlu1 %9017 }
0x1f4c   :  { %v9120_v41 = vsel %vm5519_vm9, %v7192_v19, %v9018_v47  ;;  %v9014_v47 = vpop.permute.xlu0 %9013 }
0x1f4d   :  { %v14698_v3 = vsel %vm156_vm3, %v9120_v41, %v9058_v37  ;;  %v11069_v41 = vld [vmem:[%s15161_s6 + $0x40] sm:$0xff] }
0x1f4e   :  { %9204 = vmatpush.bf16.msrb.mxu1 %v11069_v41 }
0x1f52   :  { %9205 = vmatpush.bf16.msrb.mxu1 %v11068_v15  ;;  %v11076_v15 = vld [vmem:[%s15165_s13 + $0x34] sm:$0xf] }
0x1f56   :  { %9206 = vmatpush.bf16.msrb.mxu1 %v11067_v62  ;;  %v10755_v62 = vld [vmem:[%s15165_s13] sm:$0xf] }
0x1f8b   :  { %v8838_v48 = vpop.f32.mrf.mxu1 }
0x1f8c   :  { %v8975_v21 = vpack.c.bf16 %v8838_v48, %v8838_v48  ;;  %v9052_v48 = vpop.permute.xlu0 %9051 }
0x1f8d   :  { %v9132_v17 = vsel %vm156_vm3, %v14675_v8, %v9052_v48  ;;  %v10731_v48 = vld [vmem:[%s15165_s13 + $0x38] sm:$0xf0] }
0x1f8e   :  { %v9071_v35 = vunpack.c.l.b16 %v8975_v21  ;;  %v9114_v21 = vsel %vm5519_vm9, %v7190_v54, %v9014_v47  ;;  %v11077_v47 = vld [vmem:[%s15165_s13 + $0x34] sm:$0xf0] }
0x1f90   :  { %v9079_v53 = vpack.c.b16 %v9071_v35, %v9071_v35 }
0x1f92   :  { %9087 = vrot.lane.b32.xlu2 %v9079_v53, %s11606_s19  ;;  %v9134_v53 = vsel %vm156_vm3, %v9114_v21, %v14689_v31  ;;  %v10734_v21 = vor.u32 %v11076_v15, %v10731_v48 }
0x1f93   :  { %v8840_v33 = vpop.f32.mrf.mxu1 }
0x1f9a   :  { %v8876_v59 = vpop.f32.mrf.mxu3 }
0x1f9b   :  { %v8977_v60 = vpack.c.bf16 %v8876_v59, %v8876_v59  ;;  %v9016_v59 = vpop.permute.xlu0 %9015 }
0x1f9d   :  { %v9073_v6 = vunpack.c.l.b16 %v8977_v60  ;;  %v9056_v60 = vpop.permute.xlu1 %9055 }
0x1f9f   :  { %v9081_v49 = vpack.c.b16 %v9073_v6, %v9073_v6  ;;  %v7191_v6 = vpack.c.bf16 %v14246_v22, %v14246_v22 }
0x1fa1   :  { %9091 = vrot.lane.b32.xlu1 %v9081_v49, %s11606_s19  ;;  %v8857_v2 = vpop.f32.mrf.mxu2  ;;  %v9117_v46 = vsel %vm5519_vm9, %v7191_v6, %v9016_v59 }
0x1fa2   :  { %v8976_v18 = vpack.c.bf16 %v8857_v2, %v8857_v2  ;;  %v8878_v11 = vpop.f32.mrf.mxu3  ;;  %v9136_v31 = vsel %vm156_vm3, %v9117_v46, %v9056_v60 }
0x1fa3   :  { %v8895_v27 = vpop.f32.mrf.mxu0  ;;  %v9022_v49 = vpop.permute.xlu0 %9021 }
0x1fa4   :  { %v9072_v28 = vunpack.c.l.b16 %v8976_v18  ;;  %v8978_v63 = vpack.c.bf16 %v8895_v27, %v8895_v27  ;;  %v7194_v27 = vpack.c.bf16 %v14291_v20, %v14291_v20 }
0x1fa6   :  { %v9080_v30 = vpack.c.b16 %v9072_v28, %v9072_v28  ;;  %v9074_v16 = vunpack.c.l.b16 %v8978_v63  ;;  %v9126_v28 = vsel %vm5519_vm9, %v7194_v27, %v9022_v49  ;;  %v11074_v49 = vld [vmem:[%s15165_s13 + $0x24] sm:$0xf]  ;;  %v10805_v27 = vld [vmem:[%s15165_s13 + $0x88] sm:$0xf0]  ;;  %vm9274_vm9 = vcmask 1043459  }
0x1fa8   :  { %v9082_v50 = vpack.c.b16 %v9074_v16, %v9074_v16  ;;  %9089 = vrot.lane.b32.xlu0 %v9080_v30, %s11606_s19 }
0x1fa9   :  { %9061 = vrot.lane.b32.xlu1 %v9046_v25, %s11607_s0  ;;  %v8859_v12 = vpop.f32.mrf.mxu2 }
0x1faa   :  { %v8952_v4 = vpop.f32.mrf.mxu3  ;;  %9093 = vrot.lane.b32.xlu2 %v9082_v50, %s11606_s19 }
0x1fab   :  { %v8981_v55 = vpack.c.bf16 %v8952_v4, %v8952_v4  ;;  %v8897_v45 = vpop.f32.mrf.mxu0 }
0x1fac   :  { %v10745_v45 = vld [vmem:[%s15165_s13 + $0x50] sm:$0xf] }
0x1fad   :  { %v9077_v57 = vunpack.c.l.b16 %v8981_v55 }
0x1faf   :  { %v9085_v43 = vpack.c.b16 %v9077_v57, %v9077_v57  ;;  %v11080_v57 = vld [vmem:[%s15165_s13 + $0x54] sm:$0xf] }
0x1fb0   :  { %9059 = vrot.lane.b32.xlu0 %v9045_v40, %s11607_s0 }
0x1fb1   :  { %9099 = vrot.lane.b32.xlu1 %v9085_v43, %s11606_s19  ;;  %v8933_v42 = vpop.f32.mrf.mxu2  ;;  %v10771_v43 = vld [vmem:[%s15165_s13 + $0x20] sm:$0xf] }
0x1fb2   :  { %v8980_v56 = vpack.c.bf16 %v8933_v42, %v8933_v42  ;;  %v8954_v26 = vpop.f32.mrf.mxu3  ;;  %v11075_v42 = vld [vmem:[%s15165_s13 + $0x24] sm:$0xf0] }
0x1fb3   :  { %v8914_v36 = vpop.f32.mrf.mxu1  ;;  %v10772_v26 = vor.u32 %v11075_v42, %v10771_v43  ;;  %v10789_v43 = vld [vmem:[%s15165_s13 + $0x68] sm:$0xf0] }
0x1fb4   :  { %v9076_v44 = vunpack.c.l.b16 %v8980_v56  ;;  %v8979_v9 = vpack.c.bf16 %v8914_v36, %v8914_v36  ;;  %v8971_v29 = vpop.f32.mrf.mxu0  ;;  %v10835_v36 = vld [vmem:[%s15165_s13 + $0xb0] sm:$0xf] }
0x1fb5   :  { %v8982_v14 = vpack.c.bf16 %v8971_v29, %v8971_v29  ;;  %9401 = vmatpush.bf16.msra.mxu0 %v10772_v26  ;;  %v10737_v29 = vld [vmem:[%s15165_s13 + $0x40] sm:$0xf] }
0x1fb6   :  { %v9084_v10 = vpack.c.b16 %v9076_v44, %v9076_v44  ;;  %v9075_v5 = vunpack.c.l.b16 %v8979_v9  ;;  %v11093_v44 = vld [vmem:[%s15165_s13 + $0xb4] sm:$0xf0] }
0x1fb7   :  { %v9078_v23 = vunpack.c.l.b16 %v8982_v14  ;;  %v10836_v9 = vor.u32 %v11093_v44, %v10835_v36 }
0x1fb8   :  { %v9083_v61 = vpack.c.b16 %v9075_v5, %v9075_v5  ;;  %9097 = vrot.lane.b32.xlu0 %v9084_v10, %s11606_s19  ;;  %v11079_v10 = vld [vmem:[%s15165_s13 + $0x44] sm:$0xf0]  ;;  %v11078_v5 = vld [vmem:[%s15165_s13 + $0x44] sm:$0xf] }
0x1fb9   :  { %v8935_v7 = vpop.f32.mrf.mxu2  ;;  %v9086_v38 = vpack.c.b16 %v9078_v23, %v9078_v23  ;;  %9565 = vmatpush.bf16.msra.mxu1 %v10836_v9  ;;  %v10738_v14 = vor.u32 %v11079_v10, %v10737_v29  ;;  %v11073_v23 = vld [vmem:[%s15165_s13 + $0x14] sm:$0xf0] }
0x1fba   :  { %9095 = vrot.lane.b32.xlu2 %v9083_v61, %s11606_s19  ;;  %v10739_v7 = vld [vmem:[%s15165_s13 + $0x48] sm:$0xf0] }
0x1fbb   :  { %v8916_v51 = vpop.f32.mrf.mxu1 }
0x1fbc   :  { %v8973_v34 = vpop.f32.mrf.mxu0  ;;  %v10763_v51 = vld [vmem:[%s15165_s13 + $0x10] sm:$0xf] }
0x1fbd   :  { %v14803_v34 = vld [vmem:[%s15153_s16 + $0x8] ss:$0 sm:$0xff]  ;;  %v10764_v32 = vor.u32 %v11073_v23, %v10763_v51 }
0x1fbf   :  { %9402 = vmatpush.bf16.msra.mxu0 %v10764_v32 }
0x1fc2   :  { %9101 = vrot.lane.b32.xlu2 %v9086_v38, %s11606_s19  ;;  %v10742_v38 = vor.u32 %v11078_v5, %v10739_v7 }
0x1fec   :  { %v9088_v19 = vpop.permute.xlu2 %9087 }
0x1fed   :  { %v9144_v37 = vsel %vm5586_vm12, %v9128_v0, %v9088_v19  ;;  %v11091_v0 = vld [vmem:[%s15165_s13 + $0xa4] sm:$0xf0] }
0x1fee   :  { %9160 = vst [vmem:[#allocation1] ss:$4 sm:$0xff] %v9144_v37  ;;  %v10828_v19 = vor.u32 %v11091_v0, %v10827_v1  ;;  %v10729_v37 = vld [vmem:[%s15165_s13 + $0x30] sm:$0xf] }
0x1fef   :  { %v10730_v41 = vor.u32 %v11077_v47, %v10729_v37 }
0x1ff0   :  { %9566 = vmatpush.bf16.msra.mxu1 %v10828_v19 }
0x2004   :  { %v9094_v35 = vpop.permute.xlu2 %9093 }
0x2005   :  { %v9150_v33 = vsel %vm5586_vm12, %v9134_v53, %v9094_v35  ;;  %v11071_v35 = vld [vmem:[%s15165_s13 + $0x4] sm:$0xf0]  ;;  %v10819_v53 = vld [vmem:[%s15165_s13 + $0x90] sm:$0xf] }
0x2006   :  { %9166 = vst [vmem:[#allocation1 + $0x3] ss:$4 sm:$0xff] %v9150_v33  ;;  %v11089_v33 = vld [vmem:[%s15165_s13 + $0x94] sm:$0xf0]  ;;  %v10756_v59 = vor.u32 %v11071_v35, %v10755_v62 }
0x2007   :  { %v10820_v60 = vor.u32 %v11089_v33, %v10819_v53 }
0x2008   :  { %9403 = vmatpush.bf16.msra.mxu0 %v10756_v59 }
0x2009   :  { %9567 = vmatpush.bf16.msra.mxu1 %v10820_v60 }
0x2013   :  { %v9092_v2 = vpop.permute.xlu1 %9091 }
0x2014   :  { %v9148_v18 = vsel %vm5586_vm12, %v9132_v17, %v9092_v2  ;;  %v9096_v11 = vpop.permute.xlu2 %9095  ;;  %v10773_v2 = vld [vmem:[%s15165_s13 + $0x28] sm:$0xf0] }
0x2015   :  { %9164 = vst [vmem:[#allocation1 + $0x2] ss:$4 sm:$0xff] %v9148_v18  ;;  %v9152_v58 = vsel %vm5586_vm12, %v9136_v31, %v9096_v11  ;;  %v10803_v18 = vld [vmem:[%s15165_s13 + $0x80] sm:$0xf]  ;;  %v11087_v11 = vld [vmem:[%s15165_s13 + $0x84] sm:$0xf0]  ;;  %v10776_v31 = vor.u32 %v11074_v49, %v10773_v2 }
0x2016   :  { %9168 = vst [vmem:[#allocation1 + $0x20] ss:$4 sm:$0xff] %v9152_v58  ;;  %v11086_v58 = vld [vmem:[%s15165_s13 + $0x84] sm:$0xf] }
0x201a   :  { %v9090_v22 = vpop.permute.xlu0 %9089 }
0x201b   :  { %v9062_v63 = vpop.permute.xlu1 %9061  ;;  %v9146_v8 = vsel %vm5586_vm12, %v14685_v52, %v9090_v22  ;;  %v11072_v22 = vld [vmem:[%s15165_s13 + $0x14] sm:$0xf] }
0x201c   :  { %v9142_v24 = vsel %vm156_vm3, %v9126_v28, %v9062_v63  ;;  %9162 = vst [vmem:[#allocation1 + $0x1] ss:$4 sm:$0xff] %v9146_v8  ;;  %v9102_v30 = vpop.permute.xlu2 %9101  ;;  %v10804_v8 = vor.u32 %v11087_v11, %v10803_v18 }
0x201d   :  { %v9158_v16 = vsel %vm5586_vm12, %v9142_v24, %v9102_v30  ;;  %v10808_v24 = vor.u32 %v11086_v58, %v10805_v27  ;;  %v10765_v30 = vld [vmem:[%s15165_s13 + $0x18] sm:$0xf0] }
0x201e   :  { %9174 = vst [vmem:[#allocation1 + $0x23] ss:$4 sm:$0xff] %v9158_v16  ;;  %v10795_v16 = vld [vmem:[%s15165_s13 + $0x70] sm:$0xf] }
0x201f   :  { %9495 = vmatpush.bf16.msrb.mxu0 %v10808_v24 }
0x2022   :  { %v9060_v25 = vpop.permute.xlu0 %9059 }
0x2023   :  { %v9100_v50 = vpop.permute.xlu1 %9099  ;;  %v9140_v12 = vsel %vm156_vm3, %v14692_v39, %v9060_v25  ;;  %v9175_v20 = vld.sshfl [vmem:[#allocation1] sm:$0xff pattern:$0x73625140]  ;;  %v11081_v39 = vld [vmem:[%s15165_s13 + $0x54] sm:$0xf0]  ;;  %vm9268_vm3 = vcmask 1041409  }
0x2024   :  { %v9156_v13 = vsel %vm5586_vm12, %v9140_v12, %v9100_v50  ;;  %10719 = vmatmul.msk.bf16.vlgmr.msrb.gmra.mxu1 %vm421_vm4, %v9175_v20  ;;  %v10746_v40 = vor.u32 %v11081_v39, %v10745_v45  ;;  %v10768_v12 = vor.u32 %v11072_v22, %v10765_v30  ;;  %v11085_v20 = vld [vmem:[%s15165_s13 + $0x74] sm:$0xf0]  ;;  %v11070_v45 = vld [vmem:[%s15165_s13 + $0x4] sm:$0xf]  ;;  %v10757_v39 = vld [vmem:[%s15165_s13 + $0x8] sm:$0xf0] }
0x2025   :  { %9172 = vst [vmem:[#allocation1 + $0x22] ss:$4 sm:$0xff] %v9156_v13  ;;  %v11084_v13 = vld [vmem:[%s15165_s13 + $0x74] sm:$0xf]  ;;  %v10760_v29 = vor.u32 %v11070_v45, %v10757_v39 }
0x2026   :  { %9327 = vmatpush.bf16.msra.mxu2 %v10746_v40  ;;  %v11083_v40 = vld [vmem:[%s15165_s13 + $0x64] sm:$0xf0]  ;;  %v11092_v39 = vld [vmem:[%s15165_s13 + $0xb4] sm:$0xf] }
0x202a   :  { %v9098_v4 = vpop.permute.xlu0 %9097  ;;  %9328 = vmatpush.bf16.msra.mxu2 %v10738_v14 }
0x202b   :  { %v9154_v52 = vsel %vm5586_vm12, %v14698_v3, %v9098_v4  ;;  %v10747_v3 = vld [vmem:[%s15165_s13 + $0x58] sm:$0xf0]  ;;  %vm9277_vm12 = vcmask 1044484  }
0x202c   :  { %9170 = vst [vmem:[#allocation1 + $0x21] ss:$4 sm:$0xff] %v9154_v52  ;;  %v10750_v56 = vor.u32 %v11080_v57, %v10747_v3  ;;  %v10797_v4 = vld [vmem:[%s15165_s13 + $0x78] sm:$0xf0]  ;;  %v10796_v52 = vor.u32 %v11085_v20, %v10795_v16  ;;  %v10787_v57 = vld [vmem:[%s15165_s13 + $0x60] sm:$0xf] }
0x202d   :  { %v11082_v3 = vld [vmem:[%s15165_s13 + $0x64] sm:$0xf]  ;;  %v10788_v10 = vor.u32 %v11083_v40, %v10787_v57  ;;  %v10837_v57 = vld [vmem:[%s15165_s13 + $0xb8] sm:$0xf0] }
0x202e   :  { %9340 = vmatpush.bf16.msrb.mxu3 %v10750_v56  ;;  %9329 = vmatpush.bf16.msra.mxu2 %v10730_v41  ;;  %v10792_v5 = vor.u32 %v11082_v3, %v10789_v43 }
0x2032   :  { %9341 = vmatpush.bf16.msrb.mxu3 %v10742_v38  ;;  %9414 = vmatpush.bf16.msrb.mxu2 %v10776_v31 }
0x2033   :  { %v9176_v55 = vld.sshfl [vmem:[#allocation1 + $0x20] sm:$0xff pattern:$0x73625140] }
0x2034   :  { %10720 = vmatmul.msk.bf16.gmra.mxu1 %vm421_vm4, %v9176_v55  ;;  %v10800_v55 = vor.u32 %v11084_v13, %v10797_v4 }
0x2036   :  { %9342 = vmatpush.bf16.msrb.mxu3 %v10734_v21  ;;  %9415 = vmatpush.bf16.msrb.mxu2 %v10768_v12 }
0x2037   :  { %9496 = vmatpush.bf16.msrb.mxu0 %v10800_v55 }
0x203a   :  { %9482 = vmatpush.bf16.msra.mxu3 %v10804_v8  ;;  %9416 = vmatpush.bf16.msrb.mxu2 %v10760_v29 }
0x203b   :  { %9497 = vmatpush.bf16.msrb.mxu0 %v10792_v5  ;;  %v10840_v5 = vor.u32 %v11092_v39, %v10837_v57  ;;  %v11098_v39 = vld [vmem:[%s15166_s14 + $0x24] sm:$0xf] }
0x203e   :  { %9483 = vmatpush.bf16.msra.mxu3 %v10796_v52 }
0x2042   :  { %9484 = vmatpush.bf16.msra.mxu3 %v10788_v10 }
0x20a1   :  { %v9208_v61 = vpop.f32.mrf.mxu1 }
0x20a2   :  { %v9209_v54 = vadd.f32 %v14803_v34, %v9208_v61 }
0x20a4   :  { %v9222_v46 = vrot.slane %v9209_v54, 4  ;;  %v9236_v28 = vpack.c.bf16 %v9209_v54, %v9209_v54 }
0x20a6   :  { %v9237_v25 = vpack.c.bf16 %v9222_v46, %v9222_v46  ;;  %v14891_v42 = vunpack.c.l.b16 %v9236_v28 }
0x20a8   :  { %v14893_v36 = vunpack.c.l.b16 %v9237_v25  ;;  %v9267_v7 = vrot.slane %v14891_v42, 1  ;;  %v9512_v47 = vrot.slane %v14891_v42, 3 }
0x20a9   :  { %v9210_v6 = vpop.f32.mrf.mxu1 }
0x20aa   :  { %v9211_v17 = vadd.f32 %v14803_v34, %v9210_v6  ;;  %v9348_v23 = vrot.slane %v14893_v36, 7  ;;  %v9513_v38 = vrot.slane %v14893_v36, 2  ;;  %v9269_v41 = vsel %vm9268_vm3, %v14893_v36, %v9267_v7 }
0x20ab   :  { %v9430_v43 = vrot.slane %v14893_v36, 1  ;;  %v10829_v36 = vld [vmem:[%s15165_s13 + $0xa8] sm:$0xf0] }
0x20ac   :  { %v9223_v63 = vrot.slane %v9211_v17, 4  ;;  %v9238_v50 = vpack.c.bf16 %v9211_v17, %v9211_v17  ;;  %v9349_v62 = vsel %vm9268_vm3, %v9348_v23, %v14891_v42  ;;  %v9514_v54 = vsel %vm9268_vm3, %v9513_v38, %v9512_v47  ;;  %v11090_v23 = vld [vmem:[%s15165_s13 + $0xa4] sm:$0xf] }
0x20ae   :  { %v9239_v56 = vpack.c.bf16 %v9223_v63, %v9223_v63  ;;  %v14895_v44 = vunpack.c.l.b16 %v9238_v50 }
0x20b0   :  { %v14899_v51 = vunpack.c.l.b16 %v9239_v56  ;;  %v9270_v32 = vrot.slane %v14895_v44, 7  ;;  %v9350_v1 = vrot.slane %v14895_v44, 6  ;;  %v9515_v0 = vrot.slane %v14895_v44, 1 }
0x20b1   :  { %v9213_v26 = vpop.f32.mrf.mxu1 }
0x20b2   :  { %v9214_v9 = vadd.f32 %v14803_v34, %v9213_v26  ;;  %v9273_v15 = vrot.slane %v14899_v51, 6  ;;  %v9272_v21 = vsel %vm9271_vm7, %v9270_v32, %v9269_v41  ;;  %v9352_v35 = vrot.slane %v14899_v51, 5 }
0x20b3   :  { %v9351_v53 = vsel %vm9271_vm7, %v9350_v1, %v9349_v62  ;;  %v9516_v33 = vsel %vm9271_vm7, %v9515_v0, %v9514_v54 }
0x20b4   :  { %v9224_v61 = vrot.slane %v9214_v9, 4  ;;  %v9240_v14 = vpack.c.bf16 %v9214_v9, %v9214_v9  ;;  %v9275_v17 = vsel %vm9274_vm9, %v9273_v15, %v9272_v21  ;;  %v9353_v2 = vsel %vm9274_vm9, %v9352_v35, %v9351_v53  ;;  %v10902_v35 = vld [vmem:[%s15166_s14 + $0x70] sm:$0xf]  ;;  %v11109_v53 = vld [vmem:[%s15166_s14 + $0x74] sm:$0xf0] }
0x20b5   :  { %v9517_v18 = vsel %vm9274_vm9, %v14899_v51, %v9516_v33  ;;  %v11108_v33 = vld [vmem:[%s15166_s14 + $0x74] sm:$0xf] }
0x20b6   :  { %v9241_v19 = vpack.c.bf16 %v9224_v61, %v9224_v61  ;;  %v14906_v37 = vunpack.c.l.b16 %v9240_v14  ;;  %v9429_v61 = vrot.slane %v14891_v42, 2  ;;  %v9433_v14 = vrot.slane %v14899_v51, 7 }
0x20b7   :  { %v10832_v51 = vor.u32 %v11090_v23, %v10829_v36  ;;  %v10848_v23 = vld [vmem:[%s15166_s14 + $0x8] sm:$0xf0] }
0x20b8   :  { %v14919_v59 = vunpack.c.l.b16 %v9241_v19  ;;  %v9276_v60 = vrot.slane %v14906_v37, 5  ;;  %v9354_v6 = vrot.slane %v14906_v37, 4  ;;  %v9518_v46 = vrot.slane %v14906_v37, 7  ;;  %v11088_v19 = vld [vmem:[%s15165_s13 + $0x94] sm:$0xf] }
0x20b9   :  { %v9215_v48 = vpop.f32.mrf.mxu1  ;;  %v9435_v38 = vrot.slane %v14906_v37, 6  ;;  %v9431_v32 = vsel %vm9268_vm3, %v9430_v43, %v9429_v61  ;;  %v10821_v37 = vld [vmem:[%s15165_s13 + $0x98] sm:$0xf0]  ;;  %v10854_v43 = vld [vmem:[%s15166_s14 + $0x10] sm:$0xf] }
0x20ba   :  { %v9216_v49 = vadd.f32 %v14803_v34, %v9215_v48  ;;  %v9278_v58 = vsel %vm9277_vm12, %v9276_v60, %v9275_v17  ;;  %v9279_v27 = vrot.slane %v14919_v59, 4  ;;  %v9356_v22 = vrot.slane %v14919_v59, 3  ;;  %v10904_v60 = vld [vmem:[%s15166_s14 + $0x78] sm:$0xf0]  ;;  %v11106_v17 = vld [vmem:[%s15166_s14 + $0x64] sm:$0xf] }
0x20bb   :  { %v9520_v28 = vrot.slane %v14919_v59, 6  ;;  %v9355_v34 = vsel %vm9277_vm12, %v9354_v6, %v9353_v2  ;;  %v9519_v63 = vsel %vm9277_vm12, %v9518_v46, %v9517_v18  ;;  %v9432_v42 = vsel %vm9271_vm7, %v14895_v44, %v9431_v32  ;;  %v10894_v46 = vld [vmem:[%s15166_s14 + $0x60] sm:$0xf]  ;;  %v10896_v18 = vld [vmem:[%s15166_s14 + $0x68] sm:$0xf0] }
0x20bc   :  { %v9225_v11 = vrot.slane %v9216_v49, 4  ;;  %v9242_v31 = vpack.c.bf16 %v9216_v49, %v9216_v49  ;;  %v9281_v50 = vsel %vm9280_vm2, %v9279_v27, %v9278_v58  ;;  %v9357_v12 = vsel %vm9280_vm2, %v9356_v22, %v9355_v34  ;;  %v11107_v49 = vld [vmem:[%s15166_s14 + $0x64] sm:$0xf0]  ;;  %v11105_v58 = vld [vmem:[%s15166_s14 + $0x54] sm:$0xf0] }
0x20bd   :  { %v9521_v20 = vsel %vm9280_vm2, %v9520_v28, %v9519_v63  ;;  %v9434_v1 = vsel %vm9274_vm9, %v9433_v14, %v9432_v42  ;;  %v9437_v0 = vrot.slane %v14919_v59, 5  ;;  %v10824_v15 = vor.u32 %v11088_v19, %v10821_v37  ;;  %v11104_v27 = vld [vmem:[%s15166_s14 + $0x54] sm:$0xf]  ;;  %v10888_v28 = vld [vmem:[%s15166_s14 + $0x58] sm:$0xf0] }
0x20be   :  { %v9243_v8 = vpack.c.bf16 %v9225_v11, %v9225_v11  ;;  %v9265_v24 = vunpack.c.l.b16 %v9242_v31  ;;  %v9436_v47 = vsel %vm9277_vm12, %v9435_v38, %v9434_v1  ;;  %v10903_v59 = vor.u32 %v11109_v53, %v10902_v35  ;;  %v10886_v31 = vld [vmem:[%s15166_s14 + $0x50] sm:$0xf]  ;;  %v10878_v63 = vld [vmem:[%s15166_s14 + $0x40] sm:$0xf]  ;;  %v11095_v61 = vld [vmem:[%s15166_s14 + $0x4] sm:$0xf0] }
0x20bf   :  { %v9438_v44 = vsel %vm9280_vm2, %v9437_v0, %v9436_v47  ;;  %v10907_v6 = vor.u32 %v11108_v33, %v10904_v60  ;;  %v10895_v2 = vor.u32 %v11107_v49, %v10894_v46  ;;  %v10899_v11 = vor.u32 %v11106_v17, %v10896_v18  ;;  %v11094_v14 = vld [vmem:[%s15166_s14 + $0x4] sm:$0xf]  ;;  %v10934_v38 = vld [vmem:[%s15166_s14 + $0xb0] sm:$0xf]  ;;  %v11117_v32 = vld [vmem:[%s15166_s14 + $0xb4] sm:$0xf0] }
0x20c0   :  { %v9266_v30 = vunpack.c.l.b16 %v9243_v8  ;;  %v9282_v16 = vrot.slane %v9265_v24, 3  ;;  %v9358_v25 = vrot.slane %v9265_v24, 2  ;;  %v9522_v13 = vrot.slane %v9265_v24, 5  ;;  %v11103_v8 = vld [vmem:[%s15166_s14 + $0x44] sm:$0xf0] }
0x20c1   :  { %v9439_v41 = vrot.slane %v9265_v24, 4  ;;  %9781 = vmatpush.bf16.msrb.mxu1 %v10907_v6  ;;  %v10887_v22 = vor.u32 %v11105_v58, %v10886_v31  ;;  %v10891_v34 = vor.u32 %v11104_v27, %v10888_v28  ;;  %v11102_v24 = vld [vmem:[%s15166_s14 + $0x44] sm:$0xf]  ;;  %v10851_v36 = vor.u32 %v11094_v14, %v10848_v23  ;;  %v11116_v42 = vld [vmem:[%s15166_s14 + $0xb4] sm:$0xf] }
0x20c2   :  { %v9284_v4 = vsel %vm9283_vm5, %v9282_v16, %v9281_v50  ;;  %v9285_v52 = vrot.slane %v9266_v30, 2  ;;  %v9359_v55 = vsel %vm9283_vm5, %v9358_v25, %v9357_v12  ;;  %v9360_v45 = vrot.slane %v9266_v30, 1  ;;  %v10880_v16 = vld [vmem:[%s15166_s14 + $0x48] sm:$0xf0]  ;;  %v10870_v50 = vld [vmem:[%s15166_s14 + $0x30] sm:$0xf] }
0x20c3   :  { %v9523_v40 = vsel %vm9283_vm5, %v9522_v13, %v9521_v20  ;;  %v9524_v3 = vrot.slane %v9266_v30, 4  ;;  %v9441_v48 = vrot.slane %v9266_v30, 3  ;;  %v9440_v62 = vsel %vm9283_vm5, %v9439_v41, %v9438_v44  ;;  %v11101_v12 = vld [vmem:[%s15166_s14 + $0x34] sm:$0xf0]  ;;  %v11100_v20 = vld [vmem:[%s15166_s14 + $0x34] sm:$0xf] }
0x20c4   :  { %v9287_v56 = vsel %vm9286_vm6, %v9285_v52, %v9284_v4  ;;  %v9361_v26 = vsel %vm9286_vm6, %v9360_v45, %v9359_v55  ;;  %v10879_v30 = vor.u32 %v11103_v8, %v10878_v63  ;;  %v10883_v25 = vor.u32 %v11102_v24, %v10880_v16  ;;  %v10872_v4 = vld [vmem:[%s15166_s14 + $0x38] sm:$0xf0]  ;;  %v10862_v55 = vld [vmem:[%s15166_s14 + $0x20] sm:$0xf]  ;;  %v11099_v45 = vld [vmem:[%s15166_s14 + $0x24] sm:$0xf0] }
0x20c5   :  { %v9288_v9 = vpack.c.b16 %v9287_v56, %v9287_v56  ;;  %v9362_v29 = vpack.c.b16 %v9361_v26, %v9361_v26  ;;  %v9525_v10 = vsel %vm9286_vm6, %v9524_v3, %v9523_v40  ;;  %v9442_v54 = vsel %vm9286_vm6, %v9441_v48, %v9440_v62  ;;  %9782 = vmatpush.bf16.msrb.mxu1 %v10899_v11  ;;  %v10864_v40 = vld [vmem:[%s15166_s14 + $0x28] sm:$0xf0]  ;;  %v11097_v56 = vld [vmem:[%s15166_s14 + $0x14] sm:$0xf0]  ;;  %v11096_v26 = vld [vmem:[%s15166_s14 + $0x14] sm:$0xf] }
0x20c6   :  { %v9526_v7 = vpack.c.b16 %v9525_v10, %v9525_v10  ;;  %v9443_v21 = vpack.c.b16 %v9442_v54, %v9442_v54  ;;  %v10871_v13 = vor.u32 %v11101_v12, %v10870_v50  ;;  %v10875_v52 = vor.u32 %v11100_v20, %v10872_v4  ;;  %v10936_v1 = vld [vmem:[%s15166_s14 + $0xb8] sm:$0xf0]  ;;  %v10926_v47 = vld [vmem:[%s15166_s14 + $0xa0] sm:$0xf]  ;;  %v11115_v41 = vld [vmem:[%s15166_s14 + $0xa4] sm:$0xf0] }
0x20c7   :  { %10751 = vmatmul.msk.bf16.vlgmr.msra.gmra.mxu2 %vm421_vm4, %v9288_v9  ;;  %10752 = vmatmul.msk.bf16.vlgmr.msrb.gmra.mxu3 %vm421_vm4, %v9288_v9  ;;  %v10863_v57 = vor.u32 %v11099_v45, %v10862_v55  ;;  %v10867_v3 = vor.u32 %v11098_v39, %v10864_v40  ;;  %v10855_v9 = vor.u32 %v11097_v56, %v10854_v43  ;;  %v10928_v48 = vld [vmem:[%s15166_s14 + $0xa8] sm:$0xf0]  ;;  %v10918_v35 = vld [vmem:[%s15166_s14 + $0x90] sm:$0xf]  ;;  %v11113_v53 = vld [vmem:[%s15166_s14 + $0x94] sm:$0xf0] }
0x20c8   :  { %10777 = vmatmul.msk.bf16.vlgmr.msra.gmra.mxu0 %vm421_vm4, %v9362_v29  ;;  %10841 = vmatmul.msk.bf16.vlgmr.msra.gmra.mxu1 %vm421_vm4, %v9526_v7  ;;  %v10939_v0 = vor.u32 %v11116_v42, %v10936_v1  ;;  %v10927_v44 = vor.u32 %v11115_v41, %v10926_v47  ;;  %v11112_v33 = vld [vmem:[%s15166_s14 + $0x94] sm:$0xf]  ;;  %v10920_v60 = vld [vmem:[%s15166_s14 + $0x98] sm:$0xf0]  ;;  %v10910_v17 = vld [vmem:[%s15166_s14 + $0x80] sm:$0xf] }
0x20c9   :  { %9578 = vmatpush.bf16.msra.mxu2 %v10840_v5  ;;  %9755 = vmatpush.bf16.msrb.mxu3 %v10903_v59  ;;  %v10846_v5 = vld [vmem:[%s15166_s14] sm:$0xf]  ;;  %v10919_v59 = vor.u32 %v11113_v53, %v10918_v35  ;;  %v10923_v6 = vor.u32 %v11112_v33, %v10920_v60  ;;  %v11110_v18 = vld [vmem:[%s15166_s14 + $0x84] sm:$0xf]  ;;  %v10912_v31 = vld [vmem:[%s15166_s14 + $0x88] sm:$0xf0] }
0x20ca   :  { %9783 = vmatpush.bf16.msrb.mxu1 %v10891_v34  ;;  %v10915_v58 = vor.u32 %v11110_v18, %v10912_v31  ;;  %v9588_v34 = vld [vmem:[%s15167_s17] ss:$4 sm:$0x3]  ;;  %v11610_v47 = vmov 192.0  }
0x20cb   :  { %v9590_v16 = vperm.slane %v9588_v34, 0  ;;  %v9591_v39 = vperm.slane %v9588_v34, 1  ;;  %11596 = vrcp.f32 %v11610_v47 }
0x20cd   :  { %9579 = vmatpush.bf16.msra.mxu2 %v10832_v51  ;;  %9756 = vmatpush.bf16.msrb.mxu3 %v10895_v2  ;;  %v10935_v51 = vor.u32 %v11117_v32, %v10934_v38  ;;  %v11111_v2 = vld [vmem:[%s15166_s14 + $0x84] sm:$0xf0] }
0x20ce   :  { %9784 = vmatpush.bf16.msrb.mxu1 %v10883_v25  ;;  %v10911_v11 = vor.u32 %v11111_v2, %v10910_v17 }
0x20cf   :  { %9772 = vmatpush.bf16.msra.mxu0 %v10935_v51 }
0x20d1   :  { %9580 = vmatpush.bf16.msra.mxu2 %v10824_v15  ;;  %9757 = vmatpush.bf16.msrb.mxu3 %v10887_v22  ;;  %v11114_v15 = vld [vmem:[%s15166_s14 + $0xa4] sm:$0xf]  ;;  %v11597_v41 = vpop.eup %11596 }
0x20d2   :  { %9785 = vmatpush.bf16.msrb.mxu1 %v10875_v52  ;;  %v10931_v62 = vor.u32 %v11114_v15, %v10928_v48  ;;  %v9816_v15 = vmul.f32 192.0, %v11597_v41  ;;  %vm9820_vm10 = vweird.f32 %v11597_v41 }
0x20d3   :  { %9773 = vmatpush.bf16.msra.mxu0 %v10927_v44 }
0x20d4   :  { %v9817_v44 = vsub.f32 1.0, %v9816_v15 }
0x20d5   :  { %9758 = vmatpush.bf16.msrb.mxu3 %v10879_v30 }
0x20d6   :  { %9786 = vmatpush.bf16.msrb.mxu1 %v10867_v3  ;;  %v9818_v48 = vmul.f32 %v11597_v41, %v9817_v44 }
0x20d7   :  { %10778 = vmatmul.msk.bf16.vlgmr.msrb.gmra.mxu2 %vm421_vm4, %v9362_v29  ;;  %10809 = vmatmul.msk.bf16.vlgmr.msra.gmra.mxu3 %vm421_vm4, %v9443_v21  ;;  %v10856_v29 = vld [vmem:[%s15166_s14 + $0x18] sm:$0xf0] }
0x20d8   :  { %10810 = vmatmul.msk.bf16.vlgmr.msrb.gmra.mxu0 %vm421_vm4, %v9443_v21  ;;  %v10859_v10 = vor.u32 %v11096_v26, %v10856_v29  ;;  %9798 = vmatpush.bf16.msrb.mxu2 %v10939_v0 }
0x20d9   :  { %9759 = vmatpush.bf16.msrb.mxu3 %v10871_v13  ;;  %9774 = vmatpush.bf16.msra.mxu0 %v10919_v59 }
0x20da   :  { %9787 = vmatpush.bf16.msrb.mxu1 %v10859_v10 }
0x20dc   :  { %9799 = vmatpush.bf16.msrb.mxu2 %v10931_v62  ;;  %v9819_v62 = vadd.f32 %v11597_v41, %v9818_v48 }
0x20dd   :  { %9760 = vmatpush.bf16.msrb.mxu3 %v10863_v57  ;;  %9775 = vmatpush.bf16.msra.mxu0 %v10911_v11 }
0x20de   :  { %9788 = vmatpush.bf16.msrb.mxu1 %v10851_v36 }
0x20e0   :  { %9800 = vmatpush.bf16.msrb.mxu2 %v10923_v6 }
0x20e1   :  { %9761 = vmatpush.bf16.msrb.mxu3 %v10855_v9 }
0x20e4   :  { %9801 = vmatpush.bf16.msrb.mxu2 %v10915_v58 }
0x20e7   :  { %10842 = vmatmul.msk.bf16.vlgmr.msra.gmra.mxu2 %vm421_vm4, %v9526_v7  ;;  %v10847_v7 = vor.u32 %v11095_v61, %v10846_v5  ;;  %vm9751_vm4 = vcmask 523264   ;;  %v10843_v5 = vld [vmem:[%s15167_s17 + $0x1] ss:$4 sm:$0x3] }
0x20e8   :  { %v9627_v23 = vperm.slane %v10843_v5, 0 }
0x20e9   :  { %9762 = vmatpush.bf16.msrb.mxu3 %v10847_v7  ;;  %v9628_v7 = vperm.slane %v10843_v5, 1 }
0x2145   :  { %v9405_v19 = vpop.f32.mrf.mxu0  ;;  %v9569_v37 = vpop.f32.mrf.mxu1 }
0x214a   :  { %v9331_v54 = vpop.f32.mrf.mxu2  ;;  %v9344_v21 = vpop.f32.mrf.mxu3 }
0x214b   :  { %v9406_v63 = vadd.f32 %v9405_v19, %v9331_v54  ;;  %v9821_v54 = vsel %vm9820_vm10, %v11597_v41, %v9819_v62 }
0x214d   :  { %v9407_v46 = vpop.f32.mrf.mxu0  ;;  %v9571_v49 = vpop.f32.mrf.mxu1 }
0x2152   :  { %v9333_v27 = vpop.f32.mrf.mxu2  ;;  %v9346_v22 = vpop.f32.mrf.mxu3 }
0x2153   :  { %v10942_v27 = vld [vmem:[%s15167_s17 + $0x2] ss:$4 sm:$0x3] }
0x2155   :  { %v9499_v28 = vpop.f32.mrf.mxu0 }
0x215a   :  { %v9418_v8 = vpop.f32.mrf.mxu2  ;;  %v9486_v24 = vpop.f32.mrf.mxu3 }
0x215b   :  { %v9503_v30 = vadd.f32 %v9486_v24, %v9406_v63  ;;  %v9419_v55 = vadd.f32 %v9418_v8, %v9344_v21  ;;  %v9846_v63 = vperm.slane %v10942_v27, 0  ;;  %v9847_v8 = vperm.slane %v10942_v27, 1 }
0x215d   :  { %v9586_v25 = vadd.f32 %v9569_v37, %v9503_v30  ;;  %v9501_v50 = vpop.f32.mrf.mxu0  ;;  %v9504_v45 = vadd.f32 %v9499_v28, %v9419_v55  ;;  %v10943_v28 = vld [vmem:[%s15167_s17 + $0x3] ss:$4 sm:$0x3] }
0x215e   :  { %v9853_v30 = vperm.slane %v10943_v28, 0 }
0x215f   :  { %v9594_v12 = vadd.f32 %v9590_v16, %v9586_v25  ;;  %v9854_v16 = vperm.slane %v10943_v28, 1 }
0x2161   :  { %v9596_v20 = vmax.f32 %v9594_v12, 0.0 }
0x2162   :  { %v9420_v13 = vpop.f32.mrf.mxu2  ;;  %v9488_v4 = vpop.f32.mrf.mxu3 }
0x2163   :  { %v9622_v52 = vpack.c.bf16 %v9596_v20, %v9596_v20 }
0x2165   :  { %9763 = vmatmul.bf16.vlgmr.msrb.gmra.mxu3 %v9622_v52  ;;  %9789 = vmatmul.bf16.vlgmr.msrb.gmra.mxu1 %v9622_v52 }
0x216a   :  { %v9582_v57 = vpop.f32.mrf.mxu2 }
0x216b   :  { %v9587_v40 = vadd.f32 %v9582_v57, %v9504_v45 }
0x216d   :  { %v9595_v3 = vadd.f32 %v9591_v39, %v9587_v40 }
0x216f   :  { %v9597_v43 = vmax.f32 %v9595_v3, 0.0 }
0x2171   :  { %v9623_v56 = vpack.c.bf16 %v9597_v43, %v9597_v43 }
0x2172   :  { %v9584_v26 = vpop.f32.mrf.mxu2 }
0x2173   :  { %10940 = vmatmul.msk.bf16.vlgmr.msra.gmra.mxu0 %vm9751_vm4, %v9623_v56  ;;  %10941 = vmatmul.msk.bf16.vlgmr.msrb.gmra.mxu2 %vm9751_vm4, %v9623_v56 }
0x21e2   :  { %v9790_v9 = vpop.f32.mrf.mxu1 }
0x21e3   :  { %v9791_v36 = vadd.f32 %v9790_v9, %v9628_v7 }
0x21e8   :  { %v9764_v29 = vpop.f32.mrf.mxu3 }
0x21e9   :  { %v9765_v38 = vadd.f32 %v9764_v29, %v9627_v23 }
0x21ea   :  { %v9792_v10 = vpop.f32.mrf.mxu1 }
0x21f0   :  { %v9766_v61 = vpop.f32.mrf.mxu3  ;;  %v9777_v14 = vpop.f32.mrf.mxu0 }
0x21f1   :  { %v9778_v51 = vadd.f32 %v9777_v14, %v9765_v38 }
0x21f6   :  { %v9803_v32 = vpop.f32.mrf.mxu2 }
0x21f7   :  { %v9804_v42 = vadd.f32 %v9803_v32, %v9791_v36 }
0x21f8   :  { %v9779_v1 = vpop.f32.mrf.mxu0 }
0x21f9   :  { %v9811_v0 = vsel %vm9751_vm4, %v9804_v42, 0.0 }
0x21fa   :  { %v9812_v19 = vadd.f32 %v9811_v0, %v9778_v51 }
0x21fc   :  { %9813 = vadd.xlane.f32.xlu0 %v9812_v19 }
0x21fe   :  { %v9805_v37 = vpop.f32.mrf.mxu2 }
0x226f   :  { %v9814_v21 = vpop.xlane.xlu0 %9813 }
0x2270   :  { %v9822_v35 = vmul.f32 %v9821_v54, %v9814_v21 }
0x2272   :  { %v9823_v53 = vsub.f32 %v9778_v51, %v9822_v35  ;;  %v9824_v33 = vsub.f32 %v9804_v42, %v9822_v35 }
0x2274   :  { %v9825_v59 = vmul.f32 %v9823_v53, %v9823_v53  ;;  %v9826_v60 = vmul.f32 %v9824_v33, %v9824_v33 }
0x2276   :  { %v9827_v6 = vsel %vm9751_vm4, %v9826_v60, 0.0 }
0x2277   :  { %v9828_v46 = vadd.f32 %v9827_v6, %v9825_v59 }
0x2279   :  { %9829 = vadd.xlane.f32.xlu1 %v9828_v46 }
0x22ec   :  { %v9830_v49 = vpop.xlane.xlu1 %9829 }
0x22ed   :  { %v9831_v17 = vmul.f32 %v9830_v49, %v9821_v54 }
0x22ef   :  { %v9832_v2 = vadd.f32 1e-05, %v9831_v17 }
0x22f1   :  { %11598 = vrsqrt.f32 %v9832_v2  ;;  %vm9839_vm14 = vweird.f32 %v9832_v2 }
0x22f7   :  { %v11599_v18 = vpop.eup %11598 }
0x22f8   :  { %v9834_v11 = vmul.f32 %v11599_v18, %v9832_v2  ;;  %vm9840_vm11 = vweird.f32 %v11599_v18 }
0x22f9   :  { %vm9841_vm15 = vmor %vm9839_vm14, %vm9840_vm11 }
0x22fa   :  { %v9835_v31 = vmul.f32 %v11599_v18, %v9834_v11 }
0x22fc   :  { %v9836_v58 = vmul.f32 0.5, %v9835_v31 }
0x22fe   :  { %v9837_v22 = vsub.f32 1.5, %v9836_v58 }
0x2300   :  { %v9838_v34 = vmul.f32 %v11599_v18, %v9837_v22 }
0x2302   :  { %v9842_v24 = vsel %vm9841_vm15, %v11599_v18, %v9838_v34 }
0x2303   :  { %v9843_v25 = vmul.f32 %v9842_v24, %v9823_v53  ;;  %v9844_v50 = vmul.f32 %v9842_v24, %v9824_v33 }
0x2305   :  { %v9850_v12 = vmul.f32 %v9846_v63, %v9843_v25  ;;  %v9851_v20 = vmul.f32 %v9847_v8, %v9844_v50 }
0x2307   :  { %v9857_v13 = vadd.f32 %v9853_v30, %v9850_v12  ;;  %v9858_v4 = vadd.f32 %v9854_v16, %v9851_v20 }
0x2309   :  { %9859 = vst [vmem:[%s15168_s18] sm:$0xff] %v9857_v13 }
0x230a   :  { %9860 = vst.msk [vmem:[%s15168_s18 + $0x8] sm:$0xff] %vm9751_vm4, %v9858_v4 }

</bundles_post_ra>
